<compile_context>
chip_gen: v6e
topology: v6e:2x2x1
jax: 0.10.0
libtpu: 0.0.40
codegen_flags: <defaults>
</compile_context>

<pallas_src>
from functools import partial

import numpy as np
import jax
import jax.numpy as jnp
from jax.experimental import pallas as pl
from jax.experimental.pallas import tpu as pltpu


# -----------------------------------------------------------------------------
# Pallas kernel: whole LocalGraph forward for a tile of tn rows of (B*T).
# Working layout is (tn, J*C) lane-dense everywhere.
# -----------------------------------------------------------------------------
def local_graph_kernel(
    x_ref,        # (tn, J*Cin)        f32
    a_ref,        # (J*Cin, 2*J*Cout)  bf16, [gcn_sym | gcn_con] with BN1/BN2 scale folded
    shift12_ref,  # (1, 2*J*Cout)      f32, BN1/BN2 shift
    wcat_ref,     # (2*J*Cout, J*Cout) bf16, block-diag 1x1 cat-conv with BN3 scale folded
    shift3_ref,   # (1, J*Cout)        f32, BN3 shift
    o_ref,        # (tn, J*Cout)       f32
    *,
    n_sub,
):
    tn = x_ref.shape[0]
    rows = tn // n_sub
    a = a_ref[...]
    w = wcat_ref[...]
    shift12 = shift12_ref[...]
    shift3 = shift3_ref[...]

    # Static unroll over sub-tiles: breaks the matmul->epilogue->matmul data
    # dependency so stage-2 of sub-tile s can overlap stage-1 of sub-tile s+1.
    for s in range(n_sub):
        lo, hi = s * rows, (s + 1) * rows
        xs = x_ref[lo:hi, :].astype(a.dtype)                       # bf16 for the MXU
        # Stage 1: both SemCHGraphConv branches as one MXU matmul (f32 acc).
        g = jnp.dot(xs, a, preferred_element_type=jnp.float32)
        g = jnp.maximum(g + shift12, 0.0)                          # BN shift + ReLU (f32)
        # Stage 2: concat + 1x1 cat-conv as one block-diagonal MXU matmul.
        z = jnp.dot(g.astype(w.dtype), w, preferred_element_type=jnp.float32)
        z = jnp.maximum(z + shift3, 0.0)                           # BN shift + ReLU (f32)
        o_ref[lo:hi, :] = z.astype(o_ref.dtype)


# -----------------------------------------------------------------------------
# Tiling / VMEM sizing helpers
# -----------------------------------------------------------------------------
def _pick_tile(N, *, target=512, min_rows=128, num_cores=2):
    """Rows per grid step.

    grid=1 for small N (per-step pipeline overhead ~0.35us dwarfs the compute
    of tiny tiles); otherwise the largest sublane-aligned divisor of N in
    [min_rows, target], preferring an even step count so both v7x TensorCores
    get work.  The result is always a multiple of 8 or equal to N (valid
    (8,128) blocks, unmasked stores)."""
    if N <= max(target, num_cores * min_rows):
        return N
    cands = [d for d in range(8, min(target, N) + 1, 8)
             if N % d == 0 and d >= min_rows]
    if not cands:
        return N                              # no aligned divisor: single full step
    even = [d for d in cands if (N // d) % num_cores == 0]
    return max(even) if even else max(cands)


def _vmem_limit_bytes(tn, jc_in, jc_out, weight_bytes):
    """Sized from the actual buffer plan (double-buffered f32 x/out tiles,
    single-buffered weights, f32 stage-1 intermediate) plus compiler headroom;
    clamped well under v7x's 64 MiB physical VMEM."""
    io = 2 * tn * (jc_in + jc_out) * 4          # x + out tiles, double-buffered
    inter = 2 * tn * (2 * jc_out) * 4           # stage-1 intermediate + slack
    need = io + inter + weight_bytes + (8 << 20)
    return int(min(max(need, 16 << 20), 48 << 20))


# -----------------------------------------------------------------------------
# Wrapper
# -----------------------------------------------------------------------------
def local_graph_forward(x, kp, *, tn=None):
    B, T, J, Cin = x.shape
    N = B * T
    jc_in = J * Cin
    jc_out = kp["w_cat"].shape[1]
    Cout = jc_out // J

    if tn is None:
        tn = _pick_tile(N)
    assert N % tn == 0 and (tn == N or tn % 8 == 0)

    # Two sub-tiles inside a step only when each half stays sublane-aligned.
    n_sub = 2 if (tn % 16 == 0 and tn >= 16) else 1

    x_flat = x.reshape(N, jc_in)                     # lane-dense (N, J*Cin) input

    weight_bytes = (kp["a_full"].size * kp["a_full"].dtype.itemsize
                    + kp["w_cat"].size * kp["w_cat"].dtype.itemsize)
    vmem_limit = _vmem_limit_bytes(tn, jc_in, jc_out, weight_bytes)

    def run(single_buffer_weights):
        def const_spec(a, single_buffer=False):
            nd = a.ndim
            kwargs = {}
            if single_buffer:
                # Grid-invariant operand: one buffer is enough (it is never
                # re-fetched), default double-buffering just burns VMEM.
                kwargs["pipeline_mode"] = pl.Buffered(1)
            return pl.BlockSpec(a.shape, lambda i, _nd=nd: (0,) * _nd, **kwargs)

        return pl.pallas_call(
            partial(local_graph_kernel, n_sub=n_sub),
            out_shape=jax.ShapeDtypeStruct((N, jc_out), jnp.float32),
            grid_spec=pltpu.PrefetchScalarGridSpec(
                num_scalar_prefetch=0,
                grid=(N // tn,),
                in_specs=[
                    pl.BlockSpec((tn, jc_in), lambda i: (i, 0)),
                    const_spec(kp["a_full"], single_buffer_weights),
                    const_spec(kp["shift12"]),
                    const_spec(kp["w_cat"], single_buffer_weights),
                    const_spec(kp["shift3"]),
                ],
                out_specs=pl.BlockSpec((tn, jc_out), lambda i: (i, 0)),
            ),
            compiler_params=pltpu.CompilerParams(
                dimension_semantics=("parallel",),
                vmem_limit_bytes=vmem_limit,
            ),
        )(x_flat, kp["a_full"], kp["shift12"], kp["w_cat"], kp["shift3"])

    try:
        out = run(True)
    except Exception:
        # TODO(synk): drop this fallback once pl.Buffered(1) is guaranteed on
        # the installed JAX; semantics are identical, only VMEM usage differs.
        out = run(False)

    return out.reshape(B, T, J, Cout)


# -----------------------------------------------------------------------------
# Parameter / adjacency construction (glue, mirrors LocalGraph.__init__)
# -----------------------------------------------------------------------------
def make_adjacencies(J=16):
    # 16-joint skeleton (hip, r-leg, l-leg, spine, head, l-arm, r-arm)
    parents = [-1, 0, 1, 2, 0, 4, 5, 0, 7, 8, 8, 10, 11, 8, 13, 14]
    adj = np.zeros((J, J), dtype=np.float32)
    for j, par in enumerate(parents):
        if par >= 0:
            adj[j, par] = 1.0
            adj[par, j] = 1.0
    adj += np.eye(J, dtype=np.float32)

    store_2 = [3, 6, 9, 12, 15]
    joints_left = [4, 5, 6, 10, 11, 12]
    joints_right = [1, 2, 3, 13, 14, 15]

    adj_sym = np.zeros_like(adj)
    for i in range(J):
        for j in range(J):
            if i == j:
                adj_sym[i][j] = 1.0
            if i in joints_left:
                idx = joints_left.index(i)
                adj_sym[i][joints_right[idx]] = 1.0
            if i in joints_right:
                idx = joints_right.index(i)
                adj_sym[i][joints_left[idx]] = 1.0

    adj_1 = adj.copy()
    for i in range(J):
        if i in store_2:
            adj_1[i] = 0.0
    adj_2 = adj @ adj
    for i in range(J):
        if i not in store_2:
            adj_2[i] = 0.0
    adj_con = adj_1 + adj_2
    return adj_sym, adj_con


def build_channel_softmax(adj, e):
    # reproduces: adj_rep = -9e15*ones; adj_rep[mask] = e.view(-1); softmax(dim=2)
    Cout = e.shape[0]
    J = adj.shape[0]
    mask = adj > 0
    full = np.full((Cout, J, J), -9.0e15, dtype=np.float32)
    for c in range(Cout):
        m = np.full((J, J), -9.0e15, dtype=np.float32)
        m[mask] = e[c]
        full[c] = m
    mx = full.max(axis=2, keepdims=True)
    ex = np.exp(full - mx)
    return (ex / ex.sum(axis=2, keepdims=True)).astype(np.float32)   # (Cout, J, J)


def make_params(key, J, Cin, Cout):
    adj_sym, adj_con = make_adjacencies(J)
    ks = jax.random.split(key, 8)

    def xavier(k, shape):
        fan_in, fan_out = shape[-2], shape[-1]
        bound = 1.414 * np.sqrt(6.0 / (fan_in + fan_out))
        return jax.random.uniform(k, shape, jnp.float32, -bound, bound)

    W_sym = xavier(ks[0], (2, Cin, Cout))
    W_con = xavier(ks[1], (2, Cin, Cout))

    nnz_sym = int((adj_sym > 0).sum())
    nnz_con = int((adj_con > 0).sum())
    e_sym = np.asarray(jax.random.uniform(ks[2], (Cout, nnz_sym), jnp.float32, 0.5, 1.5))
    e_con = np.asarray(jax.random.uniform(ks[3], (Cout, nnz_con), jnp.float32, 0.5, 1.5))

    soft_sym = build_channel_softmax(adj_sym, e_sym)
    soft_con = build_channel_softmax(adj_con, e_con)

    def bn_fold(k, C):
        kg, kb, km, kv = jax.random.split(k, 4)
        gamma = jax.random.uniform(kg, (C,), jnp.float32, 0.5, 1.5)
        beta = jax.random.uniform(kb, (C,), jnp.float32, -0.2, 0.2)
        mean = jax.random.uniform(km, (C,), jnp.float32, -0.5, 0.5)
        var = jax.random.uniform(kv, (C,), jnp.float32, 0.5, 1.5)
        scale = gamma / jnp.sqrt(var + 1e-5)
        shift = beta - mean * scale
        return scale, shift

    bn1_scale, bn1_shift = bn_fold(ks[4], Cout)
    bn2_scale, bn2_shift = bn_fold(ks[5], Cout)
    bn3_scale, bn3_shift = bn_fold(ks[6], Cout)

    # cat_conv: Conv2d(2*Cout, Cout, 1, bias=False); weight (Cout, 2*Cout)
    wconv = xavier(ks[7], (Cout, 2 * Cout))

    return {
        "W_sym": W_sym, "W_con": W_con,
        "soft_sym": jnp.asarray(soft_sym), "soft_con": jnp.asarray(soft_con),
        "bn1_scale": bn1_scale, "bn1_shift": bn1_shift,
        "bn2_scale": bn2_scale, "bn2_shift": bn2_shift,
        "bn3_scale": bn3_scale, "bn3_shift": bn3_shift,
        "wconv": wconv,
    }


def pack_kernel_params(p, J, Cin, Cout, *, matmul_dtype=jnp.bfloat16):
    """Host-side fusion of all LocalGraph parameters into 4 kernel operands.
    BN scales are folded into the weight columns; weights are cast to bf16."""
    eyeJ = np.eye(J, dtype=np.float32)

    def branch_matrix(W, soft):
        # A[(k,c),(j,o)] = W0[c,o]*diag[j,o]*[k==j] + W1[c,o]*off[j,k,o]
        W0 = np.asarray(W[0], np.float32)                     # (Cin, Cout)
        W1 = np.asarray(W[1], np.float32)
        soft = np.asarray(soft, np.float32)                   # (Cout, J, J)
        diag = soft[:, np.arange(J), np.arange(J)].T          # (J, Cout)
        off = np.transpose(soft, (1, 2, 0)) * (1.0 - eyeJ)[:, :, None]  # (J, K, Cout)
        a = (np.einsum('co,jo,kj->kcjo', W0, diag, eyeJ)
             + np.einsum('co,jko->kcjo', W1, off))
        return a.reshape(J * Cin, J * Cout)

    a_sym = branch_matrix(p["W_sym"], p["soft_sym"])
    a_con = branch_matrix(p["W_con"], p["soft_con"])
    a_full = np.concatenate([a_sym, a_con], axis=1)           # (J*Cin, 2*J*Cout)

    wconv = np.asarray(p["wconv"], np.float32)                # (Cout, 2*Cout)
    wcat_x = wconv[:, :Cout].T                                # (Cout, Cout)
    wcat_y = wconv[:, Cout:].T
    blk_x = np.einsum('jk,po->jpko', eyeJ, wcat_x).reshape(J * Cout, J * Cout)
    blk_y = np.einsum('jk,po->jpko', eyeJ, wcat_y).reshape(J * Cout, J * Cout)
    w_cat = np.concatenate([blk_x, blk_y], axis=0)            # (2*J*Cout, J*Cout)

    def tileJ(v):
        return np.tile(np.asarray(v, np.float32).reshape(-1), J)

    scale12 = np.concatenate([tileJ(p["bn1_scale"]), tileJ(p["bn2_scale"])])
    shift12 = np.concatenate([tileJ(p["bn1_shift"]), tileJ(p["bn2_shift"])])
    scale3 = tileJ(p["bn3_scale"])
    shift3 = tileJ(p["bn3_shift"])

    # Fold the (inference-mode) BN scales into the weight columns host-side so
    # the kernel epilogue is shift + ReLU only (saves two VPU multiplies/step).
    a_full = a_full * scale12[None, :]
    w_cat = w_cat * scale3[None, :]

    return {
        "a_full": jnp.asarray(a_full, dtype=matmul_dtype),
        "w_cat": jnp.asarray(w_cat, dtype=matmul_dtype),
        "shift12": jnp.asarray(shift12.reshape(1, -1), dtype=jnp.float32),
        "shift3": jnp.asarray(shift3.reshape(1, -1), dtype=jnp.float32),
    }


# -----------------------------------------------------------------------------
# Pure-JAX reference (mirrors the torch forward math) for validation
# -----------------------------------------------------------------------------
def reference_forward(x, p):
    J = x.shape[2]
    eye = jnp.eye(J, dtype=jnp.float32)

    def sem_gcn(xin, W, soft):
        h0 = jnp.einsum("btjc,cd->btjd", xin, W[0])
        h1 = jnp.einsum("btjc,cd->btjd", xin, W[1])
        a_d = soft * eye[None]
        a_o = soft * (1.0 - eye)[None]
        return (jnp.einsum("ojk,btko->btjo", a_d, h0)
                + jnp.einsum("ojk,btko->btjo", a_o, h1))

    xg = sem_gcn(x, p["W_sym"], p["soft_sym"])
    yg = sem_gcn(x, p["W_con"], p["soft_con"])
    xg = jnp.maximum(xg * p["bn1_scale"] + p["bn1_shift"], 0.0)
    yg = jnp.maximum(yg * p["bn2_scale"] + p["bn2_shift"], 0.0)
    z = jnp.concatenate([xg, yg], axis=-1)
    z = jnp.einsum("btjc,oc->btjo", z, p["wconv"])
    z = jnp.maximum(z * p["bn3_scale"] + p["bn3_shift"], 0.0)
    return z


if __name__ == "__main__":
    key = jax.random.PRNGKey(0)
    B, T, J, Cin, Cout = 2, 16, 16, 32, 32   # N = B*T = 32 -> tn = 32, grid of 1
    kx, kparam = jax.random.split(key)
    x = jax.random.normal(kx, (B, T, J, Cin), jnp.float32)

    params = make_params(kparam, J, Cin, Cout)
    kparams = pack_kernel_params(params, J, Cin, Cout)

    out = jax.block_until_ready(local_graph_forward(x, kparams))
    assert out.shape == (B, T, J, Cout)

    ref = reference_forward(x, params)
    # bf16 MXU inputs (f32 accumulation) across two chained matmuls: ~1e-2
    # worst-case abs/rel error -> validate at 3e-2.
    np.testing.assert_allclose(np.asarray(out), np.asarray(ref), rtol=3e-2, atol=3e-2)

    print("KERNEL_OK")
</pallas_src>

<mosaic_0001>
module attributes {stable_mosaic.version = 11 : i64} {
  func.func @local_graph_kernel(%arg0: i32, %arg1: memref<32x512xf32, #tpu.memory_space<vmem>>, %arg2: memref<512x1024xbf16, #tpu.memory_space<vmem>>, %arg3: memref<1x1024xf32, #tpu.memory_space<vmem>>, %arg4: memref<1024x512xbf16, #tpu.memory_space<vmem>>, %arg5: memref<1x512xf32, #tpu.memory_space<vmem>>, %arg6: memref<32x512xf32, #tpu.memory_space<vmem>>) attributes {dimension_semantics = [#tpu.dimension_semantics<parallel>], iteration_bounds = array<i64: 1>, scalar_prefetch = 0 : i64, scratch_operands = 0 : i64, tpu.core_type = #tpu.core_type<tc>, window_params = [{transform_indices = @transform_0, window_bounds = array<i64: 32, 512>}, {pipeline_mode = #tpu.pipeline_mode<synchronous>, transform_indices = @transform_1, window_bounds = array<i64: 512, 1024>}, {pipeline_mode = #tpu.pipeline_mode<synchronous>, transform_indices = @transform_2, window_bounds = array<i64: 1, 1024>}, {pipeline_mode = #tpu.pipeline_mode<synchronous>, transform_indices = @transform_3, window_bounds = array<i64: 1024, 512>}, {pipeline_mode = #tpu.pipeline_mode<synchronous>, transform_indices = @transform_4, window_bounds = array<i64: 1, 512>}, {transform_indices = @transform_5, window_bounds = array<i64: 32, 512>}]} {
    %c0 = arith.constant 0 : index
    %c0_0 = arith.constant 0 : index
    %0 = vector.load %arg2[%c0, %c0_0] : memref<512x1024xbf16, #tpu.memory_space<vmem>>, vector<512x1024xbf16>
    %c0_1 = arith.constant 0 : index
    %c0_2 = arith.constant 0 : index
    %1 = vector.load %arg4[%c0_1, %c0_2] : memref<1024x512xbf16, #tpu.memory_space<vmem>>, vector<1024x512xbf16>
    %c0_3 = arith.constant 0 : index
    %c0_4 = arith.constant 0 : index
    %2 = vector.load %arg3[%c0_3, %c0_4] : memref<1x1024xf32, #tpu.memory_space<vmem>>, vector<1x1024xf32>
    %c0_5 = arith.constant 0 : index
    %c0_6 = arith.constant 0 : index
    %3 = vector.load %arg5[%c0_5, %c0_6] : memref<1x512xf32, #tpu.memory_space<vmem>>, vector<1x512xf32>
    %c0_7 = arith.constant 0 : index
    %c0_8 = arith.constant 0 : index
    %4 = vector.load %arg1[%c0_7, %c0_8] : memref<32x512xf32, #tpu.memory_space<vmem>>, vector<16x512xf32>
    %5 = arith.truncf %4 : vector<16x512xf32> to vector<16x512xbf16>
    %cst = arith.constant dense<0.000000e+00> : vector<16x1024xf32>
    %6 = tpu.matmul %5, %0, %cst {dimension_numbers = #tpu.dot_dimension_numbers<[1], [0], [0], [1], [0, 0, 1, 1], [], []>} : vector<16x512xbf16>, vector<512x1024xbf16>, vector<16x1024xf32> -> vector<16x1024xf32>
    %7 = vector.broadcast %2 : vector<1x1024xf32> to vector<16x1024xf32>
    %8 = arith.addf %6, %7 : vector<16x1024xf32>
    %cst_9 = arith.constant 0.000000e+00 : f32
    %9 = vector.broadcast %cst_9 : f32 to vector<16x1024xf32>
    %10 = arith.maximumf %8, %9 : vector<16x1024xf32>
    %11 = arith.truncf %10 : vector<16x1024xf32> to vector<16x1024xbf16>
    %cst_10 = arith.constant dense<0.000000e+00> : vector<16x512xf32>
    %12 = tpu.matmul %11, %1, %cst_10 {dimension_numbers = #tpu.dot_dimension_numbers<[1], [0], [0], [1], [0, 0, 1, 1], [], []>} : vector<16x1024xbf16>, vector<1024x512xbf16>, vector<16x512xf32> -> vector<16x512xf32>
    %13 = vector.broadcast %3 : vector<1x512xf32> to vector<16x512xf32>
    %14 = arith.addf %12, %13 : vector<16x512xf32>
    %cst_11 = arith.constant 0.000000e+00 : f32
    %15 = vector.broadcast %cst_11 : f32 to vector<16x512xf32>
    %16 = arith.maximumf %14, %15 : vector<16x512xf32>
    %c0_12 = arith.constant 0 : index
    %c0_13 = arith.constant 0 : index
    %17 = vector.load %arg6[%c0_12, %c0_13] : memref<32x512xf32, #tpu.memory_space<vmem>>, vector<16x512xf32>
    tpu.vector_store %arg6[%c0_12, %c0_13], %16 {strides = array<i32>} : memref<32x512xf32, #tpu.memory_space<vmem>>, vector<16x512xf32>,
    %c16 = arith.constant 16 : index
    %c0_14 = arith.constant 0 : index
    %18 = vector.load %arg1[%c16, %c0_14] : memref<32x512xf32, #tpu.memory_space<vmem>>, vector<16x512xf32>
    %19 = arith.truncf %18 : vector<16x512xf32> to vector<16x512xbf16>
    %cst_15 = arith.constant dense<0.000000e+00> : vector<16x1024xf32>
    %20 = tpu.matmul %19, %0, %cst_15 {dimension_numbers = #tpu.dot_dimension_numbers<[1], [0], [0], [1], [0, 0, 1, 1], [], []>} : vector<16x512xbf16>, vector<512x1024xbf16>, vector<16x1024xf32> -> vector<16x1024xf32>
    %21 = vector.broadcast %2 : vector<1x1024xf32> to vector<16x1024xf32>
    %22 = arith.addf %20, %21 : vector<16x1024xf32>
    %cst_16 = arith.constant 0.000000e+00 : f32
    %23 = vector.broadcast %cst_16 : f32 to vector<16x1024xf32>
    %24 = arith.maximumf %22, %23 : vector<16x1024xf32>
    %25 = arith.truncf %24 : vector<16x1024xf32> to vector<16x1024xbf16>
    %cst_17 = arith.constant dense<0.000000e+00> : vector<16x512xf32>
    %26 = tpu.matmul %25, %1, %cst_17 {dimension_numbers = #tpu.dot_dimension_numbers<[1], [0], [0], [1], [0, 0, 1, 1], [], []>} : vector<16x1024xbf16>, vector<1024x512xbf16>, vector<16x512xf32> -> vector<16x512xf32>
    %27 = vector.broadcast %3 : vector<1x512xf32> to vector<16x512xf32>
    %28 = arith.addf %26, %27 : vector<16x512xf32>
    %cst_18 = arith.constant 0.000000e+00 : f32
    %29 = vector.broadcast %cst_18 : f32 to vector<16x512xf32>
    %30 = arith.maximumf %28, %29 : vector<16x512xf32>
    %c16_19 = arith.constant 16 : index
    %c0_20 = arith.constant 0 : index
    %31 = vector.load %arg6[%c16_19, %c0_20] : memref<32x512xf32, #tpu.memory_space<vmem>>, vector<16x512xf32>
    tpu.vector_store %arg6[%c16_19, %c0_20], %30 {strides = array<i32>} : memref<32x512xf32, #tpu.memory_space<vmem>>, vector<16x512xf32>,
    return
  }
  func.func @transform_0(%arg0: i32) -> (i32, i32) {
    %c0_i32 = arith.constant 0 : i32
    %c0_i32_0 = arith.constant 0 : i32
    return %arg0, %c0_i32 : i32, i32
  }
  func.func @transform_1(%arg0: i32) -> (i32, i32) {
    %c0_i32 = arith.constant 0 : i32
    %c0_i32_0 = arith.constant 0 : i32
    %c0_i32_1 = arith.constant 0 : i32
    return %c0_i32, %c0_i32_0 : i32, i32
  }
  func.func @transform_2(%arg0: i32) -> (i32, i32) {
    %c0_i32 = arith.constant 0 : i32
    %c0_i32_0 = arith.constant 0 : i32
    %c0_i32_1 = arith.constant 0 : i32
    return %c0_i32, %c0_i32_0 : i32, i32
  }
  func.func @transform_3(%arg0: i32) -> (i32, i32) {
    %c0_i32 = arith.constant 0 : i32
    %c0_i32_0 = arith.constant 0 : i32
    %c0_i32_1 = arith.constant 0 : i32
    return %c0_i32, %c0_i32_0 : i32, i32
  }
  func.func @transform_4(%arg0: i32) -> (i32, i32) {
    %c0_i32 = arith.constant 0 : i32
    %c0_i32_0 = arith.constant 0 : i32
    %c0_i32_1 = arith.constant 0 : i32
    return %c0_i32, %c0_i32_0 : i32, i32
  }
  func.func @transform_5(%arg0: i32) -> (i32, i32) {
    %c0_i32 = arith.constant 0 : i32
    %c0_i32_0 = arith.constant 0 : i32
    return %arg0, %c0_i32 : i32, i32
  }
}

module attributes {stable_mosaic.version = 11 : i64} {
  func.func @local_graph_kernel(%arg0: i32, %arg1: memref<32x512xf32, #tpu.memory_space<vmem>>, %arg2: memref<512x1024xbf16, #tpu.memory_space<vmem>>, %arg3: memref<1x1024xf32, #tpu.memory_space<vmem>>, %arg4: memref<1024x512xbf16, #tpu.memory_space<vmem>>, %arg5: memref<1x512xf32, #tpu.memory_space<vmem>>, %arg6: memref<32x512xf32, #tpu.memory_space<vmem>>) attributes {dimension_semantics = [#tpu.dimension_semantics<parallel>], iteration_bounds = array<i64: 1>, scalar_prefetch = 0 : i64, scratch_operands = 0 : i64, tpu.core_type = #tpu.core_type<tc>, window_params = [{transform_indices = @transform_0, window_bounds = array<i64: 32, 512>}, {pipeline_mode = #tpu.pipeline_mode<synchronous>, transform_indices = @transform_1, window_bounds = array<i64: 512, 1024>}, {pipeline_mode = #tpu.pipeline_mode<synchronous>, transform_indices = @transform_2, window_bounds = array<i64: 1, 1024>}, {pipeline_mode = #tpu.pipeline_mode<synchronous>, transform_indices = @transform_3, window_bounds = array<i64: 1024, 512>}, {pipeline_mode = #tpu.pipeline_mode<synchronous>, transform_indices = @transform_4, window_bounds = array<i64: 1, 512>}, {transform_indices = @transform_5, window_bounds = array<i64: 32, 512>}]} {
    %c0 = arith.constant 0 : index
    %c0_0 = arith.constant 0 : index
    %0 = vector.load %arg2[%c0, %c0_0] : memref<512x1024xbf16, #tpu.memory_space<vmem>>, vector<512x1024xbf16>
    %c0_1 = arith.constant 0 : index
    %c0_2 = arith.constant 0 : index
    %1 = vector.load %arg4[%c0_1, %c0_2] : memref<1024x512xbf16, #tpu.memory_space<vmem>>, vector<1024x512xbf16>
    %c0_3 = arith.constant 0 : index
    %c0_4 = arith.constant 0 : index
    %2 = vector.load %arg3[%c0_3, %c0_4] : memref<1x1024xf32, #tpu.memory_space<vmem>>, vector<1x1024xf32>
    %c0_5 = arith.constant 0 : index
    %c0_6 = arith.constant 0 : index
    %3 = vector.load %arg5[%c0_5, %c0_6] : memref<1x512xf32, #tpu.memory_space<vmem>>, vector<1x512xf32>
    %c0_7 = arith.constant 0 : index
    %c0_8 = arith.constant 0 : index
    %4 = vector.load %arg1[%c0_7, %c0_8] : memref<32x512xf32, #tpu.memory_space<vmem>>, vector<16x512xf32>
    %5 = arith.truncf %4 : vector<16x512xf32> to vector<16x512xbf16>
    %cst = arith.constant dense<0.000000e+00> : vector<16x1024xf32>
    %6 = tpu.matmul %5, %0, %cst {dimension_numbers = #tpu.dot_dimension_numbers<[1], [0], [0], [1], [0, 0, 1, 1], [], []>} : vector<16x512xbf16>, vector<512x1024xbf16>, vector<16x1024xf32> -> vector<16x1024xf32>
    %7 = vector.broadcast %2 : vector<1x1024xf32> to vector<16x1024xf32>
    %8 = arith.addf %6, %7 : vector<16x1024xf32>
    %cst_9 = arith.constant 0.000000e+00 : f32
    %9 = vector.broadcast %cst_9 : f32 to vector<16x1024xf32>
    %10 = arith.maximumf %8, %9 : vector<16x1024xf32>
    %11 = arith.truncf %10 : vector<16x1024xf32> to vector<16x1024xbf16>
    %cst_10 = arith.constant dense<0.000000e+00> : vector<16x512xf32>
    %12 = tpu.matmul %11, %1, %cst_10 {dimension_numbers = #tpu.dot_dimension_numbers<[1], [0], [0], [1], [0, 0, 1, 1], [], []>} : vector<16x1024xbf16>, vector<1024x512xbf16>, vector<16x512xf32> -> vector<16x512xf32>
    %13 = vector.broadcast %3 : vector<1x512xf32> to vector<16x512xf32>
    %14 = arith.addf %12, %13 : vector<16x512xf32>
    %cst_11 = arith.constant 0.000000e+00 : f32
    %15 = vector.broadcast %cst_11 : f32 to vector<16x512xf32>
    %16 = arith.maximumf %14, %15 : vector<16x512xf32>
    %c0_12 = arith.constant 0 : index
    %c0_13 = arith.constant 0 : index
    %17 = vector.load %arg6[%c0_12, %c0_13] : memref<32x512xf32, #tpu.memory_space<vmem>>, vector<16x512xf32>
    tpu.vector_store %arg6[%c0_12, %c0_13], %16 {strides = array<i32>} : memref<32x512xf32, #tpu.memory_space<vmem>>, vector<16x512xf32>,
    %c16 = arith.constant 16 : index
    %c0_14 = arith.constant 0 : index
    %18 = vector.load %arg1[%c16, %c0_14] : memref<32x512xf32, #tpu.memory_space<vmem>>, vector<16x512xf32>
    %19 = arith.truncf %18 : vector<16x512xf32> to vector<16x512xbf16>
    %cst_15 = arith.constant dense<0.000000e+00> : vector<16x1024xf32>
    %20 = tpu.matmul %19, %0, %cst_15 {dimension_numbers = #tpu.dot_dimension_numbers<[1], [0], [0], [1], [0, 0, 1, 1], [], []>} : vector<16x512xbf16>, vector<512x1024xbf16>, vector<16x1024xf32> -> vector<16x1024xf32>
    %21 = vector.broadcast %2 : vector<1x1024xf32> to vector<16x1024xf32>
    %22 = arith.addf %20, %21 : vector<16x1024xf32>
    %cst_16 = arith.constant 0.000000e+00 : f32
    %23 = vector.broadcast %cst_16 : f32 to vector<16x1024xf32>
    %24 = arith.maximumf %22, %23 : vector<16x1024xf32>
    %25 = arith.truncf %24 : vector<16x1024xf32> to vector<16x1024xbf16>
    %cst_17 = arith.constant dense<0.000000e+00> : vector<16x512xf32>
    %26 = tpu.matmul %25, %1, %cst_17 {dimension_numbers = #tpu.dot_dimension_numbers<[1], [0], [0], [1], [0, 0, 1, 1], [], []>} : vector<16x1024xbf16>, vector<1024x512xbf16>, vector<16x512xf32> -> vector<16x512xf32>
    %27 = vector.broadcast %3 : vector<1x512xf32> to vector<16x512xf32>
    %28 = arith.addf %26, %27 : vector<16x512xf32>
    %cst_18 = arith.constant 0.000000e+00 : f32
    %29 = vector.broadcast %cst_18 : f32 to vector<16x512xf32>
    %30 = arith.maximumf %28, %29 : vector<16x512xf32>
    %c16_19 = arith.constant 16 : index
    %c0_20 = arith.constant 0 : index
    %31 = vector.load %arg6[%c16_19, %c0_20] : memref<32x512xf32, #tpu.memory_space<vmem>>, vector<16x512xf32>
    tpu.vector_store %arg6[%c16_19, %c0_20], %30 {strides = array<i32>} : memref<32x512xf32, #tpu.memory_space<vmem>>, vector<16x512xf32>,
    return
  }
  func.func @transform_0(%arg0: i32) -> (i32, i32) {
    %c0_i32 = arith.constant 0 : i32
    %c0_i32_0 = arith.constant 0 : i32
    return %arg0, %c0_i32 : i32, i32
  }
  func.func @transform_1(%arg0: i32) -> (i32, i32) {
    %c0_i32 = arith.constant 0 : i32
    %c0_i32_0 = arith.constant 0 : i32
    %c0_i32_1 = arith.constant 0 : i32
    return %c0_i32, %c0_i32_0 : i32, i32
  }
  func.func @transform_2(%arg0: i32) -> (i32, i32) {
    %c0_i32 = arith.constant 0 : i32
    %c0_i32_0 = arith.constant 0 : i32
    %c0_i32_1 = arith.constant 0 : i32
    return %c0_i32, %c0_i32_0 : i32, i32
  }
  func.func @transform_3(%arg0: i32) -> (i32, i32) {
    %c0_i32 = arith.constant 0 : i32
    %c0_i32_0 = arith.constant 0 : i32
    %c0_i32_1 = arith.constant 0 : i32
    return %c0_i32, %c0_i32_0 : i32, i32
  }
  func.func @transform_4(%arg0: i32) -> (i32, i32) {
    %c0_i32 = arith.constant 0 : i32
    %c0_i32_0 = arith.constant 0 : i32
    %c0_i32_1 = arith.constant 0 : i32
    return %c0_i32, %c0_i32_0 : i32, i32
  }
  func.func @transform_5(%arg0: i32) -> (i32, i32) {
    %c0_i32 = arith.constant 0 : i32
    %c0_i32_0 = arith.constant 0 : i32
    return %arg0, %c0_i32 : i32, i32
  }
}

</mosaic_0001>

<bundles_post_ra>
// kernel: tpu_custom_call.1
= control target key start
LH: loop header
LB: loop body
LE: loop exit
PB: predicated region body
PF: predicated region fallthrough
CT: control target
= control target key end

     0   :  { %10 = vsyncpa [#allocation3], 0  ;;  %s7306_s0 = inlined_call_operand.hbm [shape: f32[32,512], index: 0, kind: input, shape index: {}]   ;;  %s7307_s1 = inlined_call_operand.hbm [shape: bf16[512,1024], index: 1, kind: input, shape index: {}]   ;;  %s7308_s2 = inlined_call_operand.hbm [shape: f32[1,1024], index: 2, kind: input, shape index: {}]   ;;  %s7309_s3 = inlined_call_operand.hbm [shape: bf16[1024,512], index: 3, kind: input, shape index: {}]   ;;  %s7310_s4 = inlined_call_operand.vmem [shape: f32[1,512], index: 4, kind: input, shape index: {}]   ;;  %s7311_s5 = inlined_call_operand.hbm [shape: f32[32,512], index: 5, kind: output, shape index: {}]  }
   0x1   :  { %11 = vsyncpa [#allocation6], 0 }
   0x2   :  { %12 = vsyncpa [#allocation9], 0 }
   0x3   :  { %13 = vsyncpa [#allocation4], 0  ;;  %s5978_s18 = smov [#allocation5]   ;;  %s5979_s20 = smov [#allocation2]  }
   0x4   :  { %s31_s19 = sshll.u32 %s5978_s18, 4  ;;  %s19_s21 = sshll.u32 %s5979_s20, 4  ;;  %s32_s19 = int_to_ptr.vmem [resolvable:$true] %s31_s19  ;;  %s20_s21 = int_to_ptr.vmem [resolvable:$true] %s19_s21 }
   0x5   :  { %s5878_s22 = scalar_lea.vmem %s32_s19, 32768  ;;  %p5883_p1 = scmp.lt.s32.totalorder %s32_s19, %s32_s19 }
   0x6   :  { %p5879_p0 = scmp.ne.s32.totalorder %s32_s19, %s5878_s22  ;;  %p5884_p2 = scmp.lt.s32.totalorder %s5878_s22, %s5878_s22 }
   0x8   :  { %p5885_p3 = por %p5884_p2, %p5883_p1 }
   0xa   :  { %p5886_p4 = pnand %p5885_p3, %p5879_p0 }
   0xc   :  { %5889 = shalt.err (!%p5886_p4)
}
   0xd   :  { %s5980_s23 = smov 512   ;;  %s5981_s24 = smov 32  }
   0xe   :  { %37 = dma.hbm_to_vmem [thread:$0]  %s7307_s1, 32768, %s32_s19, [#allocation6], %s5980_s23, %s5980_s23, %s5981_s24  }
   0xf   :  { %s5898_s27 = scalar_lea.vmem %s20_s21, 2048  ;;  %p5903_p6 = scmp.lt.s32.totalorder %s20_s21, %s20_s21 }
  0x10   :  { %p5899_p5 = scmp.ne.s32.totalorder %s20_s21, %s5898_s27  ;;  %p5904_p7 = scmp.lt.s32.totalorder %s5898_s27, %s5898_s27 }
  0x12   :  { %p5905_p8 = por %p5904_p7, %p5903_p6 }
  0x14   :  { %p5906_p9 = pnand %p5905_p8, %p5899_p5 }
  0x16   :  { %5909 = shalt.err (!%p5906_p9)
}
  0x17   :  { %25 = dma.hbm_to_vmem [thread:$0]  %s7306_s0, 2048, %s20_s21, [#allocation3], %s5980_s23, %s5980_s23, %s5981_s24  }
  0x18   :  { %s5982_s30 = smov [#allocation7]   ;;  %s5983_s7 = smov [#allocation8]  }
  0x19   :  { %s44_s6 = sshll.u32 %s5982_s30, 4  ;;  %s53_s8 = sshll.u32 %s5983_s7, 4  ;;  %s45_s6 = int_to_ptr.vmem [resolvable:$true] %s44_s6  ;;  %s54_s8 = int_to_ptr.vmem [resolvable:$true] %s53_s8 }
  0x1a   :  { %s5918_s1 = scalar_lea.vmem %s45_s6, 128  ;;  %p5923_p11 = scmp.lt.s32.totalorder %s45_s6, %s45_s6 }
  0x1b   :  { %p5919_p10 = scmp.ne.s32.totalorder %s45_s6, %s5918_s1  ;;  %p5924_p12 = scmp.lt.s32.totalorder %s5918_s1, %s5918_s1 }
  0x1d   :  { %p5925_p13 = por %p5924_p12, %p5923_p11 }
  0x1f   :  { %p5926_p0 = pnand %p5925_p13, %p5919_p10 }
  0x21   :  { %5929 = shalt.err (!%p5926_p0)
}
  0x22   :  { %47 = dma.hbm_to_vmem [thread:$0]  %s7308_s2, 128, %s45_s6, [#allocation6]  }
  0x23   :  { %s5938_s11 = scalar_lea.vmem %s54_s8, 32768  ;;  %p5943_p2 = scmp.lt.s32.totalorder %s54_s8, %s54_s8 }
  0x24   :  { %p5939_p1 = scmp.ne.s32.totalorder %s54_s8, %s5938_s11  ;;  %p5944_p3 = scmp.lt.s32.totalorder %s5938_s11, %s5938_s11 }
  0x26   :  { %p5945_p4 = por %p5944_p3, %p5943_p2 }
  0x28   :  { %p5946_p5 = pnand %p5945_p4, %p5939_p1 }
  0x2a   :  { %5949 = shalt.err (!%p5946_p5)
}
  0x2b   :  { %s5984_s0 = smov 256   ;;  %s5985_s12 = smov 16  }
  0x2c   :  { %59 = dma.hbm_to_vmem [thread:$0]  %s7309_s3, 32768, %s54_s8, [#allocation9], %s5984_s0, %s5984_s0, %s5985_s12  }
  0x2d   :  { %5970 = dma.done.wait [#allocation3], 2048  }
  0x2e   :  { %5971 = vsyncadd [#allocation3], 4294965248 }
  0x2f   :  { %5972 = dma.done.wait [#allocation6], 32896  }
  0x30   :  { %5973 = vsyncadd [#allocation6], 4294934400 }
  0x31   :  { %5974 = dma.done.wait [#allocation9], 32768  }
  0x32   :  { %5975 = vsyncadd [#allocation9], 4294934528  ;;  %v130_v0 = vld [vmem:[#allocation5 + $0x1c0] sm:$0xff]  ;;  %v589_v54 = vld [vmem:[#allocation2 + $0x8] sm:$0xff] }
  0x33   :  { %v134_v1 = vld [vmem:[#allocation5 + $0x1e0] sm:$0xff]  ;;  %v593_v55 = vld [vmem:[#allocation2 + $0x28] sm:$0xff]  ;;  %v591_v59 = vld [vmem:[#allocation2 + $0x18] sm:$0xff] }
  0x34   :  { %v258_v2 = vld [vmem:[#allocation5 + $0x5c0] sm:$0xff]  ;;  %v6035_v3 = vcombine.high %v130_v0, %v134_v1  ;;  %v6037_v5 = vcombine.low %v130_v0, %v134_v1  ;;  %v6109_v58 = vpack.c.bf16 %v593_v55, %v589_v54  ;;  %v595_v60 = vld [vmem:[#allocation2 + $0x38] sm:$0xff] }
  0x35   :  { %v262_v4 = vld [vmem:[#allocation5 + $0x5e0] sm:$0xff]  ;;  %v6111_v63 = vpack.c.bf16 %v595_v60, %v591_v59 }
  0x36   :  { %v122_v6 = vld [vmem:[#allocation5 + $0x180] sm:$0xff]  ;;  %v6039_v8 = vcombine.high %v258_v2, %v262_v4  ;;  %v6041_v9 = vcombine.low %v258_v2, %v262_v4  ;;  %1921 = vmatprep.subr.bf16.mxu0 %v6035_v3  ;;  %1953 = vmatprep.mubr.bf16.mxu0 %v6109_v58 }
  0x37   :  { %v126_v7 = vld [vmem:[#allocation5 + $0x1a0] sm:$0xff]  ;;  %1922 = vmatpush1.bf16.msra.mxu0 %v6037_v5  ;;  %1996 = vmatprep.mubr.bf16.mxu1 %v6111_v63 }
  0x38   :  { %7553 = vst [vmem:[#allocation15_spill] sm:$0xff] %v6041_v9  ;;  %v6043_v10 = vcombine.high %v122_v6, %v126_v7  ;;  %v250_v11 = vld [vmem:[#allocation5 + $0x580] sm:$0xff]  ;;  %1964 = vmatprep.subr.bf16.mxu1 %v6039_v8  ;;  %v6050_v18 = vcombine.low %v122_v6, %v126_v7 }
  0x39   :  { %v254_v12 = vld [vmem:[#allocation5 + $0x5a0] sm:$0xff]  ;;  %1965 = vmatpush1.bf16.msra.mxu1 %v6041_v9 }
  0x3a   :  { %v114_v13 = vld [vmem:[#allocation5 + $0x140] sm:$0xff]  ;;  %v6046_v14 = vcombine.high %v250_v11, %v254_v12  ;;  %1923 = vmatprep.subr.bf16.mxu0 %v6043_v10  ;;  %v6054_v19 = vcombine.low %v250_v11, %v254_v12 }
  0x3b   :  { %v118_v15 = vld [vmem:[#allocation5 + $0x160] sm:$0xff]  ;;  %1924 = vmatpush1.bf16.msra.mxu0 %v6050_v18 }
  0x3c   :  { %7554 = vst [vmem:[#allocation16_spill] sm:$0xff] %v6046_v14  ;;  %v242_v16 = vld [vmem:[#allocation5 + $0x540] sm:$0xff]  ;;  %7555 = vst [vmem:[#allocation17_spill] sm:$0xff] %v6054_v19  ;;  %v6056_v20 = vcombine.high %v114_v13, %v118_v15  ;;  %1966 = vmatprep.subr.bf16.mxu1 %v6046_v14  ;;  %v6062_v26 = vcombine.low %v114_v13, %v118_v15  ;;  %v5374_v14 = vld [vmem:[#allocation8 + $0x6e0] ss:$16 sps:$4 sm:$0xff]  }
  0x3d   :  { %v246_v17 = vld [vmem:[#allocation5 + $0x560] sm:$0xff]  ;;  %1967 = vmatpush1.bf16.msra.mxu1 %v6054_v19 }
  0x3e   :  { %v6059_v21 = vcombine.high %v242_v16, %v246_v17  ;;  %v106_v22 = vld [vmem:[#allocation5 + $0x100] sm:$0xff]  ;;  %1925 = vmatprep.subr.bf16.mxu0 %v6056_v20  ;;  %v6066_v27 = vcombine.low %v242_v16, %v246_v17 }
  0x3f   :  { %v110_v23 = vld [vmem:[#allocation5 + $0x120] sm:$0xff]  ;;  %1926 = vmatpush1.bf16.msra.mxu0 %v6062_v26 }
  0x40   :  { %7556 = vst [vmem:[#allocation18_spill] sm:$0xff] %v6059_v21  ;;  %v234_v24 = vld [vmem:[#allocation5 + $0x500] sm:$0xff]  ;;  %7557 = vst [vmem:[#allocation19_spill] sm:$0xff] %v6066_v27  ;;  %v6068_v28 = vcombine.high %v106_v22, %v110_v23  ;;  %1968 = vmatprep.subr.bf16.mxu1 %v6059_v21  ;;  %v6074_v34 = vcombine.low %v106_v22, %v110_v23  ;;  %v5263_v21 = vld [vmem:[#allocation8 + $0x280] ss:$16 sps:$4 sm:$0xff]  }
  0x41   :  { %v238_v25 = vld [vmem:[#allocation5 + $0x520] sm:$0xff]  ;;  %1969 = vmatpush1.bf16.msra.mxu1 %v6066_v27  ;;  %v231_v27 = vld [vmem:[#allocation5 + $0x4e8] sm:$0xff] }
  0x42   :  { %v6071_v29 = vcombine.high %v234_v24, %v238_v25  ;;  %v98_v30 = vld [vmem:[#allocation5 + $0xc0] sm:$0xff]  ;;  %1927 = vmatprep.subr.bf16.mxu0 %v6068_v28  ;;  %v6078_v35 = vcombine.low %v234_v24, %v238_v25 }
  0x43   :  { %v102_v31 = vld [vmem:[#allocation5 + $0xe0] sm:$0xff]  ;;  %1928 = vmatpush1.bf16.msra.mxu0 %v6074_v34 }
  0x44   :  { %7558 = vst [vmem:[#allocation20_spill] sm:$0xff] %v6071_v29  ;;  %v226_v32 = vld [vmem:[#allocation5 + $0x4c0] sm:$0xff]  ;;  %7559 = vst [vmem:[#allocation21_spill] sm:$0xff] %v6078_v35  ;;  %v6080_v36 = vcombine.high %v98_v30, %v102_v31  ;;  %1970 = vmatprep.subr.bf16.mxu1 %v6071_v29  ;;  %v6086_v42 = vcombine.low %v98_v30, %v102_v31 }
  0x45   :  { %v230_v33 = vld [vmem:[#allocation5 + $0x4e0] sm:$0xff]  ;;  %1971 = vmatpush1.bf16.msra.mxu1 %v6078_v35  ;;  %v239_v35 = vld [vmem:[#allocation5 + $0x528] sm:$0xff] }
  0x46   :  { %v6083_v37 = vcombine.high %v226_v32, %v230_v33  ;;  %v90_v38 = vld [vmem:[#allocation5 + $0x80] sm:$0xff]  ;;  %1929 = vmatprep.subr.bf16.mxu0 %v6080_v36  ;;  %v6090_v43 = vcombine.low %v226_v32, %v230_v33 }
  0x47   :  { %v94_v39 = vld [vmem:[#allocation5 + $0xa0] sm:$0xff]  ;;  %1930 = vmatpush1.bf16.msra.mxu0 %v6086_v42 }
  0x48   :  { %7560 = vst [vmem:[#allocation22_spill] sm:$0xff] %v6083_v37  ;;  %v218_v40 = vld [vmem:[#allocation5 + $0x480] sm:$0xff]  ;;  %7561 = vst [vmem:[#allocation23_spill] sm:$0xff] %v6090_v43  ;;  %v6092_v44 = vcombine.high %v90_v38, %v94_v39  ;;  %1972 = vmatprep.subr.bf16.mxu1 %v6083_v37  ;;  %v6098_v50 = vcombine.low %v90_v38, %v94_v39 }
  0x49   :  { %v222_v41 = vld [vmem:[#allocation5 + $0x4a0] sm:$0xff]  ;;  %1973 = vmatpush1.bf16.msra.mxu1 %v6090_v43  ;;  %v119_v43 = vld [vmem:[#allocation5 + $0x168] sm:$0xff] }
  0x4a   :  { %v6095_v45 = vcombine.high %v218_v40, %v222_v41  ;;  %v82_v46 = vld [vmem:[#allocation5 + $0x40] sm:$0xff]  ;;  %1931 = vmatprep.subr.bf16.mxu0 %v6092_v44  ;;  %v6102_v51 = vcombine.low %v218_v40, %v222_v41 }
  0x4b   :  { %v86_v47 = vld [vmem:[#allocation5 + $0x60] sm:$0xff]  ;;  %1932 = vmatpush1.bf16.msra.mxu0 %v6098_v50 }
  0x4c   :  { %7562 = vst [vmem:[#allocation24_spill] sm:$0xff] %v6095_v45  ;;  %v210_v48 = vld [vmem:[#allocation5 + $0x440] sm:$0xff]  ;;  %7563 = vst [vmem:[#allocation25_spill] sm:$0xff] %v6102_v51  ;;  %v6104_v52 = vcombine.high %v82_v46, %v86_v47  ;;  %1974 = vmatprep.subr.bf16.mxu1 %v6095_v45  ;;  %v6114_v0 = vcombine.low %v82_v46, %v86_v47  ;;  %v255_v45 = vld [vmem:[#allocation5 + $0x5a8] sm:$0xff] }
  0x4d   :  { %v214_v49 = vld [vmem:[#allocation5 + $0x460] sm:$0xff]  ;;  %1975 = vmatpush1.bf16.msra.mxu1 %v6102_v51  ;;  %v127_v51 = vld [vmem:[#allocation5 + $0x1a8] sm:$0xff] }
  0x4e   :  { %v74_v53 = vld [vmem:[#allocation5] sm:$0xff]  ;;  %v6107_v56 = vcombine.high %v210_v48, %v214_v49  ;;  %1933 = vmatprep.subr.bf16.mxu0 %v6104_v52  ;;  %v6119_v1 = vcombine.low %v210_v48, %v214_v49 }
  0x4f   :  { %v78_v57 = vld [vmem:[#allocation5 + $0x20] sm:$0xff]  ;;  %1934 = vmatpush1.bf16.msra.mxu0 %v6114_v0 }
  0x50   :  { %7564 = vst [vmem:[#allocation26_spill] sm:$0xff] %v6107_v56  ;;  %v202_v61 = vld [vmem:[#allocation5 + $0x400] sm:$0xff]  ;;  %7565 = vst [vmem:[#allocation27_spill] sm:$0xff] %v6119_v1  ;;  %v6121_v2 = vcombine.high %v74_v53, %v78_v57  ;;  %1976 = vmatprep.subr.bf16.mxu1 %v6107_v56  ;;  %v6128_v13 = vcombine.low %v74_v53, %v78_v57  ;;  %v123_v56 = vld [vmem:[#allocation5 + $0x188] sm:$0xff] }
  0x51   :  { %v206_v62 = vld [vmem:[#allocation5 + $0x420] sm:$0xff]  ;;  %1977 = vmatpush1.bf16.msra.mxu1 %v6119_v1 }
  0x52   :  { %v6124_v4 = vcombine.high %v202_v61, %v206_v62  ;;  %v194_v6 = vld [vmem:[#allocation5 + $0x3c0] sm:$0xff]  ;;  %1935 = vmatprep.subr.bf16.mxu0 %v6121_v2  ;;  %v6132_v15 = vcombine.low %v202_v61, %v206_v62 }
  0x53   :  { %v198_v7 = vld [vmem:[#allocation5 + $0x3e0] sm:$0xff]  ;;  %1936 = vmatpush1.bf16.msra.mxu0 %v6128_v13 }
  0x54   :  { %7566 = vst [vmem:[#allocation28_spill] sm:$0xff] %v6124_v4  ;;  %v322_v11 = vld [vmem:[#allocation5 + $0x7c0] sm:$0xff]  ;;  %7567 = vst [vmem:[#allocation29_spill] sm:$0xff] %v6132_v15  ;;  %v6134_v16 = vcombine.high %v194_v6, %v198_v7  ;;  %1978 = vmatprep.subr.bf16.mxu1 %v6124_v4  ;;  %v6140_v30 = vcombine.low %v194_v6, %v198_v7 }
  0x55   :  { %v326_v12 = vld [vmem:[#allocation5 + $0x7e0] sm:$0xff]  ;;  %1979 = vmatpush1.bf16.msra.mxu1 %v6132_v15  ;;  %v263_v15 = vld [vmem:[#allocation5 + $0x5e8] sm:$0xff] }
  0x56   :  { %v6137_v17 = vcombine.high %v322_v11, %v326_v12  ;;  %v186_v22 = vld [vmem:[#allocation5 + $0x380] sm:$0xff]  ;;  %1937 = vmatprep.subr.bf16.mxu0 %v6134_v16  ;;  %v6144_v31 = vcombine.low %v322_v11, %v326_v12 }
  0x57   :  { %v190_v23 = vld [vmem:[#allocation5 + $0x3a0] sm:$0xff]  ;;  %1938 = vmatpush2.bf16.msra.mxu0 %v6140_v30 }
  0x58   :  { %7568 = vst [vmem:[#allocation30_spill] sm:$0xff] %v6137_v17  ;;  %v314_v24 = vld [vmem:[#allocation5 + $0x780] sm:$0xff]  ;;  %7569 = vst [vmem:[#allocation31_spill] sm:$0xff] %v6144_v31  ;;  %v6146_v32 = vcombine.high %v186_v22, %v190_v23  ;;  %1980 = vmatprep.subr.bf16.mxu1 %v6137_v17  ;;  %v6152_v46 = vcombine.low %v186_v22, %v190_v23  ;;  %v259_v17 = vld [vmem:[#allocation5 + $0x5c8] sm:$0xff] }
  0x59   :  { %v318_v25 = vld [vmem:[#allocation5 + $0x7a0] sm:$0xff]  ;;  %1981 = vmatpush2.bf16.msra.mxu1 %v6144_v31  ;;  %v6233_v1 = vcombine.high %v259_v17, %v263_v15 }
  0x5a   :  { %v6149_v33 = vcombine.high %v314_v24, %v318_v25  ;;  %v178_v38 = vld [vmem:[#allocation5 + $0x340] sm:$0xff]  ;;  %1939 = vmatprep.subr.bf16.mxu0 %v6146_v32  ;;  %v6156_v47 = vcombine.low %v314_v24, %v318_v25 }
  0x5b   :  { %v182_v39 = vld [vmem:[#allocation5 + $0x360] sm:$0xff]  ;;  %1940 = vmatpush2.bf16.msra.mxu0 %v6152_v46  ;;  %7585 = vst [vmem:[#allocation47_spill] sm:$0xff] %v6233_v1 }
  0x5c   :  { %7570 = vst [vmem:[#allocation32_spill] sm:$0xff] %v6149_v33  ;;  %v306_v40 = vld [vmem:[#allocation5 + $0x740] sm:$0xff]  ;;  %7571 = vst [vmem:[#allocation33_spill] sm:$0xff] %v6156_v47  ;;  %v6158_v48 = vcombine.high %v178_v38, %v182_v39  ;;  %1982 = vmatprep.subr.bf16.mxu1 %v6149_v33  ;;  %v6164_v59 = vcombine.low %v178_v38, %v182_v39 }
  0x5d   :  { %v310_v41 = vld [vmem:[#allocation5 + $0x760] sm:$0xff]  ;;  %1983 = vmatpush2.bf16.msra.mxu1 %v6156_v47 }
  0x5e   :  { %v6161_v49 = vcombine.high %v306_v40, %v310_v41  ;;  %v170_v53 = vld [vmem:[#allocation5 + $0x300] sm:$0xff]  ;;  %1941 = vmatprep.subr.bf16.mxu0 %v6158_v48  ;;  %v6168_v60 = vcombine.low %v306_v40, %v310_v41 }
  0x5f   :  { %v174_v54 = vld [vmem:[#allocation5 + $0x320] sm:$0xff]  ;;  %1942 = vmatpush2.bf16.msra.mxu0 %v6164_v59 }
  0x60   :  { %7572 = vst [vmem:[#allocation34_spill] sm:$0xff] %v6161_v49  ;;  %v298_v55 = vld [vmem:[#allocation5 + $0x700] sm:$0xff]  ;;  %7573 = vst [vmem:[#allocation35_spill] sm:$0xff] %v6168_v60  ;;  %v6170_v61 = vcombine.high %v170_v53, %v174_v54  ;;  %1984 = vmatprep.subr.bf16.mxu1 %v6161_v49  ;;  %v6176_v22 = vcombine.low %v170_v53, %v174_v54 }
  0x61   :  { %v302_v57 = vld [vmem:[#allocation5 + $0x720] sm:$0xff]  ;;  %1985 = vmatpush2.bf16.msra.mxu1 %v6168_v60 }
  0x62   :  { %v6173_v62 = vcombine.high %v298_v55, %v302_v57  ;;  %v162_v6 = vld [vmem:[#allocation5 + $0x2c0] sm:$0xff]  ;;  %1943 = vmatprep.subr.bf16.mxu0 %v6170_v61  ;;  %v6180_v23 = vcombine.low %v298_v55, %v302_v57 }
  0x63   :  { %v166_v7 = vld [vmem:[#allocation5 + $0x2e0] sm:$0xff]  ;;  %1944 = vmatpush2.bf16.msra.mxu0 %v6176_v22 }
  0x64   :  { %7574 = vst [vmem:[#allocation36_spill] sm:$0xff] %v6173_v62  ;;  %v290_v11 = vld [vmem:[#allocation5 + $0x6c0] sm:$0xff]  ;;  %7575 = vst [vmem:[#allocation37_spill] sm:$0xff] %v6180_v23  ;;  %v6182_v24 = vcombine.high %v162_v6, %v166_v7  ;;  %1986 = vmatprep.subr.bf16.mxu1 %v6173_v62  ;;  %v6188_v53 = vcombine.low %v162_v6, %v166_v7 }
  0x65   :  { %v294_v12 = vld [vmem:[#allocation5 + $0x6e0] sm:$0xff]  ;;  %1987 = vmatpush2.bf16.msra.mxu1 %v6180_v23 }
  0x66   :  { %v6185_v25 = vcombine.high %v290_v11, %v294_v12  ;;  %v154_v38 = vld [vmem:[#allocation5 + $0x280] sm:$0xff]  ;;  %1945 = vmatprep.subr.bf16.mxu0 %v6182_v24  ;;  %v6192_v54 = vcombine.low %v290_v11, %v294_v12 }
  0x67   :  { %v158_v39 = vld [vmem:[#allocation5 + $0x2a0] sm:$0xff]  ;;  %1946 = vmatpush2.bf16.msra.mxu0 %v6188_v53 }
  0x68   :  { %7576 = vst [vmem:[#allocation38_spill] sm:$0xff] %v6185_v25  ;;  %v282_v40 = vld [vmem:[#allocation5 + $0x680] sm:$0xff]  ;;  %7577 = vst [vmem:[#allocation39_spill] sm:$0xff] %v6192_v54  ;;  %v6194_v55 = vcombine.high %v154_v38, %v158_v39  ;;  %1988 = vmatprep.subr.bf16.mxu1 %v6185_v25  ;;  %v6200_v6 = vcombine.low %v154_v38, %v158_v39 }
  0x69   :  { %v286_v41 = vld [vmem:[#allocation5 + $0x6a0] sm:$0xff]  ;;  %1989 = vmatpush2.bf16.msra.mxu1 %v6192_v54  ;;  %v135_v54 = vld [vmem:[#allocation5 + $0x1e8] sm:$0xff] }
  0x6a   :  { %v6197_v57 = vcombine.high %v282_v40, %v286_v41  ;;  %v146_v62 = vld [vmem:[#allocation5 + $0x240] sm:$0xff]  ;;  %1947 = vmatprep.subr.bf16.mxu0 %v6194_v55  ;;  %v6204_v7 = vcombine.low %v282_v40, %v286_v41 }
  0x6b   :  { %v150_v60 = vld [vmem:[#allocation5 + $0x260] sm:$0xff]  ;;  %1948 = vmatpush2.bf16.msra.mxu0 %v6200_v6 }
  0x6c   :  { %7578 = vst [vmem:[#allocation40_spill] sm:$0xff] %v6197_v57  ;;  %v274_v49 = vld [vmem:[#allocation5 + $0x640] sm:$0xff]  ;;  %7579 = vst [vmem:[#allocation41_spill] sm:$0xff] %v6204_v7  ;;  %v6206_v11 = vcombine.high %v146_v62, %v150_v60  ;;  %1990 = vmatprep.subr.bf16.mxu1 %v6197_v57  ;;  %v6212_v38 = vcombine.low %v146_v62, %v150_v60  ;;  %v131_v57 = vld [vmem:[#allocation5 + $0x1c8] sm:$0xff] }
  0x6d   :  { %v278_v47 = vld [vmem:[#allocation5 + $0x660] sm:$0xff]  ;;  %1991 = vmatpush2.bf16.msra.mxu1 %v6204_v7  ;;  %v6230_v4 = vcombine.high %v131_v57, %v135_v54 }
  0x6e   :  { %v6209_v12 = vcombine.high %v274_v49, %v278_v47  ;;  %v138_v25 = vld [vmem:[#allocation5 + $0x200] sm:$0xff]  ;;  %1949 = vmatprep.subr.bf16.mxu0 %v6206_v11  ;;  %v6216_v39 = vcombine.low %v274_v49, %v278_v47  ;;  %v590_v49 = vld [vmem:[#allocation2 + $0x10] sm:$0xff] }
  0x6f   :  { %v142_v23 = vld [vmem:[#allocation5 + $0x220] sm:$0xff]  ;;  %1950 = vmatpush2.bf16.msra.mxu0 %v6212_v38  ;;  %7584 = vst [vmem:[#allocation46_spill] sm:$0xff] %v6230_v4 }
  0x70   :  { %7580 = vst [vmem:[#allocation42_spill] sm:$0xff] %v6209_v12  ;;  %v266_v33 = vld [vmem:[#allocation5 + $0x600] sm:$0xff]  ;;  %7581 = vst [vmem:[#allocation43_spill] sm:$0xff] %v6216_v39  ;;  %v6218_v40 = vcombine.high %v138_v25, %v142_v23  ;;  %1992 = vmatprep.subr.bf16.mxu1 %v6209_v12  ;;  %v6224_v60 = vcombine.low %v138_v25, %v142_v23  ;;  %v594_v12 = vld [vmem:[#allocation2 + $0x30] sm:$0xff] }
  0x71   :  { %v270_v31 = vld [vmem:[#allocation5 + $0x620] sm:$0xff]  ;;  %1993 = vmatpush2.bf16.msra.mxu1 %v6216_v39  ;;  %v251_v25 = vld [vmem:[#allocation5 + $0x588] sm:$0xff]  ;;  %v6238_v39 = vpack.c.bf16 %v594_v12, %v590_v49 }
  0x72   :  { %v6221_v41 = vcombine.high %v266_v33, %v270_v31  ;;  %v588_v62 = vld [vmem:[#allocation2] sm:$0xff]  ;;  %1951 = vmatprep.subr.bf16.mxu0 %v6218_v40  ;;  %v6228_v47 = vcombine.low %v266_v33, %v270_v31  ;;  %v6240_v31 = vcombine.low %v131_v57, %v135_v54  ;;  %v6244_v33 = vcombine.low %v259_v17, %v263_v15  ;;  %v243_v12 = vld [vmem:[#allocation5 + $0x548] sm:$0xff] }
  0x73   :  { %v592_v7 = vld [vmem:[#allocation2 + $0x20] sm:$0xff]  ;;  %1952 = vmatpush2.bf16.msra.mxu0 %v6224_v60  ;;  %v247_v49 = vld [vmem:[#allocation5 + $0x568] sm:$0xff]  ;;  %v6254_v54 = vcombine.low %v123_v56, %v127_v51  ;;  %v6258_v15 = vcombine.low %v251_v25, %v255_v45 }
  0x74   :  { %7582 = vst [vmem:[#allocation44_spill] sm:$0xff] %v6221_v41  ;;  %7583 = vst [vmem:[#allocation45_spill] sm:$0xff] %v6228_v47  ;;  %1994 = vmatprep.subr.bf16.mxu1 %v6221_v41  ;;  %v6235_v23 = vpack.c.bf16 %v592_v7, %v588_v62  ;;  %2007 = vmatprep.subr.bf16.mxu0 %v6230_v4  ;;  %v6246_v41 = vcombine.high %v123_v56, %v127_v51  ;;  %v115_v62 = vld [vmem:[#allocation5 + $0x148] sm:$0xff]  ;;  %v5377_v4 = vld [vmem:[#allocation8 + $0xe8] ss:$16 sps:$4 sm:$0xff]  }
  0x75   :  { %7586 = vst [vmem:[#allocation48_spill] sm:$0xff] %v6240_v31  ;;  %1995 = vmatpush2.bf16.msra.mxu1 %v6228_v47  ;;  %7587 = vst [vmem:[#allocation49_spill] sm:$0xff] %v6244_v33  ;;  %v6249_v7 = vcombine.high %v251_v25, %v255_v45  ;;  %v6260_v17 = vcombine.high %v115_v62, %v119_v43  ;;  %v107_v57 = vld [vmem:[#allocation5 + $0x108] sm:$0xff]  ;;  %v6263_v37 = vcombine.high %v243_v12, %v247_v49 }
  0x76   :  { %7588 = vst [vmem:[#allocation50_spill] sm:$0xff] %v6246_v41  ;;  %2050 = vmatprep.subr.bf16.mxu1 %v6233_v1  ;;  %1954 = vmatmul.mubr.bf16.vlgmr.msra.gmra.mxu0 %v6235_v23  ;;  %7590 = vst [vmem:[#allocation52_spill] sm:$0xff] %v6254_v54  ;;  %v111_v1 = vld [vmem:[#allocation5 + $0x128] sm:$0xff]  ;;  %v6268_v51 = vcombine.low %v115_v62, %v119_v43  ;;  %v6272_v45 = vcombine.low %v243_v12, %v247_v49 }
  0x77   :  { %7589 = vst [vmem:[#allocation51_spill] sm:$0xff] %v6249_v7  ;;  %2008 = vmatpush1.bf16.msra.mxu0 %v6240_v31  ;;  %7591 = vst [vmem:[#allocation53_spill] sm:$0xff] %v6258_v15  ;;  %v235_v47 = vld [vmem:[#allocation5 + $0x508] sm:$0xff]  ;;  %2039 = vmatprep.mubr.bf16.mxu0 %v6109_v58  ;;  %v6274_v56 = vcombine.high %v107_v57, %v111_v1  ;;  %v6280_v43 = vcombine.low %v107_v57, %v111_v1 }
  0x78   :  { %1997 = vmatmul.mubr.bf16.vlgmr.msra.gmra.mxu1 %v6238_v39  ;;  %2009 = vmatprep.subr.bf16.mxu0 %v6246_v41  ;;  %7592 = vst [vmem:[#allocation54_spill] sm:$0xff] %v6260_v17  ;;  %7593 = vst [vmem:[#allocation55_spill] sm:$0xff] %v6263_v37  ;;  %v99_v25 = vld [vmem:[#allocation5 + $0xc8] sm:$0xff]  ;;  %v6277_v29 = vcombine.high %v235_v47, %v239_v35  ;;  %v6284_v62 = vcombine.low %v235_v47, %v239_v35 }
  0x79   :  { %2051 = vmatpush1.bf16.msra.mxu1 %v6244_v33  ;;  %2082 = vmatprep.mubr.bf16.mxu1 %v6111_v63  ;;  %7594 = vst [vmem:[#allocation56_spill] sm:$0xff] %v6268_v51  ;;  %7595 = vst [vmem:[#allocation57_spill] sm:$0xff] %v6272_v45  ;;  %v227_v33 = vld [vmem:[#allocation5 + $0x4c8] sm:$0xff] }
  0x7a   :  { %2052 = vmatprep.subr.bf16.mxu1 %v6249_v7  ;;  %7596 = vst [vmem:[#allocation58_spill] sm:$0xff] %v6274_v56  ;;  %v103_v7 = vld [vmem:[#allocation5 + $0xe8] sm:$0xff]  ;;  %7597 = vst [vmem:[#allocation59_spill] sm:$0xff] %v6277_v29  ;;  %v6296_v35 = vcombine.low %v227_v33, %v231_v27 }
  0x7b   :  { %2010 = vmatpush1.bf16.msra.mxu0 %v6254_v54  ;;  %7598 = vst [vmem:[#allocation60_spill] sm:$0xff] %v6280_v43  ;;  %7599 = vst [vmem:[#allocation61_spill] sm:$0xff] %v6284_v62  ;;  %v6286_v12 = vcombine.high %v99_v25, %v103_v7  ;;  %v91_v49 = vld [vmem:[#allocation5 + $0x88] sm:$0xff]  ;;  %v6292_v1 = vcombine.low %v99_v25, %v103_v7 }
  0x7c   :  { %2011 = vmatprep.subr.bf16.mxu0 %v6260_v17  ;;  %v219_v17 = vld [vmem:[#allocation5 + $0x488] sm:$0xff]  ;;  %7603 = vst [vmem:[#allocation65_spill] sm:$0xff] %v6296_v35 }
  0x7d   :  { %2053 = vmatpush1.bf16.msra.mxu1 %v6258_v15  ;;  %7600 = vst [vmem:[#allocation62_spill] sm:$0xff] %v6286_v12  ;;  %v95_v15 = vld [vmem:[#allocation5 + $0xa8] sm:$0xff]  ;;  %7602 = vst [vmem:[#allocation64_spill] sm:$0xff] %v6292_v1 }
  0x7e   :  { %2054 = vmatprep.subr.bf16.mxu1 %v6263_v37  ;;  %v6289_v37 = vcombine.high %v227_v33, %v231_v27  ;;  %v223_v54 = vld [vmem:[#allocation5 + $0x4a8] sm:$0xff]  ;;  %v6298_v47 = vcombine.high %v91_v49, %v95_v15  ;;  %v6304_v7 = vcombine.low %v91_v49, %v95_v15 }
  0x7f   :  { %2012 = vmatpush1.bf16.msra.mxu0 %v6268_v51  ;;  %v83_v57 = vld [vmem:[#allocation5 + $0x48] sm:$0xff]  ;;  %v6308_v27 = vcombine.low %v219_v17, %v223_v54 }
  0x80   :  { %2013 = vmatprep.subr.bf16.mxu0 %v6274_v56  ;;  %7601 = vst [vmem:[#allocation63_spill] sm:$0xff] %v6289_v37  ;;  %7604 = vst [vmem:[#allocation66_spill] sm:$0xff] %v6298_v47  ;;  %v211_v56 = vld [vmem:[#allocation5 + $0x448] sm:$0xff] }
  0x81   :  { %2055 = vmatpush1.bf16.msra.mxu1 %v6272_v45  ;;  %v87_v45 = vld [vmem:[#allocation5 + $0x68] sm:$0xff]  ;;  %7606 = vst [vmem:[#allocation68_spill] sm:$0xff] %v6304_v7  ;;  %7607 = vst [vmem:[#allocation69_spill] sm:$0xff] %v6308_v27 }
  0x82   :  { %2056 = vmatprep.subr.bf16.mxu1 %v6277_v29  ;;  %v6301_v29 = vcombine.high %v219_v17, %v223_v54  ;;  %v215_v51 = vld [vmem:[#allocation5 + $0x468] sm:$0xff]  ;;  %v6310_v33 = vcombine.high %v83_v57, %v87_v45  ;;  %v6316_v15 = vcombine.low %v83_v57, %v87_v45 }
  0x83   :  { %2014 = vmatpush1.bf16.msra.mxu0 %v6280_v43  ;;  %v75_v25 = vld [vmem:[#allocation5 + $0x8] sm:$0xff]  ;;  %v6320_v54 = vcombine.low %v211_v56, %v215_v51 }
  0x84   :  { %2015 = vmatprep.subr.bf16.mxu0 %v6286_v12  ;;  %7605 = vst [vmem:[#allocation67_spill] sm:$0xff] %v6301_v29  ;;  %7608 = vst [vmem:[#allocation70_spill] sm:$0xff] %v6310_v33  ;;  %v203_v12 = vld [vmem:[#allocation5 + $0x408] sm:$0xff] }
  0x85   :  { %2057 = vmatpush1.bf16.msra.mxu1 %v6284_v62  ;;  %v79_v62 = vld [vmem:[#allocation5 + $0x28] sm:$0xff]  ;;  %7610 = vst [vmem:[#allocation72_spill] sm:$0xff] %v6316_v15  ;;  %7611 = vst [vmem:[#allocation73_spill] sm:$0xff] %v6320_v54 }
  0x86   :  { %2058 = vmatprep.subr.bf16.mxu1 %v6289_v37  ;;  %v6313_v37 = vcombine.high %v211_v56, %v215_v51  ;;  %v207_v43 = vld [vmem:[#allocation5 + $0x428] sm:$0xff]  ;;  %v6322_v17 = vcombine.high %v75_v25, %v79_v62  ;;  %v6328_v45 = vcombine.low %v75_v25, %v79_v62 }
  0x87   :  { %2016 = vmatpush1.bf16.msra.mxu0 %v6292_v1  ;;  %v195_v49 = vld [vmem:[#allocation5 + $0x3c8] sm:$0xff]  ;;  %v6332_v51 = vcombine.low %v203_v12, %v207_v43 }
  0x88   :  { %2017 = vmatprep.subr.bf16.mxu0 %v6298_v47  ;;  %7609 = vst [vmem:[#allocation71_spill] sm:$0xff] %v6313_v37  ;;  %7612 = vst [vmem:[#allocation74_spill] sm:$0xff] %v6322_v17  ;;  %v323_v47 = vld [vmem:[#allocation5 + $0x7c8] sm:$0xff] }
  0x89   :  { %2059 = vmatpush1.bf16.msra.mxu1 %v6296_v35  ;;  %v199_v35 = vld [vmem:[#allocation5 + $0x3e8] sm:$0xff]  ;;  %7614 = vst [vmem:[#allocation76_spill] sm:$0xff] %v6328_v45  ;;  %7615 = vst [vmem:[#allocation77_spill] sm:$0xff] %v6332_v51 }
  0x8a   :  { %2060 = vmatprep.subr.bf16.mxu1 %v6301_v29  ;;  %v6325_v29 = vcombine.high %v203_v12, %v207_v43  ;;  %v327_v1 = vld [vmem:[#allocation5 + $0x7e8] sm:$0xff]  ;;  %v6334_v56 = vcombine.high %v195_v49, %v199_v35  ;;  %v6340_v62 = vcombine.low %v195_v49, %v199_v35 }
  0x8b   :  { %2018 = vmatpush1.bf16.msra.mxu0 %v6304_v7  ;;  %v187_v57 = vld [vmem:[#allocation5 + $0x388] sm:$0xff]  ;;  %v6344_v43 = vcombine.low %v323_v47, %v327_v1 }
  0x8c   :  { %2019 = vmatprep.subr.bf16.mxu0 %v6310_v33  ;;  %7613 = vst [vmem:[#allocation75_spill] sm:$0xff] %v6325_v29  ;;  %7616 = vst [vmem:[#allocation78_spill] sm:$0xff] %v6334_v56  ;;  %v315_v33 = vld [vmem:[#allocation5 + $0x788] sm:$0xff] }
  0x8d   :  { %2061 = vmatpush1.bf16.msra.mxu1 %v6308_v27  ;;  %v191_v27 = vld [vmem:[#allocation5 + $0x3a8] sm:$0xff]  ;;  %7618 = vst [vmem:[#allocation80_spill] sm:$0xff] %v6340_v62  ;;  %7619 = vst [vmem:[#allocation81_spill] sm:$0xff] %v6344_v43 }
  0x8e   :  { %2062 = vmatprep.subr.bf16.mxu1 %v6313_v37  ;;  %v6337_v37 = vcombine.high %v323_v47, %v327_v1  ;;  %v319_v7 = vld [vmem:[#allocation5 + $0x7a8] sm:$0xff]  ;;  %v6346_v12 = vcombine.high %v187_v57, %v191_v27  ;;  %v6352_v35 = vcombine.low %v187_v57, %v191_v27 }
  0x8f   :  { %2020 = vmatpush1.bf16.msra.mxu0 %v6316_v15  ;;  %v179_v25 = vld [vmem:[#allocation5 + $0x348] sm:$0xff]  ;;  %v6356_v1 = vcombine.low %v315_v33, %v319_v7 }
  0x90   :  { %2021 = vmatprep.subr.bf16.mxu0 %v6322_v17  ;;  %7617 = vst [vmem:[#allocation79_spill] sm:$0xff] %v6337_v37  ;;  %7620 = vst [vmem:[#allocation82_spill] sm:$0xff] %v6346_v12  ;;  %v307_v17 = vld [vmem:[#allocation5 + $0x748] sm:$0xff] }
  0x91   :  { %2063 = vmatpush1.bf16.msra.mxu1 %v6320_v54  ;;  %v183_v54 = vld [vmem:[#allocation5 + $0x368] sm:$0xff]  ;;  %7622 = vst [vmem:[#allocation84_spill] sm:$0xff] %v6352_v35  ;;  %7623 = vst [vmem:[#allocation85_spill] sm:$0xff] %v6356_v1 }
  0x92   :  { %2064 = vmatprep.subr.bf16.mxu1 %v6325_v29  ;;  %v6349_v29 = vcombine.high %v315_v33, %v319_v7  ;;  %v311_v15 = vld [vmem:[#allocation5 + $0x768] sm:$0xff]  ;;  %v6358_v47 = vcombine.high %v179_v25, %v183_v54  ;;  %v6364_v27 = vcombine.low %v179_v25, %v183_v54 }
  0x93   :  { %2022 = vmatpush1.bf16.msra.mxu0 %v6328_v45  ;;  %v171_v49 = vld [vmem:[#allocation5 + $0x308] sm:$0xff]  ;;  %v6368_v7 = vcombine.low %v307_v17, %v311_v15 }
  0x94   :  { %2023 = vmatprep.subr.bf16.mxu0 %v6334_v56  ;;  %7621 = vst [vmem:[#allocation83_spill] sm:$0xff] %v6349_v29  ;;  %7624 = vst [vmem:[#allocation86_spill] sm:$0xff] %v6358_v47  ;;  %v299_v56 = vld [vmem:[#allocation5 + $0x708] sm:$0xff] }
  0x95   :  { %2065 = vmatpush1.bf16.msra.mxu1 %v6332_v51  ;;  %v175_v51 = vld [vmem:[#allocation5 + $0x328] sm:$0xff]  ;;  %7626 = vst [vmem:[#allocation88_spill] sm:$0xff] %v6364_v27  ;;  %7627 = vst [vmem:[#allocation89_spill] sm:$0xff] %v6368_v7 }
  0x96   :  { %2066 = vmatprep.subr.bf16.mxu1 %v6337_v37  ;;  %v6361_v37 = vcombine.high %v307_v17, %v311_v15  ;;  %v303_v45 = vld [vmem:[#allocation5 + $0x728] sm:$0xff]  ;;  %v6370_v33 = vcombine.high %v171_v49, %v175_v51  ;;  %v6376_v54 = vcombine.low %v171_v49, %v175_v51 }
  0x97   :  { %2024 = vmatpush2.bf16.msra.mxu0 %v6340_v62  ;;  %v163_v57 = vld [vmem:[#allocation5 + $0x2c8] sm:$0xff]  ;;  %v6380_v15 = vcombine.low %v299_v56, %v303_v45 }
  0x98   :  { %2025 = vmatprep.subr.bf16.mxu0 %v6346_v12  ;;  %7625 = vst [vmem:[#allocation87_spill] sm:$0xff] %v6361_v37  ;;  %7628 = vst [vmem:[#allocation90_spill] sm:$0xff] %v6370_v33  ;;  %v291_v12 = vld [vmem:[#allocation5 + $0x6c8] sm:$0xff] }
  0x99   :  { %2067 = vmatpush2.bf16.msra.mxu1 %v6344_v43  ;;  %v167_v43 = vld [vmem:[#allocation5 + $0x2e8] sm:$0xff]  ;;  %7630 = vst [vmem:[#allocation92_spill] sm:$0xff] %v6376_v54  ;;  %7631 = vst [vmem:[#allocation93_spill] sm:$0xff] %v6380_v15 }
  0x9a   :  { %2068 = vmatprep.subr.bf16.mxu1 %v6349_v29  ;;  %v6373_v29 = vcombine.high %v299_v56, %v303_v45  ;;  %v295_v62 = vld [vmem:[#allocation5 + $0x6e8] sm:$0xff]  ;;  %v6382_v17 = vcombine.high %v163_v57, %v167_v43  ;;  %v6388_v51 = vcombine.low %v163_v57, %v167_v43 }
  0x9b   :  { %2026 = vmatpush2.bf16.msra.mxu0 %v6352_v35  ;;  %v155_v25 = vld [vmem:[#allocation5 + $0x288] sm:$0xff]  ;;  %v6392_v45 = vcombine.low %v291_v12, %v295_v62 }
  0x9c   :  { %2027 = vmatprep.subr.bf16.mxu0 %v6358_v47  ;;  %7629 = vst [vmem:[#allocation91_spill] sm:$0xff] %v6373_v29  ;;  %7632 = vst [vmem:[#allocation94_spill] sm:$0xff] %v6382_v17  ;;  %v283_v47 = vld [vmem:[#allocation5 + $0x688] sm:$0xff] }
  0x9d   :  { %2069 = vmatpush2.bf16.msra.mxu1 %v6356_v1  ;;  %v159_v1 = vld [vmem:[#allocation5 + $0x2a8] sm:$0xff]  ;;  %7634 = vst [vmem:[#allocation96_spill] sm:$0xff] %v6388_v51  ;;  %7635 = vst [vmem:[#allocation97_spill] sm:$0xff] %v6392_v45 }
  0x9e   :  { %2070 = vmatprep.subr.bf16.mxu1 %v6361_v37  ;;  %v6385_v37 = vcombine.high %v291_v12, %v295_v62  ;;  %v287_v35 = vld [vmem:[#allocation5 + $0x6a8] sm:$0xff]  ;;  %v6394_v56 = vcombine.high %v155_v25, %v159_v1  ;;  %v6400_v43 = vcombine.low %v155_v25, %v159_v1  ;;  %v132_v25 = vld [vmem:[#allocation5 + $0x1d0] sm:$0xff] }
  0x9f   :  { %2028 = vmatpush2.bf16.msra.mxu0 %v6364_v27  ;;  %v147_v49 = vld [vmem:[#allocation5 + $0x248] sm:$0xff]  ;;  %v6404_v62 = vcombine.low %v283_v47, %v287_v35 }
  0xa0   :  { %2029 = vmatprep.subr.bf16.mxu0 %v6370_v33  ;;  %7633 = vst [vmem:[#allocation95_spill] sm:$0xff] %v6385_v37  ;;  %7636 = vst [vmem:[#allocation98_spill] sm:$0xff] %v6394_v56  ;;  %v275_v33 = vld [vmem:[#allocation5 + $0x648] sm:$0xff] }
  0xa1   :  { %2071 = vmatpush2.bf16.msra.mxu1 %v6368_v7  ;;  %v151_v7 = vld [vmem:[#allocation5 + $0x268] sm:$0xff]  ;;  %7638 = vst [vmem:[#allocation100_spill] sm:$0xff] %v6400_v43  ;;  %7639 = vst [vmem:[#allocation101_spill] sm:$0xff] %v6404_v62 }
  0xa2   :  { %2072 = vmatprep.subr.bf16.mxu1 %v6373_v29  ;;  %v6397_v29 = vcombine.high %v283_v47, %v287_v35  ;;  %v279_v27 = vld [vmem:[#allocation5 + $0x668] sm:$0xff]  ;;  %v6406_v12 = vcombine.high %v147_v49, %v151_v7  ;;  %v6412_v1 = vcombine.low %v147_v49, %v151_v7  ;;  %v124_v49 = vld [vmem:[#allocation5 + $0x190] sm:$0xff] }
  0xa3   :  { %2030 = vmatpush2.bf16.msra.mxu0 %v6376_v54  ;;  %v139_v57 = vld [vmem:[#allocation5 + $0x208] sm:$0xff]  ;;  %v6416_v35 = vcombine.low %v275_v33, %v279_v27 }
  0xa4   :  { %2031 = vmatprep.subr.bf16.mxu0 %v6382_v17  ;;  %7637 = vst [vmem:[#allocation99_spill] sm:$0xff] %v6397_v29  ;;  %7640 = vst [vmem:[#allocation102_spill] sm:$0xff] %v6406_v12  ;;  %v267_v17 = vld [vmem:[#allocation5 + $0x608] sm:$0xff] }
  0xa5   :  { %2073 = vmatpush2.bf16.msra.mxu1 %v6380_v15  ;;  %v143_v15 = vld [vmem:[#allocation5 + $0x228] sm:$0xff]  ;;  %7642 = vst [vmem:[#allocation104_spill] sm:$0xff] %v6412_v1  ;;  %7643 = vst [vmem:[#allocation105_spill] sm:$0xff] %v6416_v35 }
  0xa6   :  { %2074 = vmatprep.subr.bf16.mxu1 %v6385_v37  ;;  %v6409_v37 = vcombine.high %v275_v33, %v279_v27  ;;  %v271_v54 = vld [vmem:[#allocation5 + $0x628] sm:$0xff]  ;;  %v6418_v47 = vcombine.high %v139_v57, %v143_v15  ;;  %v6424_v7 = vcombine.low %v139_v57, %v143_v15  ;;  %v116_v57 = vld [vmem:[#allocation5 + $0x150] sm:$0xff] }
  0xa7   :  { %2032 = vmatpush2.bf16.msra.mxu0 %v6388_v51  ;;  %v264_v51 = vld [vmem:[#allocation5 + $0x5f0] sm:$0xff]  ;;  %v6428_v27 = vcombine.low %v267_v17, %v271_v54 }
  0xa8   :  { %2033 = vmatprep.subr.bf16.mxu0 %v6394_v56  ;;  %7641 = vst [vmem:[#allocation103_spill] sm:$0xff] %v6409_v37  ;;  %7644 = vst [vmem:[#allocation106_spill] sm:$0xff] %v6418_v47  ;;  %v260_v56 = vld [vmem:[#allocation5 + $0x5d0] sm:$0xff] }
  0xa9   :  { %2075 = vmatpush2.bf16.msra.mxu1 %v6392_v45  ;;  %v136_v45 = vld [vmem:[#allocation5 + $0x1f0] sm:$0xff]  ;;  %7646 = vst [vmem:[#allocation108_spill] sm:$0xff] %v6424_v7  ;;  %7647 = vst [vmem:[#allocation109_spill] sm:$0xff] %v6428_v27 }
  0xaa   :  { %2076 = vmatprep.subr.bf16.mxu1 %v6397_v29  ;;  %v6421_v29 = vcombine.high %v267_v17, %v271_v54  ;;  %v6430_v33 = vcombine.high %v132_v25, %v136_v45  ;;  %v6436_v15 = vcombine.low %v132_v25, %v136_v45  ;;  %v6440_v54 = vcombine.low %v260_v56, %v264_v51  ;;  %v108_v25 = vld [vmem:[#allocation5 + $0x110] sm:$0xff] }
  0xab   :  { %2034 = vmatpush2.bf16.msra.mxu0 %v6400_v43  ;;  %v256_v43 = vld [vmem:[#allocation5 + $0x5b0] sm:$0xff] }
  0xac   :  { %2035 = vmatprep.subr.bf16.mxu0 %v6406_v12  ;;  %7645 = vst [vmem:[#allocation107_spill] sm:$0xff] %v6421_v29  ;;  %7648 = vst [vmem:[#allocation110_spill] sm:$0xff] %v6430_v33  ;;  %v252_v12 = vld [vmem:[#allocation5 + $0x590] sm:$0xff] }
  0xad   :  { %2077 = vmatpush2.bf16.msra.mxu1 %v6404_v62  ;;  %v128_v62 = vld [vmem:[#allocation5 + $0x1b0] sm:$0xff]  ;;  %7650 = vst [vmem:[#allocation112_spill] sm:$0xff] %v6436_v15  ;;  %7651 = vst [vmem:[#allocation113_spill] sm:$0xff] %v6440_v54 }
  0xae   :  { %2078 = vmatprep.subr.bf16.mxu1 %v6409_v37  ;;  %v6433_v37 = vcombine.high %v260_v56, %v264_v51  ;;  %v6442_v17 = vcombine.high %v124_v49, %v128_v62  ;;  %v6450_v45 = vcombine.low %v124_v49, %v128_v62  ;;  %v112_v51 = vld [vmem:[#allocation5 + $0x130] sm:$0xff]  ;;  %v6454_v56 = vcombine.low %v252_v12, %v256_v43 }
  0xaf   :  { %2036 = vmatpush2.bf16.msra.mxu0 %v6412_v1  ;;  %v100_v49 = vld [vmem:[#allocation5 + $0xd0] sm:$0xff] }
  0xb0   :  { %2037 = vmatprep.subr.bf16.mxu0 %v6418_v47  ;;  %7649 = vst [vmem:[#allocation111_spill] sm:$0xff] %v6433_v37  ;;  %7652 = vst [vmem:[#allocation114_spill] sm:$0xff] %v6442_v17  ;;  %v244_v47 = vld [vmem:[#allocation5 + $0x550] sm:$0xff] }
  0xb1   :  { %2079 = vmatpush2.bf16.msra.mxu1 %v6416_v35  ;;  %v120_v35 = vld [vmem:[#allocation5 + $0x170] sm:$0xff]  ;;  %7654 = vst [vmem:[#allocation116_spill] sm:$0xff] %v6450_v45  ;;  %7655 = vst [vmem:[#allocation117_spill] sm:$0xff] %v6454_v56 }
  0xb2   :  { %2080 = vmatprep.subr.bf16.mxu1 %v6421_v29  ;;  %v6445_v29 = vcombine.high %v252_v12, %v256_v43  ;;  %v6464_v62 = vcombine.low %v116_v57, %v120_v35  ;;  %v6470_v12 = vcombine.high %v108_v25, %v112_v51  ;;  %v232_v1 = vld [vmem:[#allocation5 + $0x4f0] sm:$0xff] }
  0xb3   :  { %2038 = vmatpush2.bf16.msra.mxu0 %v6424_v7  ;;  %v248_v7 = vld [vmem:[#allocation5 + $0x570] sm:$0xff] }
  0xb4   :  { %2093 = vmatprep.subr.bf16.mxu0 %v6430_v33  ;;  %7653 = vst [vmem:[#allocation115_spill] sm:$0xff] %v6445_v29  ;;  %v236_v33 = vld [vmem:[#allocation5 + $0x510] sm:$0xff]  ;;  %7658 = vst [vmem:[#allocation120_spill] sm:$0xff] %v6464_v62  ;;  %v6468_v43 = vcombine.low %v244_v47, %v248_v7 }
  0xb5   :  { %2081 = vmatpush2.bf16.msra.mxu1 %v6428_v27  ;;  %v6459_v27 = vcombine.high %v244_v47, %v248_v7  ;;  %7660 = vst [vmem:[#allocation122_spill] sm:$0xff] %v6470_v12 }
  0xb6   :  { %2136 = vmatprep.subr.bf16.mxu1 %v6433_v37  ;;  %2040 = vmatmul.mubr.bf16.vlgmr.msra.gmra.mxu0 %v6235_v23  ;;  %v6456_v37 = vcombine.high %v116_v57, %v120_v35  ;;  %7659 = vst [vmem:[#allocation121_spill] sm:$0xff] %v6468_v43  ;;  %v6476_v35 = vcombine.low %v108_v25, %v112_v51  ;;  %v92_v57 = vld [vmem:[#allocation5 + $0x90] sm:$0xff] }
  0xb7   :  { %2094 = vmatpush1.bf16.msra.mxu0 %v6436_v15  ;;  %7657 = vst [vmem:[#allocation119_spill] sm:$0xff] %v6459_v27  ;;  %2125 = vmatprep.mubr.bf16.mxu0 %v6109_v58  ;;  %v240_v15 = vld [vmem:[#allocation5 + $0x530] sm:$0xff] }
  0xb8   :  { %2083 = vmatmul.mubr.bf16.vlgmr.msra.gmra.mxu1 %v6238_v39  ;;  %2095 = vmatprep.subr.bf16.mxu0 %v6442_v17  ;;  %7656 = vst [vmem:[#allocation118_spill] sm:$0xff] %v6456_v37  ;;  %v228_v17 = vld [vmem:[#allocation5 + $0x4d0] sm:$0xff]  ;;  %7662 = vst [vmem:[#allocation124_spill] sm:$0xff] %v6476_v35  ;;  %v6480_v47 = vcombine.low %v236_v33, %v240_v15 }
  0xb9   :  { %2137 = vmatpush1.bf16.msra.mxu1 %v6440_v54  ;;  %2168 = vmatprep.mubr.bf16.mxu1 %v6111_v63  ;;  %v104_v54 = vld [vmem:[#allocation5 + $0xf0] sm:$0xff]  ;;  %v6492_v51 = vcombine.low %v228_v17, %v232_v1 }
  0xba   :  { %2138 = vmatprep.subr.bf16.mxu1 %v6445_v29  ;;  %v6473_v29 = vcombine.high %v236_v33, %v240_v15  ;;  %7663 = vst [vmem:[#allocation125_spill] sm:$0xff] %v6480_v47  ;;  %v6482_v7 = vcombine.high %v100_v49, %v104_v54  ;;  %v6488_v25 = vcombine.low %v100_v49, %v104_v54  ;;  %v76_v49 = vld [vmem:[#allocation5 + $0x10] sm:$0xff] }
  0xbb   :  { %2096 = vmatpush1.bf16.msra.mxu0 %v6450_v45  ;;  %v96_v45 = vld [vmem:[#allocation5 + $0xb0] sm:$0xff]  ;;  %7667 = vst [vmem:[#allocation129_spill] sm:$0xff] %v6492_v51 }
  0xbc   :  { %2097 = vmatprep.subr.bf16.mxu0 %v6456_v37  ;;  %7661 = vst [vmem:[#allocation123_spill] sm:$0xff] %v6473_v29  ;;  %7664 = vst [vmem:[#allocation126_spill] sm:$0xff] %v6482_v7  ;;  %v224_v37 = vld [vmem:[#allocation5 + $0x4b0] sm:$0xff]  ;;  %v6494_v33 = vcombine.high %v92_v57, %v96_v45  ;;  %v6500_v54 = vcombine.low %v92_v57, %v96_v45 }
  0xbd   :  { %2139 = vmatpush1.bf16.msra.mxu1 %v6454_v56  ;;  %v220_v56 = vld [vmem:[#allocation5 + $0x490] sm:$0xff]  ;;  %7666 = vst [vmem:[#allocation128_spill] sm:$0xff] %v6488_v25 }
  0xbe   :  { %2140 = vmatprep.subr.bf16.mxu1 %v6459_v27  ;;  %v6485_v27 = vcombine.high %v228_v17, %v232_v1  ;;  %7668 = vst [vmem:[#allocation130_spill] sm:$0xff] %v6494_v33  ;;  %v6497_v15 = vcombine.high %v220_v56, %v224_v37  ;;  %7670 = vst [vmem:[#allocation132_spill] sm:$0xff] %v6500_v54  ;;  %v6504_v1 = vcombine.low %v220_v56, %v224_v37  ;;  %v196_v57 = vld [vmem:[#allocation5 + $0x3d0] sm:$0xff] }
  0xbf   :  { %2098 = vmatpush1.bf16.msra.mxu0 %v6464_v62  ;;  %v216_v62 = vld [vmem:[#allocation5 + $0x470] sm:$0xff] }
  0xc0   :  { %2099 = vmatprep.subr.bf16.mxu0 %v6470_v12  ;;  %7665 = vst [vmem:[#allocation127_spill] sm:$0xff] %v6485_v27  ;;  %7669 = vst [vmem:[#allocation131_spill] sm:$0xff] %v6497_v15  ;;  %v212_v12 = vld [vmem:[#allocation5 + $0x450] sm:$0xff] }
  0xc1   :  { %2141 = vmatpush1.bf16.msra.mxu1 %v6468_v43  ;;  %v88_v43 = vld [vmem:[#allocation5 + $0x70] sm:$0xff]  ;;  %7671 = vst [vmem:[#allocation133_spill] sm:$0xff] %v6504_v1  ;;  %v6516_v37 = vcombine.low %v212_v12, %v216_v62 }
  0xc2   :  { %2142 = vmatprep.subr.bf16.mxu1 %v6473_v29  ;;  %v84_v29 = vld [vmem:[#allocation5 + $0x50] sm:$0xff] }
  0xc3   :  { %2100 = vmatpush1.bf16.msra.mxu0 %v6476_v35  ;;  %v6506_v17 = vcombine.high %v84_v29, %v88_v43  ;;  %v6509_v35 = vcombine.high %v212_v12, %v216_v62  ;;  %v6512_v45 = vcombine.low %v84_v29, %v88_v43  ;;  %7675 = vst [vmem:[#allocation137_spill] sm:$0xff] %v6516_v37  ;;  %v188_v43 = vld [vmem:[#allocation5 + $0x390] sm:$0xff] }
  0xc4   :  { %2101 = vmatprep.subr.bf16.mxu0 %v6482_v7  ;;  %v208_v7 = vld [vmem:[#allocation5 + $0x430] sm:$0xff] }
  0xc5   :  { %2143 = vmatpush1.bf16.msra.mxu1 %v6480_v47  ;;  %v80_v47 = vld [vmem:[#allocation5 + $0x30] sm:$0xff]  ;;  %7672 = vst [vmem:[#allocation134_spill] sm:$0xff] %v6506_v17  ;;  %7673 = vst [vmem:[#allocation135_spill] sm:$0xff] %v6509_v35 }
  0xc6   :  { %2144 = vmatprep.subr.bf16.mxu1 %v6485_v27  ;;  %v204_v27 = vld [vmem:[#allocation5 + $0x410] sm:$0xff]  ;;  %7674 = vst [vmem:[#allocation136_spill] sm:$0xff] %v6512_v45  ;;  %v6518_v56 = vcombine.high %v76_v49, %v80_v47  ;;  %v6524_v29 = vcombine.low %v76_v49, %v80_v47 }
  0xc7   :  { %2102 = vmatpush1.bf16.msra.mxu0 %v6488_v25  ;;  %v200_v25 = vld [vmem:[#allocation5 + $0x3f0] sm:$0xff]  ;;  %v6528_v62 = vcombine.low %v204_v27, %v208_v7 }
  0xc8   :  { %2103 = vmatprep.subr.bf16.mxu0 %v6494_v33  ;;  %7676 = vst [vmem:[#allocation138_spill] sm:$0xff] %v6518_v56  ;;  %v328_v33 = vld [vmem:[#allocation5 + $0x7f0] sm:$0xff]  ;;  %7678 = vst [vmem:[#allocation140_spill] sm:$0xff] %v6524_v29  ;;  %v6530_v12 = vcombine.high %v196_v57, %v200_v25  ;;  %v6536_v47 = vcombine.low %v196_v57, %v200_v25 }
  0xc9   :  { %2145 = vmatpush1.bf16.msra.mxu1 %v6492_v51  ;;  %v324_v51 = vld [vmem:[#allocation5 + $0x7d0] sm:$0xff]  ;;  %7679 = vst [vmem:[#allocation141_spill] sm:$0xff] %v6528_v62 }
  0xca   :  { %2146 = vmatprep.subr.bf16.mxu1 %v6497_v15  ;;  %v6521_v15 = vcombine.high %v204_v27, %v208_v7  ;;  %7680 = vst [vmem:[#allocation142_spill] sm:$0xff] %v6530_v12  ;;  %7682 = vst [vmem:[#allocation144_spill] sm:$0xff] %v6536_v47  ;;  %v180_v49 = vld [vmem:[#allocation5 + $0x350] sm:$0xff]  ;;  %v6540_v27 = vcombine.low %v324_v51, %v328_v33 }
  0xcb   :  { %2104 = vmatpush1.bf16.msra.mxu0 %v6500_v54  ;;  %v192_v54 = vld [vmem:[#allocation5 + $0x3b0] sm:$0xff] }
  0xcc   :  { %2105 = vmatprep.subr.bf16.mxu0 %v6506_v17  ;;  %7677 = vst [vmem:[#allocation139_spill] sm:$0xff] %v6521_v15  ;;  %v320_v17 = vld [vmem:[#allocation5 + $0x7b0] sm:$0xff]  ;;  %7683 = vst [vmem:[#allocation145_spill] sm:$0xff] %v6540_v27  ;;  %v6542_v7 = vcombine.high %v188_v43, %v192_v54  ;;  %v6548_v25 = vcombine.low %v188_v43, %v192_v54 }
  0xcd   :  { %2147 = vmatpush1.bf16.msra.mxu1 %v6504_v1  ;;  %v316_v1 = vld [vmem:[#allocation5 + $0x790] sm:$0xff] }
  0xce   :  { %2148 = vmatprep.subr.bf16.mxu1 %v6509_v35  ;;  %v6533_v35 = vcombine.high %v324_v51, %v328_v33  ;;  %7684 = vst [vmem:[#allocation146_spill] sm:$0xff] %v6542_v7  ;;  %7686 = vst [vmem:[#allocation148_spill] sm:$0xff] %v6548_v25  ;;  %v172_v57 = vld [vmem:[#allocation5 + $0x310] sm:$0xff]  ;;  %v6552_v51 = vcombine.low %v316_v1, %v320_v17 }
  0xcf   :  { %2106 = vmatpush1.bf16.msra.mxu0 %v6512_v45  ;;  %v184_v45 = vld [vmem:[#allocation5 + $0x370] sm:$0xff] }
  0xd0   :  { %2107 = vmatprep.subr.bf16.mxu0 %v6518_v56  ;;  %7681 = vst [vmem:[#allocation143_spill] sm:$0xff] %v6533_v35  ;;  %v312_v56 = vld [vmem:[#allocation5 + $0x770] sm:$0xff]  ;;  %7687 = vst [vmem:[#allocation149_spill] sm:$0xff] %v6552_v51  ;;  %v6554_v33 = vcombine.high %v180_v49, %v184_v45  ;;  %v6560_v54 = vcombine.low %v180_v49, %v184_v45 }
  0xd1   :  { %2149 = vmatpush1.bf16.msra.mxu1 %v6516_v37  ;;  %v308_v37 = vld [vmem:[#allocation5 + $0x750] sm:$0xff] }
  0xd2   :  { %2150 = vmatprep.subr.bf16.mxu1 %v6521_v15  ;;  %v6545_v15 = vcombine.high %v316_v1, %v320_v17  ;;  %7688 = vst [vmem:[#allocation150_spill] sm:$0xff] %v6554_v33  ;;  %7690 = vst [vmem:[#allocation152_spill] sm:$0xff] %v6560_v54  ;;  %v164_v43 = vld [vmem:[#allocation5 + $0x2d0] sm:$0xff]  ;;  %v6564_v1 = vcombine.low %v308_v37, %v312_v56 }
  0xd3   :  { %2108 = vmatpush1.bf16.msra.mxu0 %v6524_v29  ;;  %v176_v29 = vld [vmem:[#allocation5 + $0x330] sm:$0xff] }
  0xd4   :  { %2109 = vmatprep.subr.bf16.mxu0 %v6530_v12  ;;  %7685 = vst [vmem:[#allocation147_spill] sm:$0xff] %v6545_v15  ;;  %v304_v12 = vld [vmem:[#allocation5 + $0x730] sm:$0xff]  ;;  %7691 = vst [vmem:[#allocation153_spill] sm:$0xff] %v6564_v1  ;;  %v6566_v17 = vcombine.high %v172_v57, %v176_v29  ;;  %v6572_v45 = vcombine.low %v172_v57, %v176_v29 }
  0xd5   :  { %2151 = vmatpush1.bf16.msra.mxu1 %v6528_v62  ;;  %v300_v62 = vld [vmem:[#allocation5 + $0x710] sm:$0xff] }
  0xd6   :  { %2152 = vmatprep.subr.bf16.mxu1 %v6533_v35  ;;  %v6557_v35 = vcombine.high %v308_v37, %v312_v56  ;;  %7692 = vst [vmem:[#allocation154_spill] sm:$0xff] %v6566_v17  ;;  %7694 = vst [vmem:[#allocation156_spill] sm:$0xff] %v6572_v45  ;;  %v156_v49 = vld [vmem:[#allocation5 + $0x290] sm:$0xff]  ;;  %v6576_v37 = vcombine.low %v300_v62, %v304_v12 }
  0xd7   :  { %2110 = vmatpush2.bf16.msra.mxu0 %v6536_v47  ;;  %v168_v47 = vld [vmem:[#allocation5 + $0x2f0] sm:$0xff] }
  0xd8   :  { %2111 = vmatprep.subr.bf16.mxu0 %v6542_v7  ;;  %7689 = vst [vmem:[#allocation151_spill] sm:$0xff] %v6557_v35  ;;  %v296_v7 = vld [vmem:[#allocation5 + $0x6f0] sm:$0xff]  ;;  %7695 = vst [vmem:[#allocation157_spill] sm:$0xff] %v6576_v37  ;;  %v6578_v56 = vcombine.high %v164_v43, %v168_v47  ;;  %v6584_v29 = vcombine.low %v164_v43, %v168_v47 }
  0xd9   :  { %2153 = vmatpush2.bf16.msra.mxu1 %v6540_v27  ;;  %v292_v27 = vld [vmem:[#allocation5 + $0x6d0] sm:$0xff] }
  0xda   :  { %2154 = vmatprep.subr.bf16.mxu1 %v6545_v15  ;;  %v6569_v15 = vcombine.high %v300_v62, %v304_v12  ;;  %7696 = vst [vmem:[#allocation158_spill] sm:$0xff] %v6578_v56  ;;  %7698 = vst [vmem:[#allocation160_spill] sm:$0xff] %v6584_v29  ;;  %v148_v57 = vld [vmem:[#allocation5 + $0x250] sm:$0xff]  ;;  %v6588_v62 = vcombine.low %v292_v27, %v296_v7 }
  0xdb   :  { %2112 = vmatpush2.bf16.msra.mxu0 %v6548_v25  ;;  %v160_v25 = vld [vmem:[#allocation5 + $0x2b0] sm:$0xff] }
  0xdc   :  { %2113 = vmatprep.subr.bf16.mxu0 %v6554_v33  ;;  %7693 = vst [vmem:[#allocation155_spill] sm:$0xff] %v6569_v15  ;;  %v288_v33 = vld [vmem:[#allocation5 + $0x6b0] sm:$0xff]  ;;  %7699 = vst [vmem:[#allocation161_spill] sm:$0xff] %v6588_v62  ;;  %v6590_v12 = vcombine.high %v156_v49, %v160_v25  ;;  %v6596_v47 = vcombine.low %v156_v49, %v160_v25  ;;  %v133_v49 = vld [vmem:[#allocation5 + $0x1d8] sm:$0xff] }
  0xdd   :  { %2155 = vmatpush2.bf16.msra.mxu1 %v6552_v51  ;;  %v284_v51 = vld [vmem:[#allocation5 + $0x690] sm:$0xff] }
  0xde   :  { %2156 = vmatprep.subr.bf16.mxu1 %v6557_v35  ;;  %v6581_v35 = vcombine.high %v292_v27, %v296_v7  ;;  %7700 = vst [vmem:[#allocation162_spill] sm:$0xff] %v6590_v12  ;;  %7702 = vst [vmem:[#allocation164_spill] sm:$0xff] %v6596_v47  ;;  %v140_v43 = vld [vmem:[#allocation5 + $0x210] sm:$0xff]  ;;  %v6600_v27 = vcombine.low %v284_v51, %v288_v33 }
  0xdf   :  { %2114 = vmatpush2.bf16.msra.mxu0 %v6560_v54  ;;  %v152_v54 = vld [vmem:[#allocation5 + $0x270] sm:$0xff] }
  0xe0   :  { %2115 = vmatprep.subr.bf16.mxu0 %v6566_v17  ;;  %7697 = vst [vmem:[#allocation159_spill] sm:$0xff] %v6581_v35  ;;  %v280_v17 = vld [vmem:[#allocation5 + $0x670] sm:$0xff]  ;;  %7703 = vst [vmem:[#allocation165_spill] sm:$0xff] %v6600_v27  ;;  %v6602_v7 = vcombine.high %v148_v57, %v152_v54  ;;  %v6608_v25 = vcombine.low %v148_v57, %v152_v54  ;;  %v125_v57 = vld [vmem:[#allocation5 + $0x198] sm:$0xff] }
  0xe1   :  { %2157 = vmatpush2.bf16.msra.mxu1 %v6564_v1  ;;  %v276_v1 = vld [vmem:[#allocation5 + $0x650] sm:$0xff] }
  0xe2   :  { %2158 = vmatprep.subr.bf16.mxu1 %v6569_v15  ;;  %v6593_v15 = vcombine.high %v284_v51, %v288_v33  ;;  %7704 = vst [vmem:[#allocation166_spill] sm:$0xff] %v6602_v7  ;;  %7706 = vst [vmem:[#allocation168_spill] sm:$0xff] %v6608_v25  ;;  %v6612_v51 = vcombine.low %v276_v1, %v280_v17 }
  0xe3   :  { %2116 = vmatpush2.bf16.msra.mxu0 %v6572_v45  ;;  %v144_v45 = vld [vmem:[#allocation5 + $0x230] sm:$0xff] }
  0xe4   :  { %2117 = vmatprep.subr.bf16.mxu0 %v6578_v56  ;;  %7701 = vst [vmem:[#allocation163_spill] sm:$0xff] %v6593_v15  ;;  %v272_v56 = vld [vmem:[#allocation5 + $0x630] sm:$0xff]  ;;  %7707 = vst [vmem:[#allocation169_spill] sm:$0xff] %v6612_v51  ;;  %v6614_v33 = vcombine.high %v140_v43, %v144_v45  ;;  %v6620_v54 = vcombine.low %v140_v43, %v144_v45 }
  0xe5   :  { %2159 = vmatpush2.bf16.msra.mxu1 %v6576_v37  ;;  %v268_v37 = vld [vmem:[#allocation5 + $0x610] sm:$0xff] }
  0xe6   :  { %2160 = vmatprep.subr.bf16.mxu1 %v6581_v35  ;;  %v6605_v35 = vcombine.high %v276_v1, %v280_v17  ;;  %7708 = vst [vmem:[#allocation170_spill] sm:$0xff] %v6614_v33  ;;  %7710 = vst [vmem:[#allocation172_spill] sm:$0xff] %v6620_v54  ;;  %v6624_v1 = vcombine.low %v268_v37, %v272_v56 }
  0xe7   :  { %2118 = vmatpush2.bf16.msra.mxu0 %v6584_v29  ;;  %v137_v29 = vld [vmem:[#allocation5 + $0x1f8] sm:$0xff] }
  0xe8   :  { %2119 = vmatprep.subr.bf16.mxu0 %v6590_v12  ;;  %7705 = vst [vmem:[#allocation167_spill] sm:$0xff] %v6605_v35  ;;  %v265_v12 = vld [vmem:[#allocation5 + $0x5f8] sm:$0xff]  ;;  %7711 = vst [vmem:[#allocation173_spill] sm:$0xff] %v6624_v1  ;;  %v6626_v17 = vcombine.high %v133_v49, %v137_v29  ;;  %v6632_v45 = vcombine.low %v133_v49, %v137_v29 }
  0xe9   :  { %2161 = vmatpush2.bf16.msra.mxu1 %v6588_v62  ;;  %v261_v62 = vld [vmem:[#allocation5 + $0x5d8] sm:$0xff] }
  0xea   :  { %2162 = vmatprep.subr.bf16.mxu1 %v6593_v15  ;;  %v6617_v15 = vcombine.high %v268_v37, %v272_v56  ;;  %7712 = vst [vmem:[#allocation174_spill] sm:$0xff] %v6626_v17  ;;  %7714 = vst [vmem:[#allocation176_spill] sm:$0xff] %v6632_v45  ;;  %v6636_v43 = vcombine.low %v261_v62, %v265_v12 }
  0xeb   :  { %2120 = vmatpush2.bf16.msra.mxu0 %v6596_v47  ;;  %v129_v47 = vld [vmem:[#allocation5 + $0x1b8] sm:$0xff] }
  0xec   :  { %2121 = vmatprep.subr.bf16.mxu0 %v6602_v7  ;;  %7709 = vst [vmem:[#allocation171_spill] sm:$0xff] %v6617_v15  ;;  %v257_v7 = vld [vmem:[#allocation5 + $0x5b8] sm:$0xff]  ;;  %7715 = vst [vmem:[#allocation177_spill] sm:$0xff] %v6636_v43  ;;  %v6638_v37 = vcombine.high %v125_v57, %v129_v47  ;;  %v6646_v29 = vcombine.low %v125_v57, %v129_v47 }
  0xed   :  { %2163 = vmatpush2.bf16.msra.mxu1 %v6600_v27  ;;  %v253_v27 = vld [vmem:[#allocation5 + $0x598] sm:$0xff] }
  0xee   :  { %2164 = vmatprep.subr.bf16.mxu1 %v6605_v35  ;;  %v6629_v35 = vcombine.high %v261_v62, %v265_v12  ;;  %7716 = vst [vmem:[#allocation178_spill] sm:$0xff] %v6638_v37  ;;  %v6641_v56 = vcombine.high %v253_v27, %v257_v7  ;;  %7718 = vst [vmem:[#allocation180_spill] sm:$0xff] %v6646_v29  ;;  %v6650_v62 = vcombine.low %v253_v27, %v257_v7 }
  0xef   :  { %2122 = vmatpush2.bf16.msra.mxu0 %v6608_v25  ;;  %v5244_v25 = vld [vmem:[#allocation8 + $0x64] ss:$16 sps:$4 sm:$0xff]  }
  0xf0   :  { %2123 = vmatprep.subr.bf16.mxu0 %v6614_v33  ;;  %7713 = vst [vmem:[#allocation175_spill] sm:$0xff] %v6629_v35  ;;  %7717 = vst [vmem:[#allocation179_spill] sm:$0xff] %v6641_v56  ;;  %v245_v33 = vld [vmem:[#allocation5 + $0x558] sm:$0xff] }
  0xf1   :  { %2165 = vmatpush2.bf16.msra.mxu1 %v6612_v51  ;;  %v117_v51 = vld [vmem:[#allocation5 + $0x158] sm:$0xff]  ;;  %7719 = vst [vmem:[#allocation181_spill] sm:$0xff] %v6650_v62 }
  0xf2   :  { %2166 = vmatprep.subr.bf16.mxu1 %v6617_v15  ;;  %v121_v15 = vld [vmem:[#allocation5 + $0x178] sm:$0xff] }
  0xf3   :  { %2124 = vmatpush2.bf16.msra.mxu0 %v6620_v54  ;;  %v249_v54 = vld [vmem:[#allocation5 + $0x578] sm:$0xff]  ;;  %v6652_v12 = vcombine.high %v117_v51, %v121_v15  ;;  %v6660_v47 = vcombine.low %v117_v51, %v121_v15 }
  0xf4   :  { %2179 = vmatprep.subr.bf16.mxu0 %v6626_v17  ;;  %v6655_v49 = vcombine.high %v245_v33, %v249_v54  ;;  %v237_v17 = vld [vmem:[#allocation5 + $0x518] sm:$0xff]  ;;  %v6664_v27 = vcombine.low %v245_v33, %v249_v54 }
  0xf5   :  { %2167 = vmatpush2.bf16.msra.mxu1 %v6624_v1  ;;  %7720 = vst [vmem:[#allocation182_spill] sm:$0xff] %v6652_v12  ;;  %v113_v1 = vld [vmem:[#allocation5 + $0x138] sm:$0xff]  ;;  %7722 = vst [vmem:[#allocation184_spill] sm:$0xff] %v6660_v47 }
  0xf6   :  { %2222 = vmatprep.subr.bf16.mxu1 %v6629_v35  ;;  %2126 = vmatmul.mubr.bf16.vlgmr.msra.gmra.mxu0 %v6235_v23  ;;  %7721 = vst [vmem:[#allocation183_spill] sm:$0xff] %v6655_v49  ;;  %v109_v35 = vld [vmem:[#allocation5 + $0x118] sm:$0xff]  ;;  %7723 = vst [vmem:[#allocation185_spill] sm:$0xff] %v6664_v27 }
  0xf7   :  { %2180 = vmatpush1.bf16.msra.mxu0 %v6632_v45  ;;  %2211 = vmatprep.mubr.bf16.mxu0 %v6109_v58  ;;  %v241_v45 = vld [vmem:[#allocation5 + $0x538] sm:$0xff]  ;;  %v6666_v7 = vcombine.high %v109_v35, %v113_v1  ;;  %v6672_v15 = vcombine.low %v109_v35, %v113_v1 }
  0xf8   :  { %2169 = vmatmul.mubr.bf16.vlgmr.msra.gmra.mxu1 %v6238_v39  ;;  %2181 = vmatprep.subr.bf16.mxu0 %v6638_v37  ;;  %v6669_v57 = vcombine.high %v237_v17, %v241_v45  ;;  %v101_v58 = vld [vmem:[#allocation5 + $0xd8] sm:$0xff]  ;;  %v6676_v51 = vcombine.low %v237_v17, %v241_v45 }
  0xf9   :  { %2223 = vmatpush1.bf16.msra.mxu1 %v6636_v43  ;;  %2254 = vmatprep.mubr.bf16.mxu1 %v6111_v63  ;;  %7724 = vst [vmem:[#allocation186_spill] sm:$0xff] %v6666_v7  ;;  %v229_v43 = vld [vmem:[#allocation5 + $0x4d8] sm:$0xff]  ;;  %7726 = vst [vmem:[#allocation188_spill] sm:$0xff] %v6672_v15 }
  0xfa   :  { %2224 = vmatprep.subr.bf16.mxu1 %v6641_v56  ;;  %7725 = vst [vmem:[#allocation187_spill] sm:$0xff] %v6669_v57  ;;  %v105_v56 = vld [vmem:[#allocation5 + $0xf8] sm:$0xff]  ;;  %7727 = vst [vmem:[#allocation189_spill] sm:$0xff] %v6676_v51 }
  0xfb   :  { %2182 = vmatpush1.bf16.msra.mxu0 %v6646_v29  ;;  %v233_v63 = vld [vmem:[#allocation5 + $0x4f8] sm:$0xff]  ;;  %v6678_v33 = vcombine.high %v101_v58, %v105_v56  ;;  %v6684_v35 = vcombine.low %v101_v58, %v105_v56 }
  0xfc   :  { %2183 = vmatprep.subr.bf16.mxu0 %v6652_v12  ;;  %v6681_v54 = vcombine.high %v229_v43, %v233_v63  ;;  %v221_v12 = vld [vmem:[#allocation5 + $0x498] sm:$0xff]  ;;  %v6688_v1 = vcombine.low %v229_v43, %v233_v63 }
  0xfd   :  { %2225 = vmatpush1.bf16.msra.mxu1 %v6650_v62  ;;  %7728 = vst [vmem:[#allocation190_spill] sm:$0xff] %v6678_v33  ;;  %v97_v62 = vld [vmem:[#allocation5 + $0xb8] sm:$0xff]  ;;  %7730 = vst [vmem:[#allocation192_spill] sm:$0xff] %v6684_v35 }
  0xfe   :  { %2226 = vmatprep.subr.bf16.mxu1 %v6655_v49  ;;  %7729 = vst [vmem:[#allocation191_spill] sm:$0xff] %v6681_v54  ;;  %v93_v49 = vld [vmem:[#allocation5 + $0x98] sm:$0xff]  ;;  %7731 = vst [vmem:[#allocation193_spill] sm:$0xff] %v6688_v1 }
  0xff   :  { %2184 = vmatpush1.bf16.msra.mxu0 %v6660_v47  ;;  %v225_v29 = vld [vmem:[#allocation5 + $0x4b8] sm:$0xff]  ;;  %v6690_v17 = vcombine.high %v93_v49, %v97_v62  ;;  %v6696_v56 = vcombine.low %v93_v49, %v97_v62 }
 0x100   :  { %2185 = vmatprep.subr.bf16.mxu0 %v6666_v7  ;;  %v6693_v45 = vcombine.high %v221_v12, %v225_v29  ;;  %v213_v7 = vld [vmem:[#allocation5 + $0x458] sm:$0xff]  ;;  %v6700_v43 = vcombine.low %v221_v12, %v225_v29 }
 0x101   :  { %2227 = vmatpush1.bf16.msra.mxu1 %v6664_v27  ;;  %7732 = vst [vmem:[#allocation194_spill] sm:$0xff] %v6690_v17  ;;  %v89_v27 = vld [vmem:[#allocation5 + $0x78] sm:$0xff]  ;;  %7734 = vst [vmem:[#allocation196_spill] sm:$0xff] %v6696_v56 }
 0x102   :  { %2228 = vmatprep.subr.bf16.mxu1 %v6669_v57  ;;  %7733 = vst [vmem:[#allocation195_spill] sm:$0xff] %v6693_v45  ;;  %v85_v57 = vld [vmem:[#allocation5 + $0x58] sm:$0xff]  ;;  %7735 = vst [vmem:[#allocation197_spill] sm:$0xff] %v6700_v43 }
 0x103   :  { %2186 = vmatpush1.bf16.msra.mxu0 %v6672_v15  ;;  %v217_v47 = vld [vmem:[#allocation5 + $0x478] sm:$0xff]  ;;  %v6702_v58 = vcombine.high %v85_v57, %v89_v27  ;;  %v6708_v62 = vcombine.low %v85_v57, %v89_v27 }
 0x104   :  { %2187 = vmatprep.subr.bf16.mxu0 %v6678_v33  ;;  %v6705_v63 = vcombine.high %v213_v7, %v217_v47  ;;  %v205_v33 = vld [vmem:[#allocation5 + $0x418] sm:$0xff]  ;;  %v6712_v29 = vcombine.low %v213_v7, %v217_v47 }
 0x105   :  { %2229 = vmatpush1.bf16.msra.mxu1 %v6676_v51  ;;  %7736 = vst [vmem:[#allocation198_spill] sm:$0xff] %v6702_v58  ;;  %v81_v51 = vld [vmem:[#allocation5 + $0x38] sm:$0xff]  ;;  %7738 = vst [vmem:[#allocation200_spill] sm:$0xff] %v6708_v62 }
 0x106   :  { %2230 = vmatprep.subr.bf16.mxu1 %v6681_v54  ;;  %7737 = vst [vmem:[#allocation199_spill] sm:$0xff] %v6705_v63  ;;  %v77_v54 = vld [vmem:[#allocation5 + $0x18] sm:$0xff]  ;;  %7739 = vst [vmem:[#allocation201_spill] sm:$0xff] %v6712_v29 }
 0x107   :  { %2188 = vmatpush1.bf16.msra.mxu0 %v6684_v35  ;;  %v209_v15 = vld [vmem:[#allocation5 + $0x438] sm:$0xff]  ;;  %v6714_v12 = vcombine.high %v77_v54, %v81_v51  ;;  %v6720_v27 = vcombine.low %v77_v54, %v81_v51 }
 0x108   :  { %2189 = vmatprep.subr.bf16.mxu0 %v6690_v17  ;;  %v6717_v49 = vcombine.high %v205_v33, %v209_v15  ;;  %v325_v17 = vld [vmem:[#allocation5 + $0x7d8] sm:$0xff]  ;;  %v6724_v47 = vcombine.low %v205_v33, %v209_v15 }
 0x109   :  { %2231 = vmatpush1.bf16.msra.mxu1 %v6688_v1  ;;  %7740 = vst [vmem:[#allocation202_spill] sm:$0xff] %v6714_v12  ;;  %v201_v1 = vld [vmem:[#allocation5 + $0x3f8] sm:$0xff]  ;;  %7742 = vst [vmem:[#allocation204_spill] sm:$0xff] %v6720_v27 }
 0x10a   :  { %2232 = vmatprep.subr.bf16.mxu1 %v6693_v45  ;;  %7741 = vst [vmem:[#allocation203_spill] sm:$0xff] %v6717_v49  ;;  %v197_v45 = vld [vmem:[#allocation5 + $0x3d8] sm:$0xff]  ;;  %7743 = vst [vmem:[#allocation205_spill] sm:$0xff] %v6724_v47 }
 0x10b   :  { %2190 = vmatpush1.bf16.msra.mxu0 %v6696_v56  ;;  %v329_v35 = vld [vmem:[#allocation5 + $0x7f8] sm:$0xff]  ;;  %v6726_v7 = vcombine.high %v197_v45, %v201_v1  ;;  %v6732_v51 = vcombine.low %v197_v45, %v201_v1 }
 0x10c   :  { %2191 = vmatprep.subr.bf16.mxu0 %v6702_v58  ;;  %v6729_v57 = vcombine.high %v325_v17, %v329_v35  ;;  %v317_v58 = vld [vmem:[#allocation5 + $0x798] sm:$0xff]  ;;  %v6736_v15 = vcombine.low %v325_v17, %v329_v35 }
 0x10d   :  { %2233 = vmatpush1.bf16.msra.mxu1 %v6700_v43  ;;  %7744 = vst [vmem:[#allocation206_spill] sm:$0xff] %v6726_v7  ;;  %v193_v43 = vld [vmem:[#allocation5 + $0x3b8] sm:$0xff]  ;;  %7746 = vst [vmem:[#allocation208_spill] sm:$0xff] %v6732_v51 }
 0x10e   :  { %2234 = vmatprep.subr.bf16.mxu1 %v6705_v63  ;;  %7745 = vst [vmem:[#allocation207_spill] sm:$0xff] %v6729_v57  ;;  %v189_v63 = vld [vmem:[#allocation5 + $0x398] sm:$0xff]  ;;  %7747 = vst [vmem:[#allocation209_spill] sm:$0xff] %v6736_v15 }
 0x10f   :  { %2192 = vmatpush1.bf16.msra.mxu0 %v6708_v62  ;;  %v321_v56 = vld [vmem:[#allocation5 + $0x7b8] sm:$0xff]  ;;  %v6738_v33 = vcombine.high %v189_v63, %v193_v43  ;;  %v6744_v1 = vcombine.low %v189_v63, %v193_v43 }
 0x110   :  { %2193 = vmatprep.subr.bf16.mxu0 %v6714_v12  ;;  %v6741_v54 = vcombine.high %v317_v58, %v321_v56  ;;  %v309_v12 = vld [vmem:[#allocation5 + $0x758] sm:$0xff]  ;;  %v6748_v35 = vcombine.low %v317_v58, %v321_v56 }
 0x111   :  { %2235 = vmatpush1.bf16.msra.mxu1 %v6712_v29  ;;  %7748 = vst [vmem:[#allocation210_spill] sm:$0xff] %v6738_v33  ;;  %v185_v29 = vld [vmem:[#allocation5 + $0x378] sm:$0xff]  ;;  %7750 = vst [vmem:[#allocation212_spill] sm:$0xff] %v6744_v1 }
 0x112   :  { %2236 = vmatprep.subr.bf16.mxu1 %v6717_v49  ;;  %7749 = vst [vmem:[#allocation211_spill] sm:$0xff] %v6741_v54  ;;  %v181_v49 = vld [vmem:[#allocation5 + $0x358] sm:$0xff]  ;;  %7751 = vst [vmem:[#allocation213_spill] sm:$0xff] %v6748_v35 }
 0x113   :  { %2194 = vmatpush1.bf16.msra.mxu0 %v6720_v27  ;;  %v313_v62 = vld [vmem:[#allocation5 + $0x778] sm:$0xff]  ;;  %v6750_v17 = vcombine.high %v181_v49, %v185_v29  ;;  %v6756_v43 = vcombine.low %v181_v49, %v185_v29 }
 0x114   :  { %2195 = vmatprep.subr.bf16.mxu0 %v6726_v7  ;;  %v6753_v45 = vcombine.high %v309_v12, %v313_v62  ;;  %v301_v7 = vld [vmem:[#allocation5 + $0x718] sm:$0xff]  ;;  %v6760_v56 = vcombine.low %v309_v12, %v313_v62 }
 0x115   :  { %2237 = vmatpush1.bf16.msra.mxu1 %v6724_v47  ;;  %7752 = vst [vmem:[#allocation214_spill] sm:$0xff] %v6750_v17  ;;  %v177_v47 = vld [vmem:[#allocation5 + $0x338] sm:$0xff]  ;;  %7754 = vst [vmem:[#allocation216_spill] sm:$0xff] %v6756_v43 }
 0x116   :  { %2238 = vmatprep.subr.bf16.mxu1 %v6729_v57  ;;  %7753 = vst [vmem:[#allocation215_spill] sm:$0xff] %v6753_v45  ;;  %v173_v57 = vld [vmem:[#allocation5 + $0x318] sm:$0xff]  ;;  %7755 = vst [vmem:[#allocation217_spill] sm:$0xff] %v6760_v56 }
 0x117   :  { %2196 = vmatpush2.bf16.msra.mxu0 %v6732_v51  ;;  %v305_v27 = vld [vmem:[#allocation5 + $0x738] sm:$0xff]  ;;  %v6762_v58 = vcombine.high %v173_v57, %v177_v47  ;;  %v6768_v29 = vcombine.low %v173_v57, %v177_v47 }
 0x118   :  { %2197 = vmatprep.subr.bf16.mxu0 %v6738_v33  ;;  %v6765_v63 = vcombine.high %v301_v7, %v305_v27  ;;  %v293_v33 = vld [vmem:[#allocation5 + $0x6d8] sm:$0xff]  ;;  %v6772_v62 = vcombine.low %v301_v7, %v305_v27 }
 0x119   :  { %2239 = vmatpush2.bf16.msra.mxu1 %v6736_v15  ;;  %7756 = vst [vmem:[#allocation218_spill] sm:$0xff] %v6762_v58  ;;  %v169_v15 = vld [vmem:[#allocation5 + $0x2f8] sm:$0xff]  ;;  %7758 = vst [vmem:[#allocation220_spill] sm:$0xff] %v6768_v29 }
 0x11a   :  { %2240 = vmatprep.subr.bf16.mxu1 %v6741_v54  ;;  %7757 = vst [vmem:[#allocation219_spill] sm:$0xff] %v6765_v63  ;;  %v165_v54 = vld [vmem:[#allocation5 + $0x2d8] sm:$0xff]  ;;  %7759 = vst [vmem:[#allocation221_spill] sm:$0xff] %v6772_v62 }
 0x11b   :  { %2198 = vmatpush2.bf16.msra.mxu0 %v6744_v1  ;;  %v297_v51 = vld [vmem:[#allocation5 + $0x6f8] sm:$0xff]  ;;  %v6774_v12 = vcombine.high %v165_v54, %v169_v15  ;;  %v6780_v47 = vcombine.low %v165_v54, %v169_v15 }
 0x11c   :  { %2199 = vmatprep.subr.bf16.mxu0 %v6750_v17  ;;  %v6777_v49 = vcombine.high %v293_v33, %v297_v51  ;;  %v285_v17 = vld [vmem:[#allocation5 + $0x698] sm:$0xff]  ;;  %v6784_v27 = vcombine.low %v293_v33, %v297_v51 }
 0x11d   :  { %2241 = vmatpush2.bf16.msra.mxu1 %v6748_v35  ;;  %7760 = vst [vmem:[#allocation222_spill] sm:$0xff] %v6774_v12  ;;  %v161_v35 = vld [vmem:[#allocation5 + $0x2b8] sm:$0xff]  ;;  %7762 = vst [vmem:[#allocation224_spill] sm:$0xff] %v6780_v47 }
 0x11e   :  { %2242 = vmatprep.subr.bf16.mxu1 %v6753_v45  ;;  %7761 = vst [vmem:[#allocation223_spill] sm:$0xff] %v6777_v49  ;;  %v157_v45 = vld [vmem:[#allocation5 + $0x298] sm:$0xff]  ;;  %7763 = vst [vmem:[#allocation225_spill] sm:$0xff] %v6784_v27 }
 0x11f   :  { %2200 = vmatpush2.bf16.msra.mxu0 %v6756_v43  ;;  %v289_v1 = vld [vmem:[#allocation5 + $0x6b8] sm:$0xff]  ;;  %v6786_v7 = vcombine.high %v157_v45, %v161_v35  ;;  %v6792_v15 = vcombine.low %v157_v45, %v161_v35 }
 0x120   :  { %2201 = vmatprep.subr.bf16.mxu0 %v6762_v58  ;;  %v6789_v57 = vcombine.high %v285_v17, %v289_v1  ;;  %v277_v58 = vld [vmem:[#allocation5 + $0x658] sm:$0xff]  ;;  %v6796_v51 = vcombine.low %v285_v17, %v289_v1 }
 0x121   :  { %2243 = vmatpush2.bf16.msra.mxu1 %v6760_v56  ;;  %7764 = vst [vmem:[#allocation226_spill] sm:$0xff] %v6786_v7  ;;  %v153_v56 = vld [vmem:[#allocation5 + $0x278] sm:$0xff]  ;;  %7766 = vst [vmem:[#allocation228_spill] sm:$0xff] %v6792_v15 }
 0x122   :  { %2244 = vmatprep.subr.bf16.mxu1 %v6765_v63  ;;  %7765 = vst [vmem:[#allocation227_spill] sm:$0xff] %v6789_v57  ;;  %v149_v63 = vld [vmem:[#allocation5 + $0x258] sm:$0xff]  ;;  %7767 = vst [vmem:[#allocation229_spill] sm:$0xff] %v6796_v51 }
 0x123   :  { %2202 = vmatpush2.bf16.msra.mxu0 %v6768_v29  ;;  %v281_v43 = vld [vmem:[#allocation5 + $0x678] sm:$0xff]  ;;  %v6798_v33 = vcombine.high %v149_v63, %v153_v56  ;;  %v6804_v35 = vcombine.low %v149_v63, %v153_v56 }
 0x124   :  { %2203 = vmatprep.subr.bf16.mxu0 %v6774_v12  ;;  %v6801_v54 = vcombine.high %v277_v58, %v281_v43  ;;  %v601_v12 = vlaneseq  ;;  %v269_v29 = vld [vmem:[#allocation5 + $0x618] sm:$0xff]  ;;  %v6808_v1 = vcombine.low %v277_v58, %v281_v43 }
 0x125   :  { %2245 = vmatpush2.bf16.msra.mxu1 %v6772_v62  ;;  %7768 = vst [vmem:[#allocation230_spill] sm:$0xff] %v6798_v33  ;;  %v145_v62 = vld [vmem:[#allocation5 + $0x238] sm:$0xff]  ;;  %7770 = vst [vmem:[#allocation232_spill] sm:$0xff] %v6804_v35 }
 0x126   :  { %2246 = vmatprep.subr.bf16.mxu1 %v6777_v49  ;;  %7769 = vst [vmem:[#allocation231_spill] sm:$0xff] %v6801_v54  ;;  %v141_v49 = vld [vmem:[#allocation5 + $0x218] sm:$0xff]  ;;  %7771 = vst [vmem:[#allocation233_spill] sm:$0xff] %v6808_v1 }
 0x127   :  { %2204 = vmatpush2.bf16.msra.mxu0 %v6780_v47  ;;  %v273_v37 = vld [vmem:[#allocation5 + $0x638] sm:$0xff]  ;;  %v6810_v17 = vcombine.high %v141_v49, %v145_v62 }
 0x128   :  { %2205 = vmatprep.subr.bf16.mxu0 %v6786_v7  ;;  %v6813_v45 = vcombine.high %v269_v29, %v273_v37  ;;  %v6822_v56 = vcombine.low %v269_v29, %v273_v37  ;;  %v5232_v43 = vld [vmem:[#allocation8 + $0xe4] ss:$16 sps:$4 sm:$0xff]  }
 0x129   :  { %2247 = vmatpush2.bf16.msra.mxu1 %v6784_v27  ;;  %7772 = vst [vmem:[#allocation234_spill] sm:$0xff] %v6810_v17  ;;  %v6818_v27 = vcombine.low %v141_v49, %v145_v62  ;;  %v5247_v63 = vld [vmem:[#allocation8 + $0x2e4] ss:$16 sps:$4 sm:$0xff]   ;;  %v5245_v49 = vld [vmem:[#allocation8 + $0x2e0] ss:$16 sps:$4 sm:$0xff]  }
 0x12a   :  { %2248 = vmatprep.subr.bf16.mxu1 %v6789_v57  ;;  %7773 = vst [vmem:[#allocation235_spill] sm:$0xff] %v6813_v45  ;;  %v6815_v57 = vshrl.u32 %v601_v12, 7  ;;  %7775 = vst [vmem:[#allocation237_spill] sm:$0xff] %v6822_v56  ;;  %v5230_v12 = vld [vmem:[#allocation8 + $0xe0] ss:$16 sps:$4 sm:$0xff]  }
 0x12b   :  { %2206 = vmatpush2.bf16.msra.mxu0 %v6792_v15  ;;  %7774 = vst [vmem:[#allocation236_spill] sm:$0xff] %v6818_v27  ;;  %v5235_v62 = vld [vmem:[#allocation8 + $0xc4] ss:$16 sps:$4 sm:$0xff]  }
 0x12c   :  { %2207 = vmatprep.subr.bf16.mxu0 %v6798_v33  ;;  %v7521_v58 = vsub.s32 1, %v6815_v57  ;;  %v5253_v29 = vld [vmem:[#allocation8 + $0x2c4] ss:$16 sps:$4 sm:$0xff]  }
 0x12d   :  { %2249 = vmatpush2.bf16.msra.mxu1 %v6796_v51  ;;  %v5238_v51 = vld [vmem:[#allocation8 + $0xa4] ss:$16 sps:$4 sm:$0xff]  }
 0x12e   :  { %2250 = vmatprep.subr.bf16.mxu1 %v6801_v54  ;;  %v6826_v54 = vld [vmem:[#allocation7] sm:$0xff]  ;;  %v5265_v7 = vld [vmem:[#allocation8 + $0x284] ss:$16 sps:$4 sm:$0xff]  }
 0x12f   :  { %2208 = vmatpush2.bf16.msra.mxu0 %v6804_v35  ;;  %v6833_v37 = vrot.slane %v6826_v54, %v7521_v58 }
 0x130   :  { %2209 = vmatprep.subr.bf16.mxu0 %v6810_v17 }
 0x131   :  { %2251 = vmatpush2.bf16.msra.mxu1 %v6808_v1  ;;  %7776 = vst [vmem:[#allocation238_spill] sm:$0xff] %v6833_v37 }
 0x132   :  { %2252 = vmatprep.subr.bf16.mxu1 %v6813_v45 }
 0x133   :  { %2210 = vmatpush2.bf16.msra.mxu0 %v6818_v27  ;;  %v5251_v27 = vld [vmem:[#allocation8 + $0x2c0] ss:$16 sps:$4 sm:$0xff]  }
 0x134   :  { %3590 = vmatprep.subr.bf16.mxu0 %v5232_v43 }
 0x135   :  { %2253 = vmatpush2.bf16.msra.mxu1 %v6822_v56  ;;  %v5233_v56 = vld [vmem:[#allocation8 + $0xc0] ss:$16 sps:$4 sm:$0xff]  }
 0x136   :  { %3633 = vmatprep.subr.bf16.mxu1 %v5247_v63  ;;  %v6835_v45 = vpop.f32.mrf.mxu0  ;;  %2212 = vmatmul.mubr.bf16.vlgmr.msra.gmra.mxu0 %v6235_v23  ;;  %v5259_v63 = vld [vmem:[#allocation8 + $0x2a4] ss:$16 sps:$4 sm:$0xff]   ;;  %v5236_v23 = vld [vmem:[#allocation8 + $0xa0] ss:$16 sps:$4 sm:$0xff]  }
 0x137   :  { %3591 = vmatpush1.bf16.msra.mxu0 %v5230_v12  ;;  %v5257_v12 = vld [vmem:[#allocation8 + $0x2a0] ss:$16 sps:$4 sm:$0xff]  }
 0x138   :  { %v6838_v1 = vpop.f32.mrf.mxu1  ;;  %2255 = vmatmul.mubr.bf16.vlgmr.msra.gmra.mxu1 %v6238_v39  ;;  %v1957_v43 = vpop.f32.mrf.mxu0  ;;  %3592 = vmatprep.subr.bf16.mxu0 %v5235_v62  ;;  %v5241_v39 = vld [vmem:[#allocation8 + $0x84] ss:$16 sps:$4 sm:$0xff]  }
 0x139   :  { %3634 = vmatpush1.bf16.msra.mxu1 %v5245_v49  ;;  %v1958_v58 = vadd.f32 %v1957_v43, %v6833_v37 }
 0x13a   :  { %v2000_v17 = vpop.f32.mrf.mxu1  ;;  %3635 = vmatprep.subr.bf16.mxu1 %v5253_v29  ;;  %v6842_v35 = vpop.f32.mrf.mxu0  ;;  %v5239_v29 = vld [vmem:[#allocation8 + $0x80] ss:$16 sps:$4 sm:$0xff]  }
 0x13b   :  { %3593 = vmatpush1.bf16.msra.mxu0 %v5233_v56  ;;  %v2001_v62 = vadd.f32 %v2000_v17, %v1958_v58  ;;  %v5269_v17 = vld [vmem:[#allocation8 + $0x260] ss:$16 sps:$4 sm:$0xff]   ;;  %v5277_v58 = vld [vmem:[#allocation8 + $0x244] ss:$16 sps:$4 sm:$0xff]  }
 0x13c   :  { %v6844_v33 = vpop.f32.mrf.mxu1  ;;  %v1961_v15 = vpop.f32.mrf.mxu0  ;;  %3594 = vmatprep.subr.bf16.mxu0 %v5238_v51  ;;  %v5271_v51 = vld [vmem:[#allocation8 + $0x264] ss:$16 sps:$4 sm:$0xff]  }
 0x13d   :  { %3636 = vmatpush1.bf16.msra.mxu1 %v5251_v27  ;;  %v1962_v49 = vadd.f32 %v1961_v15, %v6833_v37  ;;  %v2266_v56 = vmax.f32 %v2001_v62, 0.0  ;;  %v5242_v27 = vld [vmem:[#allocation8 + $0x60] ss:$16 sps:$4 sm:$0xff]   ;;  %v5250_v15 = vld [vmem:[#allocation8 + $0x44] ss:$16 sps:$4 sm:$0xff]  }
 0x13e   :  { %3637 = vmatprep.subr.bf16.mxu1 %v5259_v63  ;;  %v2004_v43 = vpop.f32.mrf.mxu1  ;;  %v5248_v63 = vld [vmem:[#allocation8 + $0x40] ss:$16 sps:$4 sm:$0xff]   ;;  %v5268_v62 = vld [vmem:[#allocation8 + $0x1e4] ss:$16 sps:$4 sm:$0xff]  }
 0x13f   :  { %v2005_v47 = vadd.f32 %v2004_v43, %v1962_v49  ;;  %3595 = vmatpush1.bf16.msra.mxu0 %v5236_v23  ;;  %v5256_v23 = vld [vmem:[#allocation8 + $0x24] ss:$16 sps:$4 sm:$0xff]   ;;  %v5287_v49 = vld [vmem:[#allocation8 + $0x200] ss:$16 sps:$4 sm:$0xff]  }
 0x140   :  { %3596 = vmatprep.subr.bf16.mxu0 %v5241_v39  ;;  %v5262_v39 = vld [vmem:[#allocation8 + $0x4] ss:$16 sps:$4 sm:$0xff]  }
 0x141   :  { %3638 = vmatpush1.bf16.msra.mxu1 %v5257_v12  ;;  %v2274_v19 = vmax.f32 %v2005_v47, 0.0  ;;  %v5275_v47 = vld [vmem:[#allocation8 + $0x240] ss:$16 sps:$4 sm:$0xff]   ;;  %v5295_v43 = vld [vmem:[#allocation8 + $0x3e4] ss:$16 sps:$4 sm:$0xff]  }
 0x142   :  { %3639 = vmatprep.subr.bf16.mxu1 %v5265_v7  ;;  %v5283_v7 = vld [vmem:[#allocation8 + $0x224] ss:$16 sps:$4 sm:$0xff]   ;;  %v5260_v12 = vld [vmem:[#allocation8] ss:$16 sps:$4 sm:$0xff]  }
 0x143   :  { %v6847_v41 = vpack.c.bf16 %v2274_v19, %v2266_v56  ;;  %3597 = vmatpush1.bf16.msra.mxu0 %v5239_v29  ;;  %v5254_v19 = vld [vmem:[#allocation8 + $0x20] ss:$16 sps:$4 sm:$0xff]   ;;  %v5274_v56 = vld [vmem:[#allocation8 + $0x1c4] ss:$16 sps:$4 sm:$0xff]  }
 0x144   :  { %3598 = vmatprep.subr.bf16.mxu0 %v5244_v25  ;;  %v5281_v25 = vld [vmem:[#allocation8 + $0x220] ss:$16 sps:$4 sm:$0xff]  }
 0x145   :  { %3640 = vmatpush1.bf16.msra.mxu1 %v5263_v21  ;;  %3622 = vmatprep.mubr.bf16.mxu0 %v6847_v41  ;;  %v5289_v21 = vld [vmem:[#allocation8 + $0x204] ss:$16 sps:$4 sm:$0xff]   ;;  %v5266_v29 = vld [vmem:[#allocation8 + $0x1e0] ss:$16 sps:$4 sm:$0xff]  }
 0x146   :  { %3641 = vmatprep.subr.bf16.mxu1 %v5271_v51  ;;  %v5293_v51 = vld [vmem:[#allocation8 + $0x3e0] ss:$16 sps:$4 sm:$0xff]  }
 0x147   :  { %3599 = vmatpush1.bf16.msra.mxu0 %v5242_v27  ;;  %v5301_v27 = vld [vmem:[#allocation8 + $0x3c4] ss:$16 sps:$4 sm:$0xff]  }
 0x148   :  { %3600 = vmatprep.subr.bf16.mxu0 %v5250_v15  ;;  %v5272_v15 = vld [vmem:[#allocation8 + $0x1c0] ss:$16 sps:$4 sm:$0xff]  }
 0x149   :  { %3642 = vmatpush1.bf16.msra.mxu1 %v5269_v17  ;;  %v5280_v17 = vld [vmem:[#allocation8 + $0x1a4] ss:$16 sps:$4 sm:$0xff]  }
 0x14a   :  { %3643 = vmatprep.subr.bf16.mxu1 %v5277_v58  ;;  %v5299_v58 = vld [vmem:[#allocation8 + $0x3c0] ss:$16 sps:$4 sm:$0xff]  }
 0x14b   :  { %3601 = vmatpush1.bf16.msra.mxu0 %v5248_v63  ;;  %v5307_v63 = vld [vmem:[#allocation8 + $0x3a4] ss:$16 sps:$4 sm:$0xff]  }
 0x14c   :  { %3602 = vmatprep.subr.bf16.mxu0 %v5256_v23  ;;  %v5278_v23 = vld [vmem:[#allocation8 + $0x1a0] ss:$16 sps:$4 sm:$0xff]  }
 0x14d   :  { %3644 = vmatpush1.bf16.msra.mxu1 %v5275_v47  ;;  %v5286_v47 = vld [vmem:[#allocation8 + $0x184] ss:$16 sps:$4 sm:$0xff]  }
 0x14e   :  { %3645 = vmatprep.subr.bf16.mxu1 %v5283_v7  ;;  %v5305_v7 = vld [vmem:[#allocation8 + $0x3a0] ss:$16 sps:$4 sm:$0xff]  }
 0x14f   :  { %3603 = vmatpush1.bf16.msra.mxu0 %v5254_v19  ;;  %v5313_v19 = vld [vmem:[#allocation8 + $0x384] ss:$16 sps:$4 sm:$0xff]  }
 0x150   :  { %3604 = vmatprep.subr.bf16.mxu0 %v5262_v39  ;;  %v5284_v39 = vld [vmem:[#allocation8 + $0x180] ss:$16 sps:$4 sm:$0xff]  }
 0x151   :  { %3646 = vmatpush1.bf16.msra.mxu1 %v5281_v25  ;;  %v5292_v25 = vld [vmem:[#allocation8 + $0x164] ss:$16 sps:$4 sm:$0xff]  }
 0x152   :  { %3647 = vmatprep.subr.bf16.mxu1 %v5289_v21  ;;  %v5311_v21 = vld [vmem:[#allocation8 + $0x380] ss:$16 sps:$4 sm:$0xff]  }
 0x153   :  { %3605 = vmatpush1.bf16.msra.mxu0 %v5260_v12  ;;  %v5316_v12 = vld [vmem:[#allocation8 + $0x364] ss:$16 sps:$4 sm:$0xff]  }
 0x154   :  { %3606 = vmatprep.subr.bf16.mxu0 %v5268_v62  ;;  %v7534_v62 = vsub.s32 0, %v6815_v57 }
 0x155   :  { %3648 = vmatpush1.bf16.msra.mxu1 %v5287_v49  ;;  %v5290_v49 = vld [vmem:[#allocation8 + $0x160] ss:$16 sps:$4 sm:$0xff]  }
 0x156   :  { %3649 = vmatprep.subr.bf16.mxu1 %v5295_v43  ;;  %v5298_v43 = vld [vmem:[#allocation8 + $0x144] ss:$16 sps:$4 sm:$0xff]  }
 0x157   :  { %3607 = vmatpush2.bf16.msra.mxu0 %v5266_v29  ;;  %v5314_v29 = vld [vmem:[#allocation8 + $0x360] ss:$16 sps:$4 sm:$0xff]  }
 0x158   :  { %3608 = vmatprep.subr.bf16.mxu0 %v5274_v56  ;;  %v5319_v56 = vld [vmem:[#allocation8 + $0x344] ss:$16 sps:$4 sm:$0xff]  }
 0x159   :  { %3650 = vmatpush2.bf16.msra.mxu1 %v5293_v51  ;;  %v6854_v51 = vrot.slane %v6826_v54, %v7534_v62 }
 0x15a   :  { %3651 = vmatprep.subr.bf16.mxu1 %v5301_v27  ;;  %v5296_v27 = vld [vmem:[#allocation8 + $0x140] ss:$16 sps:$4 sm:$0xff]  }
 0x15b   :  { %3609 = vmatpush2.bf16.msra.mxu0 %v5272_v15  ;;  %7777 = vst [vmem:[#allocation239_spill] sm:$0xff] %v6854_v51  ;;  %v1960_v15 = vadd.f32 %v6842_v35, %v6854_v51 }
 0x15c   :  { %3610 = vmatprep.subr.bf16.mxu0 %v5280_v17  ;;  %v5304_v17 = vld [vmem:[#allocation8 + $0x124] ss:$16 sps:$4 sm:$0xff]  }
 0x15d   :  { %3652 = vmatpush2.bf16.msra.mxu1 %v5299_v58  ;;  %v5317_v58 = vld [vmem:[#allocation8 + $0x340] ss:$16 sps:$4 sm:$0xff]  }
 0x15e   :  { %3653 = vmatprep.subr.bf16.mxu1 %v5307_v63  ;;  %v5322_v63 = vld [vmem:[#allocation8 + $0x324] ss:$16 sps:$4 sm:$0xff]  }
 0x15f   :  { %3611 = vmatpush2.bf16.msra.mxu0 %v5278_v23  ;;  %v1956_v23 = vadd.f32 %v6835_v45, %v6854_v51  ;;  %v7532_v45 = vsub.s32 3, %v6815_v57 }
 0x160   :  { %3612 = vmatprep.subr.bf16.mxu0 %v5286_v47  ;;  %v5302_v47 = vld [vmem:[#allocation8 + $0x120] ss:$16 sps:$4 sm:$0xff]  }
 0x161   :  { %3654 = vmatpush2.bf16.msra.mxu1 %v5305_v7  ;;  %v2003_v7 = vadd.f32 %v6844_v33, %v1960_v15  ;;  %v1999_v35 = vadd.f32 %v6838_v1, %v1956_v23  ;;  %v5331_v1 = vld [vmem:[#allocation8 + $0x4c4] ss:$16 sps:$4 sm:$0xff]  }
 0x162   :  { %3655 = vmatprep.subr.bf16.mxu1 %v5313_v19  ;;  %v5310_v19 = vld [vmem:[#allocation8 + $0x104] ss:$16 sps:$4 sm:$0xff]  }
 0x163   :  { %3613 = vmatpush2.bf16.msra.mxu0 %v5284_v39  ;;  %v5320_v39 = vld [vmem:[#allocation8 + $0x320] ss:$16 sps:$4 sm:$0xff]   ;;  %v2265_v33 = vmax.f32 %v1999_v35, 0.0 }
 0x164   :  { %3614 = vmatprep.subr.bf16.mxu0 %v5292_v25  ;;  %v5325_v25 = vld [vmem:[#allocation8 + $0x304] ss:$16 sps:$4 sm:$0xff]  }
 0x165   :  { %3656 = vmatpush2.bf16.msra.mxu1 %v5311_v21  ;;  %v5308_v21 = vld [vmem:[#allocation8 + $0x100] ss:$16 sps:$4 sm:$0xff]  }
 0x166   :  { %3657 = vmatprep.subr.bf16.mxu1 %v5316_v12  ;;  %v2273_v12 = vmax.f32 %v2003_v7, 0.0 }
 0x167   :  { %3615 = vmatpush2.bf16.msra.mxu0 %v5290_v49  ;;  %v5323_v49 = vld [vmem:[#allocation8 + $0x300] ss:$16 sps:$4 sm:$0xff]  }
 0x168   :  { %3616 = vmatprep.subr.bf16.mxu0 %v5298_v43  ;;  %v5328_v43 = vld [vmem:[#allocation8 + $0x4e4] ss:$16 sps:$4 sm:$0xff]   ;;  %v6864_v15 = vpack.c.bf16 %v2273_v12, %v2265_v33 }
 0x169   :  { %3658 = vmatpush2.bf16.msra.mxu1 %v5314_v29  ;;  %v5376_v29 = vld [vmem:[#allocation8 + $0x6e4] ss:$16 sps:$4 sm:$0xff]  }
 0x16a   :  { %3659 = vmatprep.subr.bf16.mxu1 %v5319_v56  ;;  %v7533_v56 = vsub.s32 2, %v6815_v57  ;;  %v5337_v33 = vld [vmem:[#allocation8 + $0x484] ss:$16 sps:$4 sm:$0xff]  }
 0x16b   :  { %3617 = vmatpush2.bf16.msra.mxu0 %v5296_v27  ;;  %v5326_v27 = vld [vmem:[#allocation8 + $0x4e0] ss:$16 sps:$4 sm:$0xff]  }
 0x16c   :  { %3618 = vmatprep.subr.bf16.mxu0 %v5304_v17  ;;  %v6869_v17 = vrot.slane %v6826_v54, %v7532_v45 }
 0x16d   :  { %3660 = vmatpush2.bf16.msra.mxu1 %v5317_v58  ;;  %v6874_v58 = vrot.slane %v6826_v54, %v7533_v56 }
 0x16e   :  { %3661 = vmatprep.subr.bf16.mxu1 %v5322_v63  ;;  %7778 = vst [vmem:[#allocation240_spill] sm:$0xff] %v6869_v17 }
 0x16f   :  { %3619 = vmatpush2.bf16.msra.mxu0 %v5302_v47  ;;  %7779 = vst [vmem:[#allocation241_spill] sm:$0xff] %v6874_v58  ;;  %v5329_v47 = vld [vmem:[#allocation8 + $0x4c0] ss:$16 sps:$4 sm:$0xff]  }
 0x170   :  { %3620 = vmatprep.subr.bf16.mxu0 %v5310_v19  ;;  %v5334_v19 = vld [vmem:[#allocation8 + $0x4a4] ss:$16 sps:$4 sm:$0xff]  }
 0x171   :  { %3662 = vmatpush2.bf16.msra.mxu1 %v5320_v39 }
 0x172   :  { %3663 = vmatprep.subr.bf16.mxu1 %v5325_v25 }
 0x173   :  { %3621 = vmatpush2.bf16.msra.mxu0 %v5308_v21 }
 0x174   :  { %3676 = vmatprep.subr.bf16.mxu0 %v5328_v43  ;;  %v5332_v43 = vld [vmem:[#allocation8 + $0x4a0] ss:$16 sps:$4 sm:$0xff]  }
 0x175   :  { %3664 = vmatpush2.bf16.msra.mxu1 %v5323_v49 }
 0x176   :  { %3719 = vmatprep.subr.bf16.mxu1 %v5376_v29  ;;  %v2041_v63 = vpop.f32.mrf.mxu0  ;;  %3623 = vmatmul.mubr.bf16.vlgmr.msra.gmra.mxu0 %v6864_v15 }
 0x177   :  { %3677 = vmatpush1.bf16.msra.mxu0 %v5326_v27  ;;  %v2042_v35 = vadd.f32 %v2041_v63, %v6874_v58  ;;  %v5340_v63 = vld [vmem:[#allocation8 + $0x464] ss:$16 sps:$4 sm:$0xff]  }
 0x178   :  { %v2084_v23 = vpop.f32.mrf.mxu1  ;;  %v2043_v7 = vpop.f32.mrf.mxu0  ;;  %3678 = vmatprep.subr.bf16.mxu0 %v5331_v1 }
 0x179   :  { %v2044_v39 = vadd.f32 %v2043_v7, %v6869_v17  ;;  %v2085_v1 = vadd.f32 %v2084_v23, %v2042_v35  ;;  %v5335_v7 = vld [vmem:[#allocation8 + $0x480] ss:$16 sps:$4 sm:$0xff]   ;;  %v5382_v23 = vld [vmem:[#allocation8 + $0x6c4] ss:$16 sps:$4 sm:$0xff]  }
 0x17a   :  { %v2086_v25 = vpop.f32.mrf.mxu1  ;;  %v2045_v21 = vpop.f32.mrf.mxu0  ;;  %v5394_v35 = vld [vmem:[#allocation8 + $0x684] ss:$16 sps:$4 sm:$0xff]  }
 0x17b   :  { %v2046_v12 = vadd.f32 %v2045_v21, %v6874_v58  ;;  %3679 = vmatpush1.bf16.msra.mxu0 %v5329_v47  ;;  %v2087_v45 = vadd.f32 %v2086_v25, %v2044_v39  ;;  %v2267_v58 = vmax.f32 %v2085_v1, 0.0  ;;  %v5343_v25 = vld [vmem:[#allocation8 + $0x444] ss:$16 sps:$4 sm:$0xff]  }
 0x17c   :  { %v2088_v49 = vpop.f32.mrf.mxu1  ;;  %v2047_v29 = vpop.f32.mrf.mxu0  ;;  %3680 = vmatprep.subr.bf16.mxu0 %v5334_v19  ;;  %v5338_v19 = vld [vmem:[#allocation8 + $0x460] ss:$16 sps:$4 sm:$0xff]   ;;  %v5406_v1 = vld [vmem:[#allocation8 + $0x644] ss:$16 sps:$4 sm:$0xff]  }
 0x17d   :  { %v2089_v27 = vadd.f32 %v2088_v49, %v2046_v12  ;;  %v2048_v56 = vadd.f32 %v2047_v29, %v6869_v17  ;;  %v2268_v31 = vmax.f32 %v2087_v45, 0.0  ;;  %v5380_v45 = vld [vmem:[#allocation8 + $0x6c0] ss:$16 sps:$4 sm:$0xff]  }
 0x17e   :  { %v2090_v62 = vpop.f32.mrf.mxu1  ;;  %v5347_v12 = vld [vmem:[#allocation8 + $0x400] ss:$16 sps:$4 sm:$0xff]  }
 0x17f   :  { %v2091_v51 = vadd.f32 %v2090_v62, %v2048_v56  ;;  %3681 = vmatpush1.bf16.msra.mxu0 %v5332_v43  ;;  %v2275_v37 = vmax.f32 %v2089_v27, 0.0  ;;  %v5341_v62 = vld [vmem:[#allocation8 + $0x440] ss:$16 sps:$4 sm:$0xff]   ;;  %v5352_v43 = vld [vmem:[#allocation8 + $0x5e4] ss:$16 sps:$4 sm:$0xff]  }
 0x180   :  { %3682 = vmatprep.subr.bf16.mxu0 %v5337_v33  ;;  %v5344_v56 = vld [vmem:[#allocation8 + $0x420] ss:$16 sps:$4 sm:$0xff]   ;;  %v5355_v27 = vld [vmem:[#allocation8 + $0x5c4] ss:$16 sps:$4 sm:$0xff]  }
 0x181   :  { %v2276_v21 = vmax.f32 %v2091_v51, 0.0  ;;  %v6883_v39 = vpack.c.bf16 %v2275_v37, %v2267_v58  ;;  %v5346_v51 = vld [vmem:[#allocation8 + $0x424] ss:$16 sps:$4 sm:$0xff]   ;;  %v5386_v37 = vld [vmem:[#allocation8 + $0x6a0] ss:$16 sps:$4 sm:$0xff]  }
 0x182   :  { %v5349_v58 = vld [vmem:[#allocation8 + $0x404] ss:$16 sps:$4 sm:$0xff]   ;;  %v5392_v49 = vld [vmem:[#allocation8 + $0x680] ss:$16 sps:$4 sm:$0xff]  }
 0x183   :  { %v6881_v47 = vpack.c.bf16 %v2276_v21, %v2268_v31  ;;  %3683 = vmatpush1.bf16.msra.mxu0 %v5335_v7  ;;  %v5388_v31 = vld [vmem:[#allocation8 + $0x6a4] ss:$16 sps:$4 sm:$0xff]   ;;  %v5350_v29 = vld [vmem:[#allocation8 + $0x5e0] ss:$16 sps:$4 sm:$0xff]  }
 0x184   :  { %3684 = vmatprep.subr.bf16.mxu0 %v5340_v63  ;;  %v5398_v33 = vld [vmem:[#allocation8 + $0x660] ss:$16 sps:$4 sm:$0xff]   ;;  %v5358_v21 = vld [vmem:[#allocation8 + $0x5a4] ss:$16 sps:$4 sm:$0xff]  }
 0x185   :  { %3665 = vmatprep.mubr.bf16.mxu1 %v6881_v47  ;;  %v5353_v7 = vld [vmem:[#allocation8 + $0x5c0] ss:$16 sps:$4 sm:$0xff]  }
 0x186   :  { %3666 = vmatmul.mubr.bf16.vlgmr.msra.gmra.mxu1 %v6883_v39  ;;  %v5404_v63 = vld [vmem:[#allocation8 + $0x640] ss:$16 sps:$4 sm:$0xff]  }
 0x187   :  { %3685 = vmatpush1.bf16.msra.mxu0 %v5338_v19  ;;  %3720 = vmatpush1.bf16.msra.mxu1 %v5374_v14  ;;  %v5400_v14 = vld [vmem:[#allocation8 + $0x664] ss:$16 sps:$4 sm:$0xff]  }
 0x188   :  { %3686 = vmatprep.subr.bf16.mxu0 %v5343_v25  ;;  %3721 = vmatprep.subr.bf16.mxu1 %v5382_v23  ;;  %v5412_v19 = vld [vmem:[#allocation8 + $0x624] ss:$16 sps:$4 sm:$0xff]   ;;  %v5356_v25 = vld [vmem:[#allocation8 + $0x5a0] ss:$16 sps:$4 sm:$0xff]  }
 0x189   :  { %v5410_v23 = vld [vmem:[#allocation8 + $0x620] ss:$16 sps:$4 sm:$0xff]  }
 0x18b   :  { %3687 = vmatpush1.bf16.msra.mxu0 %v5341_v62  ;;  %3722 = vmatpush1.bf16.msra.mxu1 %v5380_v45  ;;  %v5361_v62 = vld [vmem:[#allocation8 + $0x584] ss:$16 sps:$4 sm:$0xff]  }
 0x18c   :  { %3688 = vmatprep.subr.bf16.mxu0 %v5346_v51  ;;  %3723 = vmatprep.subr.bf16.mxu1 %v5388_v31  ;;  %v5418_v45 = vld [vmem:[#allocation8 + $0x604] ss:$16 sps:$4 sm:$0xff]   ;;  %v5359_v51 = vld [vmem:[#allocation8 + $0x580] ss:$16 sps:$4 sm:$0xff]  }
 0x18d   :  { %v5416_v31 = vld [vmem:[#allocation8 + $0x600] ss:$16 sps:$4 sm:$0xff]  }
 0x18f   :  { %3689 = vmatpush1.bf16.msra.mxu0 %v5344_v56  ;;  %3724 = vmatpush1.bf16.msra.mxu1 %v5386_v37  ;;  %v5364_v56 = vld [vmem:[#allocation8 + $0x564] ss:$16 sps:$4 sm:$0xff]  }
 0x190   :  { %3690 = vmatprep.subr.bf16.mxu0 %v5349_v58  ;;  %3725 = vmatprep.subr.bf16.mxu1 %v5394_v35  ;;  %v5424_v37 = vld [vmem:[#allocation8 + $0x7e4] ss:$16 sps:$4 sm:$0xff]   ;;  %v5362_v58 = vld [vmem:[#allocation8 + $0x560] ss:$16 sps:$4 sm:$0xff]  }
 0x191   :  { %v5422_v35 = vld [vmem:[#allocation8 + $0x7e0] ss:$16 sps:$4 sm:$0xff]  }
 0x193   :  { %3691 = vmatpush1.bf16.msra.mxu0 %v5347_v12  ;;  %3726 = vmatpush1.bf16.msra.mxu1 %v5392_v49  ;;  %v5367_v12 = vld [vmem:[#allocation8 + $0x544] ss:$16 sps:$4 sm:$0xff]  }
 0x194   :  { %3692 = vmatprep.subr.bf16.mxu0 %v5352_v43  ;;  %3727 = vmatprep.subr.bf16.mxu1 %v5400_v14  ;;  %v5430_v49 = vld [vmem:[#allocation8 + $0x7c4] ss:$16 sps:$4 sm:$0xff]   ;;  %v5365_v43 = vld [vmem:[#allocation8 + $0x540] ss:$16 sps:$4 sm:$0xff]  }
 0x195   :  { %v5428_v14 = vld [vmem:[#allocation8 + $0x7c0] ss:$16 sps:$4 sm:$0xff]  }
 0x197   :  { %3693 = vmatpush2.bf16.msra.mxu0 %v5350_v29  ;;  %3728 = vmatpush1.bf16.msra.mxu1 %v5398_v33  ;;  %v5370_v29 = vld [vmem:[#allocation8 + $0x524] ss:$16 sps:$4 sm:$0xff]  }
 0x198   :  { %3694 = vmatprep.subr.bf16.mxu0 %v5355_v27  ;;  %3729 = vmatprep.subr.bf16.mxu1 %v5406_v1  ;;  %v5436_v33 = vld [vmem:[#allocation8 + $0x7a4] ss:$16 sps:$4 sm:$0xff]   ;;  %v5368_v27 = vld [vmem:[#allocation8 + $0x520] ss:$16 sps:$4 sm:$0xff]  }
 0x199   :  { %v5434_v1 = vld [vmem:[#allocation8 + $0x7a0] ss:$16 sps:$4 sm:$0xff]  }
 0x19b   :  { %3695 = vmatpush2.bf16.msra.mxu0 %v5353_v7  ;;  %3730 = vmatpush1.bf16.msra.mxu1 %v5404_v63  ;;  %v5373_v7 = vld [vmem:[#allocation8 + $0x504] ss:$16 sps:$4 sm:$0xff]  }
 0x19c   :  { %3696 = vmatprep.subr.bf16.mxu0 %v5358_v21  ;;  %3731 = vmatprep.subr.bf16.mxu1 %v5412_v19  ;;  %v5442_v63 = vld [vmem:[#allocation8 + $0x784] ss:$16 sps:$4 sm:$0xff]   ;;  %v5371_v21 = vld [vmem:[#allocation8 + $0x500] ss:$16 sps:$4 sm:$0xff]  }
 0x19d   :  { %v5440_v19 = vld [vmem:[#allocation8 + $0x780] ss:$16 sps:$4 sm:$0xff]  }
 0x19f   :  { %3697 = vmatpush2.bf16.msra.mxu0 %v5356_v25  ;;  %3732 = vmatpush1.bf16.msra.mxu1 %v5410_v23  ;;  %v5379_v25 = vld [vmem:[#allocation8 + $0xec] ss:$16 sps:$4 sm:$0xff]   ;;  %v5448_v23 = vld [vmem:[#allocation8 + $0x764] ss:$16 sps:$4 sm:$0xff]  }
 0x1a0   :  { %3698 = vmatprep.subr.bf16.mxu0 %v5361_v62  ;;  %3733 = vmatprep.subr.bf16.mxu1 %v5418_v45  ;;  %v623_v62 = vsub.s32 5, %v6815_v57  ;;  %v619_v45 = vsub.s32 4, %v6815_v57 }
 0x1a3   :  { %3699 = vmatpush2.bf16.msra.mxu0 %v5359_v51  ;;  %3734 = vmatpush1.bf16.msra.mxu1 %v5416_v31  ;;  %v5446_v51 = vld [vmem:[#allocation8 + $0x760] ss:$16 sps:$4 sm:$0xff]   ;;  %v5454_v31 = vld [vmem:[#allocation8 + $0x744] ss:$16 sps:$4 sm:$0xff]  }
 0x1a4   :  { %3700 = vmatprep.subr.bf16.mxu0 %v5364_v56  ;;  %3735 = vmatprep.subr.bf16.mxu1 %v5424_v37  ;;  %v6890_v56 = vrot.slane %v6826_v54, %v623_v62  ;;  %v6893_v37 = vrot.slane %v6826_v54, %v619_v45 }
 0x1a6   :  { %7780 = vst [vmem:[#allocation242_spill] sm:$0xff] %v6890_v56  ;;  %7781 = vst [vmem:[#allocation243_spill] sm:$0xff] %v6893_v37 }
 0x1a7   :  { %3701 = vmatpush2.bf16.msra.mxu0 %v5362_v58  ;;  %3736 = vmatpush2.bf16.msra.mxu1 %v5422_v35 }
 0x1a8   :  { %3702 = vmatprep.subr.bf16.mxu0 %v5367_v12  ;;  %3737 = vmatprep.subr.bf16.mxu1 %v5430_v49  ;;  %v5452_v12 = vld [vmem:[#allocation8 + $0x740] ss:$16 sps:$4 sm:$0xff]  }
 0x1ab   :  { %3703 = vmatpush2.bf16.msra.mxu0 %v5365_v43  ;;  %3738 = vmatpush2.bf16.msra.mxu1 %v5428_v14  ;;  %v5460_v43 = vld [vmem:[#allocation8 + $0x724] ss:$16 sps:$4 sm:$0xff]  }
 0x1ac   :  { %3704 = vmatprep.subr.bf16.mxu0 %v5370_v29  ;;  %3739 = vmatprep.subr.bf16.mxu1 %v5436_v33 }
 0x1af   :  { %3705 = vmatpush2.bf16.msra.mxu0 %v5368_v27  ;;  %3740 = vmatpush2.bf16.msra.mxu1 %v5434_v1 }
 0x1b0   :  { %3706 = vmatprep.subr.bf16.mxu0 %v5373_v7  ;;  %3741 = vmatprep.subr.bf16.mxu1 %v5442_v63  ;;  %v5458_v63 = vld [vmem:[#allocation8 + $0x720] ss:$16 sps:$4 sm:$0xff]  }
 0x1b3   :  { %3707 = vmatpush2.bf16.msra.mxu0 %v5371_v21  ;;  %3742 = vmatpush2.bf16.msra.mxu1 %v5440_v19  ;;  %v5466_v19 = vld [vmem:[#allocation8 + $0x704] ss:$16 sps:$4 sm:$0xff]  }
 0x1b4   :  { %3762 = vmatprep.subr.bf16.mxu0 %v5379_v25  ;;  %3743 = vmatprep.subr.bf16.mxu1 %v5448_v23 }
 0x1b6   :  { %v2127_v58 = vpop.f32.mrf.mxu0 }
 0x1b7   :  { %3744 = vmatpush2.bf16.msra.mxu1 %v5446_v51  ;;  %v2128_v33 = vadd.f32 %v2127_v58, %v6893_v37  ;;  %v5472_v58 = vld [vmem:[#allocation8 + $0x2ec] ss:$16 sps:$4 sm:$0xff]  }
 0x1b8   :  { %v2170_v35 = vpop.f32.mrf.mxu1  ;;  %v2129_v49 = vpop.f32.mrf.mxu0  ;;  %3745 = vmatprep.subr.bf16.mxu1 %v5454_v31 }
 0x1b9   :  { %v2130_v14 = vadd.f32 %v2129_v49, %v6890_v56  ;;  %v2171_v45 = vadd.f32 %v2170_v35, %v2128_v33  ;;  %v5464_v49 = vld [vmem:[#allocation8 + $0x700] ss:$16 sps:$4 sm:$0xff]   ;;  %v5383_v35 = vld [vmem:[#allocation8 + $0xc8] ss:$16 sps:$4 sm:$0xff]  }
 0x1ba   :  { %v2172_v29 = vpop.f32.mrf.mxu1  ;;  %v2131_v27 = vpop.f32.mrf.mxu0  ;;  %v5389_v33 = vld [vmem:[#allocation8 + $0xa8] ss:$16 sps:$4 sm:$0xff]  }
 0x1bb   :  { %v2132_v1 = vadd.f32 %v2131_v27, %v6893_v37  ;;  %3746 = vmatpush2.bf16.msra.mxu1 %v5452_v12  ;;  %v2173_v25 = vadd.f32 %v2172_v29, %v2130_v14  ;;  %v2269_v37 = vmax.f32 %v2171_v45, 0.0  ;;  %v5385_v14 = vld [vmem:[#allocation8 + $0xcc] ss:$16 sps:$4 sm:$0xff]   ;;  %v5431_v45 = vld [vmem:[#allocation8 + $0x1c8] ss:$16 sps:$4 sm:$0xff]  }
 0x1bc   :  { %v2174_v7 = vpop.f32.mrf.mxu1  ;;  %v2133_v21 = vpop.f32.mrf.mxu0  ;;  %3747 = vmatprep.subr.bf16.mxu1 %v5460_v43  ;;  %v5391_v29 = vld [vmem:[#allocation8 + $0xac] ss:$16 sps:$4 sm:$0xff]  }
 0x1bd   :  { %v2175_v23 = vadd.f32 %v2174_v7, %v2132_v1  ;;  %v2134_v62 = vadd.f32 %v2133_v21, %v6890_v56  ;;  %v2270_v9 = vmax.f32 %v2173_v25, 0.0  ;;  %v5395_v1 = vld [vmem:[#allocation8 + $0x88] ss:$16 sps:$4 sm:$0xff]   ;;  %v5409_v7 = vld [vmem:[#allocation8 + $0x4c] ss:$16 sps:$4 sm:$0xff]  }
 0x1be   :  { %v2176_v51 = vpop.f32.mrf.mxu1  ;;  %v5421_v21 = vld [vmem:[#allocation8 + $0xc] ss:$16 sps:$4 sm:$0xff]   ;;  %v5473_v56 = vld [vmem:[#allocation8 + $0x4e8] ss:$16 sps:$4 sm:$0xff]  }
 0x1bf   :  { %v2177_v31 = vadd.f32 %v2176_v51, %v2134_v62  ;;  %3748 = vmatpush2.bf16.msra.mxu1 %v5458_v63  ;;  %v2277_v17 = vmax.f32 %v2175_v23, 0.0  ;;  %v5407_v63 = vld [vmem:[#allocation8 + $0x48] ss:$16 sps:$4 sm:$0xff]   ;;  %v5427_v25 = vld [vmem:[#allocation8 + $0x1ec] ss:$16 sps:$4 sm:$0xff]  }
 0x1c0   :  { %3749 = vmatprep.subr.bf16.mxu1 %v5466_v19  ;;  %v5419_v19 = vld [vmem:[#allocation8 + $0x8] ss:$16 sps:$4 sm:$0xff]   ;;  %v5433_v62 = vld [vmem:[#allocation8 + $0x1cc] ss:$16 sps:$4 sm:$0xff]  }
 0x1c1   :  { %v2278_v27 = vmax.f32 %v2177_v31, 0.0  ;;  %v6901_v43 = vpack.c.bf16 %v2277_v17, %v2269_v37  ;;  %v5403_v17 = vld [vmem:[#allocation8 + $0x6c] ss:$16 sps:$4 sm:$0xff]   ;;  %v5401_v37 = vld [vmem:[#allocation8 + $0x68] ss:$16 sps:$4 sm:$0xff]  }
 0x1c2   :  { %v5425_v23 = vld [vmem:[#allocation8 + $0x1e8] ss:$16 sps:$4 sm:$0xff]   ;;  %v5439_v51 = vld [vmem:[#allocation8 + $0x1ac] ss:$16 sps:$4 sm:$0xff]  }
 0x1c3   :  { %v6899_v12 = vpack.c.bf16 %v2278_v27, %v2270_v9  ;;  %3750 = vmatpush2.bf16.msra.mxu1 %v5464_v49  ;;  %v5397_v9 = vld [vmem:[#allocation8 + $0x8c] ss:$16 sps:$4 sm:$0xff]   ;;  %v5437_v31 = vld [vmem:[#allocation8 + $0x1a8] ss:$16 sps:$4 sm:$0xff]  }
 0x1c4   :  { %3805 = vmatprep.subr.bf16.mxu1 %v5472_v58  ;;  %v5445_v49 = vld [vmem:[#allocation8 + $0x18c] ss:$16 sps:$4 sm:$0xff]   ;;  %v5443_v58 = vld [vmem:[#allocation8 + $0x188] ss:$16 sps:$4 sm:$0xff]  }
 0x1c5   :  { %3708 = vmatprep.mubr.bf16.mxu0 %v6899_v12  ;;  %v5451_v27 = vld [vmem:[#allocation8 + $0x16c] ss:$16 sps:$4 sm:$0xff]  }
 0x1c6   :  { %3709 = vmatmul.mubr.bf16.vlgmr.msra.gmra.mxu0 %v6901_v43 }
 0x1c7   :  { %3763 = vmatpush1.bf16.msra.mxu0 %v5377_v4  ;;  %3794 = vmatprep.mubr.bf16.mxu0 %v6847_v41  ;;  %v5415_v4 = vld [vmem:[#allocation8 + $0x2c] ss:$16 sps:$4 sm:$0xff]   ;;  %v5413_v41 = vld [vmem:[#allocation8 + $0x28] ss:$16 sps:$4 sm:$0xff]  }
 0x1c8   :  { %3764 = vmatprep.subr.bf16.mxu0 %v5385_v14  ;;  %v631_v14 = vsub.s32 7, %v6815_v57 }
 0x1cb   :  { %3765 = vmatpush1.bf16.msra.mxu0 %v5383_v35  ;;  %v627_v35 = vsub.s32 6, %v6815_v57 }
 0x1cc   :  { %3766 = vmatprep.subr.bf16.mxu0 %v5391_v29  ;;  %v5449_v29 = vld [vmem:[#allocation8 + $0x168] ss:$16 sps:$4 sm:$0xff]  }
 0x1cf   :  { %3767 = vmatpush1.bf16.msra.mxu0 %v5389_v33  ;;  %v5457_v33 = vld [vmem:[#allocation8 + $0x14c] ss:$16 sps:$4 sm:$0xff]  }
 0x1d0   :  { %3768 = vmatprep.subr.bf16.mxu0 %v5397_v9  ;;  %v6909_v9 = vrot.slane %v6826_v54, %v631_v14 }
 0x1d3   :  { %3769 = vmatpush1.bf16.msra.mxu0 %v5395_v1  ;;  %v6912_v1 = vrot.slane %v6826_v54, %v627_v35 }
 0x1d4   :  { %3770 = vmatprep.subr.bf16.mxu0 %v5403_v17 }
 0x1d5   :  { %7782 = vst [vmem:[#allocation244_spill] sm:$0xff] %v6912_v1 }
 0x1d7   :  { %3771 = vmatpush1.bf16.msra.mxu0 %v5401_v37 }
 0x1d8   :  { %3772 = vmatprep.subr.bf16.mxu0 %v5409_v7  ;;  %v5455_v7 = vld [vmem:[#allocation8 + $0x148] ss:$16 sps:$4 sm:$0xff]  }
 0x1db   :  { %3773 = vmatpush1.bf16.msra.mxu0 %v5407_v63 }
 0x1dc   :  { %3774 = vmatprep.subr.bf16.mxu0 %v5415_v4  ;;  %v5463_v4 = vld [vmem:[#allocation8 + $0x12c] ss:$16 sps:$4 sm:$0xff]  }
 0x1df   :  { %3775 = vmatpush1.bf16.msra.mxu0 %v5413_v41 }
 0x1e0   :  { %3776 = vmatprep.subr.bf16.mxu0 %v5421_v21 }
 0x1e3   :  { %3777 = vmatpush1.bf16.msra.mxu0 %v5419_v19 }
 0x1e4   :  { %3778 = vmatprep.subr.bf16.mxu0 %v5427_v25 }
 0x1e7   :  { %3779 = vmatpush2.bf16.msra.mxu0 %v5425_v23 }
 0x1e8   :  { %3780 = vmatprep.subr.bf16.mxu0 %v5433_v62 }
 0x1eb   :  { %3781 = vmatpush2.bf16.msra.mxu0 %v5431_v45  ;;  %v5461_v45 = vld [vmem:[#allocation8 + $0x128] ss:$16 sps:$4 sm:$0xff]  }
 0x1ec   :  { %3782 = vmatprep.subr.bf16.mxu0 %v5439_v51  ;;  %v5469_v51 = vld [vmem:[#allocation8 + $0x10c] ss:$16 sps:$4 sm:$0xff]  }
 0x1ef   :  { %3783 = vmatpush2.bf16.msra.mxu0 %v5437_v31 }
 0x1f0   :  { %3784 = vmatprep.subr.bf16.mxu0 %v5445_v49 }
 0x1f3   :  { %3785 = vmatpush2.bf16.msra.mxu0 %v5443_v58 }
 0x1f4   :  { %3786 = vmatprep.subr.bf16.mxu0 %v5451_v27 }
 0x1f6   :  { %v2213_v17 = vpop.f32.mrf.mxu0 }
 0x1f7   :  { %3787 = vmatpush2.bf16.msra.mxu0 %v5449_v29  ;;  %v2214_v19 = vadd.f32 %v2213_v17, %v6912_v1  ;;  %v5467_v29 = vld [vmem:[#allocation8 + $0x108] ss:$16 sps:$4 sm:$0xff]   ;;  %v5475_v17 = vld [vmem:[#allocation8 + $0x4ec] ss:$16 sps:$4 sm:$0xff]  }
 0x1f8   :  { %v2256_v37 = vpop.f32.mrf.mxu1  ;;  %v2215_v63 = vpop.f32.mrf.mxu0  ;;  %3788 = vmatprep.subr.bf16.mxu0 %v5457_v33 }
 0x1f9   :  { %v2216_v41 = vadd.f32 %v2215_v63, %v6909_v9  ;;  %v2257_v27 = vadd.f32 %v2256_v37, %v2214_v19  ;;  %v5478_v37 = vld [vmem:[#allocation8 + $0x2cc] ss:$16 sps:$4 sm:$0xff]   ;;  %v5476_v19 = vld [vmem:[#allocation8 + $0x2c8] ss:$16 sps:$4 sm:$0xff]  }
 0x1fa   :  { %v2258_v21 = vpop.f32.mrf.mxu1  ;;  %v2217_v25 = vpop.f32.mrf.mxu0 }
 0x1fb   :  { %v2218_v23 = vadd.f32 %v2217_v25, %v6912_v1  ;;  %3789 = vmatpush2.bf16.msra.mxu0 %v5455_v7  ;;  %v2259_v31 = vadd.f32 %v2258_v21, %v2216_v41  ;;  %v2271_v1 = vmax.f32 %v2257_v27, 0.0  ;;  %v5481_v21 = vld [vmem:[#allocation8 + $0x4cc] ss:$16 sps:$4 sm:$0xff]  }
 0x1fc   :  { %v2260_v62 = vpop.f32.mrf.mxu1  ;;  %v2219_v54 = vpop.f32.mrf.mxu0  ;;  %3790 = vmatprep.subr.bf16.mxu0 %v5463_v4  ;;  %v5470_v4 = vld [vmem:[#allocation8 + $0x2e8] ss:$16 sps:$4 sm:$0xff]   ;;  %v5502_v27 = vld [vmem:[#allocation8 + $0x24c] ss:$16 sps:$4 sm:$0xff]  }
 0x1fd   :  { %v2261_v49 = vadd.f32 %v2260_v62, %v2218_v23  ;;  %v2220_v58 = vadd.f32 %v2219_v54, %v6909_v9  ;;  %v2272_v63 = vmax.f32 %v2259_v31, 0.0  ;;  %v5479_v23 = vld [vmem:[#allocation8 + $0x4c8] ss:$16 sps:$4 sm:$0xff]   ;;  %v5484_v62 = vld [vmem:[#allocation8 + $0x2ac] ss:$16 sps:$4 sm:$0xff]  }
 0x1fe   :  { %v2262_v14 = vpop.f32.mrf.mxu1  ;;  %v5485_v54 = vld [vmem:[#allocation8 + $0x4a8] ss:$16 sps:$4 sm:$0xff]  }
 0x1ff   :  { %v2263_v35 = vadd.f32 %v2262_v14, %v2220_v58  ;;  %3791 = vmatpush2.bf16.msra.mxu0 %v5461_v45  ;;  %v2279_v33 = vmax.f32 %v2261_v49, 0.0  ;;  %v5482_v45 = vld [vmem:[#allocation8 + $0x2a8] ss:$16 sps:$4 sm:$0xff]   ;;  %v5505_v14 = vld [vmem:[#allocation8 + $0x44c] ss:$16 sps:$4 sm:$0xff]  }
 0x200   :  { %3792 = vmatprep.subr.bf16.mxu0 %v5469_v51  ;;  %v5493_v51 = vld [vmem:[#allocation8 + $0x48c] ss:$16 sps:$4 sm:$0xff]   ;;  %v5491_v31 = vld [vmem:[#allocation8 + $0x488] ss:$16 sps:$4 sm:$0xff]  }
 0x201   :  { %v2280_v25 = vmax.f32 %v2263_v35, 0.0  ;;  %v6920_v41 = vpack.c.bf16 %v2279_v33, %v2271_v1  ;;  %v5487_v1 = vld [vmem:[#allocation8 + $0x4ac] ss:$16 sps:$4 sm:$0xff]   ;;  %v5494_v49 = vld [vmem:[#allocation8 + $0x268] ss:$16 sps:$4 sm:$0xff]  }
 0x202   :  { %v5497_v58 = vld [vmem:[#allocation8 + $0x468] ss:$16 sps:$4 sm:$0xff]   ;;  %v5508_v33 = vld [vmem:[#allocation8 + $0x22c] ss:$16 sps:$4 sm:$0xff]  }
 0x203   :  { %v6918_v7 = vpack.c.bf16 %v2280_v25, %v2272_v63  ;;  %3793 = vmatpush2.bf16.msra.mxu0 %v5467_v29  ;;  %v5500_v35 = vld [vmem:[#allocation8 + $0x248] ss:$16 sps:$4 sm:$0xff]  }
 0x204   :  { %3848 = vmatprep.subr.bf16.mxu0 %v5475_v17  ;;  %v5503_v29 = vld [vmem:[#allocation8 + $0x448] ss:$16 sps:$4 sm:$0xff]   ;;  %v5511_v17 = vld [vmem:[#allocation8 + $0x42c] ss:$16 sps:$4 sm:$0xff]  }
 0x205   :  { %3751 = vmatprep.mubr.bf16.mxu1 %v6918_v7  ;;  %v5506_v63 = vld [vmem:[#allocation8 + $0x228] ss:$16 sps:$4 sm:$0xff]  }
 0x206   :  { %3795 = vmatmul.mubr.bf16.vlgmr.msra.gmra.mxu0 %v6864_v15  ;;  %3752 = vmatmul.mubr.bf16.vlgmr.msra.gmra.mxu1 %v6920_v41  ;;  %v5490_v15 = vld [vmem:[#allocation8 + $0x28c] ss:$16 sps:$4 sm:$0xff]   ;;  %v5509_v25 = vld [vmem:[#allocation8 + $0x428] ss:$16 sps:$4 sm:$0xff]  }
 0x207   :  { %3806 = vmatpush1.bf16.msra.mxu1 %v5470_v4  ;;  %3849 = vmatpush1.bf16.msra.mxu0 %v5473_v56  ;;  %v5488_v56 = vld [vmem:[#allocation8 + $0x288] ss:$16 sps:$4 sm:$0xff]   ;;  %v5514_v4 = vld [vmem:[#allocation8 + $0x20c] ss:$16 sps:$4 sm:$0xff]  }
 0x208   :  { %3880 = vmatprep.mubr.bf16.mxu0 %v6899_v12  ;;  %3837 = vmatprep.mubr.bf16.mxu1 %v6881_v47  ;;  %v5496_v12 = vld [vmem:[#allocation8 + $0x26c] ss:$16 sps:$4 sm:$0xff]  }
 0x209   :  { %3807 = vmatprep.subr.bf16.mxu1 %v5478_v37  ;;  %3850 = vmatprep.subr.bf16.mxu0 %v5481_v21  ;;  %v5499_v47 = vld [vmem:[#allocation8 + $0x46c] ss:$16 sps:$4 sm:$0xff]   ;;  %v5512_v21 = vld [vmem:[#allocation8 + $0x208] ss:$16 sps:$4 sm:$0xff]  }
 0x20a   :  { %v5517_v37 = vld [vmem:[#allocation8 + $0x40c] ss:$16 sps:$4 sm:$0xff]  }
 0x20b   :  { %3808 = vmatpush1.bf16.msra.mxu1 %v5476_v19  ;;  %3851 = vmatpush1.bf16.msra.mxu0 %v5479_v23  ;;  %v5515_v19 = vld [vmem:[#allocation8 + $0x408] ss:$16 sps:$4 sm:$0xff]   ;;  %v5520_v23 = vld [vmem:[#allocation8 + $0x3ec] ss:$16 sps:$4 sm:$0xff]  }
 0x20c   :  { %3809 = vmatprep.subr.bf16.mxu1 %v5484_v62  ;;  %3852 = vmatprep.subr.bf16.mxu0 %v5487_v1  ;;  %v5523_v62 = vld [vmem:[#allocation8 + $0x5ec] ss:$16 sps:$4 sm:$0xff]   ;;  %v5518_v1 = vld [vmem:[#allocation8 + $0x3e8] ss:$16 sps:$4 sm:$0xff]  }
 0x20f   :  { %3810 = vmatpush1.bf16.msra.mxu1 %v5482_v45  ;;  %3853 = vmatpush1.bf16.msra.mxu0 %v5485_v54  ;;  %v5521_v45 = vld [vmem:[#allocation8 + $0x5e8] ss:$16 sps:$4 sm:$0xff]   ;;  %v5526_v54 = vld [vmem:[#allocation8 + $0x3cc] ss:$16 sps:$4 sm:$0xff]  }
 0x210   :  { %3811 = vmatprep.subr.bf16.mxu1 %v5490_v15  ;;  %3854 = vmatprep.subr.bf16.mxu0 %v5493_v51  ;;  %v5529_v15 = vld [vmem:[#allocation8 + $0x5cc] ss:$16 sps:$4 sm:$0xff]   ;;  %v5524_v51 = vld [vmem:[#allocation8 + $0x3c8] ss:$16 sps:$4 sm:$0xff]  }
 0x213   :  { %3812 = vmatpush1.bf16.msra.mxu1 %v5488_v56  ;;  %3855 = vmatpush1.bf16.msra.mxu0 %v5491_v31  ;;  %v5527_v56 = vld [vmem:[#allocation8 + $0x5c8] ss:$16 sps:$4 sm:$0xff]   ;;  %v5532_v31 = vld [vmem:[#allocation8 + $0x3ac] ss:$16 sps:$4 sm:$0xff]  }
 0x214   :  { %3813 = vmatprep.subr.bf16.mxu1 %v5496_v12  ;;  %3856 = vmatprep.subr.bf16.mxu0 %v5499_v47  ;;  %v5535_v12 = vld [vmem:[#allocation8 + $0x5ac] ss:$16 sps:$4 sm:$0xff]   ;;  %v5530_v47 = vld [vmem:[#allocation8 + $0x3a8] ss:$16 sps:$4 sm:$0xff]  }
 0x217   :  { %3814 = vmatpush1.bf16.msra.mxu1 %v5494_v49  ;;  %3857 = vmatpush1.bf16.msra.mxu0 %v5497_v58  ;;  %v5533_v49 = vld [vmem:[#allocation8 + $0x5a8] ss:$16 sps:$4 sm:$0xff]   ;;  %v5538_v58 = vld [vmem:[#allocation8 + $0x38c] ss:$16 sps:$4 sm:$0xff]  }
 0x218   :  { %3815 = vmatprep.subr.bf16.mxu1 %v5502_v27  ;;  %3858 = vmatprep.subr.bf16.mxu0 %v5505_v14  ;;  %v5541_v27 = vld [vmem:[#allocation8 + $0x58c] ss:$16 sps:$4 sm:$0xff]   ;;  %v5536_v14 = vld [vmem:[#allocation8 + $0x388] ss:$16 sps:$4 sm:$0xff]  }
 0x21b   :  { %3816 = vmatpush1.bf16.msra.mxu1 %v5500_v35  ;;  %3859 = vmatpush1.bf16.msra.mxu0 %v5503_v29  ;;  %v5539_v35 = vld [vmem:[#allocation8 + $0x588] ss:$16 sps:$4 sm:$0xff]   ;;  %v5544_v29 = vld [vmem:[#allocation8 + $0x36c] ss:$16 sps:$4 sm:$0xff]  }
 0x21c   :  { %3817 = vmatprep.subr.bf16.mxu1 %v5508_v33  ;;  %3860 = vmatprep.subr.bf16.mxu0 %v5511_v17  ;;  %v5547_v33 = vld [vmem:[#allocation8 + $0x56c] ss:$16 sps:$4 sm:$0xff]   ;;  %v5542_v17 = vld [vmem:[#allocation8 + $0x368] ss:$16 sps:$4 sm:$0xff]  }
 0x21f   :  { %3818 = vmatpush1.bf16.msra.mxu1 %v5506_v63  ;;  %3861 = vmatpush1.bf16.msra.mxu0 %v5509_v25  ;;  %v5545_v63 = vld [vmem:[#allocation8 + $0x568] ss:$16 sps:$4 sm:$0xff]   ;;  %v5550_v25 = vld [vmem:[#allocation8 + $0x34c] ss:$16 sps:$4 sm:$0xff]  }
 0x220   :  { %3819 = vmatprep.subr.bf16.mxu1 %v5514_v4  ;;  %3862 = vmatprep.subr.bf16.mxu0 %v5517_v37  ;;  %v5553_v4 = vld [vmem:[#allocation8 + $0x54c] ss:$16 sps:$4 sm:$0xff]   ;;  %v5548_v37 = vld [vmem:[#allocation8 + $0x348] ss:$16 sps:$4 sm:$0xff]  }
 0x223   :  { %3820 = vmatpush1.bf16.msra.mxu1 %v5512_v21  ;;  %3863 = vmatpush1.bf16.msra.mxu0 %v5515_v19  ;;  %v5551_v21 = vld [vmem:[#allocation8 + $0x548] ss:$16 sps:$4 sm:$0xff]   ;;  %v5556_v19 = vld [vmem:[#allocation8 + $0x32c] ss:$16 sps:$4 sm:$0xff]  }
 0x224   :  { %3821 = vmatprep.subr.bf16.mxu1 %v5520_v23  ;;  %3864 = vmatprep.subr.bf16.mxu0 %v5523_v62  ;;  %v5559_v23 = vld [vmem:[#allocation8 + $0x52c] ss:$16 sps:$4 sm:$0xff]   ;;  %v5554_v62 = vld [vmem:[#allocation8 + $0x328] ss:$16 sps:$4 sm:$0xff]  }
 0x227   :  { %3822 = vmatpush2.bf16.msra.mxu1 %v5518_v1  ;;  %3865 = vmatpush2.bf16.msra.mxu0 %v5521_v45  ;;  %v5557_v1 = vld [vmem:[#allocation8 + $0x528] ss:$16 sps:$4 sm:$0xff]   ;;  %v5562_v45 = vld [vmem:[#allocation8 + $0x30c] ss:$16 sps:$4 sm:$0xff]  }
 0x228   :  { %3823 = vmatprep.subr.bf16.mxu1 %v5526_v54  ;;  %3866 = vmatprep.subr.bf16.mxu0 %v5529_v15  ;;  %v5565_v54 = vld [vmem:[#allocation8 + $0x50c] ss:$16 sps:$4 sm:$0xff]   ;;  %v5560_v15 = vld [vmem:[#allocation8 + $0x308] ss:$16 sps:$4 sm:$0xff]  }
 0x22b   :  { %3824 = vmatpush2.bf16.msra.mxu1 %v5524_v51  ;;  %3867 = vmatpush2.bf16.msra.mxu0 %v5527_v56  ;;  %v5563_v51 = vld [vmem:[#allocation8 + $0x508] ss:$16 sps:$4 sm:$0xff]   ;;  %v5568_v56 = vld [vmem:[#allocation8 + $0x6ec] ss:$16 sps:$4 sm:$0xff]  }
 0x22c   :  { %3825 = vmatprep.subr.bf16.mxu1 %v5532_v31  ;;  %3868 = vmatprep.subr.bf16.mxu0 %v5535_v12  ;;  %v3951_v31 = vld [vmem:[#allocation2 + $0x48] sm:$0xff] }
 0x22d   :  { %v3955_v12 = vld [vmem:[#allocation2 + $0x68] sm:$0xff] }
 0x22f   :  { %3826 = vmatpush2.bf16.msra.mxu1 %v5530_v47  ;;  %3869 = vmatpush2.bf16.msra.mxu0 %v5533_v49  ;;  %v5566_v47 = vld [vmem:[#allocation8 + $0x6e8] ss:$16 sps:$4 sm:$0xff]   ;;  %v5571_v49 = vld [vmem:[#allocation8 + $0x6cc] ss:$16 sps:$4 sm:$0xff]  }
 0x230   :  { %3827 = vmatprep.subr.bf16.mxu1 %v5538_v58  ;;  %3870 = vmatprep.subr.bf16.mxu0 %v5541_v27  ;;  %v6928_v58 = vpack.c.bf16 %v3955_v12, %v3951_v31  ;;  %v5569_v27 = vld [vmem:[#allocation8 + $0x6c8] ss:$16 sps:$4 sm:$0xff]  }
 0x231   :  { %v7805_v31 = vld [vmem:[#allocation26_spill] sm:$0xff]  ;;  %v7806_v12 = vld [vmem:[#allocation68_spill] sm:$0xff] }
 0x233   :  { %3828 = vmatpush2.bf16.msra.mxu1 %v5536_v14  ;;  %3871 = vmatpush2.bf16.msra.mxu0 %v5539_v35  ;;  %v5574_v14 = vld [vmem:[#allocation8 + $0x6ac] ss:$16 sps:$4 sm:$0xff]  }
 0x234   :  { %3829 = vmatprep.subr.bf16.mxu1 %v5544_v29  ;;  %3872 = vmatprep.subr.bf16.mxu0 %v5547_v33  ;;  %v5577_v35 = vld [vmem:[#allocation8 + $0x68c] ss:$16 sps:$4 sm:$0xff]   ;;  %v3957_v29 = vld [vmem:[#allocation2 + $0x78] sm:$0xff] }
 0x235   :  { %v7786_v33 = vld [vmem:[#allocation48_spill] sm:$0xff] }
 0x237   :  { %3830 = vmatpush2.bf16.msra.mxu1 %v5542_v17  ;;  %3873 = vmatpush2.bf16.msra.mxu0 %v5545_v63  ;;  %v7787_v17 = vld [vmem:[#allocation50_spill] sm:$0xff]  ;;  %v7790_v63 = vld [vmem:[#allocation52_spill] sm:$0xff] }
 0x238   :  { %3831 = vmatprep.subr.bf16.mxu1 %v5550_v25  ;;  %3874 = vmatprep.subr.bf16.mxu0 %v5553_v4  ;;  %v7792_v25 = vld [vmem:[#allocation19_spill] sm:$0xff]  ;;  %v7793_v4 = vld [vmem:[#allocation20_spill] sm:$0xff] }
 0x23b   :  { %3832 = vmatpush2.bf16.msra.mxu1 %v5548_v37  ;;  %3875 = vmatpush2.bf16.msra.mxu0 %v5551_v21  ;;  %v7794_v37 = vld [vmem:[#allocation56_spill] sm:$0xff]  ;;  %v7795_v21 = vld [vmem:[#allocation58_spill] sm:$0xff] }
 0x23c   :  { %3833 = vmatprep.subr.bf16.mxu1 %v5556_v19  ;;  %3876 = vmatprep.subr.bf16.mxu0 %v5559_v23  ;;  %v7796_v19 = vld [vmem:[#allocation21_spill] sm:$0xff]  ;;  %v7797_v23 = vld [vmem:[#allocation22_spill] sm:$0xff] }
 0x23f   :  { %3834 = vmatpush2.bf16.msra.mxu1 %v5554_v62  ;;  %3877 = vmatpush2.bf16.msra.mxu0 %v5557_v1  ;;  %v7798_v62 = vld [vmem:[#allocation60_spill] sm:$0xff]  ;;  %v7799_v1 = vld [vmem:[#allocation62_spill] sm:$0xff] }
 0x240   :  { %3835 = vmatprep.subr.bf16.mxu1 %v5562_v45  ;;  %3878 = vmatprep.subr.bf16.mxu0 %v5565_v54  ;;  %v7800_v45 = vld [vmem:[#allocation23_spill] sm:$0xff]  ;;  %v7801_v54 = vld [vmem:[#allocation24_spill] sm:$0xff] }
 0x243   :  { %3836 = vmatpush2.bf16.msra.mxu1 %v5560_v15  ;;  %3879 = vmatpush2.bf16.msra.mxu0 %v5563_v51  ;;  %v7802_v15 = vld [vmem:[#allocation64_spill] sm:$0xff]  ;;  %v7803_v51 = vld [vmem:[#allocation66_spill] sm:$0xff] }
 0x244   :  { %3891 = vmatprep.subr.bf16.mxu1 %v5568_v56  ;;  %3962 = vmatprep.subr.bf16.mxu0 %v6035_v3  ;;  %v5572_v3 = vld [vmem:[#allocation8 + $0x6a8] ss:$16 sps:$4 sm:$0xff]   ;;  %v7804_v56 = vld [vmem:[#allocation25_spill] sm:$0xff] }
 0x246   :  { %3838 = vmatmul.mubr.bf16.vlgmr.msra.gmra.mxu1 %v6883_v39  ;;  %3881 = vmatmul.mubr.bf16.vlgmr.msra.gmra.mxu0 %v6901_v43  ;;  %v5575_v39 = vld [vmem:[#allocation8 + $0x688] ss:$16 sps:$4 sm:$0xff]   ;;  %v5580_v43 = vld [vmem:[#allocation8 + $0x66c] ss:$16 sps:$4 sm:$0xff]  }
 0x247   :  { %3892 = vmatpush1.bf16.msra.mxu1 %v5566_v47  ;;  %3923 = vmatprep.mubr.bf16.mxu1 %v6918_v7  ;;  %v3954_v7 = vld [vmem:[#allocation2 + $0x60] sm:$0xff] }
 0x248   :  { %3893 = vmatprep.subr.bf16.mxu1 %v5571_v49  ;;  %3963 = vmatpush1.bf16.msra.mxu0 %v6037_v5  ;;  %v5578_v5 = vld [vmem:[#allocation8 + $0x668] ss:$16 sps:$4 sm:$0xff]   ;;  %v7808_v49 = vld [vmem:[#allocation27_spill] sm:$0xff] }
 0x249   :  { %3964 = vmatprep.subr.bf16.mxu0 %v6043_v10  ;;  %3994 = vmatprep.mubr.bf16.mxu0 %v6928_v58  ;;  %v5583_v10 = vld [vmem:[#allocation8 + $0x64c] ss:$16 sps:$4 sm:$0xff]  }
 0x24a   :  { %v7807_v47 = vld [vmem:[#allocation70_spill] sm:$0xff] }
 0x24b   :  { %3894 = vmatpush1.bf16.msra.mxu1 %v5569_v27  ;;  %v7809_v27 = vld [vmem:[#allocation28_spill] sm:$0xff] }
 0x24c   :  { %3895 = vmatprep.subr.bf16.mxu1 %v5574_v14  ;;  %3965 = vmatpush1.bf16.msra.mxu0 %v6050_v18  ;;  %v5581_v18 = vld [vmem:[#allocation8 + $0x648] ss:$16 sps:$4 sm:$0xff]  }
 0x24d   :  { %3966 = vmatprep.subr.bf16.mxu0 %v6056_v20  ;;  %v5586_v20 = vld [vmem:[#allocation8 + $0x62c] ss:$16 sps:$4 sm:$0xff]  }
 0x24e   :  { %v7810_v14 = vld [vmem:[#allocation72_spill] sm:$0xff] }
 0x24f   :  { %3896 = vmatpush1.bf16.msra.mxu1 %v5572_v3  ;;  %v7811_v3 = vld [vmem:[#allocation74_spill] sm:$0xff] }
 0x250   :  { %3897 = vmatprep.subr.bf16.mxu1 %v5577_v35  ;;  %3967 = vmatpush1.bf16.msra.mxu0 %v6062_v26  ;;  %v5584_v26 = vld [vmem:[#allocation8 + $0x628] ss:$16 sps:$4 sm:$0xff]   ;;  %v7812_v35 = vld [vmem:[#allocation29_spill] sm:$0xff] }
 0x251   :  { %3968 = vmatprep.subr.bf16.mxu0 %v6068_v28  ;;  %v5589_v28 = vld [vmem:[#allocation8 + $0x60c] ss:$16 sps:$4 sm:$0xff]  }
 0x253   :  { %3898 = vmatpush1.bf16.msra.mxu1 %v5575_v39  ;;  %v7813_v39 = vld [vmem:[#allocation30_spill] sm:$0xff] }
 0x254   :  { %3899 = vmatprep.subr.bf16.mxu1 %v5580_v43  ;;  %3969 = vmatpush1.bf16.msra.mxu0 %v6074_v34  ;;  %v5587_v34 = vld [vmem:[#allocation8 + $0x608] ss:$16 sps:$4 sm:$0xff]  }
 0x255   :  { %3970 = vmatprep.subr.bf16.mxu0 %v6080_v36  ;;  %v5592_v36 = vld [vmem:[#allocation8 + $0x7ec] ss:$16 sps:$4 sm:$0xff]  }
 0x256   :  { %v7814_v43 = vld [vmem:[#allocation76_spill] sm:$0xff] }
 0x257   :  { %3900 = vmatpush1.bf16.msra.mxu1 %v5578_v5  ;;  %v7815_v5 = vld [vmem:[#allocation78_spill] sm:$0xff] }
 0x258   :  { %3901 = vmatprep.subr.bf16.mxu1 %v5583_v10  ;;  %3971 = vmatpush1.bf16.msra.mxu0 %v6086_v42  ;;  %v5590_v42 = vld [vmem:[#allocation8 + $0x7e8] ss:$16 sps:$4 sm:$0xff]   ;;  %v7816_v10 = vld [vmem:[#allocation31_spill] sm:$0xff] }
 0x259   :  { %3972 = vmatprep.subr.bf16.mxu0 %v6092_v44  ;;  %v5595_v44 = vld [vmem:[#allocation8 + $0x7cc] ss:$16 sps:$4 sm:$0xff]  }
 0x25b   :  { %3902 = vmatpush1.bf16.msra.mxu1 %v5581_v18  ;;  %v7817_v18 = vld [vmem:[#allocation32_spill] sm:$0xff] }
 0x25c   :  { %3903 = vmatprep.subr.bf16.mxu1 %v5586_v20  ;;  %3973 = vmatpush1.bf16.msra.mxu0 %v6098_v50  ;;  %v5593_v50 = vld [vmem:[#allocation8 + $0x7c8] ss:$16 sps:$4 sm:$0xff]  }
 0x25d   :  { %3974 = vmatprep.subr.bf16.mxu0 %v6104_v52  ;;  %v5598_v52 = vld [vmem:[#allocation8 + $0x7ac] ss:$16 sps:$4 sm:$0xff]  }
 0x25e   :  { %v7818_v20 = vld [vmem:[#allocation80_spill] sm:$0xff] }
 0x25f   :  { %3904 = vmatpush1.bf16.msra.mxu1 %v5584_v26  ;;  %v7819_v26 = vld [vmem:[#allocation82_spill] sm:$0xff] }
 0x260   :  { %3905 = vmatprep.subr.bf16.mxu1 %v5589_v28  ;;  %3975 = vmatpush1.bf16.msra.mxu0 %v6114_v0  ;;  %v5596_v0 = vld [vmem:[#allocation8 + $0x7a8] ss:$16 sps:$4 sm:$0xff]   ;;  %v7820_v28 = vld [vmem:[#allocation33_spill] sm:$0xff] }
 0x261   :  { %3976 = vmatprep.subr.bf16.mxu0 %v6121_v2  ;;  %v5601_v2 = vld [vmem:[#allocation8 + $0x78c] ss:$16 sps:$4 sm:$0xff]  }
 0x263   :  { %3906 = vmatpush1.bf16.msra.mxu1 %v5587_v34  ;;  %v7821_v34 = vld [vmem:[#allocation34_spill] sm:$0xff] }
 0x264   :  { %3907 = vmatprep.subr.bf16.mxu1 %v5592_v36  ;;  %3977 = vmatpush1.bf16.msra.mxu0 %v6128_v13  ;;  %v5599_v13 = vld [vmem:[#allocation8 + $0x788] ss:$16 sps:$4 sm:$0xff]  }
 0x265   :  { %3978 = vmatprep.subr.bf16.mxu0 %v6134_v16  ;;  %v5604_v16 = vld [vmem:[#allocation8 + $0x76c] ss:$16 sps:$4 sm:$0xff]  }
 0x266   :  { %v7822_v36 = vld [vmem:[#allocation84_spill] sm:$0xff] }
 0x267   :  { %3908 = vmatpush2.bf16.msra.mxu1 %v5590_v42  ;;  %v7823_v42 = vld [vmem:[#allocation86_spill] sm:$0xff] }
 0x268   :  { %3909 = vmatprep.subr.bf16.mxu1 %v5595_v44  ;;  %3979 = vmatpush2.bf16.msra.mxu0 %v6140_v30  ;;  %v5602_v30 = vld [vmem:[#allocation8 + $0x768] ss:$16 sps:$4 sm:$0xff]   ;;  %v3624_v44 = vpop.f32.mrf.mxu0 }
 0x269   :  { %3980 = vmatprep.subr.bf16.mxu0 %v6146_v32  ;;  %v5607_v32 = vld [vmem:[#allocation8 + $0x74c] ss:$16 sps:$4 sm:$0xff]  }
 0x26b   :  { %3910 = vmatpush2.bf16.msra.mxu1 %v5593_v50  ;;  %v7824_v50 = vld [vmem:[#allocation35_spill] sm:$0xff] }
 0x26c   :  { %3911 = vmatprep.subr.bf16.mxu1 %v5598_v52  ;;  %3981 = vmatpush2.bf16.msra.mxu0 %v6152_v46  ;;  %v5605_v46 = vld [vmem:[#allocation8 + $0x748] ss:$16 sps:$4 sm:$0xff]  }
 0x26d   :  { %3982 = vmatprep.subr.bf16.mxu0 %v6158_v48  ;;  %v5610_v48 = vld [vmem:[#allocation8 + $0x72c] ss:$16 sps:$4 sm:$0xff]  }
 0x26e   :  { %v7825_v52 = vld [vmem:[#allocation36_spill] sm:$0xff] }
 0x26f   :  { %3912 = vmatpush2.bf16.msra.mxu1 %v5596_v0  ;;  %v7826_v0 = vld [vmem:[#allocation88_spill] sm:$0xff] }
 0x270   :  { %3913 = vmatprep.subr.bf16.mxu1 %v5601_v2  ;;  %3983 = vmatpush2.bf16.msra.mxu0 %v6164_v59  ;;  %v5608_v59 = vld [vmem:[#allocation8 + $0x728] ss:$16 sps:$4 sm:$0xff]  }
 0x271   :  { %3984 = vmatprep.subr.bf16.mxu0 %v6170_v61  ;;  %v5613_v61 = vld [vmem:[#allocation8 + $0x70c] ss:$16 sps:$4 sm:$0xff]  }
 0x272   :  { %v7827_v2 = vld [vmem:[#allocation90_spill] sm:$0xff] }
 0x273   :  { %3914 = vmatpush2.bf16.msra.mxu1 %v5599_v13  ;;  %v3626_v13 = vpop.f32.mrf.mxu0 }
 0x274   :  { %3915 = vmatprep.subr.bf16.mxu1 %v5604_v16  ;;  %3985 = vmatpush2.bf16.msra.mxu0 %v6176_v22  ;;  %v5611_v22 = vld [vmem:[#allocation8 + $0x708] ss:$16 sps:$4 sm:$0xff]   ;;  %v7828_v16 = vld [vmem:[#allocation37_spill] sm:$0xff] }
 0x275   :  { %3986 = vmatprep.subr.bf16.mxu0 %v6182_v24  ;;  %v3950_v24 = vld [vmem:[#allocation2 + $0x40] sm:$0xff] }
 0x277   :  { %3916 = vmatpush2.bf16.msra.mxu1 %v5602_v30  ;;  %v7829_v30 = vld [vmem:[#allocation38_spill] sm:$0xff] }
 0x278   :  { %3917 = vmatprep.subr.bf16.mxu1 %v5607_v32  ;;  %3987 = vmatpush2.bf16.msra.mxu0 %v6188_v53  ;;  %v3953_v53 = vld [vmem:[#allocation2 + $0x58] sm:$0xff]  ;;  %v7830_v32 = vld [vmem:[#allocation92_spill] sm:$0xff] }
 0x279   :  { %3988 = vmatprep.subr.bf16.mxu0 %v6194_v55  ;;  %v6964_v55 = vpack.c.bf16 %v3954_v7, %v3950_v24  ;;  %v7834_v24 = vld [vmem:[#allocation96_spill] sm:$0xff]  ;;  %v7835_v7 = vld [vmem:[#allocation98_spill] sm:$0xff] }
 0x27b   :  { %3918 = vmatpush2.bf16.msra.mxu1 %v5605_v46  ;;  %v7831_v46 = vld [vmem:[#allocation94_spill] sm:$0xff] }
 0x27c   :  { %3919 = vmatprep.subr.bf16.mxu1 %v5610_v48  ;;  %3989 = vmatpush2.bf16.msra.mxu0 %v6200_v6  ;;  %v7783_v6 = vld [vmem:[#allocation46_spill] sm:$0xff]  ;;  %v3628_v48 = vpop.f32.mrf.mxu0 }
 0x27d   :  { %3990 = vmatprep.subr.bf16.mxu0 %v6206_v11  ;;  %v6969_v11 = vpack.c.bf16 %v3957_v29, %v3953_v53  ;;  %v7030_v53 = vld [vmem:[%s7310_s4] sm:$0xf]  ;;  %s5986_s4 = smov [#allocation10]  }
 0x27e   :  { %v3630_v29 = vpop.f32.mrf.mxu0  ;;  %s4695_s15 = sshll.u32 %s5986_s4, 4  ;;  %s4696_s15 = int_to_ptr.vmem [resolvable:$true] %s4695_s15 }
 0x27f   :  { %3920 = vmatpush2.bf16.msra.mxu1 %v5608_v59  ;;  %v7832_v59 = vld [vmem:[#allocation39_spill] sm:$0xff]  ;;  %s5950_s16 = scalar_lea.vmem %s4696_s15, 2048  ;;  %p5955_p7 = scmp.lt.s32.totalorder %s4696_s15, %s4696_s15 }
 0x280   :  { %3921 = vmatprep.subr.bf16.mxu1 %v5613_v61  ;;  %3991 = vmatpush2.bf16.msra.mxu0 %v6212_v38  ;;  %v7784_v38 = vld [vmem:[#allocation15_spill] sm:$0xff]  ;;  %v3667_v61 = vpop.f32.mrf.mxu1  ;;  %p5951_p6 = scmp.ne.s32.totalorder %s4696_s15, %s5950_s16  ;;  %p5956_p8 = scmp.lt.s32.totalorder %s5950_s16, %s5950_s16 }
 0x281   :  { %3992 = vmatprep.subr.bf16.mxu0 %v6218_v40  ;;  %v7785_v40 = vld [vmem:[#allocation16_spill] sm:$0xff] }
 0x282   :  { %p5957_p9 = por %p5956_p8, %p5955_p7 }
 0x283   :  { %3922 = vmatpush2.bf16.msra.mxu1 %v5611_v22  ;;  %v7833_v22 = vld [vmem:[#allocation40_spill] sm:$0xff] }
 0x284   :  { %4005 = vmatprep.subr.bf16.mxu1 %v6039_v8  ;;  %3993 = vmatpush2.bf16.msra.mxu0 %v6224_v60  ;;  %v7788_v8 = vld [vmem:[#allocation17_spill] sm:$0xff]  ;;  %v7789_v60 = vld [vmem:[#allocation18_spill] sm:$0xff]  ;;  %p5958_p10 = pnand %p5957_p9, %p5951_p6 }
 0x285   :  { %4048 = vmatprep.subr.bf16.mxu0 %v7783_v6  ;;  %v7836_v6 = vld [vmem:[#allocation41_spill] sm:$0xff] }
 0x286   :  { %3924 = vmatmul.mubr.bf16.vlgmr.msra.gmra.mxu1 %v6920_v41  ;;  %v7791_v41 = vld [vmem:[#allocation54_spill] sm:$0xff] }
 0x287   :  { %4006 = vmatpush1.bf16.msra.mxu1 %v7784_v38  ;;  %3995 = vmatmul.mubr.bf16.vlgmr.msra.gmra.mxu0 %v6964_v55  ;;  %v3669_v38 = vpop.f32.mrf.mxu1 }
 0x288   :  { %4007 = vmatprep.subr.bf16.mxu1 %v7785_v40  ;;  %4049 = vmatpush1.bf16.msra.mxu0 %v7786_v33  ;;  %v3710_v40 = vpop.f32.mrf.mxu0  ;;  %v7837_v33 = vld [vmem:[#allocation42_spill] sm:$0xff] }
 0x289   :  { %4050 = vmatprep.subr.bf16.mxu0 %v7787_v17  ;;  %4037 = vmatprep.mubr.bf16.mxu1 %v6969_v11  ;;  %v7838_v17 = vld [vmem:[#allocation100_spill] sm:$0xff] }
 0x28a   :  { %4080 = vmatprep.mubr.bf16.mxu0 %v6928_v58 }
 0x28b   :  { %4008 = vmatpush1.bf16.msra.mxu1 %v7788_v8  ;;  %v7839_v8 = vsub.s32 0, %v6815_v57 }
 0x28c   :  { %4009 = vmatprep.subr.bf16.mxu1 %v7789_v60  ;;  %4051 = vmatpush1.bf16.msra.mxu0 %v7790_v63  ;;  %v7840_v63 = vld [vmem:[#allocation102_spill] sm:$0xff] }
 0x28d   :  { %4052 = vmatprep.subr.bf16.mxu0 %v7791_v41  ;;  %v7038_v60 = vrot.slane %v7030_v53, %v7839_v8  ;;  %v7841_v41 = vsub.s32 1, %v6815_v57  ;;  %v7863_v8 = vld [vmem:[#allocation63_spill] sm:$0xff] }
 0x28f   :  { %4010 = vmatpush1.bf16.msra.mxu1 %v7792_v25  ;;  %v7044_v25 = vrot.slane %v7030_v53, %v7841_v41  ;;  %v7865_v41 = vld [vmem:[#allocation126_spill] sm:$0xff] }
 0x290   :  { %4011 = vmatprep.subr.bf16.mxu1 %v7793_v4  ;;  %4053 = vmatpush1.bf16.msra.mxu0 %v7794_v37  ;;  %v7842_v4 = vld [vmem:[#allocation43_spill] sm:$0xff]  ;;  %v3952_v37 = vld [vmem:[#allocation2 + $0x50] sm:$0xff] }
 0x291   :  { %4054 = vmatprep.subr.bf16.mxu0 %v7795_v21  ;;  %v3956_v21 = vld [vmem:[#allocation2 + $0x70] sm:$0xff] }
 0x293   :  { %4012 = vmatpush1.bf16.msra.mxu1 %v7796_v19  ;;  %v3671_v19 = vpop.f32.mrf.mxu1 }
 0x294   :  { %4013 = vmatprep.subr.bf16.mxu1 %v7797_v23  ;;  %4055 = vmatpush1.bf16.msra.mxu0 %v7798_v62  ;;  %v3712_v23 = vpop.f32.mrf.mxu0  ;;  %v7843_v62 = vld [vmem:[#allocation44_spill] sm:$0xff] }
 0x295   :  { %4056 = vmatprep.subr.bf16.mxu0 %v7799_v1  ;;  %v7844_v1 = vld [vmem:[#allocation104_spill] sm:$0xff] }
 0x297   :  { %4014 = vmatpush1.bf16.msra.mxu1 %v7800_v45  ;;  %v3625_v45 = vadd.f32 %v3624_v44, %v7038_v60 }
 0x298   :  { %4015 = vmatprep.subr.bf16.mxu1 %v7801_v54  ;;  %4057 = vmatpush1.bf16.msra.mxu0 %v7802_v15  ;;  %v7845_v54 = vld [vmem:[#allocation106_spill] sm:$0xff]  ;;  %v7051_v15 = vpack.c.bf16 %v3956_v21, %v3952_v37  ;;  %v7867_v37 = vld [vmem:[#allocation67_spill] sm:$0xff]  ;;  %v7868_v21 = vld [vmem:[#allocation128_spill] sm:$0xff] }
 0x299   :  { %4058 = vmatprep.subr.bf16.mxu0 %v7803_v51  ;;  %v3627_v51 = vadd.f32 %v3626_v13, %v7044_v25 }
 0x29b   :  { %4016 = vmatpush1.bf16.msra.mxu1 %v7804_v56  ;;  %v3668_v56 = vadd.f32 %v3667_v61, %v3625_v45  ;;  %v7856_v61 = vld [vmem:[#allocation116_spill] sm:$0xff]  ;;  %v7873_v45 = vld [vmem:[#allocation134_spill] sm:$0xff] }
 0x29c   :  { %4017 = vmatprep.subr.bf16.mxu1 %v7805_v31  ;;  %4059 = vmatpush1.bf16.msra.mxu0 %v7806_v12  ;;  %v7846_v31 = vld [vmem:[#allocation45_spill] sm:$0xff]  ;;  %v3673_v12 = vpop.f32.mrf.mxu1 }
 0x29d   :  { %4060 = vmatprep.subr.bf16.mxu0 %v7807_v47  ;;  %v3714_v47 = vpop.f32.mrf.mxu0 }
 0x29f   :  { %4018 = vmatpush1.bf16.msra.mxu1 %v7808_v49  ;;  %v7847_v49 = vld [vmem:[#allocation47_spill] sm:$0xff] }
 0x2a0   :  { %4019 = vmatprep.subr.bf16.mxu1 %v7809_v27  ;;  %4061 = vmatpush1.bf16.msra.mxu0 %v7810_v14  ;;  %v7848_v27 = vld [vmem:[#allocation108_spill] sm:$0xff]  ;;  %v3629_v14 = vadd.f32 %v3628_v48, %v7038_v60 }
 0x2a1   :  { %4062 = vmatprep.subr.bf16.mxu0 %v7811_v3  ;;  %v3670_v3 = vadd.f32 %v3669_v38, %v3627_v51  ;;  %v7859_v38 = vld [vmem:[#allocation59_spill] sm:$0xff] }
 0x2a2   :  { %v7875_v51 = vld [vmem:[#allocation75_spill] sm:$0xff] }
 0x2a3   :  { %4020 = vmatpush1.bf16.msra.mxu1 %v7812_v35  ;;  %v3711_v35 = vadd.f32 %v3710_v40, %v3668_v56  ;;  %v7860_v40 = vld [vmem:[#allocation120_spill] sm:$0xff] }
 0x2a4   :  { %4021 = vmatprep.subr.bf16.mxu1 %v7813_v39  ;;  %4063 = vmatpush1.bf16.msra.mxu0 %v7814_v43  ;;  %v7849_v39 = vld [vmem:[#allocation110_spill] sm:$0xff]  ;;  %v3631_v43 = vadd.f32 %v3630_v29, %v7044_v25  ;;  %v7876_v56 = vld [vmem:[#allocation136_spill] sm:$0xff] }
 0x2a5   :  { %4064 = vmatprep.subr.bf16.mxu0 %v7815_v5 }
 0x2a6   :  { %v3674_v44 = vadd.f32 %v3673_v12, %v3631_v43  ;;  %v7878_v12 = vld [vmem:[#allocation77_spill] sm:$0xff] }
 0x2a7   :  { %4022 = vmatpush2.bf16.msra.mxu1 %v7816_v10  ;;  %v3672_v10 = vadd.f32 %v3671_v19, %v3629_v14  ;;  %v7869_v19 = vld [vmem:[#allocation130_spill] sm:$0xff]  ;;  %v7882_v14 = vld [vmem:[#allocation81_spill] sm:$0xff] }
 0x2a8   :  { %4023 = vmatprep.subr.bf16.mxu1 %v7817_v18  ;;  %4065 = vmatpush2.bf16.msra.mxu0 %v7818_v20  ;;  %v3713_v18 = vadd.f32 %v3712_v23, %v3670_v3  ;;  %v7870_v23 = vld [vmem:[#allocation69_spill] sm:$0xff]  ;;  %v7883_v3 = vld [vmem:[#allocation83_spill] sm:$0xff] }
 0x2a9   :  { %4066 = vmatprep.subr.bf16.mxu0 %v7819_v26  ;;  %v7850_v26 = vld [vmem:[#allocation49_spill] sm:$0xff] }
 0x2aa   :  { %v7886_v43 = vld [vmem:[#allocation85_spill] sm:$0xff] }
 0x2ab   :  { %4024 = vmatpush2.bf16.msra.mxu1 %v7820_v28  ;;  %v3716_v28 = vpop.f32.mrf.mxu0 }
 0x2ac   :  { %4025 = vmatprep.subr.bf16.mxu1 %v7821_v34  ;;  %4067 = vmatpush2.bf16.msra.mxu0 %v7822_v36  ;;  %v7851_v36 = vld [vmem:[#allocation51_spill] sm:$0xff] }
 0x2ad   :  { %4068 = vmatprep.subr.bf16.mxu0 %v7823_v42  ;;  %v7852_v42 = vld [vmem:[#allocation112_spill] sm:$0xff] }
 0x2af   :  { %4026 = vmatpush2.bf16.msra.mxu1 %v7824_v50  ;;  %v3715_v50 = vadd.f32 %v3714_v47, %v3672_v10  ;;  %v7879_v47 = vld [vmem:[#allocation79_spill] sm:$0xff]  ;;  %v7888_v10 = vld [vmem:[#allocation148_spill] sm:$0xff] }
 0x2b0   :  { %4027 = vmatprep.subr.bf16.mxu1 %v7825_v52  ;;  %4069 = vmatpush2.bf16.msra.mxu0 %v7826_v0 }
 0x2b1   :  { %4070 = vmatprep.subr.bf16.mxu0 %v7827_v2  ;;  %v7853_v2 = vld [vmem:[#allocation114_spill] sm:$0xff] }
 0x2b3   :  { %4028 = vmatpush2.bf16.msra.mxu1 %v7828_v16  ;;  %v3717_v16 = vadd.f32 %v3716_v28, %v3674_v44  ;;  %v7892_v28 = vld [vmem:[#allocation152_spill] sm:$0xff] }
 0x2b4   :  { %4029 = vmatprep.subr.bf16.mxu1 %v7829_v30  ;;  %4071 = vmatpush2.bf16.msra.mxu0 %v7830_v32  ;;  %v7896_v44 = vld [vmem:[#allocation156_spill] sm:$0xff] }
 0x2b5   :  { %4072 = vmatprep.subr.bf16.mxu0 %v7831_v46  ;;  %v7854_v46 = vld [vmem:[#allocation53_spill] sm:$0xff] }
 0x2b7   :  { %4030 = vmatpush2.bf16.msra.mxu1 %v7832_v59  ;;  %v7855_v59 = vld [vmem:[#allocation55_spill] sm:$0xff] }
 0x2b8   :  { %4031 = vmatprep.subr.bf16.mxu1 %v7833_v22  ;;  %4073 = vmatpush2.bf16.msra.mxu0 %v7834_v24 }
 0x2b9   :  { %4074 = vmatprep.subr.bf16.mxu0 %v7835_v7  ;;  %v7857_v7 = vld [vmem:[#allocation118_spill] sm:$0xff] }
 0x2bb   :  { %4032 = vmatpush2.bf16.msra.mxu1 %v7836_v6  ;;  %v7858_v6 = vld [vmem:[#allocation57_spill] sm:$0xff] }
 0x2bc   :  { %4033 = vmatprep.subr.bf16.mxu1 %v7837_v33  ;;  %4075 = vmatpush2.bf16.msra.mxu0 %v7838_v17  ;;  %v7861_v33 = vld [vmem:[#allocation122_spill] sm:$0xff]  ;;  %v7862_v17 = vld [vmem:[#allocation61_spill] sm:$0xff] }
 0x2bd   :  { %4076 = vmatprep.subr.bf16.mxu0 %v7840_v63  ;;  %v7864_v63 = vld [vmem:[#allocation124_spill] sm:$0xff] }
 0x2bf   :  { %4034 = vmatpush2.bf16.msra.mxu1 %v7842_v4  ;;  %v7866_v4 = vld [vmem:[#allocation65_spill] sm:$0xff] }
 0x2c0   :  { %4035 = vmatprep.subr.bf16.mxu1 %v7843_v62  ;;  %4077 = vmatpush2.bf16.msra.mxu0 %v7844_v1  ;;  %v7871_v62 = vld [vmem:[#allocation71_spill] sm:$0xff]  ;;  %v7872_v1 = vld [vmem:[#allocation132_spill] sm:$0xff] }
 0x2c1   :  { %4078 = vmatprep.subr.bf16.mxu0 %v7845_v54  ;;  %v7874_v54 = vld [vmem:[#allocation73_spill] sm:$0xff] }
 0x2c3   :  { %4036 = vmatpush2.bf16.msra.mxu1 %v7846_v31  ;;  %v7877_v31 = vld [vmem:[#allocation138_spill] sm:$0xff] }
 0x2c4   :  { %4091 = vmatprep.subr.bf16.mxu1 %v7847_v49  ;;  %4079 = vmatpush2.bf16.msra.mxu0 %v7848_v27  ;;  %v7880_v49 = vld [vmem:[#allocation140_spill] sm:$0xff]  ;;  %v7881_v27 = vld [vmem:[#allocation142_spill] sm:$0xff] }
 0x2c5   :  { %4134 = vmatprep.subr.bf16.mxu0 %v7849_v39  ;;  %v7885_v39 = vld [vmem:[#allocation146_spill] sm:$0xff] }
 0x2c6   :  { %4038 = vmatmul.mubr.bf16.vlgmr.msra.gmra.mxu1 %v7051_v15  ;;  %v3753_v5 = vpop.f32.mrf.mxu1 }
 0x2c7   :  { %v3754_v20 = vadd.f32 %v3753_v5, %v3711_v35  ;;  %4092 = vmatpush1.bf16.msra.mxu1 %v7850_v26  ;;  %4081 = vmatmul.mubr.bf16.vlgmr.msra.gmra.mxu0 %v6964_v55  ;;  %v7884_v35 = vld [vmem:[#allocation144_spill] sm:$0xff]  ;;  %v7887_v5 = vld [vmem:[#allocation87_spill] sm:$0xff] }
 0x2c8   :  { %v3755_v34 = vpop.f32.mrf.mxu1  ;;  %4093 = vmatprep.subr.bf16.mxu1 %v7851_v36  ;;  %4135 = vmatpush1.bf16.msra.mxu0 %v7852_v42  ;;  %v7891_v26 = vld [vmem:[#allocation91_spill] sm:$0xff]  ;;  %v7894_v36 = vld [vmem:[#allocation93_spill] sm:$0xff] }
 0x2c9   :  { %v3934_v52 = vmax.f32 %v3754_v20, 0.0  ;;  %v3756_v0 = vadd.f32 %v3755_v34, %v3713_v18  ;;  %4136 = vmatprep.subr.bf16.mxu0 %v7853_v2  ;;  %4123 = vmatprep.mubr.bf16.mxu1 %v6969_v11  ;;  %v7889_v18 = vld [vmem:[#allocation150_spill] sm:$0xff]  ;;  %v7890_v20 = vld [vmem:[#allocation89_spill] sm:$0xff]  ;;  %v7895_v42 = vld [vmem:[#allocation95_spill] sm:$0xff] }
 0x2ca   :  { %v3757_v13 = vpop.f32.mrf.mxu1  ;;  %4166 = vmatprep.mubr.bf16.mxu0 %v6928_v58  ;;  %v7893_v34 = vld [vmem:[#allocation154_spill] sm:$0xff]  ;;  %v7900_v2 = vld [vmem:[#allocation160_spill] sm:$0xff] }
 0x2cb   :  { %3942 = vst [vmem:[#allocation10] sm:$0xff] %v3934_v52  ;;  %v3935_v30 = vmax.f32 %v3756_v0, 0.0  ;;  %v3758_v32 = vadd.f32 %v3757_v13, %v3715_v50  ;;  %4094 = vmatpush1.bf16.msra.mxu1 %v7854_v46  ;;  %v7897_v50 = vld [vmem:[#allocation158_spill] sm:$0xff]  ;;  %v7898_v52 = vld [vmem:[#allocation97_spill] sm:$0xff]  ;;  %v7899_v0 = vld [vmem:[#allocation99_spill] sm:$0xff] }
 0x2cc   :  { %v3759_v48 = vpop.f32.mrf.mxu1  ;;  %4095 = vmatprep.subr.bf16.mxu1 %v7855_v59  ;;  %4137 = vmatpush1.bf16.msra.mxu0 %v7856_v61  ;;  %v7901_v13 = vld [vmem:[#allocation162_spill] sm:$0xff]  ;;  %v7907_v59 = vld [vmem:[#allocation107_spill] sm:$0xff]  ;;  %v7908_v61 = vld [vmem:[#allocation168_spill] sm:$0xff] }
 0x2cd   :  { %3943 = vst [vmem:[#allocation10 + $0x8] sm:$0xff] %v3935_v30  ;;  %v3938_v22 = vmax.f32 %v3758_v32, 0.0  ;;  %v3760_v24 = vadd.f32 %v3759_v48, %v3717_v16  ;;  %4138 = vmatprep.subr.bf16.mxu0 %v7857_v7  ;;  %v7902_v16 = vld [vmem:[#allocation101_spill] sm:$0xff]  ;;  %v7903_v30 = vld [vmem:[#allocation103_spill] sm:$0xff]  ;;  %v7904_v32 = vld [vmem:[#allocation164_spill] sm:$0xff] }
 0x2ce   :  { %v7905_v46 = vld [vmem:[#allocation166_spill] sm:$0xff]  ;;  %v7906_v48 = vld [vmem:[#allocation105_spill] sm:$0xff]  ;;  %v7911_v7 = vld [vmem:[#allocation111_spill] sm:$0xff] }
 0x2cf   :  { %3946 = vst [vmem:[#allocation10 + $0x20] sm:$0xff] %v3938_v22  ;;  %v3939_v29 = vmax.f32 %v3760_v24, 0.0  ;;  %4096 = vmatpush1.bf16.msra.mxu1 %v7858_v6  ;;  %v7909_v22 = vld [vmem:[#allocation170_spill] sm:$0xff]  ;;  %v7910_v24 = vld [vmem:[#allocation109_spill] sm:$0xff] }
 0x2d0   :  { %4097 = vmatprep.subr.bf16.mxu1 %v7859_v38  ;;  %4139 = vmatpush1.bf16.msra.mxu0 %v7860_v40  ;;  %v7913_v6 = vld [vmem:[#allocation174_spill] sm:$0xff]  ;;  %v7914_v38 = vld [vmem:[#allocation113_spill] sm:$0xff]  ;;  %v7915_v40 = vld [vmem:[#allocation115_spill] sm:$0xff] }
 0x2d1   :  { %3947 = vst [vmem:[#allocation10 + $0x28] sm:$0xff] %v3939_v29  ;;  %4140 = vmatprep.subr.bf16.mxu0 %v7861_v33  ;;  %v7912_v29 = vld [vmem:[#allocation172_spill] sm:$0xff] }
 0x2d2   :  { %v7916_v33 = vld [vmem:[#allocation176_spill] sm:$0xff] }
 0x2d3   :  { %4098 = vmatpush1.bf16.msra.mxu1 %v7862_v17  ;;  %v7917_v17 = vld [vmem:[#allocation178_spill] sm:$0xff] }
 0x2d4   :  { %4099 = vmatprep.subr.bf16.mxu1 %v7863_v8  ;;  %4141 = vmatpush1.bf16.msra.mxu0 %v7864_v63  ;;  %v7918_v8 = vld [vmem:[#allocation117_spill] sm:$0xff]  ;;  %v7919_v63 = vld [vmem:[#allocation119_spill] sm:$0xff] }
 0x2d5   :  { %4142 = vmatprep.subr.bf16.mxu0 %v7865_v41  ;;  %v7920_v41 = vld [vmem:[#allocation180_spill] sm:$0xff] }
 0x2d7   :  { %4100 = vmatpush1.bf16.msra.mxu1 %v7866_v4  ;;  %v7921_v4 = vld [vmem:[#allocation182_spill] sm:$0xff] }
 0x2d8   :  { %4101 = vmatprep.subr.bf16.mxu1 %v7867_v37  ;;  %4143 = vmatpush1.bf16.msra.mxu0 %v7868_v21  ;;  %v7922_v37 = vld [vmem:[#allocation121_spill] sm:$0xff]  ;;  %v7923_v21 = vld [vmem:[#allocation123_spill] sm:$0xff] }
 0x2d9   :  { %4144 = vmatprep.subr.bf16.mxu0 %v7869_v19  ;;  %v7924_v19 = vld [vmem:[#allocation184_spill] sm:$0xff] }
 0x2db   :  { %4102 = vmatpush1.bf16.msra.mxu1 %v7870_v23  ;;  %v7925_v23 = vld [vmem:[#allocation186_spill] sm:$0xff] }
 0x2dc   :  { %4103 = vmatprep.subr.bf16.mxu1 %v7871_v62  ;;  %4145 = vmatpush1.bf16.msra.mxu0 %v7872_v1  ;;  %v7926_v62 = vld [vmem:[#allocation125_spill] sm:$0xff]  ;;  %v7927_v1 = vld [vmem:[#allocation127_spill] sm:$0xff] }
 0x2dd   :  { %4146 = vmatprep.subr.bf16.mxu0 %v7873_v45  ;;  %v7929_v45 = vld [vmem:[#allocation190_spill] sm:$0xff] }
 0x2df   :  { %4104 = vmatpush1.bf16.msra.mxu1 %v7874_v54  ;;  %v7930_v54 = vld [vmem:[#allocation129_spill] sm:$0xff] }
 0x2e0   :  { %4105 = vmatprep.subr.bf16.mxu1 %v7875_v51  ;;  %4147 = vmatpush1.bf16.msra.mxu0 %v7876_v56  ;;  %v7931_v51 = vld [vmem:[#allocation131_spill] sm:$0xff]  ;;  %v7932_v56 = vld [vmem:[#allocation192_spill] sm:$0xff] }
 0x2e1   :  { %4148 = vmatprep.subr.bf16.mxu0 %v7877_v31  ;;  %v7933_v31 = vld [vmem:[#allocation194_spill] sm:$0xff] }
 0x2e3   :  { %4106 = vmatpush1.bf16.msra.mxu1 %v7878_v12  ;;  %v7934_v12 = vld [vmem:[#allocation133_spill] sm:$0xff] }
 0x2e4   :  { %4107 = vmatprep.subr.bf16.mxu1 %v7879_v47  ;;  %4149 = vmatpush1.bf16.msra.mxu0 %v7880_v49  ;;  %v7935_v47 = vld [vmem:[#allocation135_spill] sm:$0xff]  ;;  %v7936_v49 = vld [vmem:[#allocation196_spill] sm:$0xff] }
 0x2e5   :  { %4150 = vmatprep.subr.bf16.mxu0 %v7881_v27  ;;  %v7937_v27 = vld [vmem:[#allocation198_spill] sm:$0xff] }
 0x2e7   :  { %4108 = vmatpush2.bf16.msra.mxu1 %v7882_v14  ;;  %v7938_v14 = vld [vmem:[#allocation137_spill] sm:$0xff] }
 0x2e8   :  { %4109 = vmatprep.subr.bf16.mxu1 %v7883_v3  ;;  %4151 = vmatpush2.bf16.msra.mxu0 %v7884_v35  ;;  %v7939_v3 = vld [vmem:[#allocation139_spill] sm:$0xff]  ;;  %v7940_v35 = vld [vmem:[#allocation200_spill] sm:$0xff] }
 0x2e9   :  { %4152 = vmatprep.subr.bf16.mxu0 %v7885_v39  ;;  %v7941_v39 = vld [vmem:[#allocation202_spill] sm:$0xff] }
 0x2eb   :  { %4110 = vmatpush2.bf16.msra.mxu1 %v7886_v43  ;;  %v7942_v43 = vld [vmem:[#allocation141_spill] sm:$0xff] }
 0x2ec   :  { %4111 = vmatprep.subr.bf16.mxu1 %v7887_v5  ;;  %4153 = vmatpush2.bf16.msra.mxu0 %v7888_v10  ;;  %v7943_v5 = vld [vmem:[#allocation143_spill] sm:$0xff]  ;;  %v7944_v10 = vld [vmem:[#allocation204_spill] sm:$0xff] }
 0x2ed   :  { %4154 = vmatprep.subr.bf16.mxu0 %v7889_v18  ;;  %v7945_v18 = vld [vmem:[#allocation206_spill] sm:$0xff] }
 0x2ef   :  { %4112 = vmatpush2.bf16.msra.mxu1 %v7890_v20  ;;  %v7946_v20 = vld [vmem:[#allocation145_spill] sm:$0xff] }
 0x2f0   :  { %4113 = vmatprep.subr.bf16.mxu1 %v7891_v26  ;;  %4155 = vmatpush2.bf16.msra.mxu0 %v7892_v28  ;;  %v7947_v26 = vld [vmem:[#allocation147_spill] sm:$0xff]  ;;  %v7948_v28 = vld [vmem:[#allocation208_spill] sm:$0xff] }
 0x2f1   :  { %4156 = vmatprep.subr.bf16.mxu0 %v7893_v34  ;;  %v7949_v34 = vld [vmem:[#allocation210_spill] sm:$0xff] }
 0x2f3   :  { %4114 = vmatpush2.bf16.msra.mxu1 %v7894_v36  ;;  %v7950_v36 = vld [vmem:[#allocation149_spill] sm:$0xff] }
 0x2f4   :  { %4115 = vmatprep.subr.bf16.mxu1 %v7895_v42  ;;  %4157 = vmatpush2.bf16.msra.mxu0 %v7896_v44  ;;  %v7951_v42 = vld [vmem:[#allocation151_spill] sm:$0xff]  ;;  %v7952_v44 = vld [vmem:[#allocation212_spill] sm:$0xff] }
 0x2f5   :  { %4158 = vmatprep.subr.bf16.mxu0 %v7897_v50  ;;  %v7953_v50 = vld [vmem:[#allocation214_spill] sm:$0xff] }
 0x2f7   :  { %4116 = vmatpush2.bf16.msra.mxu1 %v7898_v52  ;;  %v7954_v52 = vld [vmem:[#allocation153_spill] sm:$0xff] }
 0x2f8   :  { %4117 = vmatprep.subr.bf16.mxu1 %v7899_v0  ;;  %4159 = vmatpush2.bf16.msra.mxu0 %v7900_v2  ;;  %v3796_v0 = vpop.f32.mrf.mxu0  ;;  %v7955_v2 = vld [vmem:[#allocation155_spill] sm:$0xff] }
 0x2f9   :  { %4160 = vmatprep.subr.bf16.mxu0 %v7901_v13  ;;  %v7956_v13 = vld [vmem:[#allocation216_spill] sm:$0xff] }
 0x2fb   :  { %4118 = vmatpush2.bf16.msra.mxu1 %v7902_v16  ;;  %v7957_v16 = vld [vmem:[#allocation218_spill] sm:$0xff] }
 0x2fc   :  { %4119 = vmatprep.subr.bf16.mxu1 %v7903_v30  ;;  %4161 = vmatpush2.bf16.msra.mxu0 %v7904_v32  ;;  %v7958_v30 = vld [vmem:[#allocation157_spill] sm:$0xff]  ;;  %v3798_v32 = vpop.f32.mrf.mxu0 }
 0x2fd   :  { %4162 = vmatprep.subr.bf16.mxu0 %v7905_v46  ;;  %v7959_v46 = vld [vmem:[#allocation159_spill] sm:$0xff] }
 0x2ff   :  { %4120 = vmatpush2.bf16.msra.mxu1 %v7906_v48  ;;  %v7960_v48 = vld [vmem:[#allocation220_spill] sm:$0xff] }
 0x300   :  { %4121 = vmatprep.subr.bf16.mxu1 %v7907_v59  ;;  %4163 = vmatpush2.bf16.msra.mxu0 %v7908_v61  ;;  %v7961_v59 = vld [vmem:[#allocation222_spill] sm:$0xff]  ;;  %v7962_v61 = vld [vmem:[#allocation161_spill] sm:$0xff] }
 0x301   :  { %4164 = vmatprep.subr.bf16.mxu0 %v7909_v22  ;;  %v3800_v22 = vpop.f32.mrf.mxu0 }
 0x303   :  { %4122 = vmatpush2.bf16.msra.mxu1 %v7910_v24 }
 0x304   :  { %4177 = vmatprep.subr.bf16.mxu1 %v7911_v7  ;;  %4165 = vmatpush2.bf16.msra.mxu0 %v7912_v29  ;;  %v7963_v7 = vld [vmem:[#allocation163_spill] sm:$0xff]  ;;  %v7964_v29 = vld [vmem:[#allocation224_spill] sm:$0xff] }
 0x305   :  { %4220 = vmatprep.subr.bf16.mxu0 %v7913_v6  ;;  %v7965_v6 = vld [vmem:[#allocation226_spill] sm:$0xff] }
 0x306   :  { %4124 = vmatmul.mubr.bf16.vlgmr.msra.gmra.mxu1 %v7051_v15  ;;  %v3839_v24 = vpop.f32.mrf.mxu1 }
 0x307   :  { %4178 = vmatpush1.bf16.msra.mxu1 %v7914_v38  ;;  %4167 = vmatmul.mubr.bf16.vlgmr.msra.gmra.mxu0 %v6964_v55  ;;  %v7966_v38 = vsub.s32 2, %v6815_v57 }
 0x308   :  { %4179 = vmatprep.subr.bf16.mxu1 %v7915_v40  ;;  %4221 = vmatpush1.bf16.msra.mxu0 %v7916_v33  ;;  %v7967_v33 = vld [vmem:[#allocation165_spill] sm:$0xff] }
 0x309   :  { %4222 = vmatprep.subr.bf16.mxu0 %v7917_v17  ;;  %4209 = vmatprep.mubr.bf16.mxu1 %v6969_v11  ;;  %v7187_v40 = vrot.slane %v7030_v53, %v7966_v38  ;;  %v3802_v17 = vpop.f32.mrf.mxu0  ;;  %v7985_v38 = vld [vmem:[#allocation189_spill] sm:$0xff] }
 0x30a   :  { %4252 = vmatprep.mubr.bf16.mxu0 %v6928_v58  ;;  %v7928_v58 = vld [vmem:[#allocation188_spill] sm:$0xff] }
 0x30b   :  { %4180 = vmatpush1.bf16.msra.mxu1 %v7918_v8  ;;  %v3841_v8 = vpop.f32.mrf.mxu1 }
 0x30c   :  { %4181 = vmatprep.subr.bf16.mxu1 %v7919_v63  ;;  %4223 = vmatpush1.bf16.msra.mxu0 %v7920_v41  ;;  %v7968_v63 = vld [vmem:[#allocation167_spill] sm:$0xff]  ;;  %v7969_v41 = vld [vmem:[#allocation228_spill] sm:$0xff] }
 0x30d   :  { %4224 = vmatprep.subr.bf16.mxu0 %v7921_v4  ;;  %v7970_v4 = vsub.s32 3, %v6815_v57 }
 0x30f   :  { %4182 = vmatpush1.bf16.msra.mxu1 %v7922_v37  ;;  %v7195_v37 = vrot.slane %v7030_v53, %v7970_v4  ;;  %v3801_v53 = vadd.f32 %v3800_v22, %v7187_v40  ;;  %v5618_v22 = vld [vmem:[#allocation8 + $0xa4] ss:$16 sps:$4 sm:$0xff]   ;;  %v5623_v4 = vld [vmem:[#allocation8 + $0x60] ss:$16 sps:$4 sm:$0xff]  }
 0x310   :  { %4183 = vmatprep.subr.bf16.mxu1 %v7923_v21  ;;  %4225 = vmatpush1.bf16.msra.mxu0 %v7924_v19  ;;  %v7971_v21 = vld [vmem:[#allocation230_spill] sm:$0xff]  ;;  %v3882_v19 = vpop.f32.mrf.mxu0 }
 0x311   :  { %4226 = vmatprep.subr.bf16.mxu0 %v7925_v23  ;;  %v3797_v23 = vadd.f32 %v3796_v0, %v7187_v40 }
 0x312   :  { %v3884_v57 = vpop.f32.mrf.mxu0 }
 0x313   :  { %4184 = vmatpush1.bf16.msra.mxu1 %v7926_v62  ;;  %v7972_v62 = vld [vmem:[#allocation169_spill] sm:$0xff] }
 0x314   :  { %4185 = vmatprep.subr.bf16.mxu1 %v7927_v1  ;;  %4227 = vmatpush1.bf16.msra.mxu0 %v7928_v58  ;;  %v3843_v1 = vpop.f32.mrf.mxu1  ;;  %v7973_v58 = vld [vmem:[#allocation171_spill] sm:$0xff] }
 0x315   :  { %4228 = vmatprep.subr.bf16.mxu0 %v7929_v45  ;;  %v7974_v45 = vld [vmem:[#allocation232_spill] sm:$0xff] }
 0x317   :  { %4186 = vmatpush1.bf16.msra.mxu1 %v7930_v54  ;;  %v3799_v54 = vadd.f32 %v3798_v32, %v7195_v37  ;;  %v7981_v32 = vld [vmem:[#allocation181_spill] sm:$0xff] }
 0x318   :  { %4187 = vmatprep.subr.bf16.mxu1 %v7931_v51  ;;  %4229 = vmatpush1.bf16.msra.mxu0 %v7932_v56  ;;  %v3840_v51 = vadd.f32 %v3839_v24, %v3797_v23  ;;  %v7975_v56 = vld [vmem:[#allocation234_spill] sm:$0xff]  ;;  %v7983_v24 = vld [vmem:[#allocation185_spill] sm:$0xff]  ;;  %v7990_v23 = vld [vmem:[#allocation199_spill] sm:$0xff] }
 0x319   :  { %4230 = vmatprep.subr.bf16.mxu0 %v7933_v31  ;;  %v3842_v31 = vadd.f32 %v3841_v8, %v3799_v54  ;;  %v5622_v8 = vld [vmem:[#allocation8 + $0x64] ss:$16 sps:$4 sm:$0xff]   ;;  %v5627_v54 = vld [vmem:[#allocation8 + $0x20] ss:$16 sps:$4 sm:$0xff]  }
 0x31b   :  { %4188 = vmatpush1.bf16.msra.mxu1 %v7934_v12  ;;  %v7976_v12 = vld [vmem:[#allocation173_spill] sm:$0xff] }
 0x31c   :  { %4189 = vmatprep.subr.bf16.mxu1 %v7935_v47  ;;  %4231 = vmatpush1.bf16.msra.mxu0 %v7936_v49  ;;  %v3845_v47 = vpop.f32.mrf.mxu1  ;;  %v7977_v49 = vld [vmem:[#allocation175_spill] sm:$0xff] }
 0x31d   :  { %4232 = vmatprep.subr.bf16.mxu0 %v7937_v27  ;;  %v7978_v27 = vld [vmem:[#allocation236_spill] sm:$0xff] }
 0x31f   :  { %4190 = vmatpush1.bf16.msra.mxu1 %v7938_v14  ;;  %v3803_v14 = vadd.f32 %v3802_v17, %v7195_v37  ;;  %v5621_v17 = vld [vmem:[#allocation8 + $0x80] ss:$16 sps:$4 sm:$0xff]  }
 0x320   :  { %4191 = vmatprep.subr.bf16.mxu1 %v7939_v3  ;;  %4233 = vmatpush1.bf16.msra.mxu0 %v7940_v35  ;;  %v3883_v3 = vadd.f32 %v3882_v19, %v3840_v51  ;;  %v3844_v35 = vadd.f32 %v3843_v1, %v3801_v53  ;;  %v7989_v19 = vld [vmem:[#allocation197_spill] sm:$0xff] }
 0x321   :  { %4234 = vmatprep.subr.bf16.mxu0 %v7941_v39  ;;  %v5614_v39 = vld [vmem:[#allocation8 + $0xe4] ss:$16 sps:$4 sm:$0xff]   ;;  %v5629_v53 = vld [vmem:[#allocation8] ss:$16 sps:$4 sm:$0xff]  }
 0x322   :  { %v5626_v1 = vld [vmem:[#allocation8 + $0x24] ss:$16 sps:$4 sm:$0xff]  }
 0x323   :  { %4192 = vmatpush1.bf16.msra.mxu1 %v7942_v43  ;;  %v3886_v43 = vpop.f32.mrf.mxu0  ;;  %v5628_v51 = vld [vmem:[#allocation8 + $0x4] ss:$16 sps:$4 sm:$0xff]  }
 0x324   :  { %4193 = vmatprep.subr.bf16.mxu1 %v7943_v5  ;;  %4235 = vmatpush1.bf16.msra.mxu0 %v7944_v10  ;;  %v3885_v10 = vadd.f32 %v3884_v57, %v3842_v31  ;;  %v7994_v57 = vld [vmem:[#allocation207_spill] sm:$0xff] }
 0x325   :  { %4236 = vmatprep.subr.bf16.mxu0 %v7945_v18  ;;  %v3846_v18 = vadd.f32 %v3845_v47, %v3803_v14  ;;  %v3888_v0 = vpop.f32.mrf.mxu0  ;;  %v5630_v31 = vld [vmem:[#allocation8 + $0x1e4] ss:$16 sps:$4 sm:$0xff]  }
 0x326   :  { %v7996_v47 = vld [vmem:[#allocation211_spill] sm:$0xff]  ;;  %v7997_v14 = vld [vmem:[#allocation213_spill] sm:$0xff] }
 0x327   :  { %4194 = vmatpush2.bf16.msra.mxu1 %v7946_v20 }
 0x328   :  { %4195 = vmatprep.subr.bf16.mxu1 %v7947_v26  ;;  %4237 = vmatpush2.bf16.msra.mxu0 %v7948_v28  ;;  %v7979_v26 = vld [vmem:[#allocation177_spill] sm:$0xff] }
 0x329   :  { %4238 = vmatprep.subr.bf16.mxu0 %v7949_v34  ;;  %v7980_v34 = vld [vmem:[#allocation179_spill] sm:$0xff] }
 0x32b   :  { %4196 = vmatpush2.bf16.msra.mxu1 %v7950_v36  ;;  %v5615_v36 = vld [vmem:[#allocation8 + $0xe0] ss:$16 sps:$4 sm:$0xff]  }
 0x32c   :  { %4197 = vmatprep.subr.bf16.mxu1 %v7951_v42  ;;  %4239 = vmatpush2.bf16.msra.mxu0 %v7952_v44  ;;  %v3887_v42 = vadd.f32 %v3886_v43, %v3844_v35  ;;  %v5633_v35 = vld [vmem:[#allocation8 + $0x1c0] ss:$16 sps:$4 sm:$0xff]  }
 0x32d   :  { %4240 = vmatprep.subr.bf16.mxu0 %v7953_v50  ;;  %v7999_v43 = vld [vmem:[#allocation217_spill] sm:$0xff] }
 0x32f   :  { %4198 = vmatpush2.bf16.msra.mxu1 %v7954_v52  ;;  %v5616_v52 = vld [vmem:[#allocation8 + $0xc4] ss:$16 sps:$4 sm:$0xff]  }
 0x330   :  { %4199 = vmatprep.subr.bf16.mxu1 %v7955_v2  ;;  %4241 = vmatpush2.bf16.msra.mxu0 %v7956_v13  ;;  %v3889_v13 = vadd.f32 %v3888_v0, %v3846_v18  ;;  %v5636_v18 = vld [vmem:[#allocation8 + $0x184] ss:$16 sps:$4 sm:$0xff]  }
 0x331   :  { %4242 = vmatprep.subr.bf16.mxu0 %v7957_v16  ;;  %v8006_v0 = vld [vmem:[#allocation231_spill] sm:$0xff] }
 0x333   :  { %4200 = vmatpush2.bf16.msra.mxu1 %v7958_v30 }
 0x334   :  { %4201 = vmatprep.subr.bf16.mxu1 %v7959_v46  ;;  %4243 = vmatpush2.bf16.msra.mxu0 %v7960_v48  ;;  %v7982_v46 = vld [vmem:[#allocation183_spill] sm:$0xff] }
 0x335   :  { %4244 = vmatprep.subr.bf16.mxu0 %v7961_v59  ;;  %v5617_v48 = vld [vmem:[#allocation8 + $0xc0] ss:$16 sps:$4 sm:$0xff]  }
 0x337   :  { %4202 = vmatpush2.bf16.msra.mxu1 %v7962_v61 }
 0x338   :  { %4203 = vmatprep.subr.bf16.mxu1 %v7963_v7  ;;  %4245 = vmatpush2.bf16.msra.mxu0 %v7964_v29  ;;  %v7984_v7 = vld [vmem:[#allocation187_spill] sm:$0xff] }
 0x339   :  { %4246 = vmatprep.subr.bf16.mxu0 %v7965_v6  ;;  %v5619_v29 = vld [vmem:[#allocation8 + $0xa0] ss:$16 sps:$4 sm:$0xff]   ;;  %v5620_v6 = vld [vmem:[#allocation8 + $0x84] ss:$16 sps:$4 sm:$0xff]  }
 0x33b   :  { %4204 = vmatpush2.bf16.msra.mxu1 %v7967_v33  ;;  %v7986_v33 = vld [vmem:[#allocation191_spill] sm:$0xff] }
 0x33c   :  { %4205 = vmatprep.subr.bf16.mxu1 %v7968_v63  ;;  %4247 = vmatpush2.bf16.msra.mxu0 %v7969_v41  ;;  %v7987_v63 = vld [vmem:[#allocation193_spill] sm:$0xff]  ;;  %v7988_v41 = vld [vmem:[#allocation195_spill] sm:$0xff] }
 0x33d   :  { %4248 = vmatprep.subr.bf16.mxu0 %v7971_v21  ;;  %v5624_v21 = vld [vmem:[#allocation8 + $0x44] ss:$16 sps:$4 sm:$0xff]  }
 0x33f   :  { %4206 = vmatpush2.bf16.msra.mxu1 %v7972_v62  ;;  %v5625_v62 = vld [vmem:[#allocation8 + $0x40] ss:$16 sps:$4 sm:$0xff]  }
 0x340   :  { %4207 = vmatprep.subr.bf16.mxu1 %v7973_v58  ;;  %4249 = vmatpush2.bf16.msra.mxu0 %v7974_v45  ;;  %v7991_v58 = vld [vmem:[#allocation201_spill] sm:$0xff]  ;;  %v7992_v45 = vld [vmem:[#allocation203_spill] sm:$0xff] }
 0x341   :  { %4250 = vmatprep.subr.bf16.mxu0 %v7975_v56  ;;  %v7993_v56 = vld [vmem:[#allocation205_spill] sm:$0xff] }
 0x343   :  { %4208 = vmatpush2.bf16.msra.mxu1 %v7976_v12  ;;  %v7995_v12 = vld [vmem:[#allocation209_spill] sm:$0xff] }
 0x344   :  { %4263 = vmatprep.subr.bf16.mxu1 %v7977_v49  ;;  %4251 = vmatpush2.bf16.msra.mxu0 %v7978_v27  ;;  %v5631_v49 = vld [vmem:[#allocation8 + $0x1e0] ss:$16 sps:$4 sm:$0xff]   ;;  %v5632_v27 = vld [vmem:[#allocation8 + $0x1c4] ss:$16 sps:$4 sm:$0xff]  }
 0x345   :  { %4330 = vmatprep.subr.bf16.mxu0 %v5614_v39  ;;  %v5634_v39 = vld [vmem:[#allocation8 + $0x1a4] ss:$16 sps:$4 sm:$0xff]  }
 0x346   :  { %v3925_v5 = vpop.f32.mrf.mxu1  ;;  %4210 = vmatmul.mubr.bf16.vlgmr.msra.gmra.mxu1 %v7051_v15 }
 0x347   :  { %v3926_v20 = vadd.f32 %v3925_v5, %v3883_v3  ;;  %4264 = vmatpush1.bf16.msra.mxu1 %v7979_v26  ;;  %4253 = vmatmul.mubr.bf16.vlgmr.msra.gmra.mxu0 %v6964_v55  ;;  %v7998_v3 = vld [vmem:[#allocation215_spill] sm:$0xff] }
 0x348   :  { %v3927_v28 = vpop.f32.mrf.mxu1  ;;  %4265 = vmatprep.subr.bf16.mxu1 %v7980_v34  ;;  %4331 = vmatpush1.bf16.msra.mxu0 %v5615_v36  ;;  %v8000_v5 = vld [vmem:[#allocation219_spill] sm:$0xff]  ;;  %v8003_v36 = vld [vmem:[#allocation225_spill] sm:$0xff] }
 0x349   :  { %v3936_v44 = vmax.f32 %v3926_v20, 0.0  ;;  %v3928_v50 = vadd.f32 %v3927_v28, %v3885_v10  ;;  %4332 = vmatprep.subr.bf16.mxu0 %v5616_v52  ;;  %4295 = vmatprep.mubr.bf16.mxu1 %v6969_v11  ;;  %v5635_v10 = vld [vmem:[#allocation8 + $0x1a0] ss:$16 sps:$4 sm:$0xff]   ;;  %v5638_v34 = vld [vmem:[#allocation8 + $0x164] ss:$16 sps:$4 sm:$0xff]  }
 0x34a   :  { %v3929_v2 = vpop.f32.mrf.mxu1  ;;  %v8001_v20 = vld [vmem:[#allocation221_spill] sm:$0xff]  ;;  %v8002_v26 = vld [vmem:[#allocation223_spill] sm:$0xff] }
 0x34b   :  { %3944 = vst [vmem:[#allocation10 + $0x10] sm:$0xff] %v3936_v44  ;;  %v3937_v16 = vmax.f32 %v3928_v50, 0.0  ;;  %v3930_v30 = vadd.f32 %v3929_v2, %v3887_v42  ;;  %4266 = vmatpush1.bf16.msra.mxu1 %v7981_v32  ;;  %v5637_v28 = vld [vmem:[#allocation8 + $0x180] ss:$16 sps:$4 sm:$0xff]   ;;  %v5640_v50 = vld [vmem:[#allocation8 + $0x144] ss:$16 sps:$4 sm:$0xff]   ;;  %v3996_v2 = vpop.f32.mrf.mxu0 }
 0x34c   :  { %v3931_v55 = vpop.f32.mrf.mxu1  ;;  %4267 = vmatprep.subr.bf16.mxu1 %v7982_v46  ;;  %4333 = vmatpush1.bf16.msra.mxu0 %v5617_v48  ;;  %v8004_v42 = vld [vmem:[#allocation227_spill] sm:$0xff]  ;;  %v8005_v52 = vld [vmem:[#allocation229_spill] sm:$0xff] }
 0x34d   :  { %3945 = vst [vmem:[#allocation10 + $0x18] sm:$0xff] %v3937_v16  ;;  %v3940_v59 = vmax.f32 %v3930_v30, 0.0  ;;  %v3932_v61 = vadd.f32 %v3931_v55, %v3889_v13  ;;  %4334 = vmatprep.subr.bf16.mxu0 %v5618_v22  ;;  %v5639_v44 = vld [vmem:[#allocation8 + $0x160] ss:$16 sps:$4 sm:$0xff]   ;;  %v5642_v16 = vld [vmem:[#allocation8 + $0x124] ss:$16 sps:$4 sm:$0xff]   ;;  %v3998_v32 = vpop.f32.mrf.mxu0 }
 0x34e   :  { %v5641_v13 = vld [vmem:[#allocation8 + $0x140] ss:$16 sps:$4 sm:$0xff]   ;;  %v5644_v48 = vld [vmem:[#allocation8 + $0x104] ss:$16 sps:$4 sm:$0xff]  }
 0x34f   :  { %3948 = vst [vmem:[#allocation10 + $0x30] sm:$0xff] %v3940_v59  ;;  %v3941_v11 = vmax.f32 %v3932_v61, 0.0  ;;  %4268 = vmatpush1.bf16.msra.mxu1 %v7983_v24  ;;  %v8007_v30 = vld [vmem:[#allocation233_spill] sm:$0xff]  ;;  %v8008_v55 = vld [vmem:[#allocation235_spill] sm:$0xff]  ;;  %v4000_v61 = vpop.f32.mrf.mxu0 }
 0x350   :  { %4269 = vmatprep.subr.bf16.mxu1 %v7984_v7  ;;  %4335 = vmatpush1.bf16.msra.mxu0 %v5619_v29  ;;  %v5643_v46 = vld [vmem:[#allocation8 + $0x120] ss:$16 sps:$4 sm:$0xff]   ;;  %v5647_v24 = vld [vmem:[#allocation8 + $0x4e4] ss:$16 sps:$4 sm:$0xff]   ;;  %v8010_v29 = vld [vmem:[#allocation238_spill] sm:$0xff] }
 0x351   :  { %3949 = vst [vmem:[#allocation10 + $0x38] sm:$0xff] %v3941_v11  ;;  %4336 = vmatprep.subr.bf16.mxu0 %v5620_v6  ;;  %v8009_v59 = vld [vmem:[#allocation237_spill] sm:$0xff]  ;;  %v3999_v6 = vadd.f32 %v3998_v32, %v8010_v29 }
 0x352   :  { %v5645_v22 = vld [vmem:[#allocation8 + $0x100] ss:$16 sps:$4 sm:$0xff]   ;;  %v5646_v11 = vld [vmem:[#allocation8 + $0x2e4] ss:$16 sps:$4 sm:$0xff]  }
 0x353   :  { %4270 = vmatpush1.bf16.msra.mxu1 %v7985_v38  ;;  %v5648_v38 = vld [vmem:[#allocation8 + $0x2e0] ss:$16 sps:$4 sm:$0xff]   ;;  %v5677_v32 = vld [vmem:[#allocation8 + $0x424] ss:$16 sps:$4 sm:$0xff]  }
 0x354   :  { %4271 = vmatprep.subr.bf16.mxu1 %v7986_v33  ;;  %4337 = vmatpush1.bf16.msra.mxu0 %v5621_v17  ;;  %v8011_v33 = vld [vmem:[#allocation239_spill] sm:$0xff] }
 0x355   :  { %4338 = vmatprep.subr.bf16.mxu0 %v5622_v8  ;;  %v3997_v17 = vadd.f32 %v3996_v2, %v8011_v33  ;;  %v4002_v8 = vpop.f32.mrf.mxu0  ;;  %v5673_v2 = vld [vmem:[#allocation8 + $0x444] ss:$16 sps:$4 sm:$0xff]  }
 0x357   :  { %4272 = vmatpush1.bf16.msra.mxu1 %v7987_v63 }
 0x358   :  { %4273 = vmatprep.subr.bf16.mxu1 %v7988_v41  ;;  %4339 = vmatpush1.bf16.msra.mxu0 %v5623_v4  ;;  %v5649_v41 = vld [vmem:[#allocation8 + $0x2c4] ss:$16 sps:$4 sm:$0xff]   ;;  %v4001_v4 = vadd.f32 %v4000_v61, %v8011_v33  ;;  %v5682_v61 = vld [vmem:[#allocation8 + $0x3a0] ss:$16 sps:$4 sm:$0xff]  }
 0x359   :  { %4340 = vmatprep.subr.bf16.mxu0 %v5624_v21  ;;  %v5690_v33 = vld [vmem:[#allocation8 + $0x360] ss:$16 sps:$4 sm:$0xff]  }
 0x35b   :  { %4274 = vmatpush1.bf16.msra.mxu1 %v7989_v19  ;;  %v4003_v19 = vadd.f32 %v4002_v8, %v8010_v29  ;;  %v5687_v29 = vld [vmem:[#allocation8 + $0x364] ss:$16 sps:$4 sm:$0xff]   ;;  %v5692_v8 = vld [vmem:[#allocation8 + $0x5c0] ss:$16 sps:$4 sm:$0xff]  }
 0x35c   :  { %4275 = vmatprep.subr.bf16.mxu1 %v7990_v23  ;;  %4341 = vmatpush1.bf16.msra.mxu0 %v5625_v62 }
 0x35d   :  { %4342 = vmatprep.subr.bf16.mxu0 %v5626_v1  ;;  %v5650_v1 = vld [vmem:[#allocation8 + $0x2c0] ss:$16 sps:$4 sm:$0xff]  }
 0x35f   :  { %4276 = vmatpush1.bf16.msra.mxu1 %v7991_v58 }
 0x360   :  { %4277 = vmatprep.subr.bf16.mxu1 %v7992_v45  ;;  %4343 = vmatpush1.bf16.msra.mxu0 %v5627_v54  ;;  %v5651_v45 = vld [vmem:[#allocation8 + $0x2a4] ss:$16 sps:$4 sm:$0xff]  }
 0x361   :  { %4344 = vmatprep.subr.bf16.mxu0 %v5628_v51 }
 0x363   :  { %4278 = vmatpush1.bf16.msra.mxu1 %v7993_v56 }
 0x364   :  { %4279 = vmatprep.subr.bf16.mxu1 %v7994_v57  ;;  %4345 = vmatpush1.bf16.msra.mxu0 %v5629_v53  ;;  %v5652_v53 = vld [vmem:[#allocation8 + $0x2a0] ss:$16 sps:$4 sm:$0xff]  }
 0x365   :  { %4346 = vmatprep.subr.bf16.mxu0 %v5630_v31 }
 0x367   :  { %4280 = vmatpush2.bf16.msra.mxu1 %v7995_v12  ;;  %v5653_v12 = vld [vmem:[#allocation8 + $0x284] ss:$16 sps:$4 sm:$0xff]  }
 0x368   :  { %4281 = vmatprep.subr.bf16.mxu1 %v7996_v47  ;;  %4347 = vmatpush2.bf16.msra.mxu0 %v5631_v49 }
 0x369   :  { %4348 = vmatprep.subr.bf16.mxu0 %v5632_v27  ;;  %v5654_v27 = vld [vmem:[#allocation8 + $0x280] ss:$16 sps:$4 sm:$0xff]  }
 0x36b   :  { %4282 = vmatpush2.bf16.msra.mxu1 %v7997_v14  ;;  %v5655_v14 = vld [vmem:[#allocation8 + $0x264] ss:$16 sps:$4 sm:$0xff]  }
 0x36c   :  { %4283 = vmatprep.subr.bf16.mxu1 %v7998_v3  ;;  %4349 = vmatpush2.bf16.msra.mxu0 %v5633_v35  ;;  %v5656_v3 = vld [vmem:[#allocation8 + $0x4e0] ss:$16 sps:$4 sm:$0xff]   ;;  %v5657_v35 = vld [vmem:[#allocation8 + $0x4c4] ss:$16 sps:$4 sm:$0xff]  }
 0x36d   :  { %4350 = vmatprep.subr.bf16.mxu0 %v5634_v39  ;;  %v5658_v39 = vld [vmem:[#allocation8 + $0x260] ss:$16 sps:$4 sm:$0xff]  }
 0x36f   :  { %4284 = vmatpush2.bf16.msra.mxu1 %v7999_v43  ;;  %v5659_v43 = vld [vmem:[#allocation8 + $0x244] ss:$16 sps:$4 sm:$0xff]  }
 0x370   :  { %4285 = vmatprep.subr.bf16.mxu1 %v8000_v5  ;;  %4351 = vmatpush2.bf16.msra.mxu0 %v5635_v10  ;;  %v5660_v5 = vld [vmem:[#allocation8 + $0x4c0] ss:$16 sps:$4 sm:$0xff]   ;;  %v5661_v10 = vld [vmem:[#allocation8 + $0x4a4] ss:$16 sps:$4 sm:$0xff]  }
 0x371   :  { %4352 = vmatprep.subr.bf16.mxu0 %v5636_v18  ;;  %v5662_v18 = vld [vmem:[#allocation8 + $0x240] ss:$16 sps:$4 sm:$0xff]  }
 0x373   :  { %4286 = vmatpush2.bf16.msra.mxu1 %v8001_v20  ;;  %v5663_v20 = vld [vmem:[#allocation8 + $0x224] ss:$16 sps:$4 sm:$0xff]  }
 0x374   :  { %4287 = vmatprep.subr.bf16.mxu1 %v8002_v26  ;;  %4353 = vmatpush2.bf16.msra.mxu0 %v5637_v28  ;;  %v5664_v26 = vld [vmem:[#allocation8 + $0x4a0] ss:$16 sps:$4 sm:$0xff]   ;;  %v5665_v28 = vld [vmem:[#allocation8 + $0x484] ss:$16 sps:$4 sm:$0xff]  }
 0x375   :  { %4354 = vmatprep.subr.bf16.mxu0 %v5638_v34  ;;  %v5666_v34 = vld [vmem:[#allocation8 + $0x220] ss:$16 sps:$4 sm:$0xff]  }
 0x377   :  { %4288 = vmatpush2.bf16.msra.mxu1 %v8003_v36  ;;  %v5667_v36 = vld [vmem:[#allocation8 + $0x204] ss:$16 sps:$4 sm:$0xff]  }
 0x378   :  { %4289 = vmatprep.subr.bf16.mxu1 %v8004_v42  ;;  %4355 = vmatpush2.bf16.msra.mxu0 %v5639_v44  ;;  %v5668_v42 = vld [vmem:[#allocation8 + $0x480] ss:$16 sps:$4 sm:$0xff]   ;;  %v5669_v44 = vld [vmem:[#allocation8 + $0x464] ss:$16 sps:$4 sm:$0xff]  }
 0x379   :  { %4356 = vmatprep.subr.bf16.mxu0 %v5640_v50  ;;  %v5670_v50 = vld [vmem:[#allocation8 + $0x200] ss:$16 sps:$4 sm:$0xff]  }
 0x37b   :  { %4290 = vmatpush2.bf16.msra.mxu1 %v8005_v52  ;;  %v5671_v52 = vld [vmem:[#allocation8 + $0x3e4] ss:$16 sps:$4 sm:$0xff]  }
 0x37c   :  { %4291 = vmatprep.subr.bf16.mxu1 %v8006_v0  ;;  %4357 = vmatpush2.bf16.msra.mxu0 %v5641_v13  ;;  %v5672_v0 = vld [vmem:[#allocation8 + $0x460] ss:$16 sps:$4 sm:$0xff]  }
 0x37d   :  { %4358 = vmatprep.subr.bf16.mxu0 %v5642_v16  ;;  %v5674_v13 = vld [vmem:[#allocation8 + $0x3e0] ss:$16 sps:$4 sm:$0xff]   ;;  %v5675_v16 = vld [vmem:[#allocation8 + $0x3c4] ss:$16 sps:$4 sm:$0xff]  }
 0x37f   :  { %4292 = vmatpush2.bf16.msra.mxu1 %v8007_v30  ;;  %v5676_v30 = vld [vmem:[#allocation8 + $0x440] ss:$16 sps:$4 sm:$0xff]  }
 0x380   :  { %4293 = vmatprep.subr.bf16.mxu1 %v8008_v55  ;;  %4359 = vmatpush2.bf16.msra.mxu0 %v5643_v46  ;;  %v5678_v55 = vld [vmem:[#allocation8 + $0x3c0] ss:$16 sps:$4 sm:$0xff]   ;;  %v5679_v46 = vld [vmem:[#allocation8 + $0x3a4] ss:$16 sps:$4 sm:$0xff]  }
 0x381   :  { %4360 = vmatprep.subr.bf16.mxu0 %v5644_v48  ;;  %v5680_v48 = vld [vmem:[#allocation8 + $0x420] ss:$16 sps:$4 sm:$0xff]  }
 0x383   :  { %4294 = vmatpush2.bf16.msra.mxu1 %v8009_v59  ;;  %v5681_v59 = vld [vmem:[#allocation8 + $0x404] ss:$16 sps:$4 sm:$0xff]  }
 0x384   :  { %4361 = vmatpush2.bf16.msra.mxu0 %v5645_v22  ;;  %4373 = vmatprep.subr.bf16.mxu1 %v5646_v11  ;;  %v5683_v22 = vld [vmem:[#allocation8 + $0x384] ss:$16 sps:$4 sm:$0xff]   ;;  %v5684_v11 = vld [vmem:[#allocation8 + $0x400] ss:$16 sps:$4 sm:$0xff]  }
 0x385   :  { %4416 = vmatprep.subr.bf16.mxu0 %v5647_v24  ;;  %v5685_v24 = vld [vmem:[#allocation8 + $0x5e4] ss:$16 sps:$4 sm:$0xff]  }
 0x386   :  { %v4039_v7 = vpop.f32.mrf.mxu1  ;;  %4296 = vmatmul.mubr.bf16.vlgmr.msra.gmra.mxu1 %v7051_v15 }
 0x387   :  { %4374 = vmatpush1.bf16.msra.mxu1 %v5648_v38  ;;  %v4040_v15 = vadd.f32 %v4039_v7, %v3997_v17  ;;  %v5686_v7 = vld [vmem:[#allocation8 + $0x380] ss:$16 sps:$4 sm:$0xff]   ;;  %v5689_v38 = vld [vmem:[#allocation8 + $0x5c4] ss:$16 sps:$4 sm:$0xff]  }
 0x388   :  { %v4041_v63 = vpop.f32.mrf.mxu1  ;;  %4375 = vmatprep.subr.bf16.mxu1 %v5649_v41  ;;  %v5691_v17 = vld [vmem:[#allocation8 + $0x344] ss:$16 sps:$4 sm:$0xff]   ;;  %v5694_v41 = vld [vmem:[#allocation8 + $0x340] ss:$16 sps:$4 sm:$0xff]  }
 0x389   :  { %v4042_v23 = vadd.f32 %v4041_v63, %v3999_v6  ;;  %v4306_v31 = vmax.f32 %v4040_v15, 0.0  ;;  %v5688_v6 = vld [vmem:[#allocation8 + $0x5e0] ss:$16 sps:$4 sm:$0xff]   ;;  %v5693_v63 = vld [vmem:[#allocation8 + $0x5a4] ss:$16 sps:$4 sm:$0xff]  }
 0x38a   :  { %v4043_v21 = vpop.f32.mrf.mxu1  ;;  %v5699_v15 = vld [vmem:[#allocation8 + $0x304] ss:$16 sps:$4 sm:$0xff]  }
 0x38b   :  { %v4044_v62 = vadd.f32 %v4043_v21, %v4001_v4  ;;  %4376 = vmatpush1.bf16.msra.mxu1 %v5650_v1  ;;  %v4307_v56 = vmax.f32 %v4042_v23, 0.0  ;;  %v4082_v4 = vpop.f32.mrf.mxu0  ;;  %v5695_v21 = vld [vmem:[#allocation8 + $0x324] ss:$16 sps:$4 sm:$0xff]  }
 0x38c   :  { %v4045_v58 = vpop.f32.mrf.mxu1  ;;  %4377 = vmatprep.subr.bf16.mxu1 %v5651_v45  ;;  %v5697_v23 = vld [vmem:[#allocation8 + $0x584] ss:$16 sps:$4 sm:$0xff]  }
 0x38d   :  { %v4046_v54 = vadd.f32 %v4045_v58, %v4003_v19  ;;  %v4314_v51 = vmax.f32 %v4044_v62, 0.0  ;;  %v5696_v19 = vld [vmem:[#allocation8 + $0x5a0] ss:$16 sps:$4 sm:$0xff]   ;;  %v4084_v1 = vpop.f32.mrf.mxu0  ;;  %v5701_v45 = vld [vmem:[#allocation8 + $0x564] ss:$16 sps:$4 sm:$0xff]  }
 0x38e   :  { %v5698_v62 = vld [vmem:[#allocation8 + $0x320] ss:$16 sps:$4 sm:$0xff]  }
 0x38f   :  { %v4315_v57 = vmax.f32 %v4046_v54, 0.0  ;;  %4378 = vmatpush1.bf16.msra.mxu1 %v5652_v53  ;;  %v7250_v49 = vpack.c.bf16 %v4314_v51, %v4306_v31  ;;  %v5700_v58 = vld [vmem:[#allocation8 + $0x580] ss:$16 sps:$4 sm:$0xff]   ;;  %v4086_v51 = vpop.f32.mrf.mxu0  ;;  %v5705_v31 = vld [vmem:[#allocation8 + $0x544] ss:$16 sps:$4 sm:$0xff]  }
 0x390   :  { %4379 = vmatprep.subr.bf16.mxu1 %v5653_v12  ;;  %v5702_v54 = vld [vmem:[#allocation8 + $0x300] ss:$16 sps:$4 sm:$0xff]   ;;  %v8012_v12 = vld [vmem:[#allocation240_spill] sm:$0xff] }
 0x391   :  { %v7248_v47 = vpack.c.bf16 %v4315_v57, %v4307_v56  ;;  %v5703_v56 = vld [vmem:[#allocation8 + $0x6e4] ss:$16 sps:$4 sm:$0xff]   ;;  %v5704_v57 = vld [vmem:[#allocation8 + $0x560] ss:$16 sps:$4 sm:$0xff]  }
 0x393   :  { %4362 = vmatprep.mubr.bf16.mxu0 %v7248_v47  ;;  %4380 = vmatpush1.bf16.msra.mxu1 %v5654_v27  ;;  %v4085_v27 = vadd.f32 %v4084_v1, %v8012_v12  ;;  %v5732_v1 = vld [vmem:[#allocation8 + $0x7a0] ss:$16 sps:$4 sm:$0xff]  }
 0x394   :  { %4363 = vmatmul.mubr.bf16.vlgmr.msra.gmra.mxu0 %v7250_v49  ;;  %4381 = vmatprep.subr.bf16.mxu1 %v5655_v14  ;;  %v8013_v14 = vld [vmem:[#allocation241_spill] sm:$0xff] }
 0x395   :  { %4417 = vmatpush1.bf16.msra.mxu0 %v5656_v3  ;;  %v4083_v3 = vadd.f32 %v4082_v4, %v8013_v14  ;;  %v5728_v4 = vld [vmem:[#allocation8 + $0x7e0] ss:$16 sps:$4 sm:$0xff]  }
 0x396   :  { %4418 = vmatprep.subr.bf16.mxu0 %v5657_v35  ;;  %v4088_v35 = vpop.f32.mrf.mxu0 }
 0x397   :  { %4382 = vmatpush1.bf16.msra.mxu1 %v5658_v39 }
 0x398   :  { %4383 = vmatprep.subr.bf16.mxu1 %v5659_v43  ;;  %v4087_v43 = vadd.f32 %v4086_v51, %v8013_v14 }
 0x399   :  { %4419 = vmatpush1.bf16.msra.mxu0 %v5660_v5  ;;  %v5706_v5 = vld [vmem:[#allocation8 + $0x540] ss:$16 sps:$4 sm:$0xff]  }
 0x39a   :  { %4420 = vmatprep.subr.bf16.mxu0 %v5661_v10 }
 0x39b   :  { %4384 = vmatpush1.bf16.msra.mxu1 %v5662_v18  ;;  %v5707_v18 = vld [vmem:[#allocation8 + $0x524] ss:$16 sps:$4 sm:$0xff]  }
 0x39c   :  { %4385 = vmatprep.subr.bf16.mxu1 %v5663_v20  ;;  %v4089_v20 = vadd.f32 %v4088_v35, %v8012_v12 }
 0x39d   :  { %4421 = vmatpush1.bf16.msra.mxu0 %v5664_v26 }
 0x39e   :  { %4422 = vmatprep.subr.bf16.mxu0 %v5665_v28 }
 0x39f   :  { %4386 = vmatpush1.bf16.msra.mxu1 %v5666_v34 }
 0x3a0   :  { %4387 = vmatprep.subr.bf16.mxu1 %v5667_v36 }
 0x3a1   :  { %4423 = vmatpush1.bf16.msra.mxu0 %v5668_v42 }
 0x3a2   :  { %4424 = vmatprep.subr.bf16.mxu0 %v5669_v44  ;;  %v5708_v44 = vld [vmem:[#allocation8 + $0x520] ss:$16 sps:$4 sm:$0xff]  }
 0x3a3   :  { %4388 = vmatpush1.bf16.msra.mxu1 %v5670_v50 }
 0x3a4   :  { %4389 = vmatprep.subr.bf16.mxu1 %v5671_v52  ;;  %v5709_v52 = vld [vmem:[#allocation8 + $0x504] ss:$16 sps:$4 sm:$0xff]  }
 0x3a5   :  { %4425 = vmatpush1.bf16.msra.mxu0 %v5672_v0 }
 0x3a6   :  { %4426 = vmatprep.subr.bf16.mxu0 %v5673_v2 }
 0x3a7   :  { %4390 = vmatpush2.bf16.msra.mxu1 %v5674_v13 }
 0x3a8   :  { %4391 = vmatprep.subr.bf16.mxu1 %v5675_v16 }
 0x3a9   :  { %4427 = vmatpush1.bf16.msra.mxu0 %v5676_v30  ;;  %v5710_v30 = vld [vmem:[#allocation8 + $0x500] ss:$16 sps:$4 sm:$0xff]  }
 0x3aa   :  { %4428 = vmatprep.subr.bf16.mxu0 %v5677_v32 }
 0x3ab   :  { %4392 = vmatpush2.bf16.msra.mxu1 %v5678_v55  ;;  %v5711_v55 = vld [vmem:[#allocation8 + $0xec] ss:$16 sps:$4 sm:$0xff]  }
 0x3ac   :  { %4393 = vmatprep.subr.bf16.mxu1 %v5679_v46  ;;  %v5712_v46 = vld [vmem:[#allocation8 + $0x6e0] ss:$16 sps:$4 sm:$0xff]  }
 0x3ad   :  { %4429 = vmatpush1.bf16.msra.mxu0 %v5680_v48  ;;  %v5713_v48 = vld [vmem:[#allocation8 + $0x6c4] ss:$16 sps:$4 sm:$0xff]  }
 0x3ae   :  { %4430 = vmatprep.subr.bf16.mxu0 %v5681_v59  ;;  %v5714_v59 = vld [vmem:[#allocation8 + $0x6c0] ss:$16 sps:$4 sm:$0xff]  }
 0x3af   :  { %4394 = vmatpush2.bf16.msra.mxu1 %v5682_v61  ;;  %v5715_v61 = vld [vmem:[#allocation8 + $0x6a4] ss:$16 sps:$4 sm:$0xff]  }
 0x3b0   :  { %4395 = vmatprep.subr.bf16.mxu1 %v5683_v22  ;;  %v5716_v22 = vld [vmem:[#allocation8 + $0x6a0] ss:$16 sps:$4 sm:$0xff]  }
 0x3b1   :  { %4431 = vmatpush1.bf16.msra.mxu0 %v5684_v11  ;;  %v5717_v11 = vld [vmem:[#allocation8 + $0x684] ss:$16 sps:$4 sm:$0xff]  }
 0x3b2   :  { %4432 = vmatprep.subr.bf16.mxu0 %v5685_v24  ;;  %v5718_v24 = vld [vmem:[#allocation8 + $0x680] ss:$16 sps:$4 sm:$0xff]  }
 0x3b3   :  { %4396 = vmatpush2.bf16.msra.mxu1 %v5686_v7  ;;  %v5719_v7 = vld [vmem:[#allocation8 + $0x664] ss:$16 sps:$4 sm:$0xff]  }
 0x3b4   :  { %4397 = vmatprep.subr.bf16.mxu1 %v5687_v29  ;;  %v5720_v29 = vld [vmem:[#allocation8 + $0x660] ss:$16 sps:$4 sm:$0xff]  }
 0x3b5   :  { %4433 = vmatpush2.bf16.msra.mxu0 %v5688_v6  ;;  %v5721_v6 = vld [vmem:[#allocation8 + $0x644] ss:$16 sps:$4 sm:$0xff]  }
 0x3b6   :  { %4434 = vmatprep.subr.bf16.mxu0 %v5689_v38  ;;  %v5722_v38 = vld [vmem:[#allocation8 + $0x640] ss:$16 sps:$4 sm:$0xff]  }
 0x3b7   :  { %4398 = vmatpush2.bf16.msra.mxu1 %v5690_v33  ;;  %v5723_v33 = vld [vmem:[#allocation8 + $0x624] ss:$16 sps:$4 sm:$0xff]  }
 0x3b8   :  { %4399 = vmatprep.subr.bf16.mxu1 %v5691_v17  ;;  %v5724_v17 = vld [vmem:[#allocation8 + $0x620] ss:$16 sps:$4 sm:$0xff]  }
 0x3b9   :  { %4435 = vmatpush2.bf16.msra.mxu0 %v5692_v8  ;;  %v5725_v8 = vld [vmem:[#allocation8 + $0x604] ss:$16 sps:$4 sm:$0xff]  }
 0x3ba   :  { %4436 = vmatprep.subr.bf16.mxu0 %v5693_v63  ;;  %v5726_v63 = vld [vmem:[#allocation8 + $0x600] ss:$16 sps:$4 sm:$0xff]  }
 0x3bb   :  { %4400 = vmatpush2.bf16.msra.mxu1 %v5694_v41  ;;  %v5727_v41 = vld [vmem:[#allocation8 + $0x7e4] ss:$16 sps:$4 sm:$0xff]  }
 0x3bc   :  { %4401 = vmatprep.subr.bf16.mxu1 %v5695_v21  ;;  %v5729_v21 = vld [vmem:[#allocation8 + $0x7c4] ss:$16 sps:$4 sm:$0xff]  }
 0x3bd   :  { %4437 = vmatpush2.bf16.msra.mxu0 %v5696_v19  ;;  %v5730_v19 = vld [vmem:[#allocation8 + $0x7c0] ss:$16 sps:$4 sm:$0xff]  }
 0x3be   :  { %4438 = vmatprep.subr.bf16.mxu0 %v5697_v23  ;;  %v5731_v23 = vld [vmem:[#allocation8 + $0x7a4] ss:$16 sps:$4 sm:$0xff]  }
 0x3bf   :  { %4402 = vmatpush2.bf16.msra.mxu1 %v5698_v62 }
 0x3c0   :  { %4403 = vmatprep.subr.bf16.mxu1 %v5699_v15  ;;  %v5733_v15 = vld [vmem:[#allocation8 + $0x784] ss:$16 sps:$4 sm:$0xff]  }
 0x3c1   :  { %4439 = vmatpush2.bf16.msra.mxu0 %v5700_v58 }
 0x3c2   :  { %4440 = vmatprep.subr.bf16.mxu0 %v5701_v45  ;;  %v5734_v45 = vld [vmem:[#allocation8 + $0x780] ss:$16 sps:$4 sm:$0xff]  }
 0x3c3   :  { %4404 = vmatpush2.bf16.msra.mxu1 %v5702_v54  ;;  %v5735_v54 = vld [vmem:[#allocation8 + $0x764] ss:$16 sps:$4 sm:$0xff]  }
 0x3c4   :  { %4459 = vmatprep.subr.bf16.mxu1 %v5703_v56  ;;  %v5736_v56 = vld [vmem:[#allocation8 + $0x760] ss:$16 sps:$4 sm:$0xff]  }
 0x3c5   :  { %4441 = vmatpush2.bf16.msra.mxu0 %v5704_v57 }
 0x3c6   :  { %v4125_v53 = vpop.f32.mrf.mxu1  ;;  %4442 = vmatprep.subr.bf16.mxu0 %v5705_v31  ;;  %v8014_v31 = vld [vmem:[#allocation242_spill] sm:$0xff] }
 0x3c7   :  { %v4126_v34 = vadd.f32 %v4125_v53, %v4083_v3  ;;  %v4168_v62 = vpop.f32.mrf.mxu0  ;;  %v5737_v53 = vld [vmem:[#allocation8 + $0x744] ss:$16 sps:$4 sm:$0xff]  }
 0x3c8   :  { %v4127_v39 = vpop.f32.mrf.mxu1 }
 0x3c9   :  { %4443 = vmatpush2.bf16.msra.mxu0 %v5706_v5  ;;  %v4128_v26 = vadd.f32 %v4127_v39, %v4085_v27  ;;  %v4308_v13 = vmax.f32 %v4126_v34, 0.0  ;;  %v4170_v58 = vpop.f32.mrf.mxu0  ;;  %v8015_v27 = vld [vmem:[#allocation243_spill] sm:$0xff] }
 0x3ca   :  { %v4129_v10 = vpop.f32.mrf.mxu1  ;;  %4444 = vmatprep.subr.bf16.mxu0 %v5707_v18  ;;  %v4171_v12 = vadd.f32 %v4170_v58, %v8014_v31  ;;  %v4169_v14 = vadd.f32 %v4168_v62, %v8015_v27 }
 0x3cb   :  { %v4130_v28 = vadd.f32 %v4129_v10, %v4087_v43  ;;  %v4309_v0 = vmax.f32 %v4128_v26, 0.0  ;;  %v4172_v51 = vpop.f32.mrf.mxu0  ;;  %v5738_v43 = vld [vmem:[#allocation8 + $0x740] ss:$16 sps:$4 sm:$0xff]   ;;  %v5739_v10 = vld [vmem:[#allocation8 + $0x724] ss:$16 sps:$4 sm:$0xff]  }
 0x3cc   :  { %v4131_v36 = vpop.f32.mrf.mxu1  ;;  %v4173_v39 = vadd.f32 %v4172_v51, %v8015_v27 }
 0x3cd   :  { %v4132_v42 = vadd.f32 %v4131_v36, %v4089_v20  ;;  %4445 = vmatpush2.bf16.msra.mxu0 %v5708_v44  ;;  %v4316_v50 = vmax.f32 %v4130_v28, 0.0  ;;  %v4174_v3 = vpop.f32.mrf.mxu0 }
 0x3ce   :  { %4446 = vmatprep.subr.bf16.mxu0 %v5709_v52  ;;  %v4175_v18 = vadd.f32 %v4174_v3, %v8014_v31  ;;  %v8016_v31 = vld [vmem:[#allocation244_spill] sm:$0xff] }
 0x3cf   :  { %v4317_v2 = vmax.f32 %v4132_v42, 0.0  ;;  %v7260_v32 = vpack.c.bf16 %v4316_v50, %v4308_v13  ;;  %v5740_v42 = vld [vmem:[#allocation8 + $0x720] ss:$16 sps:$4 sm:$0xff]   ;;  %v5741_v50 = vld [vmem:[#allocation8 + $0x704] ss:$16 sps:$4 sm:$0xff]  }
 0x3d1   :  { %v7258_v16 = vpack.c.bf16 %v4317_v2, %v4309_v0  ;;  %4447 = vmatpush2.bf16.msra.mxu0 %v5710_v30  ;;  %v5742_v30 = vld [vmem:[#allocation8 + $0x700] ss:$16 sps:$4 sm:$0xff]  }
 0x3d2   :  { %4502 = vmatprep.subr.bf16.mxu0 %v5711_v55 }
 0x3d3   :  { %4405 = vmatprep.mubr.bf16.mxu1 %v7258_v16 }
 0x3d4   :  { %4406 = vmatmul.mubr.bf16.vlgmr.msra.gmra.mxu1 %v7260_v32 }
 0x3d5   :  { %4460 = vmatpush1.bf16.msra.mxu1 %v5712_v46  ;;  %v5743_v46 = vld [vmem:[#allocation8 + $0x2ec] ss:$16 sps:$4 sm:$0xff]  }
 0x3d6   :  { %4461 = vmatprep.subr.bf16.mxu1 %v5713_v48  ;;  %v5744_v48 = vld [vmem:[#allocation8 + $0xe8] ss:$16 sps:$4 sm:$0xff]  }
 0x3d9   :  { %4462 = vmatpush1.bf16.msra.mxu1 %v5714_v59  ;;  %v5745_v59 = vld [vmem:[#allocation8 + $0xcc] ss:$16 sps:$4 sm:$0xff]  }
 0x3da   :  { %4463 = vmatprep.subr.bf16.mxu1 %v5715_v61  ;;  %v5746_v61 = vld [vmem:[#allocation8 + $0xc8] ss:$16 sps:$4 sm:$0xff]  }
 0x3dd   :  { %4464 = vmatpush1.bf16.msra.mxu1 %v5716_v22  ;;  %v5747_v22 = vld [vmem:[#allocation8 + $0xac] ss:$16 sps:$4 sm:$0xff]  }
 0x3de   :  { %4465 = vmatprep.subr.bf16.mxu1 %v5717_v11  ;;  %v5748_v11 = vld [vmem:[#allocation8 + $0xa8] ss:$16 sps:$4 sm:$0xff]  }
 0x3e1   :  { %4466 = vmatpush1.bf16.msra.mxu1 %v5718_v24  ;;  %v5749_v24 = vld [vmem:[#allocation8 + $0x8c] ss:$16 sps:$4 sm:$0xff]  }
 0x3e2   :  { %4467 = vmatprep.subr.bf16.mxu1 %v5719_v7  ;;  %v5750_v7 = vld [vmem:[#allocation8 + $0x88] ss:$16 sps:$4 sm:$0xff]  }
 0x3e5   :  { %4468 = vmatpush1.bf16.msra.mxu1 %v5720_v29  ;;  %v5751_v29 = vld [vmem:[#allocation8 + $0x6c] ss:$16 sps:$4 sm:$0xff]  }
 0x3e6   :  { %4469 = vmatprep.subr.bf16.mxu1 %v5721_v6  ;;  %v5752_v6 = vld [vmem:[#allocation8 + $0x68] ss:$16 sps:$4 sm:$0xff]  }
 0x3e9   :  { %4470 = vmatpush1.bf16.msra.mxu1 %v5722_v38  ;;  %v5753_v38 = vld [vmem:[#allocation8 + $0x4c] ss:$16 sps:$4 sm:$0xff]  }
 0x3ea   :  { %4471 = vmatprep.subr.bf16.mxu1 %v5723_v33  ;;  %v5754_v33 = vld [vmem:[#allocation8 + $0x48] ss:$16 sps:$4 sm:$0xff]  }
 0x3ed   :  { %4472 = vmatpush1.bf16.msra.mxu1 %v5724_v17  ;;  %v5756_v17 = vld [vmem:[#allocation8 + $0x28] ss:$16 sps:$4 sm:$0xff]  }
 0x3ee   :  { %4473 = vmatprep.subr.bf16.mxu1 %v5725_v8  ;;  %v5757_v8 = vld [vmem:[#allocation8 + $0xc] ss:$16 sps:$4 sm:$0xff]  }
 0x3f1   :  { %4474 = vmatpush1.bf16.msra.mxu1 %v5726_v63  ;;  %v5758_v63 = vld [vmem:[#allocation8 + $0x8] ss:$16 sps:$4 sm:$0xff]  }
 0x3f2   :  { %4475 = vmatprep.subr.bf16.mxu1 %v5727_v41  ;;  %v5759_v41 = vld [vmem:[#allocation8 + $0x1ec] ss:$16 sps:$4 sm:$0xff]  }
 0x3f5   :  { %4476 = vmatpush2.bf16.msra.mxu1 %v5728_v4  ;;  %v5760_v4 = vld [vmem:[#allocation8 + $0x1e8] ss:$16 sps:$4 sm:$0xff]  }
 0x3f6   :  { %4477 = vmatprep.subr.bf16.mxu1 %v5729_v21  ;;  %v5761_v21 = vld [vmem:[#allocation8 + $0x1cc] ss:$16 sps:$4 sm:$0xff]  }
 0x3f9   :  { %4478 = vmatpush2.bf16.msra.mxu1 %v5730_v19  ;;  %v5762_v19 = vld [vmem:[#allocation8 + $0x1c8] ss:$16 sps:$4 sm:$0xff]  }
 0x3fa   :  { %4479 = vmatprep.subr.bf16.mxu1 %v5731_v23  ;;  %v5763_v23 = vld [vmem:[#allocation8 + $0x1ac] ss:$16 sps:$4 sm:$0xff]  }
 0x3fd   :  { %4480 = vmatpush2.bf16.msra.mxu1 %v5732_v1  ;;  %v5764_v1 = vld [vmem:[#allocation8 + $0x1a8] ss:$16 sps:$4 sm:$0xff]  }
 0x3fe   :  { %4481 = vmatprep.subr.bf16.mxu1 %v5733_v15  ;;  %v5765_v15 = vld [vmem:[#allocation8 + $0x18c] ss:$16 sps:$4 sm:$0xff]  }
 0x401   :  { %4482 = vmatpush2.bf16.msra.mxu1 %v5734_v45  ;;  %v5766_v45 = vld [vmem:[#allocation8 + $0x188] ss:$16 sps:$4 sm:$0xff]  }
 0x402   :  { %4483 = vmatprep.subr.bf16.mxu1 %v5735_v54  ;;  %v5767_v54 = vld [vmem:[#allocation8 + $0x16c] ss:$16 sps:$4 sm:$0xff]  }
 0x405   :  { %4484 = vmatpush2.bf16.msra.mxu1 %v5736_v56  ;;  %v5768_v56 = vld [vmem:[#allocation8 + $0x168] ss:$16 sps:$4 sm:$0xff]  }
 0x406   :  { %v4211_v57 = vpop.f32.mrf.mxu1  ;;  %4485 = vmatprep.subr.bf16.mxu1 %v5737_v53  ;;  %v5769_v53 = vld [vmem:[#allocation8 + $0x14c] ss:$16 sps:$4 sm:$0xff]  }
 0x407   :  { %v4212_v28 = vadd.f32 %v4211_v57, %v4169_v14  ;;  %v4254_v62 = vpop.f32.mrf.mxu0 }
 0x408   :  { %v4213_v35 = vpop.f32.mrf.mxu1 }
 0x409   :  { %4486 = vmatpush2.bf16.msra.mxu1 %v5738_v43  ;;  %v4214_v20 = vadd.f32 %v4213_v35, %v4171_v12  ;;  %v4310_v2 = vmax.f32 %v4212_v28, 0.0  ;;  %v4256_v58 = vpop.f32.mrf.mxu0  ;;  %v4255_v12 = vadd.f32 %v4254_v62, %v8016_v31  ;;  %v5799_v62 = vld [vmem:[#allocation8 + $0x42c] ss:$16 sps:$4 sm:$0xff]  }
 0x40a   :  { %v4215_v5 = vpop.f32.mrf.mxu1  ;;  %4487 = vmatprep.subr.bf16.mxu1 %v5739_v10  ;;  %v4257_v3 = vadd.f32 %v4256_v58, %v6909_v9  ;;  %v5802_v58 = vld [vmem:[#allocation8 + $0x20c] ss:$16 sps:$4 sm:$0xff]  }
 0x40b   :  { %v4216_v26 = vadd.f32 %v4215_v5, %v4173_v39  ;;  %v4311_v52 = vmax.f32 %v4214_v20, 0.0  ;;  %v4258_v51 = vpop.f32.mrf.mxu0  ;;  %v5770_v39 = vld [vmem:[#allocation8 + $0x148] ss:$16 sps:$4 sm:$0xff]   ;;  %v5771_v5 = vld [vmem:[#allocation8 + $0x12c] ss:$16 sps:$4 sm:$0xff]  }
 0x40c   :  { %v4217_v34 = vpop.f32.mrf.mxu1  ;;  %v4259_v35 = vadd.f32 %v4258_v51, %v8016_v31  ;;  %v5805_v51 = vld [vmem:[#allocation8 + $0x408] ss:$16 sps:$4 sm:$0xff]  }
 0x40d   :  { %v4218_v36 = vadd.f32 %v4217_v34, %v4175_v18  ;;  %4488 = vmatpush2.bf16.msra.mxu1 %v5740_v42  ;;  %v4318_v44 = vmax.f32 %v4216_v26, 0.0  ;;  %v4260_v27 = vpop.f32.mrf.mxu0  ;;  %v5809_v31 = vld [vmem:[#allocation8 + $0x5e8] ss:$16 sps:$4 sm:$0xff]  }
 0x40e   :  { %4489 = vmatprep.subr.bf16.mxu1 %v5741_v50  ;;  %v4261_v10 = vadd.f32 %v4260_v27, %v6909_v9  ;;  %v5775_v9 = vld [vmem:[#allocation8 + $0x4ec] ss:$16 sps:$4 sm:$0xff]  }
 0x40f   :  { %v4319_v0 = vmax.f32 %v4218_v36, 0.0  ;;  %v7270_v55 = vpack.c.bf16 %v4318_v44, %v4310_v2  ;;  %v5772_v36 = vld [vmem:[#allocation8 + $0x128] ss:$16 sps:$4 sm:$0xff]   ;;  %v5773_v44 = vld [vmem:[#allocation8 + $0x10c] ss:$16 sps:$4 sm:$0xff]  }
 0x410   :  { %v5811_v27 = vld [vmem:[#allocation8 + $0x5cc] ss:$16 sps:$4 sm:$0xff]  }
 0x411   :  { %v7268_v13 = vpack.c.bf16 %v4319_v0, %v4311_v52  ;;  %4490 = vmatpush2.bf16.msra.mxu1 %v5742_v30  ;;  %v5774_v30 = vld [vmem:[#allocation8 + $0x108] ss:$16 sps:$4 sm:$0xff]  }
 0x412   :  { %4545 = vmatprep.subr.bf16.mxu1 %v5743_v46 }
 0x413   :  { %4448 = vmatprep.mubr.bf16.mxu0 %v7268_v13 }
 0x414   :  { %4449 = vmatmul.mubr.bf16.vlgmr.msra.gmra.mxu0 %v7270_v55 }
 0x415   :  { %4503 = vmatpush1.bf16.msra.mxu0 %v5744_v48  ;;  %4534 = vmatprep.mubr.bf16.mxu0 %v7248_v47  ;;  %v5755_v47 = vld [vmem:[#allocation8 + $0x2c] ss:$16 sps:$4 sm:$0xff]   ;;  %v5776_v48 = vld [vmem:[#allocation8 + $0x2e8] ss:$16 sps:$4 sm:$0xff]  }
 0x416   :  { %4504 = vmatprep.subr.bf16.mxu0 %v5745_v59  ;;  %v5777_v59 = vld [vmem:[#allocation8 + $0x4e8] ss:$16 sps:$4 sm:$0xff]  }
 0x419   :  { %4505 = vmatpush1.bf16.msra.mxu0 %v5746_v61  ;;  %v5778_v61 = vld [vmem:[#allocation8 + $0x2cc] ss:$16 sps:$4 sm:$0xff]  }
 0x41a   :  { %4506 = vmatprep.subr.bf16.mxu0 %v5747_v22  ;;  %v5779_v22 = vld [vmem:[#allocation8 + $0x4cc] ss:$16 sps:$4 sm:$0xff]  }
 0x41d   :  { %4507 = vmatpush1.bf16.msra.mxu0 %v5748_v11  ;;  %v5780_v11 = vld [vmem:[#allocation8 + $0x2c8] ss:$16 sps:$4 sm:$0xff]  }
 0x41e   :  { %4508 = vmatprep.subr.bf16.mxu0 %v5749_v24  ;;  %v5781_v24 = vld [vmem:[#allocation8 + $0x4c8] ss:$16 sps:$4 sm:$0xff]  }
 0x421   :  { %4509 = vmatpush1.bf16.msra.mxu0 %v5750_v7  ;;  %v5782_v7 = vld [vmem:[#allocation8 + $0x2ac] ss:$16 sps:$4 sm:$0xff]  }
 0x422   :  { %4510 = vmatprep.subr.bf16.mxu0 %v5751_v29  ;;  %v5784_v29 = vld [vmem:[#allocation8 + $0x2a8] ss:$16 sps:$4 sm:$0xff]  }
 0x425   :  { %4511 = vmatpush1.bf16.msra.mxu0 %v5752_v6  ;;  %v5785_v6 = vld [vmem:[#allocation8 + $0x4a8] ss:$16 sps:$4 sm:$0xff]  }
 0x426   :  { %4512 = vmatprep.subr.bf16.mxu0 %v5753_v38  ;;  %v5786_v38 = vld [vmem:[#allocation8 + $0x28c] ss:$16 sps:$4 sm:$0xff]  }
 0x429   :  { %4513 = vmatpush1.bf16.msra.mxu0 %v5754_v33  ;;  %v5789_v33 = vld [vmem:[#allocation8 + $0x488] ss:$16 sps:$4 sm:$0xff]  }
 0x42a   :  { %4514 = vmatprep.subr.bf16.mxu0 %v5755_v47  ;;  %v5790_v47 = vld [vmem:[#allocation8 + $0x26c] ss:$16 sps:$4 sm:$0xff]  }
 0x42d   :  { %4515 = vmatpush1.bf16.msra.mxu0 %v5756_v17  ;;  %v5791_v17 = vld [vmem:[#allocation8 + $0x46c] ss:$16 sps:$4 sm:$0xff]  }
 0x42e   :  { %4516 = vmatprep.subr.bf16.mxu0 %v5757_v8  ;;  %v5792_v8 = vld [vmem:[#allocation8 + $0x268] ss:$16 sps:$4 sm:$0xff]  }
 0x431   :  { %4517 = vmatpush1.bf16.msra.mxu0 %v5758_v63  ;;  %v5793_v63 = vld [vmem:[#allocation8 + $0x468] ss:$16 sps:$4 sm:$0xff]  }
 0x432   :  { %4518 = vmatprep.subr.bf16.mxu0 %v5759_v41  ;;  %v5794_v41 = vld [vmem:[#allocation8 + $0x24c] ss:$16 sps:$4 sm:$0xff]  }
 0x435   :  { %4519 = vmatpush2.bf16.msra.mxu0 %v5760_v4  ;;  %v5795_v4 = vld [vmem:[#allocation8 + $0x44c] ss:$16 sps:$4 sm:$0xff]  }
 0x436   :  { %4520 = vmatprep.subr.bf16.mxu0 %v5761_v21  ;;  %v5796_v21 = vld [vmem:[#allocation8 + $0x248] ss:$16 sps:$4 sm:$0xff]  }
 0x439   :  { %4521 = vmatpush2.bf16.msra.mxu0 %v5762_v19  ;;  %v5797_v19 = vld [vmem:[#allocation8 + $0x448] ss:$16 sps:$4 sm:$0xff]  }
 0x43a   :  { %4522 = vmatprep.subr.bf16.mxu0 %v5763_v23  ;;  %v5798_v23 = vld [vmem:[#allocation8 + $0x22c] ss:$16 sps:$4 sm:$0xff]  }
 0x43d   :  { %4523 = vmatpush2.bf16.msra.mxu0 %v5764_v1  ;;  %v5800_v1 = vld [vmem:[#allocation8 + $0x228] ss:$16 sps:$4 sm:$0xff]  }
 0x43e   :  { %4524 = vmatprep.subr.bf16.mxu0 %v5765_v15  ;;  %v5801_v15 = vld [vmem:[#allocation8 + $0x428] ss:$16 sps:$4 sm:$0xff]  }
 0x441   :  { %4525 = vmatpush2.bf16.msra.mxu0 %v5766_v45  ;;  %v5803_v45 = vld [vmem:[#allocation8 + $0x40c] ss:$16 sps:$4 sm:$0xff]  }
 0x442   :  { %4526 = vmatprep.subr.bf16.mxu0 %v5767_v54  ;;  %v5804_v54 = vld [vmem:[#allocation8 + $0x208] ss:$16 sps:$4 sm:$0xff]  }
 0x445   :  { %4527 = vmatpush2.bf16.msra.mxu0 %v5768_v56  ;;  %v5806_v56 = vld [vmem:[#allocation8 + $0x3ec] ss:$16 sps:$4 sm:$0xff]  }
 0x446   :  { %v4297_v57 = vpop.f32.mrf.mxu1  ;;  %4528 = vmatprep.subr.bf16.mxu0 %v5769_v53  ;;  %v5808_v53 = vld [vmem:[#allocation8 + $0x3e8] ss:$16 sps:$4 sm:$0xff]  }
 0x447   :  { %v4298_v26 = vadd.f32 %v4297_v57, %v4255_v12  ;;  %v5807_v57 = vld [vmem:[#allocation8 + $0x5ec] ss:$16 sps:$4 sm:$0xff]  }
 0x448   :  { %v4299_v14 = vpop.f32.mrf.mxu1  ;;  %v5810_v12 = vld [vmem:[#allocation8 + $0x3cc] ss:$16 sps:$4 sm:$0xff]  }
 0x449   :  { %4529 = vmatpush2.bf16.msra.mxu0 %v5770_v39  ;;  %v4300_v18 = vadd.f32 %v4299_v14, %v4257_v3  ;;  %v4312_v0 = vmax.f32 %v4298_v26, 0.0  ;;  %v5812_v14 = vld [vmem:[#allocation8 + $0x3c8] ss:$16 sps:$4 sm:$0xff]   ;;  %v5815_v39 = vld [vmem:[#allocation8 + $0x5ac] ss:$16 sps:$4 sm:$0xff]  }
 0x44a   :  { %v4301_v43 = vpop.f32.mrf.mxu1  ;;  %4530 = vmatprep.subr.bf16.mxu0 %v5771_v5  ;;  %v5813_v3 = vld [vmem:[#allocation8 + $0x5c8] ss:$16 sps:$4 sm:$0xff]  }
 0x44b   :  { %v4302_v20 = vadd.f32 %v4301_v43, %v4259_v35  ;;  %v4313_v50 = vmax.f32 %v4300_v18, 0.0  ;;  %v5814_v35 = vld [vmem:[#allocation8 + $0x3ac] ss:$16 sps:$4 sm:$0xff]   ;;  %v5816_v43 = vld [vmem:[#allocation8 + $0x3a8] ss:$16 sps:$4 sm:$0xff]  }
 0x44c   :  { %v4303_v28 = vpop.f32.mrf.mxu1  ;;  %v5817_v5 = vld [vmem:[#allocation8 + $0x5a8] ss:$16 sps:$4 sm:$0xff]   ;;  %v5819_v18 = vld [vmem:[#allocation8 + $0x58c] ss:$16 sps:$4 sm:$0xff]  }
 0x44d   :  { %v4304_v34 = vadd.f32 %v4303_v28, %v4261_v10  ;;  %4531 = vmatpush2.bf16.msra.mxu0 %v5772_v36  ;;  %v4320_v42 = vmax.f32 %v4302_v20, 0.0  ;;  %v5818_v10 = vld [vmem:[#allocation8 + $0x38c] ss:$16 sps:$4 sm:$0xff]   ;;  %v5820_v20 = vld [vmem:[#allocation8 + $0x388] ss:$16 sps:$4 sm:$0xff]  }
 0x44e   :  { %4532 = vmatprep.subr.bf16.mxu0 %v5773_v44  ;;  %v5821_v26 = vld [vmem:[#allocation8 + $0x588] ss:$16 sps:$4 sm:$0xff]   ;;  %v5822_v28 = vld [vmem:[#allocation8 + $0x36c] ss:$16 sps:$4 sm:$0xff]  }
 0x44f   :  { %v4321_v52 = vmax.f32 %v4304_v34, 0.0  ;;  %v7281_v46 = vpack.c.bf16 %v4320_v42, %v4312_v0  ;;  %v5823_v34 = vld [vmem:[#allocation8 + $0x56c] ss:$16 sps:$4 sm:$0xff]   ;;  %v5824_v36 = vld [vmem:[#allocation8 + $0x368] ss:$16 sps:$4 sm:$0xff]  }
 0x450   :  { %v5825_v42 = vld [vmem:[#allocation8 + $0x568] ss:$16 sps:$4 sm:$0xff]   ;;  %v5826_v44 = vld [vmem:[#allocation8 + $0x34c] ss:$16 sps:$4 sm:$0xff]  }
 0x451   :  { %v7279_v2 = vpack.c.bf16 %v4321_v52, %v4313_v50  ;;  %4533 = vmatpush2.bf16.msra.mxu0 %v5774_v30  ;;  %v5827_v50 = vld [vmem:[#allocation8 + $0x54c] ss:$16 sps:$4 sm:$0xff]   ;;  %v5828_v52 = vld [vmem:[#allocation8 + $0x348] ss:$16 sps:$4 sm:$0xff]  }
 0x452   :  { %4588 = vmatprep.subr.bf16.mxu0 %v5775_v9  ;;  %v5829_v0 = vld [vmem:[#allocation8 + $0x548] ss:$16 sps:$4 sm:$0xff]   ;;  %v5830_v30 = vld [vmem:[#allocation8 + $0x32c] ss:$16 sps:$4 sm:$0xff]  }
 0x453   :  { %4491 = vmatprep.mubr.bf16.mxu1 %v7279_v2  ;;  %v5831_v9 = vld [vmem:[#allocation8 + $0x52c] ss:$16 sps:$4 sm:$0xff]  }
 0x454   :  { %4535 = vmatmul.mubr.bf16.vlgmr.msra.gmra.mxu0 %v7250_v49  ;;  %4492 = vmatmul.mubr.bf16.vlgmr.msra.gmra.mxu1 %v7281_v46  ;;  %v5783_v49 = vld [vmem:[#allocation8 + $0x4ac] ss:$16 sps:$4 sm:$0xff]  }
 0x455   :  { %4546 = vmatpush1.bf16.msra.mxu1 %v5776_v48  ;;  %4589 = vmatpush1.bf16.msra.mxu0 %v5777_v59  ;;  %v5832_v48 = vld [vmem:[#allocation8 + $0x328] ss:$16 sps:$4 sm:$0xff]  }
 0x456   :  { %4620 = vmatprep.mubr.bf16.mxu0 %v7268_v13  ;;  %4577 = vmatprep.mubr.bf16.mxu1 %v7258_v16  ;;  %v5787_v13 = vld [vmem:[#allocation8 + $0x48c] ss:$16 sps:$4 sm:$0xff]   ;;  %v5788_v16 = vld [vmem:[#allocation8 + $0x288] ss:$16 sps:$4 sm:$0xff]  }
 0x457   :  { %4547 = vmatprep.subr.bf16.mxu1 %v5778_v61  ;;  %4590 = vmatprep.subr.bf16.mxu0 %v5779_v22  ;;  %v5833_v59 = vld [vmem:[#allocation8 + $0x528] ss:$16 sps:$4 sm:$0xff]   ;;  %v5834_v61 = vld [vmem:[#allocation8 + $0x30c] ss:$16 sps:$4 sm:$0xff]  }
 0x458   :  { %v5835_v22 = vld [vmem:[#allocation8 + $0x50c] ss:$16 sps:$4 sm:$0xff]  }
 0x459   :  { %4548 = vmatpush1.bf16.msra.mxu1 %v5780_v11  ;;  %4591 = vmatpush1.bf16.msra.mxu0 %v5781_v24  ;;  %v5836_v11 = vld [vmem:[#allocation8 + $0x308] ss:$16 sps:$4 sm:$0xff]  }
 0x45a   :  { %4549 = vmatprep.subr.bf16.mxu1 %v5782_v7  ;;  %4592 = vmatprep.subr.bf16.mxu0 %v5783_v49  ;;  %v5837_v24 = vld [vmem:[#allocation8 + $0x508] ss:$16 sps:$4 sm:$0xff]   ;;  %v5838_v7 = vld [vmem:[#allocation8 + $0x6ec] ss:$16 sps:$4 sm:$0xff]  }
 0x45b   :  { %v5839_v49 = vld [vmem:[#allocation8 + $0x6e8] ss:$16 sps:$4 sm:$0xff]  }
 0x45d   :  { %4550 = vmatpush1.bf16.msra.mxu1 %v5784_v29  ;;  %4593 = vmatpush1.bf16.msra.mxu0 %v5785_v6  ;;  %v5840_v29 = vld [vmem:[#allocation8 + $0x6cc] ss:$16 sps:$4 sm:$0xff]   ;;  %v5841_v6 = vld [vmem:[#allocation8 + $0x6c8] ss:$16 sps:$4 sm:$0xff]  }
 0x45e   :  { %4551 = vmatprep.subr.bf16.mxu1 %v5786_v38  ;;  %4594 = vmatprep.subr.bf16.mxu0 %v5787_v13  ;;  %v5842_v38 = vld [vmem:[#allocation8 + $0x6ac] ss:$16 sps:$4 sm:$0xff]   ;;  %v5843_v13 = vld [vmem:[#allocation8 + $0x6a8] ss:$16 sps:$4 sm:$0xff]  }
 0x461   :  { %4552 = vmatpush1.bf16.msra.mxu1 %v5788_v16  ;;  %4595 = vmatpush1.bf16.msra.mxu0 %v5789_v33  ;;  %v5844_v16 = vld [vmem:[#allocation8 + $0x68c] ss:$16 sps:$4 sm:$0xff]   ;;  %v5845_v33 = vld [vmem:[#allocation8 + $0x688] ss:$16 sps:$4 sm:$0xff]  }
 0x462   :  { %4553 = vmatprep.subr.bf16.mxu1 %v5790_v47  ;;  %4596 = vmatprep.subr.bf16.mxu0 %v5791_v17  ;;  %v5846_v47 = vld [vmem:[#allocation8 + $0x66c] ss:$16 sps:$4 sm:$0xff]   ;;  %v5849_v17 = vld [vmem:[#allocation8 + $0x648] ss:$16 sps:$4 sm:$0xff]  }
 0x465   :  { %4554 = vmatpush1.bf16.msra.mxu1 %v5792_v8  ;;  %4597 = vmatpush1.bf16.msra.mxu0 %v5793_v63  ;;  %v5851_v8 = vld [vmem:[#allocation8 + $0x628] ss:$16 sps:$4 sm:$0xff]   ;;  %v5852_v63 = vld [vmem:[#allocation8 + $0x60c] ss:$16 sps:$4 sm:$0xff]  }
 0x466   :  { %4555 = vmatprep.subr.bf16.mxu1 %v5794_v41  ;;  %4598 = vmatprep.subr.bf16.mxu0 %v5795_v4  ;;  %v5853_v41 = vld [vmem:[#allocation8 + $0x608] ss:$16 sps:$4 sm:$0xff]   ;;  %v5854_v4 = vld [vmem:[#allocation8 + $0x7ec] ss:$16 sps:$4 sm:$0xff]  }
 0x469   :  { %4556 = vmatpush1.bf16.msra.mxu1 %v5796_v21  ;;  %4599 = vmatpush1.bf16.msra.mxu0 %v5797_v19  ;;  %v5855_v21 = vld [vmem:[#allocation8 + $0x7e8] ss:$16 sps:$4 sm:$0xff]   ;;  %v5856_v19 = vld [vmem:[#allocation8 + $0x7cc] ss:$16 sps:$4 sm:$0xff]  }
 0x46a   :  { %4557 = vmatprep.subr.bf16.mxu1 %v5798_v23  ;;  %4600 = vmatprep.subr.bf16.mxu0 %v5799_v62  ;;  %v5857_v23 = vld [vmem:[#allocation8 + $0x7c8] ss:$16 sps:$4 sm:$0xff]   ;;  %v5858_v62 = vld [vmem:[#allocation8 + $0x7ac] ss:$16 sps:$4 sm:$0xff]  }
 0x46d   :  { %4558 = vmatpush1.bf16.msra.mxu1 %v5800_v1  ;;  %4601 = vmatpush1.bf16.msra.mxu0 %v5801_v15  ;;  %v5859_v1 = vld [vmem:[#allocation8 + $0x7a8] ss:$16 sps:$4 sm:$0xff]   ;;  %v5860_v15 = vld [vmem:[#allocation8 + $0x78c] ss:$16 sps:$4 sm:$0xff]  }
 0x46e   :  { %4559 = vmatprep.subr.bf16.mxu1 %v5802_v58  ;;  %4602 = vmatprep.subr.bf16.mxu0 %v5803_v45  ;;  %v5861_v58 = vld [vmem:[#allocation8 + $0x788] ss:$16 sps:$4 sm:$0xff]   ;;  %v5862_v45 = vld [vmem:[#allocation8 + $0x76c] ss:$16 sps:$4 sm:$0xff]  }
 0x471   :  { %4560 = vmatpush1.bf16.msra.mxu1 %v5804_v54  ;;  %4603 = vmatpush1.bf16.msra.mxu0 %v5805_v51  ;;  %v5863_v54 = vld [vmem:[#allocation8 + $0x768] ss:$16 sps:$4 sm:$0xff]   ;;  %v5864_v51 = vld [vmem:[#allocation8 + $0x74c] ss:$16 sps:$4 sm:$0xff]  }
 0x472   :  { %4561 = vmatprep.subr.bf16.mxu1 %v5806_v56  ;;  %4604 = vmatprep.subr.bf16.mxu0 %v5807_v57  ;;  %v5865_v56 = vld [vmem:[#allocation8 + $0x748] ss:$16 sps:$4 sm:$0xff]   ;;  %v5866_v57 = vld [vmem:[#allocation8 + $0x72c] ss:$16 sps:$4 sm:$0xff]  }
 0x475   :  { %4562 = vmatpush2.bf16.msra.mxu1 %v5808_v53  ;;  %4605 = vmatpush2.bf16.msra.mxu0 %v5809_v31  ;;  %v5867_v53 = vld [vmem:[#allocation8 + $0x728] ss:$16 sps:$4 sm:$0xff]   ;;  %v5868_v31 = vld [vmem:[#allocation8 + $0x70c] ss:$16 sps:$4 sm:$0xff]  }
 0x476   :  { %4563 = vmatprep.subr.bf16.mxu1 %v5810_v12  ;;  %4606 = vmatprep.subr.bf16.mxu0 %v5811_v27  ;;  %v5869_v12 = vld [vmem:[#allocation8 + $0x708] ss:$16 sps:$4 sm:$0xff]   ;;  %v4364_v27 = vpop.f32.mrf.mxu0 }
 0x479   :  { %4564 = vmatpush2.bf16.msra.mxu1 %v5812_v14  ;;  %4607 = vmatpush2.bf16.msra.mxu0 %v5813_v3  ;;  %v4366_v14 = vpop.f32.mrf.mxu0 }
 0x47a   :  { %4565 = vmatprep.subr.bf16.mxu1 %v5814_v35  ;;  %4608 = vmatprep.subr.bf16.mxu0 %v5815_v39 }
 0x47b   :  { %v4368_v3 = vpop.f32.mrf.mxu0 }
 0x47d   :  { %4566 = vmatpush2.bf16.msra.mxu1 %v5816_v43  ;;  %4609 = vmatpush2.bf16.msra.mxu0 %v5817_v5  ;;  %v4370_v39 = vpop.f32.mrf.mxu0 }
 0x47e   :  { %4567 = vmatprep.subr.bf16.mxu1 %v5818_v10  ;;  %4610 = vmatprep.subr.bf16.mxu0 %v5819_v18 }
 0x481   :  { %4568 = vmatpush2.bf16.msra.mxu1 %v5820_v20  ;;  %4611 = vmatpush2.bf16.msra.mxu0 %v5821_v26  ;;  %v4365_v20 = vadd.f32 %v4364_v27, %v7038_v60  ;;  %v4367_v26 = vadd.f32 %v4366_v14, %v7044_v25 }
 0x482   :  { %4569 = vmatprep.subr.bf16.mxu1 %v5822_v28  ;;  %4612 = vmatprep.subr.bf16.mxu0 %v5823_v34 }
 0x485   :  { %4570 = vmatpush2.bf16.msra.mxu1 %v5824_v36  ;;  %4613 = vmatpush2.bf16.msra.mxu0 %v5825_v42  ;;  %v4369_v42 = vadd.f32 %v4368_v3, %v7038_v60 }
 0x486   :  { %4571 = vmatprep.subr.bf16.mxu1 %v5826_v44  ;;  %4614 = vmatprep.subr.bf16.mxu0 %v5827_v50 }
 0x489   :  { %4572 = vmatpush2.bf16.msra.mxu1 %v5828_v52  ;;  %4615 = vmatpush2.bf16.msra.mxu0 %v5829_v0  ;;  %v4371_v52 = vadd.f32 %v4370_v39, %v7044_v25 }
 0x48a   :  { %4573 = vmatprep.subr.bf16.mxu1 %v5830_v30  ;;  %4616 = vmatprep.subr.bf16.mxu0 %v5831_v9 }
 0x48d   :  { %4574 = vmatpush2.bf16.msra.mxu1 %v5832_v48  ;;  %4617 = vmatpush2.bf16.msra.mxu0 %v5833_v59 }
 0x48e   :  { %4575 = vmatprep.subr.bf16.mxu1 %v5834_v61  ;;  %4618 = vmatprep.subr.bf16.mxu0 %v5835_v22 }
 0x491   :  { %4576 = vmatpush2.bf16.msra.mxu1 %v5836_v11  ;;  %4619 = vmatpush2.bf16.msra.mxu0 %v5837_v24 }
 0x492   :  { %4631 = vmatprep.subr.bf16.mxu1 %v5838_v7 }
 0x494   :  { %4578 = vmatmul.mubr.bf16.vlgmr.msra.gmra.mxu1 %v7260_v32  ;;  %4621 = vmatmul.mubr.bf16.vlgmr.msra.gmra.mxu0 %v7270_v55  ;;  %v5847_v32 = vld [vmem:[#allocation8 + $0x668] ss:$16 sps:$4 sm:$0xff]   ;;  %v5848_v55 = vld [vmem:[#allocation8 + $0x64c] ss:$16 sps:$4 sm:$0xff]   ;;  %v4407_v35 = vpop.f32.mrf.mxu1 }
 0x495   :  { %4632 = vmatpush1.bf16.msra.mxu1 %v5839_v49  ;;  %4663 = vmatprep.mubr.bf16.mxu1 %v7279_v2  ;;  %v5850_v2 = vld [vmem:[#allocation8 + $0x62c] ss:$16 sps:$4 sm:$0xff]   ;;  %v4408_v28 = vadd.f32 %v4407_v35, %v4365_v20 }
 0x496   :  { %4633 = vmatprep.subr.bf16.mxu1 %v5840_v29  ;;  %v4409_v43 = vpop.f32.mrf.mxu1 }
 0x497   :  { %v4410_v44 = vadd.f32 %v4409_v43, %v4367_v26 }
 0x498   :  { %v4411_v10 = vpop.f32.mrf.mxu1 }
 0x499   :  { %4634 = vmatpush1.bf16.msra.mxu1 %v5841_v6  ;;  %v4412_v0 = vadd.f32 %v4411_v10, %v4369_v42 }
 0x49a   :  { %4635 = vmatprep.subr.bf16.mxu1 %v5842_v38  ;;  %v4413_v34 = vpop.f32.mrf.mxu1 }
 0x49b   :  { %v4414_v61 = vadd.f32 %v4413_v34, %v4371_v52 }
 0x49d   :  { %4636 = vmatpush1.bf16.msra.mxu1 %v5843_v13 }
 0x49e   :  { %4637 = vmatprep.subr.bf16.mxu1 %v5844_v16 }
 0x4a1   :  { %4638 = vmatpush1.bf16.msra.mxu1 %v5845_v33 }
 0x4a2   :  { %4639 = vmatprep.subr.bf16.mxu1 %v5846_v47 }
 0x4a5   :  { %4640 = vmatpush1.bf16.msra.mxu1 %v5847_v32 }
 0x4a6   :  { %4641 = vmatprep.subr.bf16.mxu1 %v5848_v55 }
 0x4a9   :  { %4642 = vmatpush1.bf16.msra.mxu1 %v5849_v17 }
 0x4aa   :  { %4643 = vmatprep.subr.bf16.mxu1 %v5850_v2 }
 0x4ad   :  { %4644 = vmatpush1.bf16.msra.mxu1 %v5851_v8 }
 0x4ae   :  { %4645 = vmatprep.subr.bf16.mxu1 %v5852_v63 }
 0x4b1   :  { %4646 = vmatpush1.bf16.msra.mxu1 %v5853_v41 }
 0x4b2   :  { %4647 = vmatprep.subr.bf16.mxu1 %v5854_v4 }
 0x4b5   :  { %4648 = vmatpush2.bf16.msra.mxu1 %v5855_v21 }
 0x4b6   :  { %4649 = vmatprep.subr.bf16.mxu1 %v5856_v19 }
 0x4b9   :  { %4650 = vmatpush2.bf16.msra.mxu1 %v5857_v23 }
 0x4ba   :  { %4651 = vmatprep.subr.bf16.mxu1 %v5858_v62 }
 0x4bd   :  { %4652 = vmatpush2.bf16.msra.mxu1 %v5859_v1 }
 0x4be   :  { %4653 = vmatprep.subr.bf16.mxu1 %v5860_v15 }
 0x4c1   :  { %4654 = vmatpush2.bf16.msra.mxu1 %v5861_v58 }
 0x4c2   :  { %4655 = vmatprep.subr.bf16.mxu1 %v5862_v45 }
 0x4c5   :  { %4656 = vmatpush2.bf16.msra.mxu1 %v5863_v54 }
 0x4c6   :  { %4657 = vmatprep.subr.bf16.mxu1 %v5864_v51 }
 0x4c9   :  { %4658 = vmatpush2.bf16.msra.mxu1 %v5865_v56 }
 0x4ca   :  { %4659 = vmatprep.subr.bf16.mxu1 %v5866_v57 }
 0x4cd   :  { %4660 = vmatpush2.bf16.msra.mxu1 %v5867_v53 }
 0x4ce   :  { %4661 = vmatprep.subr.bf16.mxu1 %v5868_v31 }
 0x4d1   :  { %4662 = vmatpush2.bf16.msra.mxu1 %v5869_v12 }
 0x4d4   :  { %4664 = vmatmul.mubr.bf16.vlgmr.msra.gmra.mxu1 %v7281_v46  ;;  %v4450_v5 = vpop.f32.mrf.mxu0 }
 0x4d5   :  { %v4451_v46 = vadd.f32 %v4450_v5, %v4408_v28 }
 0x4d6   :  { %v4452_v18 = vpop.f32.mrf.mxu0 }
 0x4d7   :  { %v4453_v30 = vadd.f32 %v4452_v18, %v4410_v44 }
 0x4d8   :  { %v4454_v36 = vpop.f32.mrf.mxu0 }
 0x4d9   :  { %v4455_v22 = vadd.f32 %v4454_v36, %v4412_v0 }
 0x4da   :  { %v4456_v48 = vpop.f32.mrf.mxu0 }
 0x4db   :  { %v4457_v49 = vadd.f32 %v4456_v48, %v4414_v61 }
 0x514   :  { %v4493_v50 = vpop.f32.mrf.mxu1  ;;  %v4536_v16 = vpop.f32.mrf.mxu0 }
 0x515   :  { %v4494_v9 = vadd.f32 %v4493_v50, %v4451_v46  ;;  %v4537_v8 = vadd.f32 %v4536_v16, %v7187_v40 }
 0x516   :  { %v4495_v59 = vpop.f32.mrf.mxu1  ;;  %v4538_v33 = vpop.f32.mrf.mxu0 }
 0x517   :  { %v4674_v11 = vmax.f32 %v4494_v9, 0.0  ;;  %v4496_v24 = vadd.f32 %v4495_v59, %v4453_v30  ;;  %v4539_v41 = vadd.f32 %v4538_v33, %v7195_v37 }
 0x518   :  { %v4497_v7 = vpop.f32.mrf.mxu1  ;;  %v4540_v47 = vpop.f32.mrf.mxu0 }
 0x519   :  { %4682 = vst [vmem:[#allocation10 + $0x40] sm:$0xff] %v4674_v11  ;;  %v4675_v29 = vmax.f32 %v4496_v24, 0.0  ;;  %v4498_v6 = vadd.f32 %v4497_v7, %v4455_v22  ;;  %v4541_v19 = vadd.f32 %v4540_v47, %v7187_v40 }
 0x51a   :  { %v4499_v60 = vpop.f32.mrf.mxu1  ;;  %v4542_v55 = vpop.f32.mrf.mxu0 }
 0x51b   :  { %4683 = vst [vmem:[#allocation10 + $0x48] sm:$0xff] %v4675_v29  ;;  %v4678_v38 = vmax.f32 %v4498_v6, 0.0  ;;  %v4500_v13 = vadd.f32 %v4499_v60, %v4457_v49  ;;  %v4543_v1 = vadd.f32 %v4542_v55, %v7195_v37 }
 0x51d   :  { %4686 = vst [vmem:[#allocation10 + $0x60] sm:$0xff] %v4678_v38  ;;  %v4679_v25 = vmax.f32 %v4500_v13, 0.0 }
 0x51f   :  { %4687 = vst [vmem:[#allocation10 + $0x68] sm:$0xff] %v4679_v25 }
 0x554   :  { %v4579_v32 = vpop.f32.mrf.mxu1  ;;  %v4622_v2 = vpop.f32.mrf.mxu0 }
 0x555   :  { %v4580_v4 = vadd.f32 %v4579_v32, %v4537_v8 }
 0x556   :  { %v4581_v17 = vpop.f32.mrf.mxu1  ;;  %v4624_v21 = vpop.f32.mrf.mxu0 }
 0x557   :  { %v4582_v23 = vadd.f32 %v4581_v17, %v4539_v41  ;;  %v4623_v15 = vadd.f32 %v4622_v2, %v4580_v4 }
 0x558   :  { %v4583_v63 = vpop.f32.mrf.mxu1  ;;  %v4626_v45 = vpop.f32.mrf.mxu0 }
 0x559   :  { %v4584_v58 = vadd.f32 %v4583_v63, %v4541_v19  ;;  %v4625_v51 = vadd.f32 %v4624_v21, %v4582_v23 }
 0x55a   :  { %v4585_v62 = vpop.f32.mrf.mxu1  ;;  %v4628_v14 = vpop.f32.mrf.mxu0 }
 0x55b   :  { %v4586_v56 = vadd.f32 %v4585_v62, %v4543_v1  ;;  %v4627_v31 = vadd.f32 %v4626_v45, %v4584_v58 }
 0x55d   :  { %v4629_v35 = vadd.f32 %v4628_v14, %v4586_v56 }
 0x594   :  { %v4665_v54 = vpop.f32.mrf.mxu1 }
 0x595   :  { %v4666_v57 = vadd.f32 %v4665_v54, %v4623_v15 }
 0x596   :  { %v4667_v53 = vpop.f32.mrf.mxu1 }
 0x597   :  { %v4676_v12 = vmax.f32 %v4666_v57, 0.0  ;;  %v4668_v27 = vadd.f32 %v4667_v53, %v4625_v51 }
 0x598   :  { %v4669_v3 = vpop.f32.mrf.mxu1 }
 0x599   :  { %4684 = vst [vmem:[#allocation10 + $0x50] sm:$0xff] %v4676_v12  ;;  %v4677_v40 = vmax.f32 %v4668_v27, 0.0  ;;  %v4670_v39 = vadd.f32 %v4669_v3, %v4627_v31 }
 0x59a   :  { %v4671_v43 = vpop.f32.mrf.mxu1 }
 0x59b   :  { %4685 = vst [vmem:[#allocation10 + $0x58] sm:$0xff] %v4677_v40  ;;  %v4680_v37 = vmax.f32 %v4670_v39, 0.0  ;;  %v4672_v5 = vadd.f32 %v4671_v43, %v4629_v35 }
 0x59d   :  { %4688 = vst [vmem:[#allocation10 + $0x70] sm:$0xff] %v4680_v37  ;;  %v4681_v10 = vmax.f32 %v4672_v5, 0.0 }
 0x59f   :  { %4689 = vst [vmem:[#allocation10 + $0x78] sm:$0xff] %v4681_v10 }
 0x5a0   :  { %5961 = shalt.err (!%p5958_p10)
}
 0x5a1   :  { %4701 = dma.vmem_to_hbm [thread:$0]  %s4696_s15, 2048, %s7311_s5, [#allocation4], %s5980_s23, %s5980_s23, %s5981_s24  }
 0x5a2   :  { %5976 = dma.done.wait [#allocation4], 2048  }
 0x5a3   :  { %5977 = vsyncadd [#allocation4], 4294965248 }
 0x5a4   :  { %4705 = vsyncpa [#allocation3], 1 }
 0x5a5   :  { %4706 = vsyncpa [#allocation6], 1 }
 0x5a6   :  { %4707 = vsyncpa [#allocation9], 1 }
 0x5a7   :  { %4708 = vsyncpa [#allocation4], 1 }

// kernel: tpu_custom_call.1
= control target key start
LH: loop header
LB: loop body
LE: loop exit
PB: predicated region body
PF: predicated region fallthrough
CT: control target
= control target key end

     0   :  { %10 = vsyncpa [#allocation3], 0  ;;  %s7306_s0 = inlined_call_operand.hbm [shape: f32[32,512], index: 0, kind: input, shape index: {}]   ;;  %s7307_s1 = inlined_call_operand.hbm [shape: bf16[512,1024], index: 1, kind: input, shape index: {}]   ;;  %s7308_s2 = inlined_call_operand.hbm [shape: f32[1,1024], index: 2, kind: input, shape index: {}]   ;;  %s7309_s3 = inlined_call_operand.hbm [shape: bf16[1024,512], index: 3, kind: input, shape index: {}]   ;;  %s7310_s4 = inlined_call_operand.vmem [shape: f32[1,512], index: 4, kind: input, shape index: {}]   ;;  %s7311_s5 = inlined_call_operand.hbm [shape: f32[32,512], index: 5, kind: output, shape index: {}]  }
   0x1   :  { %11 = vsyncpa [#allocation6], 0 }
   0x2   :  { %12 = vsyncpa [#allocation9], 0 }
   0x3   :  { %13 = vsyncpa [#allocation4], 0  ;;  %s5978_s18 = smov [#allocation5]   ;;  %s5979_s20 = smov [#allocation2]  }
   0x4   :  { %s31_s19 = sshll.u32 %s5978_s18, 4  ;;  %s19_s21 = sshll.u32 %s5979_s20, 4  ;;  %s32_s19 = int_to_ptr.vmem [resolvable:$true] %s31_s19  ;;  %s20_s21 = int_to_ptr.vmem [resolvable:$true] %s19_s21 }
   0x5   :  { %s5878_s22 = scalar_lea.vmem %s32_s19, 32768  ;;  %p5883_p1 = scmp.lt.s32.totalorder %s32_s19, %s32_s19 }
   0x6   :  { %p5879_p0 = scmp.ne.s32.totalorder %s32_s19, %s5878_s22  ;;  %p5884_p2 = scmp.lt.s32.totalorder %s5878_s22, %s5878_s22 }
   0x8   :  { %p5885_p3 = por %p5884_p2, %p5883_p1 }
   0xa   :  { %p5886_p4 = pnand %p5885_p3, %p5879_p0 }
   0xc   :  { %5889 = shalt.err (!%p5886_p4)
}
   0xd   :  { %s5980_s23 = smov 512   ;;  %s5981_s24 = smov 32  }
   0xe   :  { %37 = dma.hbm_to_vmem [thread:$0]  %s7307_s1, 32768, %s32_s19, [#allocation6], %s5980_s23, %s5980_s23, %s5981_s24  }
   0xf   :  { %s5898_s27 = scalar_lea.vmem %s20_s21, 2048  ;;  %p5903_p6 = scmp.lt.s32.totalorder %s20_s21, %s20_s21 }
  0x10   :  { %p5899_p5 = scmp.ne.s32.totalorder %s20_s21, %s5898_s27  ;;  %p5904_p7 = scmp.lt.s32.totalorder %s5898_s27, %s5898_s27 }
  0x12   :  { %p5905_p8 = por %p5904_p7, %p5903_p6 }
  0x14   :  { %p5906_p9 = pnand %p5905_p8, %p5899_p5 }
  0x16   :  { %5909 = shalt.err (!%p5906_p9)
}
  0x17   :  { %25 = dma.hbm_to_vmem [thread:$0]  %s7306_s0, 2048, %s20_s21, [#allocation3], %s5980_s23, %s5980_s23, %s5981_s24  }
  0x18   :  { %s5982_s30 = smov [#allocation7]   ;;  %s5983_s7 = smov [#allocation8]  }
  0x19   :  { %s44_s6 = sshll.u32 %s5982_s30, 4  ;;  %s53_s8 = sshll.u32 %s5983_s7, 4  ;;  %s45_s6 = int_to_ptr.vmem [resolvable:$true] %s44_s6  ;;  %s54_s8 = int_to_ptr.vmem [resolvable:$true] %s53_s8 }
  0x1a   :  { %s5918_s1 = scalar_lea.vmem %s45_s6, 128  ;;  %p5923_p11 = scmp.lt.s32.totalorder %s45_s6, %s45_s6 }
  0x1b   :  { %p5919_p10 = scmp.ne.s32.totalorder %s45_s6, %s5918_s1  ;;  %p5924_p12 = scmp.lt.s32.totalorder %s5918_s1, %s5918_s1 }
  0x1d   :  { %p5925_p13 = por %p5924_p12, %p5923_p11 }
  0x1f   :  { %p5926_p0 = pnand %p5925_p13, %p5919_p10 }
  0x21   :  { %5929 = shalt.err (!%p5926_p0)
}
  0x22   :  { %47 = dma.hbm_to_vmem [thread:$0]  %s7308_s2, 128, %s45_s6, [#allocation6]  }
  0x23   :  { %s5938_s11 = scalar_lea.vmem %s54_s8, 32768  ;;  %p5943_p2 = scmp.lt.s32.totalorder %s54_s8, %s54_s8 }
  0x24   :  { %p5939_p1 = scmp.ne.s32.totalorder %s54_s8, %s5938_s11  ;;  %p5944_p3 = scmp.lt.s32.totalorder %s5938_s11, %s5938_s11 }
  0x26   :  { %p5945_p4 = por %p5944_p3, %p5943_p2 }
  0x28   :  { %p5946_p5 = pnand %p5945_p4, %p5939_p1 }
  0x2a   :  { %5949 = shalt.err (!%p5946_p5)
}
  0x2b   :  { %s5984_s0 = smov 256   ;;  %s5985_s12 = smov 16  }
  0x2c   :  { %59 = dma.hbm_to_vmem [thread:$0]  %s7309_s3, 32768, %s54_s8, [#allocation9], %s5984_s0, %s5984_s0, %s5985_s12  }
  0x2d   :  { %5970 = dma.done.wait [#allocation3], 2048  }
  0x2e   :  { %5971 = vsyncadd [#allocation3], 4294965248 }
  0x2f   :  { %5972 = dma.done.wait [#allocation6], 32896  }
  0x30   :  { %5973 = vsyncadd [#allocation6], 4294934400 }
  0x31   :  { %5974 = dma.done.wait [#allocation9], 32768  }
  0x32   :  { %5975 = vsyncadd [#allocation9], 4294934528  ;;  %v130_v0 = vld [vmem:[#allocation5 + $0x1c0] sm:$0xff]  ;;  %v589_v54 = vld [vmem:[#allocation2 + $0x8] sm:$0xff] }
  0x33   :  { %v134_v1 = vld [vmem:[#allocation5 + $0x1e0] sm:$0xff]  ;;  %v593_v55 = vld [vmem:[#allocation2 + $0x28] sm:$0xff]  ;;  %v591_v59 = vld [vmem:[#allocation2 + $0x18] sm:$0xff] }
  0x34   :  { %v258_v2 = vld [vmem:[#allocation5 + $0x5c0] sm:$0xff]  ;;  %v6035_v3 = vcombine.high %v130_v0, %v134_v1  ;;  %v6037_v5 = vcombine.low %v130_v0, %v134_v1  ;;  %v6109_v58 = vpack.c.bf16 %v593_v55, %v589_v54  ;;  %v595_v60 = vld [vmem:[#allocation2 + $0x38] sm:$0xff] }
  0x35   :  { %v262_v4 = vld [vmem:[#allocation5 + $0x5e0] sm:$0xff]  ;;  %v6111_v63 = vpack.c.bf16 %v595_v60, %v591_v59 }
  0x36   :  { %v122_v6 = vld [vmem:[#allocation5 + $0x180] sm:$0xff]  ;;  %v6039_v8 = vcombine.high %v258_v2, %v262_v4  ;;  %v6041_v9 = vcombine.low %v258_v2, %v262_v4  ;;  %1921 = vmatprep.subr.bf16.mxu0 %v6035_v3  ;;  %1953 = vmatprep.mubr.bf16.mxu0 %v6109_v58 }
  0x37   :  { %v126_v7 = vld [vmem:[#allocation5 + $0x1a0] sm:$0xff]  ;;  %1922 = vmatpush1.bf16.msra.mxu0 %v6037_v5  ;;  %1996 = vmatprep.mubr.bf16.mxu1 %v6111_v63 }
  0x38   :  { %7553 = vst [vmem:[#allocation15_spill] sm:$0xff] %v6041_v9  ;;  %v6043_v10 = vcombine.high %v122_v6, %v126_v7  ;;  %v250_v11 = vld [vmem:[#allocation5 + $0x580] sm:$0xff]  ;;  %1964 = vmatprep.subr.bf16.mxu1 %v6039_v8  ;;  %v6050_v18 = vcombine.low %v122_v6, %v126_v7 }
  0x39   :  { %v254_v12 = vld [vmem:[#allocation5 + $0x5a0] sm:$0xff]  ;;  %1965 = vmatpush1.bf16.msra.mxu1 %v6041_v9 }
  0x3a   :  { %v114_v13 = vld [vmem:[#allocation5 + $0x140] sm:$0xff]  ;;  %v6046_v14 = vcombine.high %v250_v11, %v254_v12  ;;  %1923 = vmatprep.subr.bf16.mxu0 %v6043_v10  ;;  %v6054_v19 = vcombine.low %v250_v11, %v254_v12 }
  0x3b   :  { %v118_v15 = vld [vmem:[#allocation5 + $0x160] sm:$0xff]  ;;  %1924 = vmatpush1.bf16.msra.mxu0 %v6050_v18 }
  0x3c   :  { %7554 = vst [vmem:[#allocation16_spill] sm:$0xff] %v6046_v14  ;;  %v242_v16 = vld [vmem:[#allocation5 + $0x540] sm:$0xff]  ;;  %7555 = vst [vmem:[#allocation17_spill] sm:$0xff] %v6054_v19  ;;  %v6056_v20 = vcombine.high %v114_v13, %v118_v15  ;;  %1966 = vmatprep.subr.bf16.mxu1 %v6046_v14  ;;  %v6062_v26 = vcombine.low %v114_v13, %v118_v15  ;;  %v5374_v14 = vld [vmem:[#allocation8 + $0x6e0] ss:$16 sps:$4 sm:$0xff]  }
  0x3d   :  { %v246_v17 = vld [vmem:[#allocation5 + $0x560] sm:$0xff]  ;;  %1967 = vmatpush1.bf16.msra.mxu1 %v6054_v19 }
  0x3e   :  { %v6059_v21 = vcombine.high %v242_v16, %v246_v17  ;;  %v106_v22 = vld [vmem:[#allocation5 + $0x100] sm:$0xff]  ;;  %1925 = vmatprep.subr.bf16.mxu0 %v6056_v20  ;;  %v6066_v27 = vcombine.low %v242_v16, %v246_v17 }
  0x3f   :  { %v110_v23 = vld [vmem:[#allocation5 + $0x120] sm:$0xff]  ;;  %1926 = vmatpush1.bf16.msra.mxu0 %v6062_v26 }
  0x40   :  { %7556 = vst [vmem:[#allocation18_spill] sm:$0xff] %v6059_v21  ;;  %v234_v24 = vld [vmem:[#allocation5 + $0x500] sm:$0xff]  ;;  %7557 = vst [vmem:[#allocation19_spill] sm:$0xff] %v6066_v27  ;;  %v6068_v28 = vcombine.high %v106_v22, %v110_v23  ;;  %1968 = vmatprep.subr.bf16.mxu1 %v6059_v21  ;;  %v6074_v34 = vcombine.low %v106_v22, %v110_v23  ;;  %v5263_v21 = vld [vmem:[#allocation8 + $0x280] ss:$16 sps:$4 sm:$0xff]  }
  0x41   :  { %v238_v25 = vld [vmem:[#allocation5 + $0x520] sm:$0xff]  ;;  %1969 = vmatpush1.bf16.msra.mxu1 %v6066_v27  ;;  %v231_v27 = vld [vmem:[#allocation5 + $0x4e8] sm:$0xff] }
  0x42   :  { %v6071_v29 = vcombine.high %v234_v24, %v238_v25  ;;  %v98_v30 = vld [vmem:[#allocation5 + $0xc0] sm:$0xff]  ;;  %1927 = vmatprep.subr.bf16.mxu0 %v6068_v28  ;;  %v6078_v35 = vcombine.low %v234_v24, %v238_v25 }
  0x43   :  { %v102_v31 = vld [vmem:[#allocation5 + $0xe0] sm:$0xff]  ;;  %1928 = vmatpush1.bf16.msra.mxu0 %v6074_v34 }
  0x44   :  { %7558 = vst [vmem:[#allocation20_spill] sm:$0xff] %v6071_v29  ;;  %v226_v32 = vld [vmem:[#allocation5 + $0x4c0] sm:$0xff]  ;;  %7559 = vst [vmem:[#allocation21_spill] sm:$0xff] %v6078_v35  ;;  %v6080_v36 = vcombine.high %v98_v30, %v102_v31  ;;  %1970 = vmatprep.subr.bf16.mxu1 %v6071_v29  ;;  %v6086_v42 = vcombine.low %v98_v30, %v102_v31 }
  0x45   :  { %v230_v33 = vld [vmem:[#allocation5 + $0x4e0] sm:$0xff]  ;;  %1971 = vmatpush1.bf16.msra.mxu1 %v6078_v35  ;;  %v239_v35 = vld [vmem:[#allocation5 + $0x528] sm:$0xff] }
  0x46   :  { %v6083_v37 = vcombine.high %v226_v32, %v230_v33  ;;  %v90_v38 = vld [vmem:[#allocation5 + $0x80] sm:$0xff]  ;;  %1929 = vmatprep.subr.bf16.mxu0 %v6080_v36  ;;  %v6090_v43 = vcombine.low %v226_v32, %v230_v33 }
  0x47   :  { %v94_v39 = vld [vmem:[#allocation5 + $0xa0] sm:$0xff]  ;;  %1930 = vmatpush1.bf16.msra.mxu0 %v6086_v42 }
  0x48   :  { %7560 = vst [vmem:[#allocation22_spill] sm:$0xff] %v6083_v37  ;;  %v218_v40 = vld [vmem:[#allocation5 + $0x480] sm:$0xff]  ;;  %7561 = vst [vmem:[#allocation23_spill] sm:$0xff] %v6090_v43  ;;  %v6092_v44 = vcombine.high %v90_v38, %v94_v39  ;;  %1972 = vmatprep.subr.bf16.mxu1 %v6083_v37  ;;  %v6098_v50 = vcombine.low %v90_v38, %v94_v39 }
  0x49   :  { %v222_v41 = vld [vmem:[#allocation5 + $0x4a0] sm:$0xff]  ;;  %1973 = vmatpush1.bf16.msra.mxu1 %v6090_v43  ;;  %v119_v43 = vld [vmem:[#allocation5 + $0x168] sm:$0xff] }
  0x4a   :  { %v6095_v45 = vcombine.high %v218_v40, %v222_v41  ;;  %v82_v46 = vld [vmem:[#allocation5 + $0x40] sm:$0xff]  ;;  %1931 = vmatprep.subr.bf16.mxu0 %v6092_v44  ;;  %v6102_v51 = vcombine.low %v218_v40, %v222_v41 }
  0x4b   :  { %v86_v47 = vld [vmem:[#allocation5 + $0x60] sm:$0xff]  ;;  %1932 = vmatpush1.bf16.msra.mxu0 %v6098_v50 }
  0x4c   :  { %7562 = vst [vmem:[#allocation24_spill] sm:$0xff] %v6095_v45  ;;  %v210_v48 = vld [vmem:[#allocation5 + $0x440] sm:$0xff]  ;;  %7563 = vst [vmem:[#allocation25_spill] sm:$0xff] %v6102_v51  ;;  %v6104_v52 = vcombine.high %v82_v46, %v86_v47  ;;  %1974 = vmatprep.subr.bf16.mxu1 %v6095_v45  ;;  %v6114_v0 = vcombine.low %v82_v46, %v86_v47  ;;  %v255_v45 = vld [vmem:[#allocation5 + $0x5a8] sm:$0xff] }
  0x4d   :  { %v214_v49 = vld [vmem:[#allocation5 + $0x460] sm:$0xff]  ;;  %1975 = vmatpush1.bf16.msra.mxu1 %v6102_v51  ;;  %v127_v51 = vld [vmem:[#allocation5 + $0x1a8] sm:$0xff] }
  0x4e   :  { %v74_v53 = vld [vmem:[#allocation5] sm:$0xff]  ;;  %v6107_v56 = vcombine.high %v210_v48, %v214_v49  ;;  %1933 = vmatprep.subr.bf16.mxu0 %v6104_v52  ;;  %v6119_v1 = vcombine.low %v210_v48, %v214_v49 }
  0x4f   :  { %v78_v57 = vld [vmem:[#allocation5 + $0x20] sm:$0xff]  ;;  %1934 = vmatpush1.bf16.msra.mxu0 %v6114_v0 }
  0x50   :  { %7564 = vst [vmem:[#allocation26_spill] sm:$0xff] %v6107_v56  ;;  %v202_v61 = vld [vmem:[#allocation5 + $0x400] sm:$0xff]  ;;  %7565 = vst [vmem:[#allocation27_spill] sm:$0xff] %v6119_v1  ;;  %v6121_v2 = vcombine.high %v74_v53, %v78_v57  ;;  %1976 = vmatprep.subr.bf16.mxu1 %v6107_v56  ;;  %v6128_v13 = vcombine.low %v74_v53, %v78_v57  ;;  %v123_v56 = vld [vmem:[#allocation5 + $0x188] sm:$0xff] }
  0x51   :  { %v206_v62 = vld [vmem:[#allocation5 + $0x420] sm:$0xff]  ;;  %1977 = vmatpush1.bf16.msra.mxu1 %v6119_v1 }
  0x52   :  { %v6124_v4 = vcombine.high %v202_v61, %v206_v62  ;;  %v194_v6 = vld [vmem:[#allocation5 + $0x3c0] sm:$0xff]  ;;  %1935 = vmatprep.subr.bf16.mxu0 %v6121_v2  ;;  %v6132_v15 = vcombine.low %v202_v61, %v206_v62 }
  0x53   :  { %v198_v7 = vld [vmem:[#allocation5 + $0x3e0] sm:$0xff]  ;;  %1936 = vmatpush1.bf16.msra.mxu0 %v6128_v13 }
  0x54   :  { %7566 = vst [vmem:[#allocation28_spill] sm:$0xff] %v6124_v4  ;;  %v322_v11 = vld [vmem:[#allocation5 + $0x7c0] sm:$0xff]  ;;  %7567 = vst [vmem:[#allocation29_spill] sm:$0xff] %v6132_v15  ;;  %v6134_v16 = vcombine.high %v194_v6, %v198_v7  ;;  %1978 = vmatprep.subr.bf16.mxu1 %v6124_v4  ;;  %v6140_v30 = vcombine.low %v194_v6, %v198_v7 }
  0x55   :  { %v326_v12 = vld [vmem:[#allocation5 + $0x7e0] sm:$0xff]  ;;  %1979 = vmatpush1.bf16.msra.mxu1 %v6132_v15  ;;  %v263_v15 = vld [vmem:[#allocation5 + $0x5e8] sm:$0xff] }
  0x56   :  { %v6137_v17 = vcombine.high %v322_v11, %v326_v12  ;;  %v186_v22 = vld [vmem:[#allocation5 + $0x380] sm:$0xff]  ;;  %1937 = vmatprep.subr.bf16.mxu0 %v6134_v16  ;;  %v6144_v31 = vcombine.low %v322_v11, %v326_v12 }
  0x57   :  { %v190_v23 = vld [vmem:[#allocation5 + $0x3a0] sm:$0xff]  ;;  %1938 = vmatpush2.bf16.msra.mxu0 %v6140_v30 }
  0x58   :  { %7568 = vst [vmem:[#allocation30_spill] sm:$0xff] %v6137_v17  ;;  %v314_v24 = vld [vmem:[#allocation5 + $0x780] sm:$0xff]  ;;  %7569 = vst [vmem:[#allocation31_spill] sm:$0xff] %v6144_v31  ;;  %v6146_v32 = vcombine.high %v186_v22, %v190_v23  ;;  %1980 = vmatprep.subr.bf16.mxu1 %v6137_v17  ;;  %v6152_v46 = vcombine.low %v186_v22, %v190_v23  ;;  %v259_v17 = vld [vmem:[#allocation5 + $0x5c8] sm:$0xff] }
  0x59   :  { %v318_v25 = vld [vmem:[#allocation5 + $0x7a0] sm:$0xff]  ;;  %1981 = vmatpush2.bf16.msra.mxu1 %v6144_v31  ;;  %v6233_v1 = vcombine.high %v259_v17, %v263_v15 }
  0x5a   :  { %v6149_v33 = vcombine.high %v314_v24, %v318_v25  ;;  %v178_v38 = vld [vmem:[#allocation5 + $0x340] sm:$0xff]  ;;  %1939 = vmatprep.subr.bf16.mxu0 %v6146_v32  ;;  %v6156_v47 = vcombine.low %v314_v24, %v318_v25 }
  0x5b   :  { %v182_v39 = vld [vmem:[#allocation5 + $0x360] sm:$0xff]  ;;  %1940 = vmatpush2.bf16.msra.mxu0 %v6152_v46  ;;  %7585 = vst [vmem:[#allocation47_spill] sm:$0xff] %v6233_v1 }
  0x5c   :  { %7570 = vst [vmem:[#allocation32_spill] sm:$0xff] %v6149_v33  ;;  %v306_v40 = vld [vmem:[#allocation5 + $0x740] sm:$0xff]  ;;  %7571 = vst [vmem:[#allocation33_spill] sm:$0xff] %v6156_v47  ;;  %v6158_v48 = vcombine.high %v178_v38, %v182_v39  ;;  %1982 = vmatprep.subr.bf16.mxu1 %v6149_v33  ;;  %v6164_v59 = vcombine.low %v178_v38, %v182_v39 }
  0x5d   :  { %v310_v41 = vld [vmem:[#allocation5 + $0x760] sm:$0xff]  ;;  %1983 = vmatpush2.bf16.msra.mxu1 %v6156_v47 }
  0x5e   :  { %v6161_v49 = vcombine.high %v306_v40, %v310_v41  ;;  %v170_v53 = vld [vmem:[#allocation5 + $0x300] sm:$0xff]  ;;  %1941 = vmatprep.subr.bf16.mxu0 %v6158_v48  ;;  %v6168_v60 = vcombine.low %v306_v40, %v310_v41 }
  0x5f   :  { %v174_v54 = vld [vmem:[#allocation5 + $0x320] sm:$0xff]  ;;  %1942 = vmatpush2.bf16.msra.mxu0 %v6164_v59 }
  0x60   :  { %7572 = vst [vmem:[#allocation34_spill] sm:$0xff] %v6161_v49  ;;  %v298_v55 = vld [vmem:[#allocation5 + $0x700] sm:$0xff]  ;;  %7573 = vst [vmem:[#allocation35_spill] sm:$0xff] %v6168_v60  ;;  %v6170_v61 = vcombine.high %v170_v53, %v174_v54  ;;  %1984 = vmatprep.subr.bf16.mxu1 %v6161_v49  ;;  %v6176_v22 = vcombine.low %v170_v53, %v174_v54 }
  0x61   :  { %v302_v57 = vld [vmem:[#allocation5 + $0x720] sm:$0xff]  ;;  %1985 = vmatpush2.bf16.msra.mxu1 %v6168_v60 }
  0x62   :  { %v6173_v62 = vcombine.high %v298_v55, %v302_v57  ;;  %v162_v6 = vld [vmem:[#allocation5 + $0x2c0] sm:$0xff]  ;;  %1943 = vmatprep.subr.bf16.mxu0 %v6170_v61  ;;  %v6180_v23 = vcombine.low %v298_v55, %v302_v57 }
  0x63   :  { %v166_v7 = vld [vmem:[#allocation5 + $0x2e0] sm:$0xff]  ;;  %1944 = vmatpush2.bf16.msra.mxu0 %v6176_v22 }
  0x64   :  { %7574 = vst [vmem:[#allocation36_spill] sm:$0xff] %v6173_v62  ;;  %v290_v11 = vld [vmem:[#allocation5 + $0x6c0] sm:$0xff]  ;;  %7575 = vst [vmem:[#allocation37_spill] sm:$0xff] %v6180_v23  ;;  %v6182_v24 = vcombine.high %v162_v6, %v166_v7  ;;  %1986 = vmatprep.subr.bf16.mxu1 %v6173_v62  ;;  %v6188_v53 = vcombine.low %v162_v6, %v166_v7 }
  0x65   :  { %v294_v12 = vld [vmem:[#allocation5 + $0x6e0] sm:$0xff]  ;;  %1987 = vmatpush2.bf16.msra.mxu1 %v6180_v23 }
  0x66   :  { %v6185_v25 = vcombine.high %v290_v11, %v294_v12  ;;  %v154_v38 = vld [vmem:[#allocation5 + $0x280] sm:$0xff]  ;;  %1945 = vmatprep.subr.bf16.mxu0 %v6182_v24  ;;  %v6192_v54 = vcombine.low %v290_v11, %v294_v12 }
  0x67   :  { %v158_v39 = vld [vmem:[#allocation5 + $0x2a0] sm:$0xff]  ;;  %1946 = vmatpush2.bf16.msra.mxu0 %v6188_v53 }
  0x68   :  { %7576 = vst [vmem:[#allocation38_spill] sm:$0xff] %v6185_v25  ;;  %v282_v40 = vld [vmem:[#allocation5 + $0x680] sm:$0xff]  ;;  %7577 = vst [vmem:[#allocation39_spill] sm:$0xff] %v6192_v54  ;;  %v6194_v55 = vcombine.high %v154_v38, %v158_v39  ;;  %1988 = vmatprep.subr.bf16.mxu1 %v6185_v25  ;;  %v6200_v6 = vcombine.low %v154_v38, %v158_v39 }
  0x69   :  { %v286_v41 = vld [vmem:[#allocation5 + $0x6a0] sm:$0xff]  ;;  %1989 = vmatpush2.bf16.msra.mxu1 %v6192_v54  ;;  %v135_v54 = vld [vmem:[#allocation5 + $0x1e8] sm:$0xff] }
  0x6a   :  { %v6197_v57 = vcombine.high %v282_v40, %v286_v41  ;;  %v146_v62 = vld [vmem:[#allocation5 + $0x240] sm:$0xff]  ;;  %1947 = vmatprep.subr.bf16.mxu0 %v6194_v55  ;;  %v6204_v7 = vcombine.low %v282_v40, %v286_v41 }
  0x6b   :  { %v150_v60 = vld [vmem:[#allocation5 + $0x260] sm:$0xff]  ;;  %1948 = vmatpush2.bf16.msra.mxu0 %v6200_v6 }
  0x6c   :  { %7578 = vst [vmem:[#allocation40_spill] sm:$0xff] %v6197_v57  ;;  %v274_v49 = vld [vmem:[#allocation5 + $0x640] sm:$0xff]  ;;  %7579 = vst [vmem:[#allocation41_spill] sm:$0xff] %v6204_v7  ;;  %v6206_v11 = vcombine.high %v146_v62, %v150_v60  ;;  %1990 = vmatprep.subr.bf16.mxu1 %v6197_v57  ;;  %v6212_v38 = vcombine.low %v146_v62, %v150_v60  ;;  %v131_v57 = vld [vmem:[#allocation5 + $0x1c8] sm:$0xff] }
  0x6d   :  { %v278_v47 = vld [vmem:[#allocation5 + $0x660] sm:$0xff]  ;;  %1991 = vmatpush2.bf16.msra.mxu1 %v6204_v7  ;;  %v6230_v4 = vcombine.high %v131_v57, %v135_v54 }
  0x6e   :  { %v6209_v12 = vcombine.high %v274_v49, %v278_v47  ;;  %v138_v25 = vld [vmem:[#allocation5 + $0x200] sm:$0xff]  ;;  %1949 = vmatprep.subr.bf16.mxu0 %v6206_v11  ;;  %v6216_v39 = vcombine.low %v274_v49, %v278_v47  ;;  %v590_v49 = vld [vmem:[#allocation2 + $0x10] sm:$0xff] }
  0x6f   :  { %v142_v23 = vld [vmem:[#allocation5 + $0x220] sm:$0xff]  ;;  %1950 = vmatpush2.bf16.msra.mxu0 %v6212_v38  ;;  %7584 = vst [vmem:[#allocation46_spill] sm:$0xff] %v6230_v4 }
  0x70   :  { %7580 = vst [vmem:[#allocation42_spill] sm:$0xff] %v6209_v12  ;;  %v266_v33 = vld [vmem:[#allocation5 + $0x600] sm:$0xff]  ;;  %7581 = vst [vmem:[#allocation43_spill] sm:$0xff] %v6216_v39  ;;  %v6218_v40 = vcombine.high %v138_v25, %v142_v23  ;;  %1992 = vmatprep.subr.bf16.mxu1 %v6209_v12  ;;  %v6224_v60 = vcombine.low %v138_v25, %v142_v23  ;;  %v594_v12 = vld [vmem:[#allocation2 + $0x30] sm:$0xff] }
  0x71   :  { %v270_v31 = vld [vmem:[#allocation5 + $0x620] sm:$0xff]  ;;  %1993 = vmatpush2.bf16.msra.mxu1 %v6216_v39  ;;  %v251_v25 = vld [vmem:[#allocation5 + $0x588] sm:$0xff]  ;;  %v6238_v39 = vpack.c.bf16 %v594_v12, %v590_v49 }
  0x72   :  { %v6221_v41 = vcombine.high %v266_v33, %v270_v31  ;;  %v588_v62 = vld [vmem:[#allocation2] sm:$0xff]  ;;  %1951 = vmatprep.subr.bf16.mxu0 %v6218_v40  ;;  %v6228_v47 = vcombine.low %v266_v33, %v270_v31  ;;  %v6240_v31 = vcombine.low %v131_v57, %v135_v54  ;;  %v6244_v33 = vcombine.low %v259_v17, %v263_v15  ;;  %v243_v12 = vld [vmem:[#allocation5 + $0x548] sm:$0xff] }
  0x73   :  { %v592_v7 = vld [vmem:[#allocation2 + $0x20] sm:$0xff]  ;;  %1952 = vmatpush2.bf16.msra.mxu0 %v6224_v60  ;;  %v247_v49 = vld [vmem:[#allocation5 + $0x568] sm:$0xff]  ;;  %v6254_v54 = vcombine.low %v123_v56, %v127_v51  ;;  %v6258_v15 = vcombine.low %v251_v25, %v255_v45 }
  0x74   :  { %7582 = vst [vmem:[#allocation44_spill] sm:$0xff] %v6221_v41  ;;  %7583 = vst [vmem:[#allocation45_spill] sm:$0xff] %v6228_v47  ;;  %1994 = vmatprep.subr.bf16.mxu1 %v6221_v41  ;;  %v6235_v23 = vpack.c.bf16 %v592_v7, %v588_v62  ;;  %2007 = vmatprep.subr.bf16.mxu0 %v6230_v4  ;;  %v6246_v41 = vcombine.high %v123_v56, %v127_v51  ;;  %v115_v62 = vld [vmem:[#allocation5 + $0x148] sm:$0xff]  ;;  %v5377_v4 = vld [vmem:[#allocation8 + $0xe8] ss:$16 sps:$4 sm:$0xff]  }
  0x75   :  { %7586 = vst [vmem:[#allocation48_spill] sm:$0xff] %v6240_v31  ;;  %1995 = vmatpush2.bf16.msra.mxu1 %v6228_v47  ;;  %7587 = vst [vmem:[#allocation49_spill] sm:$0xff] %v6244_v33  ;;  %v6249_v7 = vcombine.high %v251_v25, %v255_v45  ;;  %v6260_v17 = vcombine.high %v115_v62, %v119_v43  ;;  %v107_v57 = vld [vmem:[#allocation5 + $0x108] sm:$0xff]  ;;  %v6263_v37 = vcombine.high %v243_v12, %v247_v49 }
  0x76   :  { %7588 = vst [vmem:[#allocation50_spill] sm:$0xff] %v6246_v41  ;;  %2050 = vmatprep.subr.bf16.mxu1 %v6233_v1  ;;  %1954 = vmatmul.mubr.bf16.vlgmr.msra.gmra.mxu0 %v6235_v23  ;;  %7590 = vst [vmem:[#allocation52_spill] sm:$0xff] %v6254_v54  ;;  %v111_v1 = vld [vmem:[#allocation5 + $0x128] sm:$0xff]  ;;  %v6268_v51 = vcombine.low %v115_v62, %v119_v43  ;;  %v6272_v45 = vcombine.low %v243_v12, %v247_v49 }
  0x77   :  { %7589 = vst [vmem:[#allocation51_spill] sm:$0xff] %v6249_v7  ;;  %2008 = vmatpush1.bf16.msra.mxu0 %v6240_v31  ;;  %7591 = vst [vmem:[#allocation53_spill] sm:$0xff] %v6258_v15  ;;  %v235_v47 = vld [vmem:[#allocation5 + $0x508] sm:$0xff]  ;;  %2039 = vmatprep.mubr.bf16.mxu0 %v6109_v58  ;;  %v6274_v56 = vcombine.high %v107_v57, %v111_v1  ;;  %v6280_v43 = vcombine.low %v107_v57, %v111_v1 }
  0x78   :  { %1997 = vmatmul.mubr.bf16.vlgmr.msra.gmra.mxu1 %v6238_v39  ;;  %2009 = vmatprep.subr.bf16.mxu0 %v6246_v41  ;;  %7592 = vst [vmem:[#allocation54_spill] sm:$0xff] %v6260_v17  ;;  %7593 = vst [vmem:[#allocation55_spill] sm:$0xff] %v6263_v37  ;;  %v99_v25 = vld [vmem:[#allocation5 + $0xc8] sm:$0xff]  ;;  %v6277_v29 = vcombine.high %v235_v47, %v239_v35  ;;  %v6284_v62 = vcombine.low %v235_v47, %v239_v35 }
  0x79   :  { %2051 = vmatpush1.bf16.msra.mxu1 %v6244_v33  ;;  %2082 = vmatprep.mubr.bf16.mxu1 %v6111_v63  ;;  %7594 = vst [vmem:[#allocation56_spill] sm:$0xff] %v6268_v51  ;;  %7595 = vst [vmem:[#allocation57_spill] sm:$0xff] %v6272_v45  ;;  %v227_v33 = vld [vmem:[#allocation5 + $0x4c8] sm:$0xff] }
  0x7a   :  { %2052 = vmatprep.subr.bf16.mxu1 %v6249_v7  ;;  %7596 = vst [vmem:[#allocation58_spill] sm:$0xff] %v6274_v56  ;;  %v103_v7 = vld [vmem:[#allocation5 + $0xe8] sm:$0xff]  ;;  %7597 = vst [vmem:[#allocation59_spill] sm:$0xff] %v6277_v29  ;;  %v6296_v35 = vcombine.low %v227_v33, %v231_v27 }
  0x7b   :  { %2010 = vmatpush1.bf16.msra.mxu0 %v6254_v54  ;;  %7598 = vst [vmem:[#allocation60_spill] sm:$0xff] %v6280_v43  ;;  %7599 = vst [vmem:[#allocation61_spill] sm:$0xff] %v6284_v62  ;;  %v6286_v12 = vcombine.high %v99_v25, %v103_v7  ;;  %v91_v49 = vld [vmem:[#allocation5 + $0x88] sm:$0xff]  ;;  %v6292_v1 = vcombine.low %v99_v25, %v103_v7 }
  0x7c   :  { %2011 = vmatprep.subr.bf16.mxu0 %v6260_v17  ;;  %v219_v17 = vld [vmem:[#allocation5 + $0x488] sm:$0xff]  ;;  %7603 = vst [vmem:[#allocation65_spill] sm:$0xff] %v6296_v35 }
  0x7d   :  { %2053 = vmatpush1.bf16.msra.mxu1 %v6258_v15  ;;  %7600 = vst [vmem:[#allocation62_spill] sm:$0xff] %v6286_v12  ;;  %v95_v15 = vld [vmem:[#allocation5 + $0xa8] sm:$0xff]  ;;  %7602 = vst [vmem:[#allocation64_spill] sm:$0xff] %v6292_v1 }
  0x7e   :  { %2054 = vmatprep.subr.bf16.mxu1 %v6263_v37  ;;  %v6289_v37 = vcombine.high %v227_v33, %v231_v27  ;;  %v223_v54 = vld [vmem:[#allocation5 + $0x4a8] sm:$0xff]  ;;  %v6298_v47 = vcombine.high %v91_v49, %v95_v15  ;;  %v6304_v7 = vcombine.low %v91_v49, %v95_v15 }
  0x7f   :  { %2012 = vmatpush1.bf16.msra.mxu0 %v6268_v51  ;;  %v83_v57 = vld [vmem:[#allocation5 + $0x48] sm:$0xff]  ;;  %v6308_v27 = vcombine.low %v219_v17, %v223_v54 }
  0x80   :  { %2013 = vmatprep.subr.bf16.mxu0 %v6274_v56  ;;  %7601 = vst [vmem:[#allocation63_spill] sm:$0xff] %v6289_v37  ;;  %7604 = vst [vmem:[#allocation66_spill] sm:$0xff] %v6298_v47  ;;  %v211_v56 = vld [vmem:[#allocation5 + $0x448] sm:$0xff] }
  0x81   :  { %2055 = vmatpush1.bf16.msra.mxu1 %v6272_v45  ;;  %v87_v45 = vld [vmem:[#allocation5 + $0x68] sm:$0xff]  ;;  %7606 = vst [vmem:[#allocation68_spill] sm:$0xff] %v6304_v7  ;;  %7607 = vst [vmem:[#allocation69_spill] sm:$0xff] %v6308_v27 }
  0x82   :  { %2056 = vmatprep.subr.bf16.mxu1 %v6277_v29  ;;  %v6301_v29 = vcombine.high %v219_v17, %v223_v54  ;;  %v215_v51 = vld [vmem:[#allocation5 + $0x468] sm:$0xff]  ;;  %v6310_v33 = vcombine.high %v83_v57, %v87_v45  ;;  %v6316_v15 = vcombine.low %v83_v57, %v87_v45 }
  0x83   :  { %2014 = vmatpush1.bf16.msra.mxu0 %v6280_v43  ;;  %v75_v25 = vld [vmem:[#allocation5 + $0x8] sm:$0xff]  ;;  %v6320_v54 = vcombine.low %v211_v56, %v215_v51 }
  0x84   :  { %2015 = vmatprep.subr.bf16.mxu0 %v6286_v12  ;;  %7605 = vst [vmem:[#allocation67_spill] sm:$0xff] %v6301_v29  ;;  %7608 = vst [vmem:[#allocation70_spill] sm:$0xff] %v6310_v33  ;;  %v203_v12 = vld [vmem:[#allocation5 + $0x408] sm:$0xff] }
  0x85   :  { %2057 = vmatpush1.bf16.msra.mxu1 %v6284_v62  ;;  %v79_v62 = vld [vmem:[#allocation5 + $0x28] sm:$0xff]  ;;  %7610 = vst [vmem:[#allocation72_spill] sm:$0xff] %v6316_v15  ;;  %7611 = vst [vmem:[#allocation73_spill] sm:$0xff] %v6320_v54 }
  0x86   :  { %2058 = vmatprep.subr.bf16.mxu1 %v6289_v37  ;;  %v6313_v37 = vcombine.high %v211_v56, %v215_v51  ;;  %v207_v43 = vld [vmem:[#allocation5 + $0x428] sm:$0xff]  ;;  %v6322_v17 = vcombine.high %v75_v25, %v79_v62  ;;  %v6328_v45 = vcombine.low %v75_v25, %v79_v62 }
  0x87   :  { %2016 = vmatpush1.bf16.msra.mxu0 %v6292_v1  ;;  %v195_v49 = vld [vmem:[#allocation5 + $0x3c8] sm:$0xff]  ;;  %v6332_v51 = vcombine.low %v203_v12, %v207_v43 }
  0x88   :  { %2017 = vmatprep.subr.bf16.mxu0 %v6298_v47  ;;  %7609 = vst [vmem:[#allocation71_spill] sm:$0xff] %v6313_v37  ;;  %7612 = vst [vmem:[#allocation74_spill] sm:$0xff] %v6322_v17  ;;  %v323_v47 = vld [vmem:[#allocation5 + $0x7c8] sm:$0xff] }
  0x89   :  { %2059 = vmatpush1.bf16.msra.mxu1 %v6296_v35  ;;  %v199_v35 = vld [vmem:[#allocation5 + $0x3e8] sm:$0xff]  ;;  %7614 = vst [vmem:[#allocation76_spill] sm:$0xff] %v6328_v45  ;;  %7615 = vst [vmem:[#allocation77_spill] sm:$0xff] %v6332_v51 }
  0x8a   :  { %2060 = vmatprep.subr.bf16.mxu1 %v6301_v29  ;;  %v6325_v29 = vcombine.high %v203_v12, %v207_v43  ;;  %v327_v1 = vld [vmem:[#allocation5 + $0x7e8] sm:$0xff]  ;;  %v6334_v56 = vcombine.high %v195_v49, %v199_v35  ;;  %v6340_v62 = vcombine.low %v195_v49, %v199_v35 }
  0x8b   :  { %2018 = vmatpush1.bf16.msra.mxu0 %v6304_v7  ;;  %v187_v57 = vld [vmem:[#allocation5 + $0x388] sm:$0xff]  ;;  %v6344_v43 = vcombine.low %v323_v47, %v327_v1 }
  0x8c   :  { %2019 = vmatprep.subr.bf16.mxu0 %v6310_v33  ;;  %7613 = vst [vmem:[#allocation75_spill] sm:$0xff] %v6325_v29  ;;  %7616 = vst [vmem:[#allocation78_spill] sm:$0xff] %v6334_v56  ;;  %v315_v33 = vld [vmem:[#allocation5 + $0x788] sm:$0xff] }
  0x8d   :  { %2061 = vmatpush1.bf16.msra.mxu1 %v6308_v27  ;;  %v191_v27 = vld [vmem:[#allocation5 + $0x3a8] sm:$0xff]  ;;  %7618 = vst [vmem:[#allocation80_spill] sm:$0xff] %v6340_v62  ;;  %7619 = vst [vmem:[#allocation81_spill] sm:$0xff] %v6344_v43 }
  0x8e   :  { %2062 = vmatprep.subr.bf16.mxu1 %v6313_v37  ;;  %v6337_v37 = vcombine.high %v323_v47, %v327_v1  ;;  %v319_v7 = vld [vmem:[#allocation5 + $0x7a8] sm:$0xff]  ;;  %v6346_v12 = vcombine.high %v187_v57, %v191_v27  ;;  %v6352_v35 = vcombine.low %v187_v57, %v191_v27 }
  0x8f   :  { %2020 = vmatpush1.bf16.msra.mxu0 %v6316_v15  ;;  %v179_v25 = vld [vmem:[#allocation5 + $0x348] sm:$0xff]  ;;  %v6356_v1 = vcombine.low %v315_v33, %v319_v7 }
  0x90   :  { %2021 = vmatprep.subr.bf16.mxu0 %v6322_v17  ;;  %7617 = vst [vmem:[#allocation79_spill] sm:$0xff] %v6337_v37  ;;  %7620 = vst [vmem:[#allocation82_spill] sm:$0xff] %v6346_v12  ;;  %v307_v17 = vld [vmem:[#allocation5 + $0x748] sm:$0xff] }
  0x91   :  { %2063 = vmatpush1.bf16.msra.mxu1 %v6320_v54  ;;  %v183_v54 = vld [vmem:[#allocation5 + $0x368] sm:$0xff]  ;;  %7622 = vst [vmem:[#allocation84_spill] sm:$0xff] %v6352_v35  ;;  %7623 = vst [vmem:[#allocation85_spill] sm:$0xff] %v6356_v1 }
  0x92   :  { %2064 = vmatprep.subr.bf16.mxu1 %v6325_v29  ;;  %v6349_v29 = vcombine.high %v315_v33, %v319_v7  ;;  %v311_v15 = vld [vmem:[#allocation5 + $0x768] sm:$0xff]  ;;  %v6358_v47 = vcombine.high %v179_v25, %v183_v54  ;;  %v6364_v27 = vcombine.low %v179_v25, %v183_v54 }
  0x93   :  { %2022 = vmatpush1.bf16.msra.mxu0 %v6328_v45  ;;  %v171_v49 = vld [vmem:[#allocation5 + $0x308] sm:$0xff]  ;;  %v6368_v7 = vcombine.low %v307_v17, %v311_v15 }
  0x94   :  { %2023 = vmatprep.subr.bf16.mxu0 %v6334_v56  ;;  %7621 = vst [vmem:[#allocation83_spill] sm:$0xff] %v6349_v29  ;;  %7624 = vst [vmem:[#allocation86_spill] sm:$0xff] %v6358_v47  ;;  %v299_v56 = vld [vmem:[#allocation5 + $0x708] sm:$0xff] }
  0x95   :  { %2065 = vmatpush1.bf16.msra.mxu1 %v6332_v51  ;;  %v175_v51 = vld [vmem:[#allocation5 + $0x328] sm:$0xff]  ;;  %7626 = vst [vmem:[#allocation88_spill] sm:$0xff] %v6364_v27  ;;  %7627 = vst [vmem:[#allocation89_spill] sm:$0xff] %v6368_v7 }
  0x96   :  { %2066 = vmatprep.subr.bf16.mxu1 %v6337_v37  ;;  %v6361_v37 = vcombine.high %v307_v17, %v311_v15  ;;  %v303_v45 = vld [vmem:[#allocation5 + $0x728] sm:$0xff]  ;;  %v6370_v33 = vcombine.high %v171_v49, %v175_v51  ;;  %v6376_v54 = vcombine.low %v171_v49, %v175_v51 }
  0x97   :  { %2024 = vmatpush2.bf16.msra.mxu0 %v6340_v62  ;;  %v163_v57 = vld [vmem:[#allocation5 + $0x2c8] sm:$0xff]  ;;  %v6380_v15 = vcombine.low %v299_v56, %v303_v45 }
  0x98   :  { %2025 = vmatprep.subr.bf16.mxu0 %v6346_v12  ;;  %7625 = vst [vmem:[#allocation87_spill] sm:$0xff] %v6361_v37  ;;  %7628 = vst [vmem:[#allocation90_spill] sm:$0xff] %v6370_v33  ;;  %v291_v12 = vld [vmem:[#allocation5 + $0x6c8] sm:$0xff] }
  0x99   :  { %2067 = vmatpush2.bf16.msra.mxu1 %v6344_v43  ;;  %v167_v43 = vld [vmem:[#allocation5 + $0x2e8] sm:$0xff]  ;;  %7630 = vst [vmem:[#allocation92_spill] sm:$0xff] %v6376_v54  ;;  %7631 = vst [vmem:[#allocation93_spill] sm:$0xff] %v6380_v15 }
  0x9a   :  { %2068 = vmatprep.subr.bf16.mxu1 %v6349_v29  ;;  %v6373_v29 = vcombine.high %v299_v56, %v303_v45  ;;  %v295_v62 = vld [vmem:[#allocation5 + $0x6e8] sm:$0xff]  ;;  %v6382_v17 = vcombine.high %v163_v57, %v167_v43  ;;  %v6388_v51 = vcombine.low %v163_v57, %v167_v43 }
  0x9b   :  { %2026 = vmatpush2.bf16.msra.mxu0 %v6352_v35  ;;  %v155_v25 = vld [vmem:[#allocation5 + $0x288] sm:$0xff]  ;;  %v6392_v45 = vcombine.low %v291_v12, %v295_v62 }
  0x9c   :  { %2027 = vmatprep.subr.bf16.mxu0 %v6358_v47  ;;  %7629 = vst [vmem:[#allocation91_spill] sm:$0xff] %v6373_v29  ;;  %7632 = vst [vmem:[#allocation94_spill] sm:$0xff] %v6382_v17  ;;  %v283_v47 = vld [vmem:[#allocation5 + $0x688] sm:$0xff] }
  0x9d   :  { %2069 = vmatpush2.bf16.msra.mxu1 %v6356_v1  ;;  %v159_v1 = vld [vmem:[#allocation5 + $0x2a8] sm:$0xff]  ;;  %7634 = vst [vmem:[#allocation96_spill] sm:$0xff] %v6388_v51  ;;  %7635 = vst [vmem:[#allocation97_spill] sm:$0xff] %v6392_v45 }
  0x9e   :  { %2070 = vmatprep.subr.bf16.mxu1 %v6361_v37  ;;  %v6385_v37 = vcombine.high %v291_v12, %v295_v62  ;;  %v287_v35 = vld [vmem:[#allocation5 + $0x6a8] sm:$0xff]  ;;  %v6394_v56 = vcombine.high %v155_v25, %v159_v1  ;;  %v6400_v43 = vcombine.low %v155_v25, %v159_v1  ;;  %v132_v25 = vld [vmem:[#allocation5 + $0x1d0] sm:$0xff] }
  0x9f   :  { %2028 = vmatpush2.bf16.msra.mxu0 %v6364_v27  ;;  %v147_v49 = vld [vmem:[#allocation5 + $0x248] sm:$0xff]  ;;  %v6404_v62 = vcombine.low %v283_v47, %v287_v35 }
  0xa0   :  { %2029 = vmatprep.subr.bf16.mxu0 %v6370_v33  ;;  %7633 = vst [vmem:[#allocation95_spill] sm:$0xff] %v6385_v37  ;;  %7636 = vst [vmem:[#allocation98_spill] sm:$0xff] %v6394_v56  ;;  %v275_v33 = vld [vmem:[#allocation5 + $0x648] sm:$0xff] }
  0xa1   :  { %2071 = vmatpush2.bf16.msra.mxu1 %v6368_v7  ;;  %v151_v7 = vld [vmem:[#allocation5 + $0x268] sm:$0xff]  ;;  %7638 = vst [vmem:[#allocation100_spill] sm:$0xff] %v6400_v43  ;;  %7639 = vst [vmem:[#allocation101_spill] sm:$0xff] %v6404_v62 }
  0xa2   :  { %2072 = vmatprep.subr.bf16.mxu1 %v6373_v29  ;;  %v6397_v29 = vcombine.high %v283_v47, %v287_v35  ;;  %v279_v27 = vld [vmem:[#allocation5 + $0x668] sm:$0xff]  ;;  %v6406_v12 = vcombine.high %v147_v49, %v151_v7  ;;  %v6412_v1 = vcombine.low %v147_v49, %v151_v7  ;;  %v124_v49 = vld [vmem:[#allocation5 + $0x190] sm:$0xff] }
  0xa3   :  { %2030 = vmatpush2.bf16.msra.mxu0 %v6376_v54  ;;  %v139_v57 = vld [vmem:[#allocation5 + $0x208] sm:$0xff]  ;;  %v6416_v35 = vcombine.low %v275_v33, %v279_v27 }
  0xa4   :  { %2031 = vmatprep.subr.bf16.mxu0 %v6382_v17  ;;  %7637 = vst [vmem:[#allocation99_spill] sm:$0xff] %v6397_v29  ;;  %7640 = vst [vmem:[#allocation102_spill] sm:$0xff] %v6406_v12  ;;  %v267_v17 = vld [vmem:[#allocation5 + $0x608] sm:$0xff] }
  0xa5   :  { %2073 = vmatpush2.bf16.msra.mxu1 %v6380_v15  ;;  %v143_v15 = vld [vmem:[#allocation5 + $0x228] sm:$0xff]  ;;  %7642 = vst [vmem:[#allocation104_spill] sm:$0xff] %v6412_v1  ;;  %7643 = vst [vmem:[#allocation105_spill] sm:$0xff] %v6416_v35 }
  0xa6   :  { %2074 = vmatprep.subr.bf16.mxu1 %v6385_v37  ;;  %v6409_v37 = vcombine.high %v275_v33, %v279_v27  ;;  %v271_v54 = vld [vmem:[#allocation5 + $0x628] sm:$0xff]  ;;  %v6418_v47 = vcombine.high %v139_v57, %v143_v15  ;;  %v6424_v7 = vcombine.low %v139_v57, %v143_v15  ;;  %v116_v57 = vld [vmem:[#allocation5 + $0x150] sm:$0xff] }
  0xa7   :  { %2032 = vmatpush2.bf16.msra.mxu0 %v6388_v51  ;;  %v264_v51 = vld [vmem:[#allocation5 + $0x5f0] sm:$0xff]  ;;  %v6428_v27 = vcombine.low %v267_v17, %v271_v54 }
  0xa8   :  { %2033 = vmatprep.subr.bf16.mxu0 %v6394_v56  ;;  %7641 = vst [vmem:[#allocation103_spill] sm:$0xff] %v6409_v37  ;;  %7644 = vst [vmem:[#allocation106_spill] sm:$0xff] %v6418_v47  ;;  %v260_v56 = vld [vmem:[#allocation5 + $0x5d0] sm:$0xff] }
  0xa9   :  { %2075 = vmatpush2.bf16.msra.mxu1 %v6392_v45  ;;  %v136_v45 = vld [vmem:[#allocation5 + $0x1f0] sm:$0xff]  ;;  %7646 = vst [vmem:[#allocation108_spill] sm:$0xff] %v6424_v7  ;;  %7647 = vst [vmem:[#allocation109_spill] sm:$0xff] %v6428_v27 }
  0xaa   :  { %2076 = vmatprep.subr.bf16.mxu1 %v6397_v29  ;;  %v6421_v29 = vcombine.high %v267_v17, %v271_v54  ;;  %v6430_v33 = vcombine.high %v132_v25, %v136_v45  ;;  %v6436_v15 = vcombine.low %v132_v25, %v136_v45  ;;  %v6440_v54 = vcombine.low %v260_v56, %v264_v51  ;;  %v108_v25 = vld [vmem:[#allocation5 + $0x110] sm:$0xff] }
  0xab   :  { %2034 = vmatpush2.bf16.msra.mxu0 %v6400_v43  ;;  %v256_v43 = vld [vmem:[#allocation5 + $0x5b0] sm:$0xff] }
  0xac   :  { %2035 = vmatprep.subr.bf16.mxu0 %v6406_v12  ;;  %7645 = vst [vmem:[#allocation107_spill] sm:$0xff] %v6421_v29  ;;  %7648 = vst [vmem:[#allocation110_spill] sm:$0xff] %v6430_v33  ;;  %v252_v12 = vld [vmem:[#allocation5 + $0x590] sm:$0xff] }
  0xad   :  { %2077 = vmatpush2.bf16.msra.mxu1 %v6404_v62  ;;  %v128_v62 = vld [vmem:[#allocation5 + $0x1b0] sm:$0xff]  ;;  %7650 = vst [vmem:[#allocation112_spill] sm:$0xff] %v6436_v15  ;;  %7651 = vst [vmem:[#allocation113_spill] sm:$0xff] %v6440_v54 }
  0xae   :  { %2078 = vmatprep.subr.bf16.mxu1 %v6409_v37  ;;  %v6433_v37 = vcombine.high %v260_v56, %v264_v51  ;;  %v6442_v17 = vcombine.high %v124_v49, %v128_v62  ;;  %v6450_v45 = vcombine.low %v124_v49, %v128_v62  ;;  %v112_v51 = vld [vmem:[#allocation5 + $0x130] sm:$0xff]  ;;  %v6454_v56 = vcombine.low %v252_v12, %v256_v43 }
  0xaf   :  { %2036 = vmatpush2.bf16.msra.mxu0 %v6412_v1  ;;  %v100_v49 = vld [vmem:[#allocation5 + $0xd0] sm:$0xff] }
  0xb0   :  { %2037 = vmatprep.subr.bf16.mxu0 %v6418_v47  ;;  %7649 = vst [vmem:[#allocation111_spill] sm:$0xff] %v6433_v37  ;;  %7652 = vst [vmem:[#allocation114_spill] sm:$0xff] %v6442_v17  ;;  %v244_v47 = vld [vmem:[#allocation5 + $0x550] sm:$0xff] }
  0xb1   :  { %2079 = vmatpush2.bf16.msra.mxu1 %v6416_v35  ;;  %v120_v35 = vld [vmem:[#allocation5 + $0x170] sm:$0xff]  ;;  %7654 = vst [vmem:[#allocation116_spill] sm:$0xff] %v6450_v45  ;;  %7655 = vst [vmem:[#allocation117_spill] sm:$0xff] %v6454_v56 }
  0xb2   :  { %2080 = vmatprep.subr.bf16.mxu1 %v6421_v29  ;;  %v6445_v29 = vcombine.high %v252_v12, %v256_v43  ;;  %v6464_v62 = vcombine.low %v116_v57, %v120_v35  ;;  %v6470_v12 = vcombine.high %v108_v25, %v112_v51  ;;  %v232_v1 = vld [vmem:[#allocation5 + $0x4f0] sm:$0xff] }
  0xb3   :  { %2038 = vmatpush2.bf16.msra.mxu0 %v6424_v7  ;;  %v248_v7 = vld [vmem:[#allocation5 + $0x570] sm:$0xff] }
  0xb4   :  { %2093 = vmatprep.subr.bf16.mxu0 %v6430_v33  ;;  %7653 = vst [vmem:[#allocation115_spill] sm:$0xff] %v6445_v29  ;;  %v236_v33 = vld [vmem:[#allocation5 + $0x510] sm:$0xff]  ;;  %7658 = vst [vmem:[#allocation120_spill] sm:$0xff] %v6464_v62  ;;  %v6468_v43 = vcombine.low %v244_v47, %v248_v7 }
  0xb5   :  { %2081 = vmatpush2.bf16.msra.mxu1 %v6428_v27  ;;  %v6459_v27 = vcombine.high %v244_v47, %v248_v7  ;;  %7660 = vst [vmem:[#allocation122_spill] sm:$0xff] %v6470_v12 }
  0xb6   :  { %2136 = vmatprep.subr.bf16.mxu1 %v6433_v37  ;;  %2040 = vmatmul.mubr.bf16.vlgmr.msra.gmra.mxu0 %v6235_v23  ;;  %v6456_v37 = vcombine.high %v116_v57, %v120_v35  ;;  %7659 = vst [vmem:[#allocation121_spill] sm:$0xff] %v6468_v43  ;;  %v6476_v35 = vcombine.low %v108_v25, %v112_v51  ;;  %v92_v57 = vld [vmem:[#allocation5 + $0x90] sm:$0xff] }
  0xb7   :  { %2094 = vmatpush1.bf16.msra.mxu0 %v6436_v15  ;;  %7657 = vst [vmem:[#allocation119_spill] sm:$0xff] %v6459_v27  ;;  %2125 = vmatprep.mubr.bf16.mxu0 %v6109_v58  ;;  %v240_v15 = vld [vmem:[#allocation5 + $0x530] sm:$0xff] }
  0xb8   :  { %2083 = vmatmul.mubr.bf16.vlgmr.msra.gmra.mxu1 %v6238_v39  ;;  %2095 = vmatprep.subr.bf16.mxu0 %v6442_v17  ;;  %7656 = vst [vmem:[#allocation118_spill] sm:$0xff] %v6456_v37  ;;  %v228_v17 = vld [vmem:[#allocation5 + $0x4d0] sm:$0xff]  ;;  %7662 = vst [vmem:[#allocation124_spill] sm:$0xff] %v6476_v35  ;;  %v6480_v47 = vcombine.low %v236_v33, %v240_v15 }
  0xb9   :  { %2137 = vmatpush1.bf16.msra.mxu1 %v6440_v54  ;;  %2168 = vmatprep.mubr.bf16.mxu1 %v6111_v63  ;;  %v104_v54 = vld [vmem:[#allocation5 + $0xf0] sm:$0xff]  ;;  %v6492_v51 = vcombine.low %v228_v17, %v232_v1 }
  0xba   :  { %2138 = vmatprep.subr.bf16.mxu1 %v6445_v29  ;;  %v6473_v29 = vcombine.high %v236_v33, %v240_v15  ;;  %7663 = vst [vmem:[#allocation125_spill] sm:$0xff] %v6480_v47  ;;  %v6482_v7 = vcombine.high %v100_v49, %v104_v54  ;;  %v6488_v25 = vcombine.low %v100_v49, %v104_v54  ;;  %v76_v49 = vld [vmem:[#allocation5 + $0x10] sm:$0xff] }
  0xbb   :  { %2096 = vmatpush1.bf16.msra.mxu0 %v6450_v45  ;;  %v96_v45 = vld [vmem:[#allocation5 + $0xb0] sm:$0xff]  ;;  %7667 = vst [vmem:[#allocation129_spill] sm:$0xff] %v6492_v51 }
  0xbc   :  { %2097 = vmatprep.subr.bf16.mxu0 %v6456_v37  ;;  %7661 = vst [vmem:[#allocation123_spill] sm:$0xff] %v6473_v29  ;;  %7664 = vst [vmem:[#allocation126_spill] sm:$0xff] %v6482_v7  ;;  %v224_v37 = vld [vmem:[#allocation5 + $0x4b0] sm:$0xff]  ;;  %v6494_v33 = vcombine.high %v92_v57, %v96_v45  ;;  %v6500_v54 = vcombine.low %v92_v57, %v96_v45 }
  0xbd   :  { %2139 = vmatpush1.bf16.msra.mxu1 %v6454_v56  ;;  %v220_v56 = vld [vmem:[#allocation5 + $0x490] sm:$0xff]  ;;  %7666 = vst [vmem:[#allocation128_spill] sm:$0xff] %v6488_v25 }
  0xbe   :  { %2140 = vmatprep.subr.bf16.mxu1 %v6459_v27  ;;  %v6485_v27 = vcombine.high %v228_v17, %v232_v1  ;;  %7668 = vst [vmem:[#allocation130_spill] sm:$0xff] %v6494_v33  ;;  %v6497_v15 = vcombine.high %v220_v56, %v224_v37  ;;  %7670 = vst [vmem:[#allocation132_spill] sm:$0xff] %v6500_v54  ;;  %v6504_v1 = vcombine.low %v220_v56, %v224_v37  ;;  %v196_v57 = vld [vmem:[#allocation5 + $0x3d0] sm:$0xff] }
  0xbf   :  { %2098 = vmatpush1.bf16.msra.mxu0 %v6464_v62  ;;  %v216_v62 = vld [vmem:[#allocation5 + $0x470] sm:$0xff] }
  0xc0   :  { %2099 = vmatprep.subr.bf16.mxu0 %v6470_v12  ;;  %7665 = vst [vmem:[#allocation127_spill] sm:$0xff] %v6485_v27  ;;  %7669 = vst [vmem:[#allocation131_spill] sm:$0xff] %v6497_v15  ;;  %v212_v12 = vld [vmem:[#allocation5 + $0x450] sm:$0xff] }
  0xc1   :  { %2141 = vmatpush1.bf16.msra.mxu1 %v6468_v43  ;;  %v88_v43 = vld [vmem:[#allocation5 + $0x70] sm:$0xff]  ;;  %7671 = vst [vmem:[#allocation133_spill] sm:$0xff] %v6504_v1  ;;  %v6516_v37 = vcombine.low %v212_v12, %v216_v62 }
  0xc2   :  { %2142 = vmatprep.subr.bf16.mxu1 %v6473_v29  ;;  %v84_v29 = vld [vmem:[#allocation5 + $0x50] sm:$0xff] }
  0xc3   :  { %2100 = vmatpush1.bf16.msra.mxu0 %v6476_v35  ;;  %v6506_v17 = vcombine.high %v84_v29, %v88_v43  ;;  %v6509_v35 = vcombine.high %v212_v12, %v216_v62  ;;  %v6512_v45 = vcombine.low %v84_v29, %v88_v43  ;;  %7675 = vst [vmem:[#allocation137_spill] sm:$0xff] %v6516_v37  ;;  %v188_v43 = vld [vmem:[#allocation5 + $0x390] sm:$0xff] }
  0xc4   :  { %2101 = vmatprep.subr.bf16.mxu0 %v6482_v7  ;;  %v208_v7 = vld [vmem:[#allocation5 + $0x430] sm:$0xff] }
  0xc5   :  { %2143 = vmatpush1.bf16.msra.mxu1 %v6480_v47  ;;  %v80_v47 = vld [vmem:[#allocation5 + $0x30] sm:$0xff]  ;;  %7672 = vst [vmem:[#allocation134_spill] sm:$0xff] %v6506_v17  ;;  %7673 = vst [vmem:[#allocation135_spill] sm:$0xff] %v6509_v35 }
  0xc6   :  { %2144 = vmatprep.subr.bf16.mxu1 %v6485_v27  ;;  %v204_v27 = vld [vmem:[#allocation5 + $0x410] sm:$0xff]  ;;  %7674 = vst [vmem:[#allocation136_spill] sm:$0xff] %v6512_v45  ;;  %v6518_v56 = vcombine.high %v76_v49, %v80_v47  ;;  %v6524_v29 = vcombine.low %v76_v49, %v80_v47 }
  0xc7   :  { %2102 = vmatpush1.bf16.msra.mxu0 %v6488_v25  ;;  %v200_v25 = vld [vmem:[#allocation5 + $0x3f0] sm:$0xff]  ;;  %v6528_v62 = vcombine.low %v204_v27, %v208_v7 }
  0xc8   :  { %2103 = vmatprep.subr.bf16.mxu0 %v6494_v33  ;;  %7676 = vst [vmem:[#allocation138_spill] sm:$0xff] %v6518_v56  ;;  %v328_v33 = vld [vmem:[#allocation5 + $0x7f0] sm:$0xff]  ;;  %7678 = vst [vmem:[#allocation140_spill] sm:$0xff] %v6524_v29  ;;  %v6530_v12 = vcombine.high %v196_v57, %v200_v25  ;;  %v6536_v47 = vcombine.low %v196_v57, %v200_v25 }
  0xc9   :  { %2145 = vmatpush1.bf16.msra.mxu1 %v6492_v51  ;;  %v324_v51 = vld [vmem:[#allocation5 + $0x7d0] sm:$0xff]  ;;  %7679 = vst [vmem:[#allocation141_spill] sm:$0xff] %v6528_v62 }
  0xca   :  { %2146 = vmatprep.subr.bf16.mxu1 %v6497_v15  ;;  %v6521_v15 = vcombine.high %v204_v27, %v208_v7  ;;  %7680 = vst [vmem:[#allocation142_spill] sm:$0xff] %v6530_v12  ;;  %7682 = vst [vmem:[#allocation144_spill] sm:$0xff] %v6536_v47  ;;  %v180_v49 = vld [vmem:[#allocation5 + $0x350] sm:$0xff]  ;;  %v6540_v27 = vcombine.low %v324_v51, %v328_v33 }
  0xcb   :  { %2104 = vmatpush1.bf16.msra.mxu0 %v6500_v54  ;;  %v192_v54 = vld [vmem:[#allocation5 + $0x3b0] sm:$0xff] }
  0xcc   :  { %2105 = vmatprep.subr.bf16.mxu0 %v6506_v17  ;;  %7677 = vst [vmem:[#allocation139_spill] sm:$0xff] %v6521_v15  ;;  %v320_v17 = vld [vmem:[#allocation5 + $0x7b0] sm:$0xff]  ;;  %7683 = vst [vmem:[#allocation145_spill] sm:$0xff] %v6540_v27  ;;  %v6542_v7 = vcombine.high %v188_v43, %v192_v54  ;;  %v6548_v25 = vcombine.low %v188_v43, %v192_v54 }
  0xcd   :  { %2147 = vmatpush1.bf16.msra.mxu1 %v6504_v1  ;;  %v316_v1 = vld [vmem:[#allocation5 + $0x790] sm:$0xff] }
  0xce   :  { %2148 = vmatprep.subr.bf16.mxu1 %v6509_v35  ;;  %v6533_v35 = vcombine.high %v324_v51, %v328_v33  ;;  %7684 = vst [vmem:[#allocation146_spill] sm:$0xff] %v6542_v7  ;;  %7686 = vst [vmem:[#allocation148_spill] sm:$0xff] %v6548_v25  ;;  %v172_v57 = vld [vmem:[#allocation5 + $0x310] sm:$0xff]  ;;  %v6552_v51 = vcombine.low %v316_v1, %v320_v17 }
  0xcf   :  { %2106 = vmatpush1.bf16.msra.mxu0 %v6512_v45  ;;  %v184_v45 = vld [vmem:[#allocation5 + $0x370] sm:$0xff] }
  0xd0   :  { %2107 = vmatprep.subr.bf16.mxu0 %v6518_v56  ;;  %7681 = vst [vmem:[#allocation143_spill] sm:$0xff] %v6533_v35  ;;  %v312_v56 = vld [vmem:[#allocation5 + $0x770] sm:$0xff]  ;;  %7687 = vst [vmem:[#allocation149_spill] sm:$0xff] %v6552_v51  ;;  %v6554_v33 = vcombine.high %v180_v49, %v184_v45  ;;  %v6560_v54 = vcombine.low %v180_v49, %v184_v45 }
  0xd1   :  { %2149 = vmatpush1.bf16.msra.mxu1 %v6516_v37  ;;  %v308_v37 = vld [vmem:[#allocation5 + $0x750] sm:$0xff] }
  0xd2   :  { %2150 = vmatprep.subr.bf16.mxu1 %v6521_v15  ;;  %v6545_v15 = vcombine.high %v316_v1, %v320_v17  ;;  %7688 = vst [vmem:[#allocation150_spill] sm:$0xff] %v6554_v33  ;;  %7690 = vst [vmem:[#allocation152_spill] sm:$0xff] %v6560_v54  ;;  %v164_v43 = vld [vmem:[#allocation5 + $0x2d0] sm:$0xff]  ;;  %v6564_v1 = vcombine.low %v308_v37, %v312_v56 }
  0xd3   :  { %2108 = vmatpush1.bf16.msra.mxu0 %v6524_v29  ;;  %v176_v29 = vld [vmem:[#allocation5 + $0x330] sm:$0xff] }
  0xd4   :  { %2109 = vmatprep.subr.bf16.mxu0 %v6530_v12  ;;  %7685 = vst [vmem:[#allocation147_spill] sm:$0xff] %v6545_v15  ;;  %v304_v12 = vld [vmem:[#allocation5 + $0x730] sm:$0xff]  ;;  %7691 = vst [vmem:[#allocation153_spill] sm:$0xff] %v6564_v1  ;;  %v6566_v17 = vcombine.high %v172_v57, %v176_v29  ;;  %v6572_v45 = vcombine.low %v172_v57, %v176_v29 }
  0xd5   :  { %2151 = vmatpush1.bf16.msra.mxu1 %v6528_v62  ;;  %v300_v62 = vld [vmem:[#allocation5 + $0x710] sm:$0xff] }
  0xd6   :  { %2152 = vmatprep.subr.bf16.mxu1 %v6533_v35  ;;  %v6557_v35 = vcombine.high %v308_v37, %v312_v56  ;;  %7692 = vst [vmem:[#allocation154_spill] sm:$0xff] %v6566_v17  ;;  %7694 = vst [vmem:[#allocation156_spill] sm:$0xff] %v6572_v45  ;;  %v156_v49 = vld [vmem:[#allocation5 + $0x290] sm:$0xff]  ;;  %v6576_v37 = vcombine.low %v300_v62, %v304_v12 }
  0xd7   :  { %2110 = vmatpush2.bf16.msra.mxu0 %v6536_v47  ;;  %v168_v47 = vld [vmem:[#allocation5 + $0x2f0] sm:$0xff] }
  0xd8   :  { %2111 = vmatprep.subr.bf16.mxu0 %v6542_v7  ;;  %7689 = vst [vmem:[#allocation151_spill] sm:$0xff] %v6557_v35  ;;  %v296_v7 = vld [vmem:[#allocation5 + $0x6f0] sm:$0xff]  ;;  %7695 = vst [vmem:[#allocation157_spill] sm:$0xff] %v6576_v37  ;;  %v6578_v56 = vcombine.high %v164_v43, %v168_v47  ;;  %v6584_v29 = vcombine.low %v164_v43, %v168_v47 }
  0xd9   :  { %2153 = vmatpush2.bf16.msra.mxu1 %v6540_v27  ;;  %v292_v27 = vld [vmem:[#allocation5 + $0x6d0] sm:$0xff] }
  0xda   :  { %2154 = vmatprep.subr.bf16.mxu1 %v6545_v15  ;;  %v6569_v15 = vcombine.high %v300_v62, %v304_v12  ;;  %7696 = vst [vmem:[#allocation158_spill] sm:$0xff] %v6578_v56  ;;  %7698 = vst [vmem:[#allocation160_spill] sm:$0xff] %v6584_v29  ;;  %v148_v57 = vld [vmem:[#allocation5 + $0x250] sm:$0xff]  ;;  %v6588_v62 = vcombine.low %v292_v27, %v296_v7 }
  0xdb   :  { %2112 = vmatpush2.bf16.msra.mxu0 %v6548_v25  ;;  %v160_v25 = vld [vmem:[#allocation5 + $0x2b0] sm:$0xff] }
  0xdc   :  { %2113 = vmatprep.subr.bf16.mxu0 %v6554_v33  ;;  %7693 = vst [vmem:[#allocation155_spill] sm:$0xff] %v6569_v15  ;;  %v288_v33 = vld [vmem:[#allocation5 + $0x6b0] sm:$0xff]  ;;  %7699 = vst [vmem:[#allocation161_spill] sm:$0xff] %v6588_v62  ;;  %v6590_v12 = vcombine.high %v156_v49, %v160_v25  ;;  %v6596_v47 = vcombine.low %v156_v49, %v160_v25  ;;  %v133_v49 = vld [vmem:[#allocation5 + $0x1d8] sm:$0xff] }
  0xdd   :  { %2155 = vmatpush2.bf16.msra.mxu1 %v6552_v51  ;;  %v284_v51 = vld [vmem:[#allocation5 + $0x690] sm:$0xff] }
  0xde   :  { %2156 = vmatprep.subr.bf16.mxu1 %v6557_v35  ;;  %v6581_v35 = vcombine.high %v292_v27, %v296_v7  ;;  %7700 = vst [vmem:[#allocation162_spill] sm:$0xff] %v6590_v12  ;;  %7702 = vst [vmem:[#allocation164_spill] sm:$0xff] %v6596_v47  ;;  %v140_v43 = vld [vmem:[#allocation5 + $0x210] sm:$0xff]  ;;  %v6600_v27 = vcombine.low %v284_v51, %v288_v33 }
  0xdf   :  { %2114 = vmatpush2.bf16.msra.mxu0 %v6560_v54  ;;  %v152_v54 = vld [vmem:[#allocation5 + $0x270] sm:$0xff] }
  0xe0   :  { %2115 = vmatprep.subr.bf16.mxu0 %v6566_v17  ;;  %7697 = vst [vmem:[#allocation159_spill] sm:$0xff] %v6581_v35  ;;  %v280_v17 = vld [vmem:[#allocation5 + $0x670] sm:$0xff]  ;;  %7703 = vst [vmem:[#allocation165_spill] sm:$0xff] %v6600_v27  ;;  %v6602_v7 = vcombine.high %v148_v57, %v152_v54  ;;  %v6608_v25 = vcombine.low %v148_v57, %v152_v54  ;;  %v125_v57 = vld [vmem:[#allocation5 + $0x198] sm:$0xff] }
  0xe1   :  { %2157 = vmatpush2.bf16.msra.mxu1 %v6564_v1  ;;  %v276_v1 = vld [vmem:[#allocation5 + $0x650] sm:$0xff] }
  0xe2   :  { %2158 = vmatprep.subr.bf16.mxu1 %v6569_v15  ;;  %v6593_v15 = vcombine.high %v284_v51, %v288_v33  ;;  %7704 = vst [vmem:[#allocation166_spill] sm:$0xff] %v6602_v7  ;;  %7706 = vst [vmem:[#allocation168_spill] sm:$0xff] %v6608_v25  ;;  %v6612_v51 = vcombine.low %v276_v1, %v280_v17 }
  0xe3   :  { %2116 = vmatpush2.bf16.msra.mxu0 %v6572_v45  ;;  %v144_v45 = vld [vmem:[#allocation5 + $0x230] sm:$0xff] }
  0xe4   :  { %2117 = vmatprep.subr.bf16.mxu0 %v6578_v56  ;;  %7701 = vst [vmem:[#allocation163_spill] sm:$0xff] %v6593_v15  ;;  %v272_v56 = vld [vmem:[#allocation5 + $0x630] sm:$0xff]  ;;  %7707 = vst [vmem:[#allocation169_spill] sm:$0xff] %v6612_v51  ;;  %v6614_v33 = vcombine.high %v140_v43, %v144_v45  ;;  %v6620_v54 = vcombine.low %v140_v43, %v144_v45 }
  0xe5   :  { %2159 = vmatpush2.bf16.msra.mxu1 %v6576_v37  ;;  %v268_v37 = vld [vmem:[#allocation5 + $0x610] sm:$0xff] }
  0xe6   :  { %2160 = vmatprep.subr.bf16.mxu1 %v6581_v35  ;;  %v6605_v35 = vcombine.high %v276_v1, %v280_v17  ;;  %7708 = vst [vmem:[#allocation170_spill] sm:$0xff] %v6614_v33  ;;  %7710 = vst [vmem:[#allocation172_spill] sm:$0xff] %v6620_v54  ;;  %v6624_v1 = vcombine.low %v268_v37, %v272_v56 }
  0xe7   :  { %2118 = vmatpush2.bf16.msra.mxu0 %v6584_v29  ;;  %v137_v29 = vld [vmem:[#allocation5 + $0x1f8] sm:$0xff] }
  0xe8   :  { %2119 = vmatprep.subr.bf16.mxu0 %v6590_v12  ;;  %7705 = vst [vmem:[#allocation167_spill] sm:$0xff] %v6605_v35  ;;  %v265_v12 = vld [vmem:[#allocation5 + $0x5f8] sm:$0xff]  ;;  %7711 = vst [vmem:[#allocation173_spill] sm:$0xff] %v6624_v1  ;;  %v6626_v17 = vcombine.high %v133_v49, %v137_v29  ;;  %v6632_v45 = vcombine.low %v133_v49, %v137_v29 }
  0xe9   :  { %2161 = vmatpush2.bf16.msra.mxu1 %v6588_v62  ;;  %v261_v62 = vld [vmem:[#allocation5 + $0x5d8] sm:$0xff] }
  0xea   :  { %2162 = vmatprep.subr.bf16.mxu1 %v6593_v15  ;;  %v6617_v15 = vcombine.high %v268_v37, %v272_v56  ;;  %7712 = vst [vmem:[#allocation174_spill] sm:$0xff] %v6626_v17  ;;  %7714 = vst [vmem:[#allocation176_spill] sm:$0xff] %v6632_v45  ;;  %v6636_v43 = vcombine.low %v261_v62, %v265_v12 }
  0xeb   :  { %2120 = vmatpush2.bf16.msra.mxu0 %v6596_v47  ;;  %v129_v47 = vld [vmem:[#allocation5 + $0x1b8] sm:$0xff] }
  0xec   :  { %2121 = vmatprep.subr.bf16.mxu0 %v6602_v7  ;;  %7709 = vst [vmem:[#allocation171_spill] sm:$0xff] %v6617_v15  ;;  %v257_v7 = vld [vmem:[#allocation5 + $0x5b8] sm:$0xff]  ;;  %7715 = vst [vmem:[#allocation177_spill] sm:$0xff] %v6636_v43  ;;  %v6638_v37 = vcombine.high %v125_v57, %v129_v47  ;;  %v6646_v29 = vcombine.low %v125_v57, %v129_v47 }
  0xed   :  { %2163 = vmatpush2.bf16.msra.mxu1 %v6600_v27  ;;  %v253_v27 = vld [vmem:[#allocation5 + $0x598] sm:$0xff] }
  0xee   :  { %2164 = vmatprep.subr.bf16.mxu1 %v6605_v35  ;;  %v6629_v35 = vcombine.high %v261_v62, %v265_v12  ;;  %7716 = vst [vmem:[#allocation178_spill] sm:$0xff] %v6638_v37  ;;  %v6641_v56 = vcombine.high %v253_v27, %v257_v7  ;;  %7718 = vst [vmem:[#allocation180_spill] sm:$0xff] %v6646_v29  ;;  %v6650_v62 = vcombine.low %v253_v27, %v257_v7 }
  0xef   :  { %2122 = vmatpush2.bf16.msra.mxu0 %v6608_v25  ;;  %v5244_v25 = vld [vmem:[#allocation8 + $0x64] ss:$16 sps:$4 sm:$0xff]  }
  0xf0   :  { %2123 = vmatprep.subr.bf16.mxu0 %v6614_v33  ;;  %7713 = vst [vmem:[#allocation175_spill] sm:$0xff] %v6629_v35  ;;  %7717 = vst [vmem:[#allocation179_spill] sm:$0xff] %v6641_v56  ;;  %v245_v33 = vld [vmem:[#allocation5 + $0x558] sm:$0xff] }
  0xf1   :  { %2165 = vmatpush2.bf16.msra.mxu1 %v6612_v51  ;;  %v117_v51 = vld [vmem:[#allocation5 + $0x158] sm:$0xff]  ;;  %7719 = vst [vmem:[#allocation181_spill] sm:$0xff] %v6650_v62 }
  0xf2   :  { %2166 = vmatprep.subr.bf16.mxu1 %v6617_v15  ;;  %v121_v15 = vld [vmem:[#allocation5 + $0x178] sm:$0xff] }
  0xf3   :  { %2124 = vmatpush2.bf16.msra.mxu0 %v6620_v54  ;;  %v249_v54 = vld [vmem:[#allocation5 + $0x578] sm:$0xff]  ;;  %v6652_v12 = vcombine.high %v117_v51, %v121_v15  ;;  %v6660_v47 = vcombine.low %v117_v51, %v121_v15 }
  0xf4   :  { %2179 = vmatprep.subr.bf16.mxu0 %v6626_v17  ;;  %v6655_v49 = vcombine.high %v245_v33, %v249_v54  ;;  %v237_v17 = vld [vmem:[#allocation5 + $0x518] sm:$0xff]  ;;  %v6664_v27 = vcombine.low %v245_v33, %v249_v54 }
  0xf5   :  { %2167 = vmatpush2.bf16.msra.mxu1 %v6624_v1  ;;  %7720 = vst [vmem:[#allocation182_spill] sm:$0xff] %v6652_v12  ;;  %v113_v1 = vld [vmem:[#allocation5 + $0x138] sm:$0xff]  ;;  %7722 = vst [vmem:[#allocation184_spill] sm:$0xff] %v6660_v47 }
  0xf6   :  { %2222 = vmatprep.subr.bf16.mxu1 %v6629_v35  ;;  %2126 = vmatmul.mubr.bf16.vlgmr.msra.gmra.mxu0 %v6235_v23  ;;  %7721 = vst [vmem:[#allocation183_spill] sm:$0xff] %v6655_v49  ;;  %v109_v35 = vld [vmem:[#allocation5 + $0x118] sm:$0xff]  ;;  %7723 = vst [vmem:[#allocation185_spill] sm:$0xff] %v6664_v27 }
  0xf7   :  { %2180 = vmatpush1.bf16.msra.mxu0 %v6632_v45  ;;  %2211 = vmatprep.mubr.bf16.mxu0 %v6109_v58  ;;  %v241_v45 = vld [vmem:[#allocation5 + $0x538] sm:$0xff]  ;;  %v6666_v7 = vcombine.high %v109_v35, %v113_v1  ;;  %v6672_v15 = vcombine.low %v109_v35, %v113_v1 }
  0xf8   :  { %2169 = vmatmul.mubr.bf16.vlgmr.msra.gmra.mxu1 %v6238_v39  ;;  %2181 = vmatprep.subr.bf16.mxu0 %v6638_v37  ;;  %v6669_v57 = vcombine.high %v237_v17, %v241_v45  ;;  %v101_v58 = vld [vmem:[#allocation5 + $0xd8] sm:$0xff]  ;;  %v6676_v51 = vcombine.low %v237_v17, %v241_v45 }
  0xf9   :  { %2223 = vmatpush1.bf16.msra.mxu1 %v6636_v43  ;;  %2254 = vmatprep.mubr.bf16.mxu1 %v6111_v63  ;;  %7724 = vst [vmem:[#allocation186_spill] sm:$0xff] %v6666_v7  ;;  %v229_v43 = vld [vmem:[#allocation5 + $0x4d8] sm:$0xff]  ;;  %7726 = vst [vmem:[#allocation188_spill] sm:$0xff] %v6672_v15 }
  0xfa   :  { %2224 = vmatprep.subr.bf16.mxu1 %v6641_v56  ;;  %7725 = vst [vmem:[#allocation187_spill] sm:$0xff] %v6669_v57  ;;  %v105_v56 = vld [vmem:[#allocation5 + $0xf8] sm:$0xff]  ;;  %7727 = vst [vmem:[#allocation189_spill] sm:$0xff] %v6676_v51 }
  0xfb   :  { %2182 = vmatpush1.bf16.msra.mxu0 %v6646_v29  ;;  %v233_v63 = vld [vmem:[#allocation5 + $0x4f8] sm:$0xff]  ;;  %v6678_v33 = vcombine.high %v101_v58, %v105_v56  ;;  %v6684_v35 = vcombine.low %v101_v58, %v105_v56 }
  0xfc   :  { %2183 = vmatprep.subr.bf16.mxu0 %v6652_v12  ;;  %v6681_v54 = vcombine.high %v229_v43, %v233_v63  ;;  %v221_v12 = vld [vmem:[#allocation5 + $0x498] sm:$0xff]  ;;  %v6688_v1 = vcombine.low %v229_v43, %v233_v63 }
  0xfd   :  { %2225 = vmatpush1.bf16.msra.mxu1 %v6650_v62  ;;  %7728 = vst [vmem:[#allocation190_spill] sm:$0xff] %v6678_v33  ;;  %v97_v62 = vld [vmem:[#allocation5 + $0xb8] sm:$0xff]  ;;  %7730 = vst [vmem:[#allocation192_spill] sm:$0xff] %v6684_v35 }
  0xfe   :  { %2226 = vmatprep.subr.bf16.mxu1 %v6655_v49  ;;  %7729 = vst [vmem:[#allocation191_spill] sm:$0xff] %v6681_v54  ;;  %v93_v49 = vld [vmem:[#allocation5 + $0x98] sm:$0xff]  ;;  %7731 = vst [vmem:[#allocation193_spill] sm:$0xff] %v6688_v1 }
  0xff   :  { %2184 = vmatpush1.bf16.msra.mxu0 %v6660_v47  ;;  %v225_v29 = vld [vmem:[#allocation5 + $0x4b8] sm:$0xff]  ;;  %v6690_v17 = vcombine.high %v93_v49, %v97_v62  ;;  %v6696_v56 = vcombine.low %v93_v49, %v97_v62 }
 0x100   :  { %2185 = vmatprep.subr.bf16.mxu0 %v6666_v7  ;;  %v6693_v45 = vcombine.high %v221_v12, %v225_v29  ;;  %v213_v7 = vld [vmem:[#allocation5 + $0x458] sm:$0xff]  ;;  %v6700_v43 = vcombine.low %v221_v12, %v225_v29 }
 0x101   :  { %2227 = vmatpush1.bf16.msra.mxu1 %v6664_v27  ;;  %7732 = vst [vmem:[#allocation194_spill] sm:$0xff] %v6690_v17  ;;  %v89_v27 = vld [vmem:[#allocation5 + $0x78] sm:$0xff]  ;;  %7734 = vst [vmem:[#allocation196_spill] sm:$0xff] %v6696_v56 }
 0x102   :  { %2228 = vmatprep.subr.bf16.mxu1 %v6669_v57  ;;  %7733 = vst [vmem:[#allocation195_spill] sm:$0xff] %v6693_v45  ;;  %v85_v57 = vld [vmem:[#allocation5 + $0x58] sm:$0xff]  ;;  %7735 = vst [vmem:[#allocation197_spill] sm:$0xff] %v6700_v43 }
 0x103   :  { %2186 = vmatpush1.bf16.msra.mxu0 %v6672_v15  ;;  %v217_v47 = vld [vmem:[#allocation5 + $0x478] sm:$0xff]  ;;  %v6702_v58 = vcombine.high %v85_v57, %v89_v27  ;;  %v6708_v62 = vcombine.low %v85_v57, %v89_v27 }
 0x104   :  { %2187 = vmatprep.subr.bf16.mxu0 %v6678_v33  ;;  %v6705_v63 = vcombine.high %v213_v7, %v217_v47  ;;  %v205_v33 = vld [vmem:[#allocation5 + $0x418] sm:$0xff]  ;;  %v6712_v29 = vcombine.low %v213_v7, %v217_v47 }
 0x105   :  { %2229 = vmatpush1.bf16.msra.mxu1 %v6676_v51  ;;  %7736 = vst [vmem:[#allocation198_spill] sm:$0xff] %v6702_v58  ;;  %v81_v51 = vld [vmem:[#allocation5 + $0x38] sm:$0xff]  ;;  %7738 = vst [vmem:[#allocation200_spill] sm:$0xff] %v6708_v62 }
 0x106   :  { %2230 = vmatprep.subr.bf16.mxu1 %v6681_v54  ;;  %7737 = vst [vmem:[#allocation199_spill] sm:$0xff] %v6705_v63  ;;  %v77_v54 = vld [vmem:[#allocation5 + $0x18] sm:$0xff]  ;;  %7739 = vst [vmem:[#allocation201_spill] sm:$0xff] %v6712_v29 }
 0x107   :  { %2188 = vmatpush1.bf16.msra.mxu0 %v6684_v35  ;;  %v209_v15 = vld [vmem:[#allocation5 + $0x438] sm:$0xff]  ;;  %v6714_v12 = vcombine.high %v77_v54, %v81_v51  ;;  %v6720_v27 = vcombine.low %v77_v54, %v81_v51 }
 0x108   :  { %2189 = vmatprep.subr.bf16.mxu0 %v6690_v17  ;;  %v6717_v49 = vcombine.high %v205_v33, %v209_v15  ;;  %v325_v17 = vld [vmem:[#allocation5 + $0x7d8] sm:$0xff]  ;;  %v6724_v47 = vcombine.low %v205_v33, %v209_v15 }
 0x109   :  { %2231 = vmatpush1.bf16.msra.mxu1 %v6688_v1  ;;  %7740 = vst [vmem:[#allocation202_spill] sm:$0xff] %v6714_v12  ;;  %v201_v1 = vld [vmem:[#allocation5 + $0x3f8] sm:$0xff]  ;;  %7742 = vst [vmem:[#allocation204_spill] sm:$0xff] %v6720_v27 }
 0x10a   :  { %2232 = vmatprep.subr.bf16.mxu1 %v6693_v45  ;;  %7741 = vst [vmem:[#allocation203_spill] sm:$0xff] %v6717_v49  ;;  %v197_v45 = vld [vmem:[#allocation5 + $0x3d8] sm:$0xff]  ;;  %7743 = vst [vmem:[#allocation205_spill] sm:$0xff] %v6724_v47 }
 0x10b   :  { %2190 = vmatpush1.bf16.msra.mxu0 %v6696_v56  ;;  %v329_v35 = vld [vmem:[#allocation5 + $0x7f8] sm:$0xff]  ;;  %v6726_v7 = vcombine.high %v197_v45, %v201_v1  ;;  %v6732_v51 = vcombine.low %v197_v45, %v201_v1 }
 0x10c   :  { %2191 = vmatprep.subr.bf16.mxu0 %v6702_v58  ;;  %v6729_v57 = vcombine.high %v325_v17, %v329_v35  ;;  %v317_v58 = vld [vmem:[#allocation5 + $0x798] sm:$0xff]  ;;  %v6736_v15 = vcombine.low %v325_v17, %v329_v35 }
 0x10d   :  { %2233 = vmatpush1.bf16.msra.mxu1 %v6700_v43  ;;  %7744 = vst [vmem:[#allocation206_spill] sm:$0xff] %v6726_v7  ;;  %v193_v43 = vld [vmem:[#allocation5 + $0x3b8] sm:$0xff]  ;;  %7746 = vst [vmem:[#allocation208_spill] sm:$0xff] %v6732_v51 }
 0x10e   :  { %2234 = vmatprep.subr.bf16.mxu1 %v6705_v63  ;;  %7745 = vst [vmem:[#allocation207_spill] sm:$0xff] %v6729_v57  ;;  %v189_v63 = vld [vmem:[#allocation5 + $0x398] sm:$0xff]  ;;  %7747 = vst [vmem:[#allocation209_spill] sm:$0xff] %v6736_v15 }
 0x10f   :  { %2192 = vmatpush1.bf16.msra.mxu0 %v6708_v62  ;;  %v321_v56 = vld [vmem:[#allocation5 + $0x7b8] sm:$0xff]  ;;  %v6738_v33 = vcombine.high %v189_v63, %v193_v43  ;;  %v6744_v1 = vcombine.low %v189_v63, %v193_v43 }
 0x110   :  { %2193 = vmatprep.subr.bf16.mxu0 %v6714_v12  ;;  %v6741_v54 = vcombine.high %v317_v58, %v321_v56  ;;  %v309_v12 = vld [vmem:[#allocation5 + $0x758] sm:$0xff]  ;;  %v6748_v35 = vcombine.low %v317_v58, %v321_v56 }
 0x111   :  { %2235 = vmatpush1.bf16.msra.mxu1 %v6712_v29  ;;  %7748 = vst [vmem:[#allocation210_spill] sm:$0xff] %v6738_v33  ;;  %v185_v29 = vld [vmem:[#allocation5 + $0x378] sm:$0xff]  ;;  %7750 = vst [vmem:[#allocation212_spill] sm:$0xff] %v6744_v1 }
 0x112   :  { %2236 = vmatprep.subr.bf16.mxu1 %v6717_v49  ;;  %7749 = vst [vmem:[#allocation211_spill] sm:$0xff] %v6741_v54  ;;  %v181_v49 = vld [vmem:[#allocation5 + $0x358] sm:$0xff]  ;;  %7751 = vst [vmem:[#allocation213_spill] sm:$0xff] %v6748_v35 }
 0x113   :  { %2194 = vmatpush1.bf16.msra.mxu0 %v6720_v27  ;;  %v313_v62 = vld [vmem:[#allocation5 + $0x778] sm:$0xff]  ;;  %v6750_v17 = vcombine.high %v181_v49, %v185_v29  ;;  %v6756_v43 = vcombine.low %v181_v49, %v185_v29 }
 0x114   :  { %2195 = vmatprep.subr.bf16.mxu0 %v6726_v7  ;;  %v6753_v45 = vcombine.high %v309_v12, %v313_v62  ;;  %v301_v7 = vld [vmem:[#allocation5 + $0x718] sm:$0xff]  ;;  %v6760_v56 = vcombine.low %v309_v12, %v313_v62 }
 0x115   :  { %2237 = vmatpush1.bf16.msra.mxu1 %v6724_v47  ;;  %7752 = vst [vmem:[#allocation214_spill] sm:$0xff] %v6750_v17  ;;  %v177_v47 = vld [vmem:[#allocation5 + $0x338] sm:$0xff]  ;;  %7754 = vst [vmem:[#allocation216_spill] sm:$0xff] %v6756_v43 }
 0x116   :  { %2238 = vmatprep.subr.bf16.mxu1 %v6729_v57  ;;  %7753 = vst [vmem:[#allocation215_spill] sm:$0xff] %v6753_v45  ;;  %v173_v57 = vld [vmem:[#allocation5 + $0x318] sm:$0xff]  ;;  %7755 = vst [vmem:[#allocation217_spill] sm:$0xff] %v6760_v56 }
 0x117   :  { %2196 = vmatpush2.bf16.msra.mxu0 %v6732_v51  ;;  %v305_v27 = vld [vmem:[#allocation5 + $0x738] sm:$0xff]  ;;  %v6762_v58 = vcombine.high %v173_v57, %v177_v47  ;;  %v6768_v29 = vcombine.low %v173_v57, %v177_v47 }
 0x118   :  { %2197 = vmatprep.subr.bf16.mxu0 %v6738_v33  ;;  %v6765_v63 = vcombine.high %v301_v7, %v305_v27  ;;  %v293_v33 = vld [vmem:[#allocation5 + $0x6d8] sm:$0xff]  ;;  %v6772_v62 = vcombine.low %v301_v7, %v305_v27 }
 0x119   :  { %2239 = vmatpush2.bf16.msra.mxu1 %v6736_v15  ;;  %7756 = vst [vmem:[#allocation218_spill] sm:$0xff] %v6762_v58  ;;  %v169_v15 = vld [vmem:[#allocation5 + $0x2f8] sm:$0xff]  ;;  %7758 = vst [vmem:[#allocation220_spill] sm:$0xff] %v6768_v29 }
 0x11a   :  { %2240 = vmatprep.subr.bf16.mxu1 %v6741_v54  ;;  %7757 = vst [vmem:[#allocation219_spill] sm:$0xff] %v6765_v63  ;;  %v165_v54 = vld [vmem:[#allocation5 + $0x2d8] sm:$0xff]  ;;  %7759 = vst [vmem:[#allocation221_spill] sm:$0xff] %v6772_v62 }
 0x11b   :  { %2198 = vmatpush2.bf16.msra.mxu0 %v6744_v1  ;;  %v297_v51 = vld [vmem:[#allocation5 + $0x6f8] sm:$0xff]  ;;  %v6774_v12 = vcombine.high %v165_v54, %v169_v15  ;;  %v6780_v47 = vcombine.low %v165_v54, %v169_v15 }
 0x11c   :  { %2199 = vmatprep.subr.bf16.mxu0 %v6750_v17  ;;  %v6777_v49 = vcombine.high %v293_v33, %v297_v51  ;;  %v285_v17 = vld [vmem:[#allocation5 + $0x698] sm:$0xff]  ;;  %v6784_v27 = vcombine.low %v293_v33, %v297_v51 }
 0x11d   :  { %2241 = vmatpush2.bf16.msra.mxu1 %v6748_v35  ;;  %7760 = vst [vmem:[#allocation222_spill] sm:$0xff] %v6774_v12  ;;  %v161_v35 = vld [vmem:[#allocation5 + $0x2b8] sm:$0xff]  ;;  %7762 = vst [vmem:[#allocation224_spill] sm:$0xff] %v6780_v47 }
 0x11e   :  { %2242 = vmatprep.subr.bf16.mxu1 %v6753_v45  ;;  %7761 = vst [vmem:[#allocation223_spill] sm:$0xff] %v6777_v49  ;;  %v157_v45 = vld [vmem:[#allocation5 + $0x298] sm:$0xff]  ;;  %7763 = vst [vmem:[#allocation225_spill] sm:$0xff] %v6784_v27 }
 0x11f   :  { %2200 = vmatpush2.bf16.msra.mxu0 %v6756_v43  ;;  %v289_v1 = vld [vmem:[#allocation5 + $0x6b8] sm:$0xff]  ;;  %v6786_v7 = vcombine.high %v157_v45, %v161_v35  ;;  %v6792_v15 = vcombine.low %v157_v45, %v161_v35 }
 0x120   :  { %2201 = vmatprep.subr.bf16.mxu0 %v6762_v58  ;;  %v6789_v57 = vcombine.high %v285_v17, %v289_v1  ;;  %v277_v58 = vld [vmem:[#allocation5 + $0x658] sm:$0xff]  ;;  %v6796_v51 = vcombine.low %v285_v17, %v289_v1 }
 0x121   :  { %2243 = vmatpush2.bf16.msra.mxu1 %v6760_v56  ;;  %7764 = vst [vmem:[#allocation226_spill] sm:$0xff] %v6786_v7  ;;  %v153_v56 = vld [vmem:[#allocation5 + $0x278] sm:$0xff]  ;;  %7766 = vst [vmem:[#allocation228_spill] sm:$0xff] %v6792_v15 }
 0x122   :  { %2244 = vmatprep.subr.bf16.mxu1 %v6765_v63  ;;  %7765 = vst [vmem:[#allocation227_spill] sm:$0xff] %v6789_v57  ;;  %v149_v63 = vld [vmem:[#allocation5 + $0x258] sm:$0xff]  ;;  %7767 = vst [vmem:[#allocation229_spill] sm:$0xff] %v6796_v51 }
 0x123   :  { %2202 = vmatpush2.bf16.msra.mxu0 %v6768_v29  ;;  %v281_v43 = vld [vmem:[#allocation5 + $0x678] sm:$0xff]  ;;  %v6798_v33 = vcombine.high %v149_v63, %v153_v56  ;;  %v6804_v35 = vcombine.low %v149_v63, %v153_v56 }
 0x124   :  { %2203 = vmatprep.subr.bf16.mxu0 %v6774_v12  ;;  %v6801_v54 = vcombine.high %v277_v58, %v281_v43  ;;  %v601_v12 = vlaneseq  ;;  %v269_v29 = vld [vmem:[#allocation5 + $0x618] sm:$0xff]  ;;  %v6808_v1 = vcombine.low %v277_v58, %v281_v43 }
 0x125   :  { %2245 = vmatpush2.bf16.msra.mxu1 %v6772_v62  ;;  %7768 = vst [vmem:[#allocation230_spill] sm:$0xff] %v6798_v33  ;;  %v145_v62 = vld [vmem:[#allocation5 + $0x238] sm:$0xff]  ;;  %7770 = vst [vmem:[#allocation232_spill] sm:$0xff] %v6804_v35 }
 0x126   :  { %2246 = vmatprep.subr.bf16.mxu1 %v6777_v49  ;;  %7769 = vst [vmem:[#allocation231_spill] sm:$0xff] %v6801_v54  ;;  %v141_v49 = vld [vmem:[#allocation5 + $0x218] sm:$0xff]  ;;  %7771 = vst [vmem:[#allocation233_spill] sm:$0xff] %v6808_v1 }
 0x127   :  { %2204 = vmatpush2.bf16.msra.mxu0 %v6780_v47  ;;  %v273_v37 = vld [vmem:[#allocation5 + $0x638] sm:$0xff]  ;;  %v6810_v17 = vcombine.high %v141_v49, %v145_v62 }
 0x128   :  { %2205 = vmatprep.subr.bf16.mxu0 %v6786_v7  ;;  %v6813_v45 = vcombine.high %v269_v29, %v273_v37  ;;  %v6822_v56 = vcombine.low %v269_v29, %v273_v37  ;;  %v5232_v43 = vld [vmem:[#allocation8 + $0xe4] ss:$16 sps:$4 sm:$0xff]  }
 0x129   :  { %2247 = vmatpush2.bf16.msra.mxu1 %v6784_v27  ;;  %7772 = vst [vmem:[#allocation234_spill] sm:$0xff] %v6810_v17  ;;  %v6818_v27 = vcombine.low %v141_v49, %v145_v62  ;;  %v5247_v63 = vld [vmem:[#allocation8 + $0x2e4] ss:$16 sps:$4 sm:$0xff]   ;;  %v5245_v49 = vld [vmem:[#allocation8 + $0x2e0] ss:$16 sps:$4 sm:$0xff]  }
 0x12a   :  { %2248 = vmatprep.subr.bf16.mxu1 %v6789_v57  ;;  %7773 = vst [vmem:[#allocation235_spill] sm:$0xff] %v6813_v45  ;;  %v6815_v57 = vshrl.u32 %v601_v12, 7  ;;  %7775 = vst [vmem:[#allocation237_spill] sm:$0xff] %v6822_v56  ;;  %v5230_v12 = vld [vmem:[#allocation8 + $0xe0] ss:$16 sps:$4 sm:$0xff]  }
 0x12b   :  { %2206 = vmatpush2.bf16.msra.mxu0 %v6792_v15  ;;  %7774 = vst [vmem:[#allocation236_spill] sm:$0xff] %v6818_v27  ;;  %v5235_v62 = vld [vmem:[#allocation8 + $0xc4] ss:$16 sps:$4 sm:$0xff]  }
 0x12c   :  { %2207 = vmatprep.subr.bf16.mxu0 %v6798_v33  ;;  %v7521_v58 = vsub.s32 1, %v6815_v57  ;;  %v5253_v29 = vld [vmem:[#allocation8 + $0x2c4] ss:$16 sps:$4 sm:$0xff]  }
 0x12d   :  { %2249 = vmatpush2.bf16.msra.mxu1 %v6796_v51  ;;  %v5238_v51 = vld [vmem:[#allocation8 + $0xa4] ss:$16 sps:$4 sm:$0xff]  }
 0x12e   :  { %2250 = vmatprep.subr.bf16.mxu1 %v6801_v54  ;;  %v6826_v54 = vld [vmem:[#allocation7] sm:$0xff]  ;;  %v5265_v7 = vld [vmem:[#allocation8 + $0x284] ss:$16 sps:$4 sm:$0xff]  }
 0x12f   :  { %2208 = vmatpush2.bf16.msra.mxu0 %v6804_v35  ;;  %v6833_v37 = vrot.slane %v6826_v54, %v7521_v58 }
 0x130   :  { %2209 = vmatprep.subr.bf16.mxu0 %v6810_v17 }
 0x131   :  { %2251 = vmatpush2.bf16.msra.mxu1 %v6808_v1  ;;  %7776 = vst [vmem:[#allocation238_spill] sm:$0xff] %v6833_v37 }
 0x132   :  { %2252 = vmatprep.subr.bf16.mxu1 %v6813_v45 }
 0x133   :  { %2210 = vmatpush2.bf16.msra.mxu0 %v6818_v27  ;;  %v5251_v27 = vld [vmem:[#allocation8 + $0x2c0] ss:$16 sps:$4 sm:$0xff]  }
 0x134   :  { %3590 = vmatprep.subr.bf16.mxu0 %v5232_v43 }
 0x135   :  { %2253 = vmatpush2.bf16.msra.mxu1 %v6822_v56  ;;  %v5233_v56 = vld [vmem:[#allocation8 + $0xc0] ss:$16 sps:$4 sm:$0xff]  }
 0x136   :  { %3633 = vmatprep.subr.bf16.mxu1 %v5247_v63  ;;  %v6835_v45 = vpop.f32.mrf.mxu0  ;;  %2212 = vmatmul.mubr.bf16.vlgmr.msra.gmra.mxu0 %v6235_v23  ;;  %v5259_v63 = vld [vmem:[#allocation8 + $0x2a4] ss:$16 sps:$4 sm:$0xff]   ;;  %v5236_v23 = vld [vmem:[#allocation8 + $0xa0] ss:$16 sps:$4 sm:$0xff]  }
 0x137   :  { %3591 = vmatpush1.bf16.msra.mxu0 %v5230_v12  ;;  %v5257_v12 = vld [vmem:[#allocation8 + $0x2a0] ss:$16 sps:$4 sm:$0xff]  }
 0x138   :  { %v6838_v1 = vpop.f32.mrf.mxu1  ;;  %2255 = vmatmul.mubr.bf16.vlgmr.msra.gmra.mxu1 %v6238_v39  ;;  %v1957_v43 = vpop.f32.mrf.mxu0  ;;  %3592 = vmatprep.subr.bf16.mxu0 %v5235_v62  ;;  %v5241_v39 = vld [vmem:[#allocation8 + $0x84] ss:$16 sps:$4 sm:$0xff]  }
 0x139   :  { %3634 = vmatpush1.bf16.msra.mxu1 %v5245_v49  ;;  %v1958_v58 = vadd.f32 %v1957_v43, %v6833_v37 }
 0x13a   :  { %v2000_v17 = vpop.f32.mrf.mxu1  ;;  %3635 = vmatprep.subr.bf16.mxu1 %v5253_v29  ;;  %v6842_v35 = vpop.f32.mrf.mxu0  ;;  %v5239_v29 = vld [vmem:[#allocation8 + $0x80] ss:$16 sps:$4 sm:$0xff]  }
 0x13b   :  { %3593 = vmatpush1.bf16.msra.mxu0 %v5233_v56  ;;  %v2001_v62 = vadd.f32 %v2000_v17, %v1958_v58  ;;  %v5269_v17 = vld [vmem:[#allocation8 + $0x260] ss:$16 sps:$4 sm:$0xff]   ;;  %v5277_v58 = vld [vmem:[#allocation8 + $0x244] ss:$16 sps:$4 sm:$0xff]  }
 0x13c   :  { %v6844_v33 = vpop.f32.mrf.mxu1  ;;  %v1961_v15 = vpop.f32.mrf.mxu0  ;;  %3594 = vmatprep.subr.bf16.mxu0 %v5238_v51  ;;  %v5271_v51 = vld [vmem:[#allocation8 + $0x264] ss:$16 sps:$4 sm:$0xff]  }
 0x13d   :  { %3636 = vmatpush1.bf16.msra.mxu1 %v5251_v27  ;;  %v1962_v49 = vadd.f32 %v1961_v15, %v6833_v37  ;;  %v2266_v56 = vmax.f32 %v2001_v62, 0.0  ;;  %v5242_v27 = vld [vmem:[#allocation8 + $0x60] ss:$16 sps:$4 sm:$0xff]   ;;  %v5250_v15 = vld [vmem:[#allocation8 + $0x44] ss:$16 sps:$4 sm:$0xff]  }
 0x13e   :  { %3637 = vmatprep.subr.bf16.mxu1 %v5259_v63  ;;  %v2004_v43 = vpop.f32.mrf.mxu1  ;;  %v5248_v63 = vld [vmem:[#allocation8 + $0x40] ss:$16 sps:$4 sm:$0xff]   ;;  %v5268_v62 = vld [vmem:[#allocation8 + $0x1e4] ss:$16 sps:$4 sm:$0xff]  }
 0x13f   :  { %v2005_v47 = vadd.f32 %v2004_v43, %v1962_v49  ;;  %3595 = vmatpush1.bf16.msra.mxu0 %v5236_v23  ;;  %v5256_v23 = vld [vmem:[#allocation8 + $0x24] ss:$16 sps:$4 sm:$0xff]   ;;  %v5287_v49 = vld [vmem:[#allocation8 + $0x200] ss:$16 sps:$4 sm:$0xff]  }
 0x140   :  { %3596 = vmatprep.subr.bf16.mxu0 %v5241_v39  ;;  %v5262_v39 = vld [vmem:[#allocation8 + $0x4] ss:$16 sps:$4 sm:$0xff]  }
 0x141   :  { %3638 = vmatpush1.bf16.msra.mxu1 %v5257_v12  ;;  %v2274_v19 = vmax.f32 %v2005_v47, 0.0  ;;  %v5275_v47 = vld [vmem:[#allocation8 + $0x240] ss:$16 sps:$4 sm:$0xff]   ;;  %v5295_v43 = vld [vmem:[#allocation8 + $0x3e4] ss:$16 sps:$4 sm:$0xff]  }
 0x142   :  { %3639 = vmatprep.subr.bf16.mxu1 %v5265_v7  ;;  %v5283_v7 = vld [vmem:[#allocation8 + $0x224] ss:$16 sps:$4 sm:$0xff]   ;;  %v5260_v12 = vld [vmem:[#allocation8] ss:$16 sps:$4 sm:$0xff]  }
 0x143   :  { %v6847_v41 = vpack.c.bf16 %v2274_v19, %v2266_v56  ;;  %3597 = vmatpush1.bf16.msra.mxu0 %v5239_v29  ;;  %v5254_v19 = vld [vmem:[#allocation8 + $0x20] ss:$16 sps:$4 sm:$0xff]   ;;  %v5274_v56 = vld [vmem:[#allocation8 + $0x1c4] ss:$16 sps:$4 sm:$0xff]  }
 0x144   :  { %3598 = vmatprep.subr.bf16.mxu0 %v5244_v25  ;;  %v5281_v25 = vld [vmem:[#allocation8 + $0x220] ss:$16 sps:$4 sm:$0xff]  }
 0x145   :  { %3640 = vmatpush1.bf16.msra.mxu1 %v5263_v21  ;;  %3622 = vmatprep.mubr.bf16.mxu0 %v6847_v41  ;;  %v5289_v21 = vld [vmem:[#allocation8 + $0x204] ss:$16 sps:$4 sm:$0xff]   ;;  %v5266_v29 = vld [vmem:[#allocation8 + $0x1e0] ss:$16 sps:$4 sm:$0xff]  }
 0x146   :  { %3641 = vmatprep.subr.bf16.mxu1 %v5271_v51  ;;  %v5293_v51 = vld [vmem:[#allocation8 + $0x3e0] ss:$16 sps:$4 sm:$0xff]  }
 0x147   :  { %3599 = vmatpush1.bf16.msra.mxu0 %v5242_v27  ;;  %v5301_v27 = vld [vmem:[#allocation8 + $0x3c4] ss:$16 sps:$4 sm:$0xff]  }
 0x148   :  { %3600 = vmatprep.subr.bf16.mxu0 %v5250_v15  ;;  %v5272_v15 = vld [vmem:[#allocation8 + $0x1c0] ss:$16 sps:$4 sm:$0xff]  }
 0x149   :  { %3642 = vmatpush1.bf16.msra.mxu1 %v5269_v17  ;;  %v5280_v17 = vld [vmem:[#allocation8 + $0x1a4] ss:$16 sps:$4 sm:$0xff]  }
 0x14a   :  { %3643 = vmatprep.subr.bf16.mxu1 %v5277_v58  ;;  %v5299_v58 = vld [vmem:[#allocation8 + $0x3c0] ss:$16 sps:$4 sm:$0xff]  }
 0x14b   :  { %3601 = vmatpush1.bf16.msra.mxu0 %v5248_v63  ;;  %v5307_v63 = vld [vmem:[#allocation8 + $0x3a4] ss:$16 sps:$4 sm:$0xff]  }
 0x14c   :  { %3602 = vmatprep.subr.bf16.mxu0 %v5256_v23  ;;  %v5278_v23 = vld [vmem:[#allocation8 + $0x1a0] ss:$16 sps:$4 sm:$0xff]  }
 0x14d   :  { %3644 = vmatpush1.bf16.msra.mxu1 %v5275_v47  ;;  %v5286_v47 = vld [vmem:[#allocation8 + $0x184] ss:$16 sps:$4 sm:$0xff]  }
 0x14e   :  { %3645 = vmatprep.subr.bf16.mxu1 %v5283_v7  ;;  %v5305_v7 = vld [vmem:[#allocation8 + $0x3a0] ss:$16 sps:$4 sm:$0xff]  }
 0x14f   :  { %3603 = vmatpush1.bf16.msra.mxu0 %v5254_v19  ;;  %v5313_v19 = vld [vmem:[#allocation8 + $0x384] ss:$16 sps:$4 sm:$0xff]  }
 0x150   :  { %3604 = vmatprep.subr.bf16.mxu0 %v5262_v39  ;;  %v5284_v39 = vld [vmem:[#allocation8 + $0x180] ss:$16 sps:$4 sm:$0xff]  }
 0x151   :  { %3646 = vmatpush1.bf16.msra.mxu1 %v5281_v25  ;;  %v5292_v25 = vld [vmem:[#allocation8 + $0x164] ss:$16 sps:$4 sm:$0xff]  }
 0x152   :  { %3647 = vmatprep.subr.bf16.mxu1 %v5289_v21  ;;  %v5311_v21 = vld [vmem:[#allocation8 + $0x380] ss:$16 sps:$4 sm:$0xff]  }
 0x153   :  { %3605 = vmatpush1.bf16.msra.mxu0 %v5260_v12  ;;  %v5316_v12 = vld [vmem:[#allocation8 + $0x364] ss:$16 sps:$4 sm:$0xff]  }
 0x154   :  { %3606 = vmatprep.subr.bf16.mxu0 %v5268_v62  ;;  %v7534_v62 = vsub.s32 0, %v6815_v57 }
 0x155   :  { %3648 = vmatpush1.bf16.msra.mxu1 %v5287_v49  ;;  %v5290_v49 = vld [vmem:[#allocation8 + $0x160] ss:$16 sps:$4 sm:$0xff]  }
 0x156   :  { %3649 = vmatprep.subr.bf16.mxu1 %v5295_v43  ;;  %v5298_v43 = vld [vmem:[#allocation8 + $0x144] ss:$16 sps:$4 sm:$0xff]  }
 0x157   :  { %3607 = vmatpush2.bf16.msra.mxu0 %v5266_v29  ;;  %v5314_v29 = vld [vmem:[#allocation8 + $0x360] ss:$16 sps:$4 sm:$0xff]  }
 0x158   :  { %3608 = vmatprep.subr.bf16.mxu0 %v5274_v56  ;;  %v5319_v56 = vld [vmem:[#allocation8 + $0x344] ss:$16 sps:$4 sm:$0xff]  }
 0x159   :  { %3650 = vmatpush2.bf16.msra.mxu1 %v5293_v51  ;;  %v6854_v51 = vrot.slane %v6826_v54, %v7534_v62 }
 0x15a   :  { %3651 = vmatprep.subr.bf16.mxu1 %v5301_v27  ;;  %v5296_v27 = vld [vmem:[#allocation8 + $0x140] ss:$16 sps:$4 sm:$0xff]  }
 0x15b   :  { %3609 = vmatpush2.bf16.msra.mxu0 %v5272_v15  ;;  %7777 = vst [vmem:[#allocation239_spill] sm:$0xff] %v6854_v51  ;;  %v1960_v15 = vadd.f32 %v6842_v35, %v6854_v51 }
 0x15c   :  { %3610 = vmatprep.subr.bf16.mxu0 %v5280_v17  ;;  %v5304_v17 = vld [vmem:[#allocation8 + $0x124] ss:$16 sps:$4 sm:$0xff]  }
 0x15d   :  { %3652 = vmatpush2.bf16.msra.mxu1 %v5299_v58  ;;  %v5317_v58 = vld [vmem:[#allocation8 + $0x340] ss:$16 sps:$4 sm:$0xff]  }
 0x15e   :  { %3653 = vmatprep.subr.bf16.mxu1 %v5307_v63  ;;  %v5322_v63 = vld [vmem:[#allocation8 + $0x324] ss:$16 sps:$4 sm:$0xff]  }
 0x15f   :  { %3611 = vmatpush2.bf16.msra.mxu0 %v5278_v23  ;;  %v1956_v23 = vadd.f32 %v6835_v45, %v6854_v51  ;;  %v7532_v45 = vsub.s32 3, %v6815_v57 }
 0x160   :  { %3612 = vmatprep.subr.bf16.mxu0 %v5286_v47  ;;  %v5302_v47 = vld [vmem:[#allocation8 + $0x120] ss:$16 sps:$4 sm:$0xff]  }
 0x161   :  { %3654 = vmatpush2.bf16.msra.mxu1 %v5305_v7  ;;  %v2003_v7 = vadd.f32 %v6844_v33, %v1960_v15  ;;  %v1999_v35 = vadd.f32 %v6838_v1, %v1956_v23  ;;  %v5331_v1 = vld [vmem:[#allocation8 + $0x4c4] ss:$16 sps:$4 sm:$0xff]  }
 0x162   :  { %3655 = vmatprep.subr.bf16.mxu1 %v5313_v19  ;;  %v5310_v19 = vld [vmem:[#allocation8 + $0x104] ss:$16 sps:$4 sm:$0xff]  }
 0x163   :  { %3613 = vmatpush2.bf16.msra.mxu0 %v5284_v39  ;;  %v5320_v39 = vld [vmem:[#allocation8 + $0x320] ss:$16 sps:$4 sm:$0xff]   ;;  %v2265_v33 = vmax.f32 %v1999_v35, 0.0 }
 0x164   :  { %3614 = vmatprep.subr.bf16.mxu0 %v5292_v25  ;;  %v5325_v25 = vld [vmem:[#allocation8 + $0x304] ss:$16 sps:$4 sm:$0xff]  }
 0x165   :  { %3656 = vmatpush2.bf16.msra.mxu1 %v5311_v21  ;;  %v5308_v21 = vld [vmem:[#allocation8 + $0x100] ss:$16 sps:$4 sm:$0xff]  }
 0x166   :  { %3657 = vmatprep.subr.bf16.mxu1 %v5316_v12  ;;  %v2273_v12 = vmax.f32 %v2003_v7, 0.0 }
 0x167   :  { %3615 = vmatpush2.bf16.msra.mxu0 %v5290_v49  ;;  %v5323_v49 = vld [vmem:[#allocation8 + $0x300] ss:$16 sps:$4 sm:$0xff]  }
 0x168   :  { %3616 = vmatprep.subr.bf16.mxu0 %v5298_v43  ;;  %v5328_v43 = vld [vmem:[#allocation8 + $0x4e4] ss:$16 sps:$4 sm:$0xff]   ;;  %v6864_v15 = vpack.c.bf16 %v2273_v12, %v2265_v33 }
 0x169   :  { %3658 = vmatpush2.bf16.msra.mxu1 %v5314_v29  ;;  %v5376_v29 = vld [vmem:[#allocation8 + $0x6e4] ss:$16 sps:$4 sm:$0xff]  }
 0x16a   :  { %3659 = vmatprep.subr.bf16.mxu1 %v5319_v56  ;;  %v7533_v56 = vsub.s32 2, %v6815_v57  ;;  %v5337_v33 = vld [vmem:[#allocation8 + $0x484] ss:$16 sps:$4 sm:$0xff]  }
 0x16b   :  { %3617 = vmatpush2.bf16.msra.mxu0 %v5296_v27  ;;  %v5326_v27 = vld [vmem:[#allocation8 + $0x4e0] ss:$16 sps:$4 sm:$0xff]  }
 0x16c   :  { %3618 = vmatprep.subr.bf16.mxu0 %v5304_v17  ;;  %v6869_v17 = vrot.slane %v6826_v54, %v7532_v45 }
 0x16d   :  { %3660 = vmatpush2.bf16.msra.mxu1 %v5317_v58  ;;  %v6874_v58 = vrot.slane %v6826_v54, %v7533_v56 }
 0x16e   :  { %3661 = vmatprep.subr.bf16.mxu1 %v5322_v63  ;;  %7778 = vst [vmem:[#allocation240_spill] sm:$0xff] %v6869_v17 }
 0x16f   :  { %3619 = vmatpush2.bf16.msra.mxu0 %v5302_v47  ;;  %7779 = vst [vmem:[#allocation241_spill] sm:$0xff] %v6874_v58  ;;  %v5329_v47 = vld [vmem:[#allocation8 + $0x4c0] ss:$16 sps:$4 sm:$0xff]  }
 0x170   :  { %3620 = vmatprep.subr.bf16.mxu0 %v5310_v19  ;;  %v5334_v19 = vld [vmem:[#allocation8 + $0x4a4] ss:$16 sps:$4 sm:$0xff]  }
 0x171   :  { %3662 = vmatpush2.bf16.msra.mxu1 %v5320_v39 }
 0x172   :  { %3663 = vmatprep.subr.bf16.mxu1 %v5325_v25 }
 0x173   :  { %3621 = vmatpush2.bf16.msra.mxu0 %v5308_v21 }
 0x174   :  { %3676 = vmatprep.subr.bf16.mxu0 %v5328_v43  ;;  %v5332_v43 = vld [vmem:[#allocation8 + $0x4a0] ss:$16 sps:$4 sm:$0xff]  }
 0x175   :  { %3664 = vmatpush2.bf16.msra.mxu1 %v5323_v49 }
 0x176   :  { %3719 = vmatprep.subr.bf16.mxu1 %v5376_v29  ;;  %v2041_v63 = vpop.f32.mrf.mxu0  ;;  %3623 = vmatmul.mubr.bf16.vlgmr.msra.gmra.mxu0 %v6864_v15 }
 0x177   :  { %3677 = vmatpush1.bf16.msra.mxu0 %v5326_v27  ;;  %v2042_v35 = vadd.f32 %v2041_v63, %v6874_v58  ;;  %v5340_v63 = vld [vmem:[#allocation8 + $0x464] ss:$16 sps:$4 sm:$0xff]  }
 0x178   :  { %v2084_v23 = vpop.f32.mrf.mxu1  ;;  %v2043_v7 = vpop.f32.mrf.mxu0  ;;  %3678 = vmatprep.subr.bf16.mxu0 %v5331_v1 }
 0x179   :  { %v2044_v39 = vadd.f32 %v2043_v7, %v6869_v17  ;;  %v2085_v1 = vadd.f32 %v2084_v23, %v2042_v35  ;;  %v5335_v7 = vld [vmem:[#allocation8 + $0x480] ss:$16 sps:$4 sm:$0xff]   ;;  %v5382_v23 = vld [vmem:[#allocation8 + $0x6c4] ss:$16 sps:$4 sm:$0xff]  }
 0x17a   :  { %v2086_v25 = vpop.f32.mrf.mxu1  ;;  %v2045_v21 = vpop.f32.mrf.mxu0  ;;  %v5394_v35 = vld [vmem:[#allocation8 + $0x684] ss:$16 sps:$4 sm:$0xff]  }
 0x17b   :  { %v2046_v12 = vadd.f32 %v2045_v21, %v6874_v58  ;;  %3679 = vmatpush1.bf16.msra.mxu0 %v5329_v47  ;;  %v2087_v45 = vadd.f32 %v2086_v25, %v2044_v39  ;;  %v2267_v58 = vmax.f32 %v2085_v1, 0.0  ;;  %v5343_v25 = vld [vmem:[#allocation8 + $0x444] ss:$16 sps:$4 sm:$0xff]  }
 0x17c   :  { %v2088_v49 = vpop.f32.mrf.mxu1  ;;  %v2047_v29 = vpop.f32.mrf.mxu0  ;;  %3680 = vmatprep.subr.bf16.mxu0 %v5334_v19  ;;  %v5338_v19 = vld [vmem:[#allocation8 + $0x460] ss:$16 sps:$4 sm:$0xff]   ;;  %v5406_v1 = vld [vmem:[#allocation8 + $0x644] ss:$16 sps:$4 sm:$0xff]  }
 0x17d   :  { %v2089_v27 = vadd.f32 %v2088_v49, %v2046_v12  ;;  %v2048_v56 = vadd.f32 %v2047_v29, %v6869_v17  ;;  %v2268_v31 = vmax.f32 %v2087_v45, 0.0  ;;  %v5380_v45 = vld [vmem:[#allocation8 + $0x6c0] ss:$16 sps:$4 sm:$0xff]  }
 0x17e   :  { %v2090_v62 = vpop.f32.mrf.mxu1  ;;  %v5347_v12 = vld [vmem:[#allocation8 + $0x400] ss:$16 sps:$4 sm:$0xff]  }
 0x17f   :  { %v2091_v51 = vadd.f32 %v2090_v62, %v2048_v56  ;;  %3681 = vmatpush1.bf16.msra.mxu0 %v5332_v43  ;;  %v2275_v37 = vmax.f32 %v2089_v27, 0.0  ;;  %v5341_v62 = vld [vmem:[#allocation8 + $0x440] ss:$16 sps:$4 sm:$0xff]   ;;  %v5352_v43 = vld [vmem:[#allocation8 + $0x5e4] ss:$16 sps:$4 sm:$0xff]  }
 0x180   :  { %3682 = vmatprep.subr.bf16.mxu0 %v5337_v33  ;;  %v5344_v56 = vld [vmem:[#allocation8 + $0x420] ss:$16 sps:$4 sm:$0xff]   ;;  %v5355_v27 = vld [vmem:[#allocation8 + $0x5c4] ss:$16 sps:$4 sm:$0xff]  }
 0x181   :  { %v2276_v21 = vmax.f32 %v2091_v51, 0.0  ;;  %v6883_v39 = vpack.c.bf16 %v2275_v37, %v2267_v58  ;;  %v5346_v51 = vld [vmem:[#allocation8 + $0x424] ss:$16 sps:$4 sm:$0xff]   ;;  %v5386_v37 = vld [vmem:[#allocation8 + $0x6a0] ss:$16 sps:$4 sm:$0xff]  }
 0x182   :  { %v5349_v58 = vld [vmem:[#allocation8 + $0x404] ss:$16 sps:$4 sm:$0xff]   ;;  %v5392_v49 = vld [vmem:[#allocation8 + $0x680] ss:$16 sps:$4 sm:$0xff]  }
 0x183   :  { %v6881_v47 = vpack.c.bf16 %v2276_v21, %v2268_v31  ;;  %3683 = vmatpush1.bf16.msra.mxu0 %v5335_v7  ;;  %v5388_v31 = vld [vmem:[#allocation8 + $0x6a4] ss:$16 sps:$4 sm:$0xff]   ;;  %v5350_v29 = vld [vmem:[#allocation8 + $0x5e0] ss:$16 sps:$4 sm:$0xff]  }
 0x184   :  { %3684 = vmatprep.subr.bf16.mxu0 %v5340_v63  ;;  %v5398_v33 = vld [vmem:[#allocation8 + $0x660] ss:$16 sps:$4 sm:$0xff]   ;;  %v5358_v21 = vld [vmem:[#allocation8 + $0x5a4] ss:$16 sps:$4 sm:$0xff]  }
 0x185   :  { %3665 = vmatprep.mubr.bf16.mxu1 %v6881_v47  ;;  %v5353_v7 = vld [vmem:[#allocation8 + $0x5c0] ss:$16 sps:$4 sm:$0xff]  }
 0x186   :  { %3666 = vmatmul.mubr.bf16.vlgmr.msra.gmra.mxu1 %v6883_v39  ;;  %v5404_v63 = vld [vmem:[#allocation8 + $0x640] ss:$16 sps:$4 sm:$0xff]  }
 0x187   :  { %3685 = vmatpush1.bf16.msra.mxu0 %v5338_v19  ;;  %3720 = vmatpush1.bf16.msra.mxu1 %v5374_v14  ;;  %v5400_v14 = vld [vmem:[#allocation8 + $0x664] ss:$16 sps:$4 sm:$0xff]  }
 0x188   :  { %3686 = vmatprep.subr.bf16.mxu0 %v5343_v25  ;;  %3721 = vmatprep.subr.bf16.mxu1 %v5382_v23  ;;  %v5412_v19 = vld [vmem:[#allocation8 + $0x624] ss:$16 sps:$4 sm:$0xff]   ;;  %v5356_v25 = vld [vmem:[#allocation8 + $0x5a0] ss:$16 sps:$4 sm:$0xff]  }
 0x189   :  { %v5410_v23 = vld [vmem:[#allocation8 + $0x620] ss:$16 sps:$4 sm:$0xff]  }
 0x18b   :  { %3687 = vmatpush1.bf16.msra.mxu0 %v5341_v62  ;;  %3722 = vmatpush1.bf16.msra.mxu1 %v5380_v45  ;;  %v5361_v62 = vld [vmem:[#allocation8 + $0x584] ss:$16 sps:$4 sm:$0xff]  }
 0x18c   :  { %3688 = vmatprep.subr.bf16.mxu0 %v5346_v51  ;;  %3723 = vmatprep.subr.bf16.mxu1 %v5388_v31  ;;  %v5418_v45 = vld [vmem:[#allocation8 + $0x604] ss:$16 sps:$4 sm:$0xff]   ;;  %v5359_v51 = vld [vmem:[#allocation8 + $0x580] ss:$16 sps:$4 sm:$0xff]  }
 0x18d   :  { %v5416_v31 = vld [vmem:[#allocation8 + $0x600] ss:$16 sps:$4 sm:$0xff]  }
 0x18f   :  { %3689 = vmatpush1.bf16.msra.mxu0 %v5344_v56  ;;  %3724 = vmatpush1.bf16.msra.mxu1 %v5386_v37  ;;  %v5364_v56 = vld [vmem:[#allocation8 + $0x564] ss:$16 sps:$4 sm:$0xff]  }
 0x190   :  { %3690 = vmatprep.subr.bf16.mxu0 %v5349_v58  ;;  %3725 = vmatprep.subr.bf16.mxu1 %v5394_v35  ;;  %v5424_v37 = vld [vmem:[#allocation8 + $0x7e4] ss:$16 sps:$4 sm:$0xff]   ;;  %v5362_v58 = vld [vmem:[#allocation8 + $0x560] ss:$16 sps:$4 sm:$0xff]  }
 0x191   :  { %v5422_v35 = vld [vmem:[#allocation8 + $0x7e0] ss:$16 sps:$4 sm:$0xff]  }
 0x193   :  { %3691 = vmatpush1.bf16.msra.mxu0 %v5347_v12  ;;  %3726 = vmatpush1.bf16.msra.mxu1 %v5392_v49  ;;  %v5367_v12 = vld [vmem:[#allocation8 + $0x544] ss:$16 sps:$4 sm:$0xff]  }
 0x194   :  { %3692 = vmatprep.subr.bf16.mxu0 %v5352_v43  ;;  %3727 = vmatprep.subr.bf16.mxu1 %v5400_v14  ;;  %v5430_v49 = vld [vmem:[#allocation8 + $0x7c4] ss:$16 sps:$4 sm:$0xff]   ;;  %v5365_v43 = vld [vmem:[#allocation8 + $0x540] ss:$16 sps:$4 sm:$0xff]  }
 0x195   :  { %v5428_v14 = vld [vmem:[#allocation8 + $0x7c0] ss:$16 sps:$4 sm:$0xff]  }
 0x197   :  { %3693 = vmatpush2.bf16.msra.mxu0 %v5350_v29  ;;  %3728 = vmatpush1.bf16.msra.mxu1 %v5398_v33  ;;  %v5370_v29 = vld [vmem:[#allocation8 + $0x524] ss:$16 sps:$4 sm:$0xff]  }
 0x198   :  { %3694 = vmatprep.subr.bf16.mxu0 %v5355_v27  ;;  %3729 = vmatprep.subr.bf16.mxu1 %v5406_v1  ;;  %v5436_v33 = vld [vmem:[#allocation8 + $0x7a4] ss:$16 sps:$4 sm:$0xff]   ;;  %v5368_v27 = vld [vmem:[#allocation8 + $0x520] ss:$16 sps:$4 sm:$0xff]  }
 0x199   :  { %v5434_v1 = vld [vmem:[#allocation8 + $0x7a0] ss:$16 sps:$4 sm:$0xff]  }
 0x19b   :  { %3695 = vmatpush2.bf16.msra.mxu0 %v5353_v7  ;;  %3730 = vmatpush1.bf16.msra.mxu1 %v5404_v63  ;;  %v5373_v7 = vld [vmem:[#allocation8 + $0x504] ss:$16 sps:$4 sm:$0xff]  }
 0x19c   :  { %3696 = vmatprep.subr.bf16.mxu0 %v5358_v21  ;;  %3731 = vmatprep.subr.bf16.mxu1 %v5412_v19  ;;  %v5442_v63 = vld [vmem:[#allocation8 + $0x784] ss:$16 sps:$4 sm:$0xff]   ;;  %v5371_v21 = vld [vmem:[#allocation8 + $0x500] ss:$16 sps:$4 sm:$0xff]  }
 0x19d   :  { %v5440_v19 = vld [vmem:[#allocation8 + $0x780] ss:$16 sps:$4 sm:$0xff]  }
 0x19f   :  { %3697 = vmatpush2.bf16.msra.mxu0 %v5356_v25  ;;  %3732 = vmatpush1.bf16.msra.mxu1 %v5410_v23  ;;  %v5379_v25 = vld [vmem:[#allocation8 + $0xec] ss:$16 sps:$4 sm:$0xff]   ;;  %v5448_v23 = vld [vmem:[#allocation8 + $0x764] ss:$16 sps:$4 sm:$0xff]  }
 0x1a0   :  { %3698 = vmatprep.subr.bf16.mxu0 %v5361_v62  ;;  %3733 = vmatprep.subr.bf16.mxu1 %v5418_v45  ;;  %v623_v62 = vsub.s32 5, %v6815_v57  ;;  %v619_v45 = vsub.s32 4, %v6815_v57 }
 0x1a3   :  { %3699 = vmatpush2.bf16.msra.mxu0 %v5359_v51  ;;  %3734 = vmatpush1.bf16.msra.mxu1 %v5416_v31  ;;  %v5446_v51 = vld [vmem:[#allocation8 + $0x760] ss:$16 sps:$4 sm:$0xff]   ;;  %v5454_v31 = vld [vmem:[#allocation8 + $0x744] ss:$16 sps:$4 sm:$0xff]  }
 0x1a4   :  { %3700 = vmatprep.subr.bf16.mxu0 %v5364_v56  ;;  %3735 = vmatprep.subr.bf16.mxu1 %v5424_v37  ;;  %v6890_v56 = vrot.slane %v6826_v54, %v623_v62  ;;  %v6893_v37 = vrot.slane %v6826_v54, %v619_v45 }
 0x1a6   :  { %7780 = vst [vmem:[#allocation242_spill] sm:$0xff] %v6890_v56  ;;  %7781 = vst [vmem:[#allocation243_spill] sm:$0xff] %v6893_v37 }
 0x1a7   :  { %3701 = vmatpush2.bf16.msra.mxu0 %v5362_v58  ;;  %3736 = vmatpush2.bf16.msra.mxu1 %v5422_v35 }
 0x1a8   :  { %3702 = vmatprep.subr.bf16.mxu0 %v5367_v12  ;;  %3737 = vmatprep.subr.bf16.mxu1 %v5430_v49  ;;  %v5452_v12 = vld [vmem:[#allocation8 + $0x740] ss:$16 sps:$4 sm:$0xff]  }
 0x1ab   :  { %3703 = vmatpush2.bf16.msra.mxu0 %v5365_v43  ;;  %3738 = vmatpush2.bf16.msra.mxu1 %v5428_v14  ;;  %v5460_v43 = vld [vmem:[#allocation8 + $0x724] ss:$16 sps:$4 sm:$0xff]  }
 0x1ac   :  { %3704 = vmatprep.subr.bf16.mxu0 %v5370_v29  ;;  %3739 = vmatprep.subr.bf16.mxu1 %v5436_v33 }
 0x1af   :  { %3705 = vmatpush2.bf16.msra.mxu0 %v5368_v27  ;;  %3740 = vmatpush2.bf16.msra.mxu1 %v5434_v1 }
 0x1b0   :  { %3706 = vmatprep.subr.bf16.mxu0 %v5373_v7  ;;  %3741 = vmatprep.subr.bf16.mxu1 %v5442_v63  ;;  %v5458_v63 = vld [vmem:[#allocation8 + $0x720] ss:$16 sps:$4 sm:$0xff]  }
 0x1b3   :  { %3707 = vmatpush2.bf16.msra.mxu0 %v5371_v21  ;;  %3742 = vmatpush2.bf16.msra.mxu1 %v5440_v19  ;;  %v5466_v19 = vld [vmem:[#allocation8 + $0x704] ss:$16 sps:$4 sm:$0xff]  }
 0x1b4   :  { %3762 = vmatprep.subr.bf16.mxu0 %v5379_v25  ;;  %3743 = vmatprep.subr.bf16.mxu1 %v5448_v23 }
 0x1b6   :  { %v2127_v58 = vpop.f32.mrf.mxu0 }
 0x1b7   :  { %3744 = vmatpush2.bf16.msra.mxu1 %v5446_v51  ;;  %v2128_v33 = vadd.f32 %v2127_v58, %v6893_v37  ;;  %v5472_v58 = vld [vmem:[#allocation8 + $0x2ec] ss:$16 sps:$4 sm:$0xff]  }
 0x1b8   :  { %v2170_v35 = vpop.f32.mrf.mxu1  ;;  %v2129_v49 = vpop.f32.mrf.mxu0  ;;  %3745 = vmatprep.subr.bf16.mxu1 %v5454_v31 }
 0x1b9   :  { %v2130_v14 = vadd.f32 %v2129_v49, %v6890_v56  ;;  %v2171_v45 = vadd.f32 %v2170_v35, %v2128_v33  ;;  %v5464_v49 = vld [vmem:[#allocation8 + $0x700] ss:$16 sps:$4 sm:$0xff]   ;;  %v5383_v35 = vld [vmem:[#allocation8 + $0xc8] ss:$16 sps:$4 sm:$0xff]  }
 0x1ba   :  { %v2172_v29 = vpop.f32.mrf.mxu1  ;;  %v2131_v27 = vpop.f32.mrf.mxu0  ;;  %v5389_v33 = vld [vmem:[#allocation8 + $0xa8] ss:$16 sps:$4 sm:$0xff]  }
 0x1bb   :  { %v2132_v1 = vadd.f32 %v2131_v27, %v6893_v37  ;;  %3746 = vmatpush2.bf16.msra.mxu1 %v5452_v12  ;;  %v2173_v25 = vadd.f32 %v2172_v29, %v2130_v14  ;;  %v2269_v37 = vmax.f32 %v2171_v45, 0.0  ;;  %v5385_v14 = vld [vmem:[#allocation8 + $0xcc] ss:$16 sps:$4 sm:$0xff]   ;;  %v5431_v45 = vld [vmem:[#allocation8 + $0x1c8] ss:$16 sps:$4 sm:$0xff]  }
 0x1bc   :  { %v2174_v7 = vpop.f32.mrf.mxu1  ;;  %v2133_v21 = vpop.f32.mrf.mxu0  ;;  %3747 = vmatprep.subr.bf16.mxu1 %v5460_v43  ;;  %v5391_v29 = vld [vmem:[#allocation8 + $0xac] ss:$16 sps:$4 sm:$0xff]  }
 0x1bd   :  { %v2175_v23 = vadd.f32 %v2174_v7, %v2132_v1  ;;  %v2134_v62 = vadd.f32 %v2133_v21, %v6890_v56  ;;  %v2270_v9 = vmax.f32 %v2173_v25, 0.0  ;;  %v5395_v1 = vld [vmem:[#allocation8 + $0x88] ss:$16 sps:$4 sm:$0xff]   ;;  %v5409_v7 = vld [vmem:[#allocation8 + $0x4c] ss:$16 sps:$4 sm:$0xff]  }
 0x1be   :  { %v2176_v51 = vpop.f32.mrf.mxu1  ;;  %v5421_v21 = vld [vmem:[#allocation8 + $0xc] ss:$16 sps:$4 sm:$0xff]   ;;  %v5473_v56 = vld [vmem:[#allocation8 + $0x4e8] ss:$16 sps:$4 sm:$0xff]  }
 0x1bf   :  { %v2177_v31 = vadd.f32 %v2176_v51, %v2134_v62  ;;  %3748 = vmatpush2.bf16.msra.mxu1 %v5458_v63  ;;  %v2277_v17 = vmax.f32 %v2175_v23, 0.0  ;;  %v5407_v63 = vld [vmem:[#allocation8 + $0x48] ss:$16 sps:$4 sm:$0xff]   ;;  %v5427_v25 = vld [vmem:[#allocation8 + $0x1ec] ss:$16 sps:$4 sm:$0xff]  }
 0x1c0   :  { %3749 = vmatprep.subr.bf16.mxu1 %v5466_v19  ;;  %v5419_v19 = vld [vmem:[#allocation8 + $0x8] ss:$16 sps:$4 sm:$0xff]   ;;  %v5433_v62 = vld [vmem:[#allocation8 + $0x1cc] ss:$16 sps:$4 sm:$0xff]  }
 0x1c1   :  { %v2278_v27 = vmax.f32 %v2177_v31, 0.0  ;;  %v6901_v43 = vpack.c.bf16 %v2277_v17, %v2269_v37  ;;  %v5403_v17 = vld [vmem:[#allocation8 + $0x6c] ss:$16 sps:$4 sm:$0xff]   ;;  %v5401_v37 = vld [vmem:[#allocation8 + $0x68] ss:$16 sps:$4 sm:$0xff]  }
 0x1c2   :  { %v5425_v23 = vld [vmem:[#allocation8 + $0x1e8] ss:$16 sps:$4 sm:$0xff]   ;;  %v5439_v51 = vld [vmem:[#allocation8 + $0x1ac] ss:$16 sps:$4 sm:$0xff]  }
 0x1c3   :  { %v6899_v12 = vpack.c.bf16 %v2278_v27, %v2270_v9  ;;  %3750 = vmatpush2.bf16.msra.mxu1 %v5464_v49  ;;  %v5397_v9 = vld [vmem:[#allocation8 + $0x8c] ss:$16 sps:$4 sm:$0xff]   ;;  %v5437_v31 = vld [vmem:[#allocation8 + $0x1a8] ss:$16 sps:$4 sm:$0xff]  }
 0x1c4   :  { %3805 = vmatprep.subr.bf16.mxu1 %v5472_v58  ;;  %v5445_v49 = vld [vmem:[#allocation8 + $0x18c] ss:$16 sps:$4 sm:$0xff]   ;;  %v5443_v58 = vld [vmem:[#allocation8 + $0x188] ss:$16 sps:$4 sm:$0xff]  }
 0x1c5   :  { %3708 = vmatprep.mubr.bf16.mxu0 %v6899_v12  ;;  %v5451_v27 = vld [vmem:[#allocation8 + $0x16c] ss:$16 sps:$4 sm:$0xff]  }
 0x1c6   :  { %3709 = vmatmul.mubr.bf16.vlgmr.msra.gmra.mxu0 %v6901_v43 }
 0x1c7   :  { %3763 = vmatpush1.bf16.msra.mxu0 %v5377_v4  ;;  %3794 = vmatprep.mubr.bf16.mxu0 %v6847_v41  ;;  %v5415_v4 = vld [vmem:[#allocation8 + $0x2c] ss:$16 sps:$4 sm:$0xff]   ;;  %v5413_v41 = vld [vmem:[#allocation8 + $0x28] ss:$16 sps:$4 sm:$0xff]  }
 0x1c8   :  { %3764 = vmatprep.subr.bf16.mxu0 %v5385_v14  ;;  %v631_v14 = vsub.s32 7, %v6815_v57 }
 0x1cb   :  { %3765 = vmatpush1.bf16.msra.mxu0 %v5383_v35  ;;  %v627_v35 = vsub.s32 6, %v6815_v57 }
 0x1cc   :  { %3766 = vmatprep.subr.bf16.mxu0 %v5391_v29  ;;  %v5449_v29 = vld [vmem:[#allocation8 + $0x168] ss:$16 sps:$4 sm:$0xff]  }
 0x1cf   :  { %3767 = vmatpush1.bf16.msra.mxu0 %v5389_v33  ;;  %v5457_v33 = vld [vmem:[#allocation8 + $0x14c] ss:$16 sps:$4 sm:$0xff]  }
 0x1d0   :  { %3768 = vmatprep.subr.bf16.mxu0 %v5397_v9  ;;  %v6909_v9 = vrot.slane %v6826_v54, %v631_v14 }
 0x1d3   :  { %3769 = vmatpush1.bf16.msra.mxu0 %v5395_v1  ;;  %v6912_v1 = vrot.slane %v6826_v54, %v627_v35 }
 0x1d4   :  { %3770 = vmatprep.subr.bf16.mxu0 %v5403_v17 }
 0x1d5   :  { %7782 = vst [vmem:[#allocation244_spill] sm:$0xff] %v6912_v1 }
 0x1d7   :  { %3771 = vmatpush1.bf16.msra.mxu0 %v5401_v37 }
 0x1d8   :  { %3772 = vmatprep.subr.bf16.mxu0 %v5409_v7  ;;  %v5455_v7 = vld [vmem:[#allocation8 + $0x148] ss:$16 sps:$4 sm:$0xff]  }
 0x1db   :  { %3773 = vmatpush1.bf16.msra.mxu0 %v5407_v63 }
 0x1dc   :  { %3774 = vmatprep.subr.bf16.mxu0 %v5415_v4  ;;  %v5463_v4 = vld [vmem:[#allocation8 + $0x12c] ss:$16 sps:$4 sm:$0xff]  }
 0x1df   :  { %3775 = vmatpush1.bf16.msra.mxu0 %v5413_v41 }
 0x1e0   :  { %3776 = vmatprep.subr.bf16.mxu0 %v5421_v21 }
 0x1e3   :  { %3777 = vmatpush1.bf16.msra.mxu0 %v5419_v19 }
 0x1e4   :  { %3778 = vmatprep.subr.bf16.mxu0 %v5427_v25 }
 0x1e7   :  { %3779 = vmatpush2.bf16.msra.mxu0 %v5425_v23 }
 0x1e8   :  { %3780 = vmatprep.subr.bf16.mxu0 %v5433_v62 }
 0x1eb   :  { %3781 = vmatpush2.bf16.msra.mxu0 %v5431_v45  ;;  %v5461_v45 = vld [vmem:[#allocation8 + $0x128] ss:$16 sps:$4 sm:$0xff]  }
 0x1ec   :  { %3782 = vmatprep.subr.bf16.mxu0 %v5439_v51  ;;  %v5469_v51 = vld [vmem:[#allocation8 + $0x10c] ss:$16 sps:$4 sm:$0xff]  }
 0x1ef   :  { %3783 = vmatpush2.bf16.msra.mxu0 %v5437_v31 }
 0x1f0   :  { %3784 = vmatprep.subr.bf16.mxu0 %v5445_v49 }
 0x1f3   :  { %3785 = vmatpush2.bf16.msra.mxu0 %v5443_v58 }
 0x1f4   :  { %3786 = vmatprep.subr.bf16.mxu0 %v5451_v27 }
 0x1f6   :  { %v2213_v17 = vpop.f32.mrf.mxu0 }
 0x1f7   :  { %3787 = vmatpush2.bf16.msra.mxu0 %v5449_v29  ;;  %v2214_v19 = vadd.f32 %v2213_v17, %v6912_v1  ;;  %v5467_v29 = vld [vmem:[#allocation8 + $0x108] ss:$16 sps:$4 sm:$0xff]   ;;  %v5475_v17 = vld [vmem:[#allocation8 + $0x4ec] ss:$16 sps:$4 sm:$0xff]  }
 0x1f8   :  { %v2256_v37 = vpop.f32.mrf.mxu1  ;;  %v2215_v63 = vpop.f32.mrf.mxu0  ;;  %3788 = vmatprep.subr.bf16.mxu0 %v5457_v33 }
 0x1f9   :  { %v2216_v41 = vadd.f32 %v2215_v63, %v6909_v9  ;;  %v2257_v27 = vadd.f32 %v2256_v37, %v2214_v19  ;;  %v5478_v37 = vld [vmem:[#allocation8 + $0x2cc] ss:$16 sps:$4 sm:$0xff]   ;;  %v5476_v19 = vld [vmem:[#allocation8 + $0x2c8] ss:$16 sps:$4 sm:$0xff]  }
 0x1fa   :  { %v2258_v21 = vpop.f32.mrf.mxu1  ;;  %v2217_v25 = vpop.f32.mrf.mxu0 }
 0x1fb   :  { %v2218_v23 = vadd.f32 %v2217_v25, %v6912_v1  ;;  %3789 = vmatpush2.bf16.msra.mxu0 %v5455_v7  ;;  %v2259_v31 = vadd.f32 %v2258_v21, %v2216_v41  ;;  %v2271_v1 = vmax.f32 %v2257_v27, 0.0  ;;  %v5481_v21 = vld [vmem:[#allocation8 + $0x4cc] ss:$16 sps:$4 sm:$0xff]  }
 0x1fc   :  { %v2260_v62 = vpop.f32.mrf.mxu1  ;;  %v2219_v54 = vpop.f32.mrf.mxu0  ;;  %3790 = vmatprep.subr.bf16.mxu0 %v5463_v4  ;;  %v5470_v4 = vld [vmem:[#allocation8 + $0x2e8] ss:$16 sps:$4 sm:$0xff]   ;;  %v5502_v27 = vld [vmem:[#allocation8 + $0x24c] ss:$16 sps:$4 sm:$0xff]  }
 0x1fd   :  { %v2261_v49 = vadd.f32 %v2260_v62, %v2218_v23  ;;  %v2220_v58 = vadd.f32 %v2219_v54, %v6909_v9  ;;  %v2272_v63 = vmax.f32 %v2259_v31, 0.0  ;;  %v5479_v23 = vld [vmem:[#allocation8 + $0x4c8] ss:$16 sps:$4 sm:$0xff]   ;;  %v5484_v62 = vld [vmem:[#allocation8 + $0x2ac] ss:$16 sps:$4 sm:$0xff]  }
 0x1fe   :  { %v2262_v14 = vpop.f32.mrf.mxu1  ;;  %v5485_v54 = vld [vmem:[#allocation8 + $0x4a8] ss:$16 sps:$4 sm:$0xff]  }
 0x1ff   :  { %v2263_v35 = vadd.f32 %v2262_v14, %v2220_v58  ;;  %3791 = vmatpush2.bf16.msra.mxu0 %v5461_v45  ;;  %v2279_v33 = vmax.f32 %v2261_v49, 0.0  ;;  %v5482_v45 = vld [vmem:[#allocation8 + $0x2a8] ss:$16 sps:$4 sm:$0xff]   ;;  %v5505_v14 = vld [vmem:[#allocation8 + $0x44c] ss:$16 sps:$4 sm:$0xff]  }
 0x200   :  { %3792 = vmatprep.subr.bf16.mxu0 %v5469_v51  ;;  %v5493_v51 = vld [vmem:[#allocation8 + $0x48c] ss:$16 sps:$4 sm:$0xff]   ;;  %v5491_v31 = vld [vmem:[#allocation8 + $0x488] ss:$16 sps:$4 sm:$0xff]  }
 0x201   :  { %v2280_v25 = vmax.f32 %v2263_v35, 0.0  ;;  %v6920_v41 = vpack.c.bf16 %v2279_v33, %v2271_v1  ;;  %v5487_v1 = vld [vmem:[#allocation8 + $0x4ac] ss:$16 sps:$4 sm:$0xff]   ;;  %v5494_v49 = vld [vmem:[#allocation8 + $0x268] ss:$16 sps:$4 sm:$0xff]  }
 0x202   :  { %v5497_v58 = vld [vmem:[#allocation8 + $0x468] ss:$16 sps:$4 sm:$0xff]   ;;  %v5508_v33 = vld [vmem:[#allocation8 + $0x22c] ss:$16 sps:$4 sm:$0xff]  }
 0x203   :  { %v6918_v7 = vpack.c.bf16 %v2280_v25, %v2272_v63  ;;  %3793 = vmatpush2.bf16.msra.mxu0 %v5467_v29  ;;  %v5500_v35 = vld [vmem:[#allocation8 + $0x248] ss:$16 sps:$4 sm:$0xff]  }
 0x204   :  { %3848 = vmatprep.subr.bf16.mxu0 %v5475_v17  ;;  %v5503_v29 = vld [vmem:[#allocation8 + $0x448] ss:$16 sps:$4 sm:$0xff]   ;;  %v5511_v17 = vld [vmem:[#allocation8 + $0x42c] ss:$16 sps:$4 sm:$0xff]  }
 0x205   :  { %3751 = vmatprep.mubr.bf16.mxu1 %v6918_v7  ;;  %v5506_v63 = vld [vmem:[#allocation8 + $0x228] ss:$16 sps:$4 sm:$0xff]  }
 0x206   :  { %3795 = vmatmul.mubr.bf16.vlgmr.msra.gmra.mxu0 %v6864_v15  ;;  %3752 = vmatmul.mubr.bf16.vlgmr.msra.gmra.mxu1 %v6920_v41  ;;  %v5490_v15 = vld [vmem:[#allocation8 + $0x28c] ss:$16 sps:$4 sm:$0xff]   ;;  %v5509_v25 = vld [vmem:[#allocation8 + $0x428] ss:$16 sps:$4 sm:$0xff]  }
 0x207   :  { %3806 = vmatpush1.bf16.msra.mxu1 %v5470_v4  ;;  %3849 = vmatpush1.bf16.msra.mxu0 %v5473_v56  ;;  %v5488_v56 = vld [vmem:[#allocation8 + $0x288] ss:$16 sps:$4 sm:$0xff]   ;;  %v5514_v4 = vld [vmem:[#allocation8 + $0x20c] ss:$16 sps:$4 sm:$0xff]  }
 0x208   :  { %3880 = vmatprep.mubr.bf16.mxu0 %v6899_v12  ;;  %3837 = vmatprep.mubr.bf16.mxu1 %v6881_v47  ;;  %v5496_v12 = vld [vmem:[#allocation8 + $0x26c] ss:$16 sps:$4 sm:$0xff]  }
 0x209   :  { %3807 = vmatprep.subr.bf16.mxu1 %v5478_v37  ;;  %3850 = vmatprep.subr.bf16.mxu0 %v5481_v21  ;;  %v5499_v47 = vld [vmem:[#allocation8 + $0x46c] ss:$16 sps:$4 sm:$0xff]   ;;  %v5512_v21 = vld [vmem:[#allocation8 + $0x208] ss:$16 sps:$4 sm:$0xff]  }
 0x20a   :  { %v5517_v37 = vld [vmem:[#allocation8 + $0x40c] ss:$16 sps:$4 sm:$0xff]  }
 0x20b   :  { %3808 = vmatpush1.bf16.msra.mxu1 %v5476_v19  ;;  %3851 = vmatpush1.bf16.msra.mxu0 %v5479_v23  ;;  %v5515_v19 = vld [vmem:[#allocation8 + $0x408] ss:$16 sps:$4 sm:$0xff]   ;;  %v5520_v23 = vld [vmem:[#allocation8 + $0x3ec] ss:$16 sps:$4 sm:$0xff]  }
 0x20c   :  { %3809 = vmatprep.subr.bf16.mxu1 %v5484_v62  ;;  %3852 = vmatprep.subr.bf16.mxu0 %v5487_v1  ;;  %v5523_v62 = vld [vmem:[#allocation8 + $0x5ec] ss:$16 sps:$4 sm:$0xff]   ;;  %v5518_v1 = vld [vmem:[#allocation8 + $0x3e8] ss:$16 sps:$4 sm:$0xff]  }
 0x20f   :  { %3810 = vmatpush1.bf16.msra.mxu1 %v5482_v45  ;;  %3853 = vmatpush1.bf16.msra.mxu0 %v5485_v54  ;;  %v5521_v45 = vld [vmem:[#allocation8 + $0x5e8] ss:$16 sps:$4 sm:$0xff]   ;;  %v5526_v54 = vld [vmem:[#allocation8 + $0x3cc] ss:$16 sps:$4 sm:$0xff]  }
 0x210   :  { %3811 = vmatprep.subr.bf16.mxu1 %v5490_v15  ;;  %3854 = vmatprep.subr.bf16.mxu0 %v5493_v51  ;;  %v5529_v15 = vld [vmem:[#allocation8 + $0x5cc] ss:$16 sps:$4 sm:$0xff]   ;;  %v5524_v51 = vld [vmem:[#allocation8 + $0x3c8] ss:$16 sps:$4 sm:$0xff]  }
 0x213   :  { %3812 = vmatpush1.bf16.msra.mxu1 %v5488_v56  ;;  %3855 = vmatpush1.bf16.msra.mxu0 %v5491_v31  ;;  %v5527_v56 = vld [vmem:[#allocation8 + $0x5c8] ss:$16 sps:$4 sm:$0xff]   ;;  %v5532_v31 = vld [vmem:[#allocation8 + $0x3ac] ss:$16 sps:$4 sm:$0xff]  }
 0x214   :  { %3813 = vmatprep.subr.bf16.mxu1 %v5496_v12  ;;  %3856 = vmatprep.subr.bf16.mxu0 %v5499_v47  ;;  %v5535_v12 = vld [vmem:[#allocation8 + $0x5ac] ss:$16 sps:$4 sm:$0xff]   ;;  %v5530_v47 = vld [vmem:[#allocation8 + $0x3a8] ss:$16 sps:$4 sm:$0xff]  }
 0x217   :  { %3814 = vmatpush1.bf16.msra.mxu1 %v5494_v49  ;;  %3857 = vmatpush1.bf16.msra.mxu0 %v5497_v58  ;;  %v5533_v49 = vld [vmem:[#allocation8 + $0x5a8] ss:$16 sps:$4 sm:$0xff]   ;;  %v5538_v58 = vld [vmem:[#allocation8 + $0x38c] ss:$16 sps:$4 sm:$0xff]  }
 0x218   :  { %3815 = vmatprep.subr.bf16.mxu1 %v5502_v27  ;;  %3858 = vmatprep.subr.bf16.mxu0 %v5505_v14  ;;  %v5541_v27 = vld [vmem:[#allocation8 + $0x58c] ss:$16 sps:$4 sm:$0xff]   ;;  %v5536_v14 = vld [vmem:[#allocation8 + $0x388] ss:$16 sps:$4 sm:$0xff]  }
 0x21b   :  { %3816 = vmatpush1.bf16.msra.mxu1 %v5500_v35  ;;  %3859 = vmatpush1.bf16.msra.mxu0 %v5503_v29  ;;  %v5539_v35 = vld [vmem:[#allocation8 + $0x588] ss:$16 sps:$4 sm:$0xff]   ;;  %v5544_v29 = vld [vmem:[#allocation8 + $0x36c] ss:$16 sps:$4 sm:$0xff]  }
 0x21c   :  { %3817 = vmatprep.subr.bf16.mxu1 %v5508_v33  ;;  %3860 = vmatprep.subr.bf16.mxu0 %v5511_v17  ;;  %v5547_v33 = vld [vmem:[#allocation8 + $0x56c] ss:$16 sps:$4 sm:$0xff]   ;;  %v5542_v17 = vld [vmem:[#allocation8 + $0x368] ss:$16 sps:$4 sm:$0xff]  }
 0x21f   :  { %3818 = vmatpush1.bf16.msra.mxu1 %v5506_v63  ;;  %3861 = vmatpush1.bf16.msra.mxu0 %v5509_v25  ;;  %v5545_v63 = vld [vmem:[#allocation8 + $0x568] ss:$16 sps:$4 sm:$0xff]   ;;  %v5550_v25 = vld [vmem:[#allocation8 + $0x34c] ss:$16 sps:$4 sm:$0xff]  }
 0x220   :  { %3819 = vmatprep.subr.bf16.mxu1 %v5514_v4  ;;  %3862 = vmatprep.subr.bf16.mxu0 %v5517_v37  ;;  %v5553_v4 = vld [vmem:[#allocation8 + $0x54c] ss:$16 sps:$4 sm:$0xff]   ;;  %v5548_v37 = vld [vmem:[#allocation8 + $0x348] ss:$16 sps:$4 sm:$0xff]  }
 0x223   :  { %3820 = vmatpush1.bf16.msra.mxu1 %v5512_v21  ;;  %3863 = vmatpush1.bf16.msra.mxu0 %v5515_v19  ;;  %v5551_v21 = vld [vmem:[#allocation8 + $0x548] ss:$16 sps:$4 sm:$0xff]   ;;  %v5556_v19 = vld [vmem:[#allocation8 + $0x32c] ss:$16 sps:$4 sm:$0xff]  }
 0x224   :  { %3821 = vmatprep.subr.bf16.mxu1 %v5520_v23  ;;  %3864 = vmatprep.subr.bf16.mxu0 %v5523_v62  ;;  %v5559_v23 = vld [vmem:[#allocation8 + $0x52c] ss:$16 sps:$4 sm:$0xff]   ;;  %v5554_v62 = vld [vmem:[#allocation8 + $0x328] ss:$16 sps:$4 sm:$0xff]  }
 0x227   :  { %3822 = vmatpush2.bf16.msra.mxu1 %v5518_v1  ;;  %3865 = vmatpush2.bf16.msra.mxu0 %v5521_v45  ;;  %v5557_v1 = vld [vmem:[#allocation8 + $0x528] ss:$16 sps:$4 sm:$0xff]   ;;  %v5562_v45 = vld [vmem:[#allocation8 + $0x30c] ss:$16 sps:$4 sm:$0xff]  }
 0x228   :  { %3823 = vmatprep.subr.bf16.mxu1 %v5526_v54  ;;  %3866 = vmatprep.subr.bf16.mxu0 %v5529_v15  ;;  %v5565_v54 = vld [vmem:[#allocation8 + $0x50c] ss:$16 sps:$4 sm:$0xff]   ;;  %v5560_v15 = vld [vmem:[#allocation8 + $0x308] ss:$16 sps:$4 sm:$0xff]  }
 0x22b   :  { %3824 = vmatpush2.bf16.msra.mxu1 %v5524_v51  ;;  %3867 = vmatpush2.bf16.msra.mxu0 %v5527_v56  ;;  %v5563_v51 = vld [vmem:[#allocation8 + $0x508] ss:$16 sps:$4 sm:$0xff]   ;;  %v5568_v56 = vld [vmem:[#allocation8 + $0x6ec] ss:$16 sps:$4 sm:$0xff]  }
 0x22c   :  { %3825 = vmatprep.subr.bf16.mxu1 %v5532_v31  ;;  %3868 = vmatprep.subr.bf16.mxu0 %v5535_v12  ;;  %v3951_v31 = vld [vmem:[#allocation2 + $0x48] sm:$0xff] }
 0x22d   :  { %v3955_v12 = vld [vmem:[#allocation2 + $0x68] sm:$0xff] }
 0x22f   :  { %3826 = vmatpush2.bf16.msra.mxu1 %v5530_v47  ;;  %3869 = vmatpush2.bf16.msra.mxu0 %v5533_v49  ;;  %v5566_v47 = vld [vmem:[#allocation8 + $0x6e8] ss:$16 sps:$4 sm:$0xff]   ;;  %v5571_v49 = vld [vmem:[#allocation8 + $0x6cc] ss:$16 sps:$4 sm:$0xff]  }
 0x230   :  { %3827 = vmatprep.subr.bf16.mxu1 %v5538_v58  ;;  %3870 = vmatprep.subr.bf16.mxu0 %v5541_v27  ;;  %v6928_v58 = vpack.c.bf16 %v3955_v12, %v3951_v31  ;;  %v5569_v27 = vld [vmem:[#allocation8 + $0x6c8] ss:$16 sps:$4 sm:$0xff]  }
 0x231   :  { %v7805_v31 = vld [vmem:[#allocation26_spill] sm:$0xff]  ;;  %v7806_v12 = vld [vmem:[#allocation68_spill] sm:$0xff] }
 0x233   :  { %3828 = vmatpush2.bf16.msra.mxu1 %v5536_v14  ;;  %3871 = vmatpush2.bf16.msra.mxu0 %v5539_v35  ;;  %v5574_v14 = vld [vmem:[#allocation8 + $0x6ac] ss:$16 sps:$4 sm:$0xff]  }
 0x234   :  { %3829 = vmatprep.subr.bf16.mxu1 %v5544_v29  ;;  %3872 = vmatprep.subr.bf16.mxu0 %v5547_v33  ;;  %v5577_v35 = vld [vmem:[#allocation8 + $0x68c] ss:$16 sps:$4 sm:$0xff]   ;;  %v3957_v29 = vld [vmem:[#allocation2 + $0x78] sm:$0xff] }
 0x235   :  { %v7786_v33 = vld [vmem:[#allocation48_spill] sm:$0xff] }
 0x237   :  { %3830 = vmatpush2.bf16.msra.mxu1 %v5542_v17  ;;  %3873 = vmatpush2.bf16.msra.mxu0 %v5545_v63  ;;  %v7787_v17 = vld [vmem:[#allocation50_spill] sm:$0xff]  ;;  %v7790_v63 = vld [vmem:[#allocation52_spill] sm:$0xff] }
 0x238   :  { %3831 = vmatprep.subr.bf16.mxu1 %v5550_v25  ;;  %3874 = vmatprep.subr.bf16.mxu0 %v5553_v4  ;;  %v7792_v25 = vld [vmem:[#allocation19_spill] sm:$0xff]  ;;  %v7793_v4 = vld [vmem:[#allocation20_spill] sm:$0xff] }
 0x23b   :  { %3832 = vmatpush2.bf16.msra.mxu1 %v5548_v37  ;;  %3875 = vmatpush2.bf16.msra.mxu0 %v5551_v21  ;;  %v7794_v37 = vld [vmem:[#allocation56_spill] sm:$0xff]  ;;  %v7795_v21 = vld [vmem:[#allocation58_spill] sm:$0xff] }
 0x23c   :  { %3833 = vmatprep.subr.bf16.mxu1 %v5556_v19  ;;  %3876 = vmatprep.subr.bf16.mxu0 %v5559_v23  ;;  %v7796_v19 = vld [vmem:[#allocation21_spill] sm:$0xff]  ;;  %v7797_v23 = vld [vmem:[#allocation22_spill] sm:$0xff] }
 0x23f   :  { %3834 = vmatpush2.bf16.msra.mxu1 %v5554_v62  ;;  %3877 = vmatpush2.bf16.msra.mxu0 %v5557_v1  ;;  %v7798_v62 = vld [vmem:[#allocation60_spill] sm:$0xff]  ;;  %v7799_v1 = vld [vmem:[#allocation62_spill] sm:$0xff] }
 0x240   :  { %3835 = vmatprep.subr.bf16.mxu1 %v5562_v45  ;;  %3878 = vmatprep.subr.bf16.mxu0 %v5565_v54  ;;  %v7800_v45 = vld [vmem:[#allocation23_spill] sm:$0xff]  ;;  %v7801_v54 = vld [vmem:[#allocation24_spill] sm:$0xff] }
 0x243   :  { %3836 = vmatpush2.bf16.msra.mxu1 %v5560_v15  ;;  %3879 = vmatpush2.bf16.msra.mxu0 %v5563_v51  ;;  %v7802_v15 = vld [vmem:[#allocation64_spill] sm:$0xff]  ;;  %v7803_v51 = vld [vmem:[#allocation66_spill] sm:$0xff] }
 0x244   :  { %3891 = vmatprep.subr.bf16.mxu1 %v5568_v56  ;;  %3962 = vmatprep.subr.bf16.mxu0 %v6035_v3  ;;  %v5572_v3 = vld [vmem:[#allocation8 + $0x6a8] ss:$16 sps:$4 sm:$0xff]   ;;  %v7804_v56 = vld [vmem:[#allocation25_spill] sm:$0xff] }
 0x246   :  { %3838 = vmatmul.mubr.bf16.vlgmr.msra.gmra.mxu1 %v6883_v39  ;;  %3881 = vmatmul.mubr.bf16.vlgmr.msra.gmra.mxu0 %v6901_v43  ;;  %v5575_v39 = vld [vmem:[#allocation8 + $0x688] ss:$16 sps:$4 sm:$0xff]   ;;  %v5580_v43 = vld [vmem:[#allocation8 + $0x66c] ss:$16 sps:$4 sm:$0xff]  }
 0x247   :  { %3892 = vmatpush1.bf16.msra.mxu1 %v5566_v47  ;;  %3923 = vmatprep.mubr.bf16.mxu1 %v6918_v7  ;;  %v3954_v7 = vld [vmem:[#allocation2 + $0x60] sm:$0xff] }
 0x248   :  { %3893 = vmatprep.subr.bf16.mxu1 %v5571_v49  ;;  %3963 = vmatpush1.bf16.msra.mxu0 %v6037_v5  ;;  %v5578_v5 = vld [vmem:[#allocation8 + $0x668] ss:$16 sps:$4 sm:$0xff]   ;;  %v7808_v49 = vld [vmem:[#allocation27_spill] sm:$0xff] }
 0x249   :  { %3964 = vmatprep.subr.bf16.mxu0 %v6043_v10  ;;  %3994 = vmatprep.mubr.bf16.mxu0 %v6928_v58  ;;  %v5583_v10 = vld [vmem:[#allocation8 + $0x64c] ss:$16 sps:$4 sm:$0xff]  }
 0x24a   :  { %v7807_v47 = vld [vmem:[#allocation70_spill] sm:$0xff] }
 0x24b   :  { %3894 = vmatpush1.bf16.msra.mxu1 %v5569_v27  ;;  %v7809_v27 = vld [vmem:[#allocation28_spill] sm:$0xff] }
 0x24c   :  { %3895 = vmatprep.subr.bf16.mxu1 %v5574_v14  ;;  %3965 = vmatpush1.bf16.msra.mxu0 %v6050_v18  ;;  %v5581_v18 = vld [vmem:[#allocation8 + $0x648] ss:$16 sps:$4 sm:$0xff]  }
 0x24d   :  { %3966 = vmatprep.subr.bf16.mxu0 %v6056_v20  ;;  %v5586_v20 = vld [vmem:[#allocation8 + $0x62c] ss:$16 sps:$4 sm:$0xff]  }
 0x24e   :  { %v7810_v14 = vld [vmem:[#allocation72_spill] sm:$0xff] }
 0x24f   :  { %3896 = vmatpush1.bf16.msra.mxu1 %v5572_v3  ;;  %v7811_v3 = vld [vmem:[#allocation74_spill] sm:$0xff] }
 0x250   :  { %3897 = vmatprep.subr.bf16.mxu1 %v5577_v35  ;;  %3967 = vmatpush1.bf16.msra.mxu0 %v6062_v26  ;;  %v5584_v26 = vld [vmem:[#allocation8 + $0x628] ss:$16 sps:$4 sm:$0xff]   ;;  %v7812_v35 = vld [vmem:[#allocation29_spill] sm:$0xff] }
 0x251   :  { %3968 = vmatprep.subr.bf16.mxu0 %v6068_v28  ;;  %v5589_v28 = vld [vmem:[#allocation8 + $0x60c] ss:$16 sps:$4 sm:$0xff]  }
 0x253   :  { %3898 = vmatpush1.bf16.msra.mxu1 %v5575_v39  ;;  %v7813_v39 = vld [vmem:[#allocation30_spill] sm:$0xff] }
 0x254   :  { %3899 = vmatprep.subr.bf16.mxu1 %v5580_v43  ;;  %3969 = vmatpush1.bf16.msra.mxu0 %v6074_v34  ;;  %v5587_v34 = vld [vmem:[#allocation8 + $0x608] ss:$16 sps:$4 sm:$0xff]  }
 0x255   :  { %3970 = vmatprep.subr.bf16.mxu0 %v6080_v36  ;;  %v5592_v36 = vld [vmem:[#allocation8 + $0x7ec] ss:$16 sps:$4 sm:$0xff]  }
 0x256   :  { %v7814_v43 = vld [vmem:[#allocation76_spill] sm:$0xff] }
 0x257   :  { %3900 = vmatpush1.bf16.msra.mxu1 %v5578_v5  ;;  %v7815_v5 = vld [vmem:[#allocation78_spill] sm:$0xff] }
 0x258   :  { %3901 = vmatprep.subr.bf16.mxu1 %v5583_v10  ;;  %3971 = vmatpush1.bf16.msra.mxu0 %v6086_v42  ;;  %v5590_v42 = vld [vmem:[#allocation8 + $0x7e8] ss:$16 sps:$4 sm:$0xff]   ;;  %v7816_v10 = vld [vmem:[#allocation31_spill] sm:$0xff] }
 0x259   :  { %3972 = vmatprep.subr.bf16.mxu0 %v6092_v44  ;;  %v5595_v44 = vld [vmem:[#allocation8 + $0x7cc] ss:$16 sps:$4 sm:$0xff]  }
 0x25b   :  { %3902 = vmatpush1.bf16.msra.mxu1 %v5581_v18  ;;  %v7817_v18 = vld [vmem:[#allocation32_spill] sm:$0xff] }
 0x25c   :  { %3903 = vmatprep.subr.bf16.mxu1 %v5586_v20  ;;  %3973 = vmatpush1.bf16.msra.mxu0 %v6098_v50  ;;  %v5593_v50 = vld [vmem:[#allocation8 + $0x7c8] ss:$16 sps:$4 sm:$0xff]  }
 0x25d   :  { %3974 = vmatprep.subr.bf16.mxu0 %v6104_v52  ;;  %v5598_v52 = vld [vmem:[#allocation8 + $0x7ac] ss:$16 sps:$4 sm:$0xff]  }
 0x25e   :  { %v7818_v20 = vld [vmem:[#allocation80_spill] sm:$0xff] }
 0x25f   :  { %3904 = vmatpush1.bf16.msra.mxu1 %v5584_v26  ;;  %v7819_v26 = vld [vmem:[#allocation82_spill] sm:$0xff] }
 0x260   :  { %3905 = vmatprep.subr.bf16.mxu1 %v5589_v28  ;;  %3975 = vmatpush1.bf16.msra.mxu0 %v6114_v0  ;;  %v5596_v0 = vld [vmem:[#allocation8 + $0x7a8] ss:$16 sps:$4 sm:$0xff]   ;;  %v7820_v28 = vld [vmem:[#allocation33_spill] sm:$0xff] }
 0x261   :  { %3976 = vmatprep.subr.bf16.mxu0 %v6121_v2  ;;  %v5601_v2 = vld [vmem:[#allocation8 + $0x78c] ss:$16 sps:$4 sm:$0xff]  }
 0x263   :  { %3906 = vmatpush1.bf16.msra.mxu1 %v5587_v34  ;;  %v7821_v34 = vld [vmem:[#allocation34_spill] sm:$0xff] }
 0x264   :  { %3907 = vmatprep.subr.bf16.mxu1 %v5592_v36  ;;  %3977 = vmatpush1.bf16.msra.mxu0 %v6128_v13  ;;  %v5599_v13 = vld [vmem:[#allocation8 + $0x788] ss:$16 sps:$4 sm:$0xff]  }
 0x265   :  { %3978 = vmatprep.subr.bf16.mxu0 %v6134_v16  ;;  %v5604_v16 = vld [vmem:[#allocation8 + $0x76c] ss:$16 sps:$4 sm:$0xff]  }
 0x266   :  { %v7822_v36 = vld [vmem:[#allocation84_spill] sm:$0xff] }
 0x267   :  { %3908 = vmatpush2.bf16.msra.mxu1 %v5590_v42  ;;  %v7823_v42 = vld [vmem:[#allocation86_spill] sm:$0xff] }
 0x268   :  { %3909 = vmatprep.subr.bf16.mxu1 %v5595_v44  ;;  %3979 = vmatpush2.bf16.msra.mxu0 %v6140_v30  ;;  %v5602_v30 = vld [vmem:[#allocation8 + $0x768] ss:$16 sps:$4 sm:$0xff]   ;;  %v3624_v44 = vpop.f32.mrf.mxu0 }
 0x269   :  { %3980 = vmatprep.subr.bf16.mxu0 %v6146_v32  ;;  %v5607_v32 = vld [vmem:[#allocation8 + $0x74c] ss:$16 sps:$4 sm:$0xff]  }
 0x26b   :  { %3910 = vmatpush2.bf16.msra.mxu1 %v5593_v50  ;;  %v7824_v50 = vld [vmem:[#allocation35_spill] sm:$0xff] }
 0x26c   :  { %3911 = vmatprep.subr.bf16.mxu1 %v5598_v52  ;;  %3981 = vmatpush2.bf16.msra.mxu0 %v6152_v46  ;;  %v5605_v46 = vld [vmem:[#allocation8 + $0x748] ss:$16 sps:$4 sm:$0xff]  }
 0x26d   :  { %3982 = vmatprep.subr.bf16.mxu0 %v6158_v48  ;;  %v5610_v48 = vld [vmem:[#allocation8 + $0x72c] ss:$16 sps:$4 sm:$0xff]  }
 0x26e   :  { %v7825_v52 = vld [vmem:[#allocation36_spill] sm:$0xff] }
 0x26f   :  { %3912 = vmatpush2.bf16.msra.mxu1 %v5596_v0  ;;  %v7826_v0 = vld [vmem:[#allocation88_spill] sm:$0xff] }
 0x270   :  { %3913 = vmatprep.subr.bf16.mxu1 %v5601_v2  ;;  %3983 = vmatpush2.bf16.msra.mxu0 %v6164_v59  ;;  %v5608_v59 = vld [vmem:[#allocation8 + $0x728] ss:$16 sps:$4 sm:$0xff]  }
 0x271   :  { %3984 = vmatprep.subr.bf16.mxu0 %v6170_v61  ;;  %v5613_v61 = vld [vmem:[#allocation8 + $0x70c] ss:$16 sps:$4 sm:$0xff]  }
 0x272   :  { %v7827_v2 = vld [vmem:[#allocation90_spill] sm:$0xff] }
 0x273   :  { %3914 = vmatpush2.bf16.msra.mxu1 %v5599_v13  ;;  %v3626_v13 = vpop.f32.mrf.mxu0 }
 0x274   :  { %3915 = vmatprep.subr.bf16.mxu1 %v5604_v16  ;;  %3985 = vmatpush2.bf16.msra.mxu0 %v6176_v22  ;;  %v5611_v22 = vld [vmem:[#allocation8 + $0x708] ss:$16 sps:$4 sm:$0xff]   ;;  %v7828_v16 = vld [vmem:[#allocation37_spill] sm:$0xff] }
 0x275   :  { %3986 = vmatprep.subr.bf16.mxu0 %v6182_v24  ;;  %v3950_v24 = vld [vmem:[#allocation2 + $0x40] sm:$0xff] }
 0x277   :  { %3916 = vmatpush2.bf16.msra.mxu1 %v5602_v30  ;;  %v7829_v30 = vld [vmem:[#allocation38_spill] sm:$0xff] }
 0x278   :  { %3917 = vmatprep.subr.bf16.mxu1 %v5607_v32  ;;  %3987 = vmatpush2.bf16.msra.mxu0 %v6188_v53  ;;  %v3953_v53 = vld [vmem:[#allocation2 + $0x58] sm:$0xff]  ;;  %v7830_v32 = vld [vmem:[#allocation92_spill] sm:$0xff] }
 0x279   :  { %3988 = vmatprep.subr.bf16.mxu0 %v6194_v55  ;;  %v6964_v55 = vpack.c.bf16 %v3954_v7, %v3950_v24  ;;  %v7834_v24 = vld [vmem:[#allocation96_spill] sm:$0xff]  ;;  %v7835_v7 = vld [vmem:[#allocation98_spill] sm:$0xff] }
 0x27b   :  { %3918 = vmatpush2.bf16.msra.mxu1 %v5605_v46  ;;  %v7831_v46 = vld [vmem:[#allocation94_spill] sm:$0xff] }
 0x27c   :  { %3919 = vmatprep.subr.bf16.mxu1 %v5610_v48  ;;  %3989 = vmatpush2.bf16.msra.mxu0 %v6200_v6  ;;  %v7783_v6 = vld [vmem:[#allocation46_spill] sm:$0xff]  ;;  %v3628_v48 = vpop.f32.mrf.mxu0 }
 0x27d   :  { %3990 = vmatprep.subr.bf16.mxu0 %v6206_v11  ;;  %v6969_v11 = vpack.c.bf16 %v3957_v29, %v3953_v53  ;;  %v7030_v53 = vld [vmem:[%s7310_s4] sm:$0xf]  ;;  %s5986_s4 = smov [#allocation10]  }
 0x27e   :  { %v3630_v29 = vpop.f32.mrf.mxu0  ;;  %s4695_s15 = sshll.u32 %s5986_s4, 4  ;;  %s4696_s15 = int_to_ptr.vmem [resolvable:$true] %s4695_s15 }
 0x27f   :  { %3920 = vmatpush2.bf16.msra.mxu1 %v5608_v59  ;;  %v7832_v59 = vld [vmem:[#allocation39_spill] sm:$0xff]  ;;  %s5950_s16 = scalar_lea.vmem %s4696_s15, 2048  ;;  %p5955_p7 = scmp.lt.s32.totalorder %s4696_s15, %s4696_s15 }
 0x280   :  { %3921 = vmatprep.subr.bf16.mxu1 %v5613_v61  ;;  %3991 = vmatpush2.bf16.msra.mxu0 %v6212_v38  ;;  %v7784_v38 = vld [vmem:[#allocation15_spill] sm:$0xff]  ;;  %v3667_v61 = vpop.f32.mrf.mxu1  ;;  %p5951_p6 = scmp.ne.s32.totalorder %s4696_s15, %s5950_s16  ;;  %p5956_p8 = scmp.lt.s32.totalorder %s5950_s16, %s5950_s16 }
 0x281   :  { %3992 = vmatprep.subr.bf16.mxu0 %v6218_v40  ;;  %v7785_v40 = vld [vmem:[#allocation16_spill] sm:$0xff] }
 0x282   :  { %p5957_p9 = por %p5956_p8, %p5955_p7 }
 0x283   :  { %3922 = vmatpush2.bf16.msra.mxu1 %v5611_v22  ;;  %v7833_v22 = vld [vmem:[#allocation40_spill] sm:$0xff] }
 0x284   :  { %4005 = vmatprep.subr.bf16.mxu1 %v6039_v8  ;;  %3993 = vmatpush2.bf16.msra.mxu0 %v6224_v60  ;;  %v7788_v8 = vld [vmem:[#allocation17_spill] sm:$0xff]  ;;  %v7789_v60 = vld [vmem:[#allocation18_spill] sm:$0xff]  ;;  %p5958_p10 = pnand %p5957_p9, %p5951_p6 }
 0x285   :  { %4048 = vmatprep.subr.bf16.mxu0 %v7783_v6  ;;  %v7836_v6 = vld [vmem:[#allocation41_spill] sm:$0xff] }
 0x286   :  { %3924 = vmatmul.mubr.bf16.vlgmr.msra.gmra.mxu1 %v6920_v41  ;;  %v7791_v41 = vld [vmem:[#allocation54_spill] sm:$0xff] }
 0x287   :  { %4006 = vmatpush1.bf16.msra.mxu1 %v7784_v38  ;;  %3995 = vmatmul.mubr.bf16.vlgmr.msra.gmra.mxu0 %v6964_v55  ;;  %v3669_v38 = vpop.f32.mrf.mxu1 }
 0x288   :  { %4007 = vmatprep.subr.bf16.mxu1 %v7785_v40  ;;  %4049 = vmatpush1.bf16.msra.mxu0 %v7786_v33  ;;  %v3710_v40 = vpop.f32.mrf.mxu0  ;;  %v7837_v33 = vld [vmem:[#allocation42_spill] sm:$0xff] }
 0x289   :  { %4050 = vmatprep.subr.bf16.mxu0 %v7787_v17  ;;  %4037 = vmatprep.mubr.bf16.mxu1 %v6969_v11  ;;  %v7838_v17 = vld [vmem:[#allocation100_spill] sm:$0xff] }
 0x28a   :  { %4080 = vmatprep.mubr.bf16.mxu0 %v6928_v58 }
 0x28b   :  { %4008 = vmatpush1.bf16.msra.mxu1 %v7788_v8  ;;  %v7839_v8 = vsub.s32 0, %v6815_v57 }
 0x28c   :  { %4009 = vmatprep.subr.bf16.mxu1 %v7789_v60  ;;  %4051 = vmatpush1.bf16.msra.mxu0 %v7790_v63  ;;  %v7840_v63 = vld [vmem:[#allocation102_spill] sm:$0xff] }
 0x28d   :  { %4052 = vmatprep.subr.bf16.mxu0 %v7791_v41  ;;  %v7038_v60 = vrot.slane %v7030_v53, %v7839_v8  ;;  %v7841_v41 = vsub.s32 1, %v6815_v57  ;;  %v7863_v8 = vld [vmem:[#allocation63_spill] sm:$0xff] }
 0x28f   :  { %4010 = vmatpush1.bf16.msra.mxu1 %v7792_v25  ;;  %v7044_v25 = vrot.slane %v7030_v53, %v7841_v41  ;;  %v7865_v41 = vld [vmem:[#allocation126_spill] sm:$0xff] }
 0x290   :  { %4011 = vmatprep.subr.bf16.mxu1 %v7793_v4  ;;  %4053 = vmatpush1.bf16.msra.mxu0 %v7794_v37  ;;  %v7842_v4 = vld [vmem:[#allocation43_spill] sm:$0xff]  ;;  %v3952_v37 = vld [vmem:[#allocation2 + $0x50] sm:$0xff] }
 0x291   :  { %4054 = vmatprep.subr.bf16.mxu0 %v7795_v21  ;;  %v3956_v21 = vld [vmem:[#allocation2 + $0x70] sm:$0xff] }
 0x293   :  { %4012 = vmatpush1.bf16.msra.mxu1 %v7796_v19  ;;  %v3671_v19 = vpop.f32.mrf.mxu1 }
 0x294   :  { %4013 = vmatprep.subr.bf16.mxu1 %v7797_v23  ;;  %4055 = vmatpush1.bf16.msra.mxu0 %v7798_v62  ;;  %v3712_v23 = vpop.f32.mrf.mxu0  ;;  %v7843_v62 = vld [vmem:[#allocation44_spill] sm:$0xff] }
 0x295   :  { %4056 = vmatprep.subr.bf16.mxu0 %v7799_v1  ;;  %v7844_v1 = vld [vmem:[#allocation104_spill] sm:$0xff] }
 0x297   :  { %4014 = vmatpush1.bf16.msra.mxu1 %v7800_v45  ;;  %v3625_v45 = vadd.f32 %v3624_v44, %v7038_v60 }
 0x298   :  { %4015 = vmatprep.subr.bf16.mxu1 %v7801_v54  ;;  %4057 = vmatpush1.bf16.msra.mxu0 %v7802_v15  ;;  %v7845_v54 = vld [vmem:[#allocation106_spill] sm:$0xff]  ;;  %v7051_v15 = vpack.c.bf16 %v3956_v21, %v3952_v37  ;;  %v7867_v37 = vld [vmem:[#allocation67_spill] sm:$0xff]  ;;  %v7868_v21 = vld [vmem:[#allocation128_spill] sm:$0xff] }
 0x299   :  { %4058 = vmatprep.subr.bf16.mxu0 %v7803_v51  ;;  %v3627_v51 = vadd.f32 %v3626_v13, %v7044_v25 }
 0x29b   :  { %4016 = vmatpush1.bf16.msra.mxu1 %v7804_v56  ;;  %v3668_v56 = vadd.f32 %v3667_v61, %v3625_v45  ;;  %v7856_v61 = vld [vmem:[#allocation116_spill] sm:$0xff]  ;;  %v7873_v45 = vld [vmem:[#allocation134_spill] sm:$0xff] }
 0x29c   :  { %4017 = vmatprep.subr.bf16.mxu1 %v7805_v31  ;;  %4059 = vmatpush1.bf16.msra.mxu0 %v7806_v12  ;;  %v7846_v31 = vld [vmem:[#allocation45_spill] sm:$0xff]  ;;  %v3673_v12 = vpop.f32.mrf.mxu1 }
 0x29d   :  { %4060 = vmatprep.subr.bf16.mxu0 %v7807_v47  ;;  %v3714_v47 = vpop.f32.mrf.mxu0 }
 0x29f   :  { %4018 = vmatpush1.bf16.msra.mxu1 %v7808_v49  ;;  %v7847_v49 = vld [vmem:[#allocation47_spill] sm:$0xff] }
 0x2a0   :  { %4019 = vmatprep.subr.bf16.mxu1 %v7809_v27  ;;  %4061 = vmatpush1.bf16.msra.mxu0 %v7810_v14  ;;  %v7848_v27 = vld [vmem:[#allocation108_spill] sm:$0xff]  ;;  %v3629_v14 = vadd.f32 %v3628_v48, %v7038_v60 }
 0x2a1   :  { %4062 = vmatprep.subr.bf16.mxu0 %v7811_v3  ;;  %v3670_v3 = vadd.f32 %v3669_v38, %v3627_v51  ;;  %v7859_v38 = vld [vmem:[#allocation59_spill] sm:$0xff] }
 0x2a2   :  { %v7875_v51 = vld [vmem:[#allocation75_spill] sm:$0xff] }
 0x2a3   :  { %4020 = vmatpush1.bf16.msra.mxu1 %v7812_v35  ;;  %v3711_v35 = vadd.f32 %v3710_v40, %v3668_v56  ;;  %v7860_v40 = vld [vmem:[#allocation120_spill] sm:$0xff] }
 0x2a4   :  { %4021 = vmatprep.subr.bf16.mxu1 %v7813_v39  ;;  %4063 = vmatpush1.bf16.msra.mxu0 %v7814_v43  ;;  %v7849_v39 = vld [vmem:[#allocation110_spill] sm:$0xff]  ;;  %v3631_v43 = vadd.f32 %v3630_v29, %v7044_v25  ;;  %v7876_v56 = vld [vmem:[#allocation136_spill] sm:$0xff] }
 0x2a5   :  { %4064 = vmatprep.subr.bf16.mxu0 %v7815_v5 }
 0x2a6   :  { %v3674_v44 = vadd.f32 %v3673_v12, %v3631_v43  ;;  %v7878_v12 = vld [vmem:[#allocation77_spill] sm:$0xff] }
 0x2a7   :  { %4022 = vmatpush2.bf16.msra.mxu1 %v7816_v10  ;;  %v3672_v10 = vadd.f32 %v3671_v19, %v3629_v14  ;;  %v7869_v19 = vld [vmem:[#allocation130_spill] sm:$0xff]  ;;  %v7882_v14 = vld [vmem:[#allocation81_spill] sm:$0xff] }
 0x2a8   :  { %4023 = vmatprep.subr.bf16.mxu1 %v7817_v18  ;;  %4065 = vmatpush2.bf16.msra.mxu0 %v7818_v20  ;;  %v3713_v18 = vadd.f32 %v3712_v23, %v3670_v3  ;;  %v7870_v23 = vld [vmem:[#allocation69_spill] sm:$0xff]  ;;  %v7883_v3 = vld [vmem:[#allocation83_spill] sm:$0xff] }
 0x2a9   :  { %4066 = vmatprep.subr.bf16.mxu0 %v7819_v26  ;;  %v7850_v26 = vld [vmem:[#allocation49_spill] sm:$0xff] }
 0x2aa   :  { %v7886_v43 = vld [vmem:[#allocation85_spill] sm:$0xff] }
 0x2ab   :  { %4024 = vmatpush2.bf16.msra.mxu1 %v7820_v28  ;;  %v3716_v28 = vpop.f32.mrf.mxu0 }
 0x2ac   :  { %4025 = vmatprep.subr.bf16.mxu1 %v7821_v34  ;;  %4067 = vmatpush2.bf16.msra.mxu0 %v7822_v36  ;;  %v7851_v36 = vld [vmem:[#allocation51_spill] sm:$0xff] }
 0x2ad   :  { %4068 = vmatprep.subr.bf16.mxu0 %v7823_v42  ;;  %v7852_v42 = vld [vmem:[#allocation112_spill] sm:$0xff] }
 0x2af   :  { %4026 = vmatpush2.bf16.msra.mxu1 %v7824_v50  ;;  %v3715_v50 = vadd.f32 %v3714_v47, %v3672_v10  ;;  %v7879_v47 = vld [vmem:[#allocation79_spill] sm:$0xff]  ;;  %v7888_v10 = vld [vmem:[#allocation148_spill] sm:$0xff] }
 0x2b0   :  { %4027 = vmatprep.subr.bf16.mxu1 %v7825_v52  ;;  %4069 = vmatpush2.bf16.msra.mxu0 %v7826_v0 }
 0x2b1   :  { %4070 = vmatprep.subr.bf16.mxu0 %v7827_v2  ;;  %v7853_v2 = vld [vmem:[#allocation114_spill] sm:$0xff] }
 0x2b3   :  { %4028 = vmatpush2.bf16.msra.mxu1 %v7828_v16  ;;  %v3717_v16 = vadd.f32 %v3716_v28, %v3674_v44  ;;  %v7892_v28 = vld [vmem:[#allocation152_spill] sm:$0xff] }
 0x2b4   :  { %4029 = vmatprep.subr.bf16.mxu1 %v7829_v30  ;;  %4071 = vmatpush2.bf16.msra.mxu0 %v7830_v32  ;;  %v7896_v44 = vld [vmem:[#allocation156_spill] sm:$0xff] }
 0x2b5   :  { %4072 = vmatprep.subr.bf16.mxu0 %v7831_v46  ;;  %v7854_v46 = vld [vmem:[#allocation53_spill] sm:$0xff] }
 0x2b7   :  { %4030 = vmatpush2.bf16.msra.mxu1 %v7832_v59  ;;  %v7855_v59 = vld [vmem:[#allocation55_spill] sm:$0xff] }
 0x2b8   :  { %4031 = vmatprep.subr.bf16.mxu1 %v7833_v22  ;;  %4073 = vmatpush2.bf16.msra.mxu0 %v7834_v24 }
 0x2b9   :  { %4074 = vmatprep.subr.bf16.mxu0 %v7835_v7  ;;  %v7857_v7 = vld [vmem:[#allocation118_spill] sm:$0xff] }
 0x2bb   :  { %4032 = vmatpush2.bf16.msra.mxu1 %v7836_v6  ;;  %v7858_v6 = vld [vmem:[#allocation57_spill] sm:$0xff] }
 0x2bc   :  { %4033 = vmatprep.subr.bf16.mxu1 %v7837_v33  ;;  %4075 = vmatpush2.bf16.msra.mxu0 %v7838_v17  ;;  %v7861_v33 = vld [vmem:[#allocation122_spill] sm:$0xff]  ;;  %v7862_v17 = vld [vmem:[#allocation61_spill] sm:$0xff] }
 0x2bd   :  { %4076 = vmatprep.subr.bf16.mxu0 %v7840_v63  ;;  %v7864_v63 = vld [vmem:[#allocation124_spill] sm:$0xff] }
 0x2bf   :  { %4034 = vmatpush2.bf16.msra.mxu1 %v7842_v4  ;;  %v7866_v4 = vld [vmem:[#allocation65_spill] sm:$0xff] }
 0x2c0   :  { %4035 = vmatprep.subr.bf16.mxu1 %v7843_v62  ;;  %4077 = vmatpush2.bf16.msra.mxu0 %v7844_v1  ;;  %v7871_v62 = vld [vmem:[#allocation71_spill] sm:$0xff]  ;;  %v7872_v1 = vld [vmem:[#allocation132_spill] sm:$0xff] }
 0x2c1   :  { %4078 = vmatprep.subr.bf16.mxu0 %v7845_v54  ;;  %v7874_v54 = vld [vmem:[#allocation73_spill] sm:$0xff] }
 0x2c3   :  { %4036 = vmatpush2.bf16.msra.mxu1 %v7846_v31  ;;  %v7877_v31 = vld [vmem:[#allocation138_spill] sm:$0xff] }
 0x2c4   :  { %4091 = vmatprep.subr.bf16.mxu1 %v7847_v49  ;;  %4079 = vmatpush2.bf16.msra.mxu0 %v7848_v27  ;;  %v7880_v49 = vld [vmem:[#allocation140_spill] sm:$0xff]  ;;  %v7881_v27 = vld [vmem:[#allocation142_spill] sm:$0xff] }
 0x2c5   :  { %4134 = vmatprep.subr.bf16.mxu0 %v7849_v39  ;;  %v7885_v39 = vld [vmem:[#allocation146_spill] sm:$0xff] }
 0x2c6   :  { %4038 = vmatmul.mubr.bf16.vlgmr.msra.gmra.mxu1 %v7051_v15  ;;  %v3753_v5 = vpop.f32.mrf.mxu1 }
 0x2c7   :  { %v3754_v20 = vadd.f32 %v3753_v5, %v3711_v35  ;;  %4092 = vmatpush1.bf16.msra.mxu1 %v7850_v26  ;;  %4081 = vmatmul.mubr.bf16.vlgmr.msra.gmra.mxu0 %v6964_v55  ;;  %v7884_v35 = vld [vmem:[#allocation144_spill] sm:$0xff]  ;;  %v7887_v5 = vld [vmem:[#allocation87_spill] sm:$0xff] }
 0x2c8   :  { %v3755_v34 = vpop.f32.mrf.mxu1  ;;  %4093 = vmatprep.subr.bf16.mxu1 %v7851_v36  ;;  %4135 = vmatpush1.bf16.msra.mxu0 %v7852_v42  ;;  %v7891_v26 = vld [vmem:[#allocation91_spill] sm:$0xff]  ;;  %v7894_v36 = vld [vmem:[#allocation93_spill] sm:$0xff] }
 0x2c9   :  { %v3934_v52 = vmax.f32 %v3754_v20, 0.0  ;;  %v3756_v0 = vadd.f32 %v3755_v34, %v3713_v18  ;;  %4136 = vmatprep.subr.bf16.mxu0 %v7853_v2  ;;  %4123 = vmatprep.mubr.bf16.mxu1 %v6969_v11  ;;  %v7889_v18 = vld [vmem:[#allocation150_spill] sm:$0xff]  ;;  %v7890_v20 = vld [vmem:[#allocation89_spill] sm:$0xff]  ;;  %v7895_v42 = vld [vmem:[#allocation95_spill] sm:$0xff] }
 0x2ca   :  { %v3757_v13 = vpop.f32.mrf.mxu1  ;;  %4166 = vmatprep.mubr.bf16.mxu0 %v6928_v58  ;;  %v7893_v34 = vld [vmem:[#allocation154_spill] sm:$0xff]  ;;  %v7900_v2 = vld [vmem:[#allocation160_spill] sm:$0xff] }
 0x2cb   :  { %3942 = vst [vmem:[#allocation10] sm:$0xff] %v3934_v52  ;;  %v3935_v30 = vmax.f32 %v3756_v0, 0.0  ;;  %v3758_v32 = vadd.f32 %v3757_v13, %v3715_v50  ;;  %4094 = vmatpush1.bf16.msra.mxu1 %v7854_v46  ;;  %v7897_v50 = vld [vmem:[#allocation158_spill] sm:$0xff]  ;;  %v7898_v52 = vld [vmem:[#allocation97_spill] sm:$0xff]  ;;  %v7899_v0 = vld [vmem:[#allocation99_spill] sm:$0xff] }
 0x2cc   :  { %v3759_v48 = vpop.f32.mrf.mxu1  ;;  %4095 = vmatprep.subr.bf16.mxu1 %v7855_v59  ;;  %4137 = vmatpush1.bf16.msra.mxu0 %v7856_v61  ;;  %v7901_v13 = vld [vmem:[#allocation162_spill] sm:$0xff]  ;;  %v7907_v59 = vld [vmem:[#allocation107_spill] sm:$0xff]  ;;  %v7908_v61 = vld [vmem:[#allocation168_spill] sm:$0xff] }
 0x2cd   :  { %3943 = vst [vmem:[#allocation10 + $0x8] sm:$0xff] %v3935_v30  ;;  %v3938_v22 = vmax.f32 %v3758_v32, 0.0  ;;  %v3760_v24 = vadd.f32 %v3759_v48, %v3717_v16  ;;  %4138 = vmatprep.subr.bf16.mxu0 %v7857_v7  ;;  %v7902_v16 = vld [vmem:[#allocation101_spill] sm:$0xff]  ;;  %v7903_v30 = vld [vmem:[#allocation103_spill] sm:$0xff]  ;;  %v7904_v32 = vld [vmem:[#allocation164_spill] sm:$0xff] }
 0x2ce   :  { %v7905_v46 = vld [vmem:[#allocation166_spill] sm:$0xff]  ;;  %v7906_v48 = vld [vmem:[#allocation105_spill] sm:$0xff]  ;;  %v7911_v7 = vld [vmem:[#allocation111_spill] sm:$0xff] }
 0x2cf   :  { %3946 = vst [vmem:[#allocation10 + $0x20] sm:$0xff] %v3938_v22  ;;  %v3939_v29 = vmax.f32 %v3760_v24, 0.0  ;;  %4096 = vmatpush1.bf16.msra.mxu1 %v7858_v6  ;;  %v7909_v22 = vld [vmem:[#allocation170_spill] sm:$0xff]  ;;  %v7910_v24 = vld [vmem:[#allocation109_spill] sm:$0xff] }
 0x2d0   :  { %4097 = vmatprep.subr.bf16.mxu1 %v7859_v38  ;;  %4139 = vmatpush1.bf16.msra.mxu0 %v7860_v40  ;;  %v7913_v6 = vld [vmem:[#allocation174_spill] sm:$0xff]  ;;  %v7914_v38 = vld [vmem:[#allocation113_spill] sm:$0xff]  ;;  %v7915_v40 = vld [vmem:[#allocation115_spill] sm:$0xff] }
 0x2d1   :  { %3947 = vst [vmem:[#allocation10 + $0x28] sm:$0xff] %v3939_v29  ;;  %4140 = vmatprep.subr.bf16.mxu0 %v7861_v33  ;;  %v7912_v29 = vld [vmem:[#allocation172_spill] sm:$0xff] }
 0x2d2   :  { %v7916_v33 = vld [vmem:[#allocation176_spill] sm:$0xff] }
 0x2d3   :  { %4098 = vmatpush1.bf16.msra.mxu1 %v7862_v17  ;;  %v7917_v17 = vld [vmem:[#allocation178_spill] sm:$0xff] }
 0x2d4   :  { %4099 = vmatprep.subr.bf16.mxu1 %v7863_v8  ;;  %4141 = vmatpush1.bf16.msra.mxu0 %v7864_v63  ;;  %v7918_v8 = vld [vmem:[#allocation117_spill] sm:$0xff]  ;;  %v7919_v63 = vld [vmem:[#allocation119_spill] sm:$0xff] }
 0x2d5   :  { %4142 = vmatprep.subr.bf16.mxu0 %v7865_v41  ;;  %v7920_v41 = vld [vmem:[#allocation180_spill] sm:$0xff] }
 0x2d7   :  { %4100 = vmatpush1.bf16.msra.mxu1 %v7866_v4  ;;  %v7921_v4 = vld [vmem:[#allocation182_spill] sm:$0xff] }
 0x2d8   :  { %4101 = vmatprep.subr.bf16.mxu1 %v7867_v37  ;;  %4143 = vmatpush1.bf16.msra.mxu0 %v7868_v21  ;;  %v7922_v37 = vld [vmem:[#allocation121_spill] sm:$0xff]  ;;  %v7923_v21 = vld [vmem:[#allocation123_spill] sm:$0xff] }
 0x2d9   :  { %4144 = vmatprep.subr.bf16.mxu0 %v7869_v19  ;;  %v7924_v19 = vld [vmem:[#allocation184_spill] sm:$0xff] }
 0x2db   :  { %4102 = vmatpush1.bf16.msra.mxu1 %v7870_v23  ;;  %v7925_v23 = vld [vmem:[#allocation186_spill] sm:$0xff] }
 0x2dc   :  { %4103 = vmatprep.subr.bf16.mxu1 %v7871_v62  ;;  %4145 = vmatpush1.bf16.msra.mxu0 %v7872_v1  ;;  %v7926_v62 = vld [vmem:[#allocation125_spill] sm:$0xff]  ;;  %v7927_v1 = vld [vmem:[#allocation127_spill] sm:$0xff] }
 0x2dd   :  { %4146 = vmatprep.subr.bf16.mxu0 %v7873_v45  ;;  %v7929_v45 = vld [vmem:[#allocation190_spill] sm:$0xff] }
 0x2df   :  { %4104 = vmatpush1.bf16.msra.mxu1 %v7874_v54  ;;  %v7930_v54 = vld [vmem:[#allocation129_spill] sm:$0xff] }
 0x2e0   :  { %4105 = vmatprep.subr.bf16.mxu1 %v7875_v51  ;;  %4147 = vmatpush1.bf16.msra.mxu0 %v7876_v56  ;;  %v7931_v51 = vld [vmem:[#allocation131_spill] sm:$0xff]  ;;  %v7932_v56 = vld [vmem:[#allocation192_spill] sm:$0xff] }
 0x2e1   :  { %4148 = vmatprep.subr.bf16.mxu0 %v7877_v31  ;;  %v7933_v31 = vld [vmem:[#allocation194_spill] sm:$0xff] }
 0x2e3   :  { %4106 = vmatpush1.bf16.msra.mxu1 %v7878_v12  ;;  %v7934_v12 = vld [vmem:[#allocation133_spill] sm:$0xff] }
 0x2e4   :  { %4107 = vmatprep.subr.bf16.mxu1 %v7879_v47  ;;  %4149 = vmatpush1.bf16.msra.mxu0 %v7880_v49  ;;  %v7935_v47 = vld [vmem:[#allocation135_spill] sm:$0xff]  ;;  %v7936_v49 = vld [vmem:[#allocation196_spill] sm:$0xff] }
 0x2e5   :  { %4150 = vmatprep.subr.bf16.mxu0 %v7881_v27  ;;  %v7937_v27 = vld [vmem:[#allocation198_spill] sm:$0xff] }
 0x2e7   :  { %4108 = vmatpush2.bf16.msra.mxu1 %v7882_v14  ;;  %v7938_v14 = vld [vmem:[#allocation137_spill] sm:$0xff] }
 0x2e8   :  { %4109 = vmatprep.subr.bf16.mxu1 %v7883_v3  ;;  %4151 = vmatpush2.bf16.msra.mxu0 %v7884_v35  ;;  %v7939_v3 = vld [vmem:[#allocation139_spill] sm:$0xff]  ;;  %v7940_v35 = vld [vmem:[#allocation200_spill] sm:$0xff] }
 0x2e9   :  { %4152 = vmatprep.subr.bf16.mxu0 %v7885_v39  ;;  %v7941_v39 = vld [vmem:[#allocation202_spill] sm:$0xff] }
 0x2eb   :  { %4110 = vmatpush2.bf16.msra.mxu1 %v7886_v43  ;;  %v7942_v43 = vld [vmem:[#allocation141_spill] sm:$0xff] }
 0x2ec   :  { %4111 = vmatprep.subr.bf16.mxu1 %v7887_v5  ;;  %4153 = vmatpush2.bf16.msra.mxu0 %v7888_v10  ;;  %v7943_v5 = vld [vmem:[#allocation143_spill] sm:$0xff]  ;;  %v7944_v10 = vld [vmem:[#allocation204_spill] sm:$0xff] }
 0x2ed   :  { %4154 = vmatprep.subr.bf16.mxu0 %v7889_v18  ;;  %v7945_v18 = vld [vmem:[#allocation206_spill] sm:$0xff] }
 0x2ef   :  { %4112 = vmatpush2.bf16.msra.mxu1 %v7890_v20  ;;  %v7946_v20 = vld [vmem:[#allocation145_spill] sm:$0xff] }
 0x2f0   :  { %4113 = vmatprep.subr.bf16.mxu1 %v7891_v26  ;;  %4155 = vmatpush2.bf16.msra.mxu0 %v7892_v28  ;;  %v7947_v26 = vld [vmem:[#allocation147_spill] sm:$0xff]  ;;  %v7948_v28 = vld [vmem:[#allocation208_spill] sm:$0xff] }
 0x2f1   :  { %4156 = vmatprep.subr.bf16.mxu0 %v7893_v34  ;;  %v7949_v34 = vld [vmem:[#allocation210_spill] sm:$0xff] }
 0x2f3   :  { %4114 = vmatpush2.bf16.msra.mxu1 %v7894_v36  ;;  %v7950_v36 = vld [vmem:[#allocation149_spill] sm:$0xff] }
 0x2f4   :  { %4115 = vmatprep.subr.bf16.mxu1 %v7895_v42  ;;  %4157 = vmatpush2.bf16.msra.mxu0 %v7896_v44  ;;  %v7951_v42 = vld [vmem:[#allocation151_spill] sm:$0xff]  ;;  %v7952_v44 = vld [vmem:[#allocation212_spill] sm:$0xff] }
 0x2f5   :  { %4158 = vmatprep.subr.bf16.mxu0 %v7897_v50  ;;  %v7953_v50 = vld [vmem:[#allocation214_spill] sm:$0xff] }
 0x2f7   :  { %4116 = vmatpush2.bf16.msra.mxu1 %v7898_v52  ;;  %v7954_v52 = vld [vmem:[#allocation153_spill] sm:$0xff] }
 0x2f8   :  { %4117 = vmatprep.subr.bf16.mxu1 %v7899_v0  ;;  %4159 = vmatpush2.bf16.msra.mxu0 %v7900_v2  ;;  %v3796_v0 = vpop.f32.mrf.mxu0  ;;  %v7955_v2 = vld [vmem:[#allocation155_spill] sm:$0xff] }
 0x2f9   :  { %4160 = vmatprep.subr.bf16.mxu0 %v7901_v13  ;;  %v7956_v13 = vld [vmem:[#allocation216_spill] sm:$0xff] }
 0x2fb   :  { %4118 = vmatpush2.bf16.msra.mxu1 %v7902_v16  ;;  %v7957_v16 = vld [vmem:[#allocation218_spill] sm:$0xff] }
 0x2fc   :  { %4119 = vmatprep.subr.bf16.mxu1 %v7903_v30  ;;  %4161 = vmatpush2.bf16.msra.mxu0 %v7904_v32  ;;  %v7958_v30 = vld [vmem:[#allocation157_spill] sm:$0xff]  ;;  %v3798_v32 = vpop.f32.mrf.mxu0 }
 0x2fd   :  { %4162 = vmatprep.subr.bf16.mxu0 %v7905_v46  ;;  %v7959_v46 = vld [vmem:[#allocation159_spill] sm:$0xff] }
 0x2ff   :  { %4120 = vmatpush2.bf16.msra.mxu1 %v7906_v48  ;;  %v7960_v48 = vld [vmem:[#allocation220_spill] sm:$0xff] }
 0x300   :  { %4121 = vmatprep.subr.bf16.mxu1 %v7907_v59  ;;  %4163 = vmatpush2.bf16.msra.mxu0 %v7908_v61  ;;  %v7961_v59 = vld [vmem:[#allocation222_spill] sm:$0xff]  ;;  %v7962_v61 = vld [vmem:[#allocation161_spill] sm:$0xff] }
 0x301   :  { %4164 = vmatprep.subr.bf16.mxu0 %v7909_v22  ;;  %v3800_v22 = vpop.f32.mrf.mxu0 }
 0x303   :  { %4122 = vmatpush2.bf16.msra.mxu1 %v7910_v24 }
 0x304   :  { %4177 = vmatprep.subr.bf16.mxu1 %v7911_v7  ;;  %4165 = vmatpush2.bf16.msra.mxu0 %v7912_v29  ;;  %v7963_v7 = vld [vmem:[#allocation163_spill] sm:$0xff]  ;;  %v7964_v29 = vld [vmem:[#allocation224_spill] sm:$0xff] }
 0x305   :  { %4220 = vmatprep.subr.bf16.mxu0 %v7913_v6  ;;  %v7965_v6 = vld [vmem:[#allocation226_spill] sm:$0xff] }
 0x306   :  { %4124 = vmatmul.mubr.bf16.vlgmr.msra.gmra.mxu1 %v7051_v15  ;;  %v3839_v24 = vpop.f32.mrf.mxu1 }
 0x307   :  { %4178 = vmatpush1.bf16.msra.mxu1 %v7914_v38  ;;  %4167 = vmatmul.mubr.bf16.vlgmr.msra.gmra.mxu0 %v6964_v55  ;;  %v7966_v38 = vsub.s32 2, %v6815_v57 }
 0x308   :  { %4179 = vmatprep.subr.bf16.mxu1 %v7915_v40  ;;  %4221 = vmatpush1.bf16.msra.mxu0 %v7916_v33  ;;  %v7967_v33 = vld [vmem:[#allocation165_spill] sm:$0xff] }
 0x309   :  { %4222 = vmatprep.subr.bf16.mxu0 %v7917_v17  ;;  %4209 = vmatprep.mubr.bf16.mxu1 %v6969_v11  ;;  %v7187_v40 = vrot.slane %v7030_v53, %v7966_v38  ;;  %v3802_v17 = vpop.f32.mrf.mxu0  ;;  %v7985_v38 = vld [vmem:[#allocation189_spill] sm:$0xff] }
 0x30a   :  { %4252 = vmatprep.mubr.bf16.mxu0 %v6928_v58  ;;  %v7928_v58 = vld [vmem:[#allocation188_spill] sm:$0xff] }
 0x30b   :  { %4180 = vmatpush1.bf16.msra.mxu1 %v7918_v8  ;;  %v3841_v8 = vpop.f32.mrf.mxu1 }
 0x30c   :  { %4181 = vmatprep.subr.bf16.mxu1 %v7919_v63  ;;  %4223 = vmatpush1.bf16.msra.mxu0 %v7920_v41  ;;  %v7968_v63 = vld [vmem:[#allocation167_spill] sm:$0xff]  ;;  %v7969_v41 = vld [vmem:[#allocation228_spill] sm:$0xff] }
 0x30d   :  { %4224 = vmatprep.subr.bf16.mxu0 %v7921_v4  ;;  %v7970_v4 = vsub.s32 3, %v6815_v57 }
 0x30f   :  { %4182 = vmatpush1.bf16.msra.mxu1 %v7922_v37  ;;  %v7195_v37 = vrot.slane %v7030_v53, %v7970_v4  ;;  %v3801_v53 = vadd.f32 %v3800_v22, %v7187_v40  ;;  %v5618_v22 = vld [vmem:[#allocation8 + $0xa4] ss:$16 sps:$4 sm:$0xff]   ;;  %v5623_v4 = vld [vmem:[#allocation8 + $0x60] ss:$16 sps:$4 sm:$0xff]  }
 0x310   :  { %4183 = vmatprep.subr.bf16.mxu1 %v7923_v21  ;;  %4225 = vmatpush1.bf16.msra.mxu0 %v7924_v19  ;;  %v7971_v21 = vld [vmem:[#allocation230_spill] sm:$0xff]  ;;  %v3882_v19 = vpop.f32.mrf.mxu0 }
 0x311   :  { %4226 = vmatprep.subr.bf16.mxu0 %v7925_v23  ;;  %v3797_v23 = vadd.f32 %v3796_v0, %v7187_v40 }
 0x312   :  { %v3884_v57 = vpop.f32.mrf.mxu0 }
 0x313   :  { %4184 = vmatpush1.bf16.msra.mxu1 %v7926_v62  ;;  %v7972_v62 = vld [vmem:[#allocation169_spill] sm:$0xff] }
 0x314   :  { %4185 = vmatprep.subr.bf16.mxu1 %v7927_v1  ;;  %4227 = vmatpush1.bf16.msra.mxu0 %v7928_v58  ;;  %v3843_v1 = vpop.f32.mrf.mxu1  ;;  %v7973_v58 = vld [vmem:[#allocation171_spill] sm:$0xff] }
 0x315   :  { %4228 = vmatprep.subr.bf16.mxu0 %v7929_v45  ;;  %v7974_v45 = vld [vmem:[#allocation232_spill] sm:$0xff] }
 0x317   :  { %4186 = vmatpush1.bf16.msra.mxu1 %v7930_v54  ;;  %v3799_v54 = vadd.f32 %v3798_v32, %v7195_v37  ;;  %v7981_v32 = vld [vmem:[#allocation181_spill] sm:$0xff] }
 0x318   :  { %4187 = vmatprep.subr.bf16.mxu1 %v7931_v51  ;;  %4229 = vmatpush1.bf16.msra.mxu0 %v7932_v56  ;;  %v3840_v51 = vadd.f32 %v3839_v24, %v3797_v23  ;;  %v7975_v56 = vld [vmem:[#allocation234_spill] sm:$0xff]  ;;  %v7983_v24 = vld [vmem:[#allocation185_spill] sm:$0xff]  ;;  %v7990_v23 = vld [vmem:[#allocation199_spill] sm:$0xff] }
 0x319   :  { %4230 = vmatprep.subr.bf16.mxu0 %v7933_v31  ;;  %v3842_v31 = vadd.f32 %v3841_v8, %v3799_v54  ;;  %v5622_v8 = vld [vmem:[#allocation8 + $0x64] ss:$16 sps:$4 sm:$0xff]   ;;  %v5627_v54 = vld [vmem:[#allocation8 + $0x20] ss:$16 sps:$4 sm:$0xff]  }
 0x31b   :  { %4188 = vmatpush1.bf16.msra.mxu1 %v7934_v12  ;;  %v7976_v12 = vld [vmem:[#allocation173_spill] sm:$0xff] }
 0x31c   :  { %4189 = vmatprep.subr.bf16.mxu1 %v7935_v47  ;;  %4231 = vmatpush1.bf16.msra.mxu0 %v7936_v49  ;;  %v3845_v47 = vpop.f32.mrf.mxu1  ;;  %v7977_v49 = vld [vmem:[#allocation175_spill] sm:$0xff] }
 0x31d   :  { %4232 = vmatprep.subr.bf16.mxu0 %v7937_v27  ;;  %v7978_v27 = vld [vmem:[#allocation236_spill] sm:$0xff] }
 0x31f   :  { %4190 = vmatpush1.bf16.msra.mxu1 %v7938_v14  ;;  %v3803_v14 = vadd.f32 %v3802_v17, %v7195_v37  ;;  %v5621_v17 = vld [vmem:[#allocation8 + $0x80] ss:$16 sps:$4 sm:$0xff]  }
 0x320   :  { %4191 = vmatprep.subr.bf16.mxu1 %v7939_v3  ;;  %4233 = vmatpush1.bf16.msra.mxu0 %v7940_v35  ;;  %v3883_v3 = vadd.f32 %v3882_v19, %v3840_v51  ;;  %v3844_v35 = vadd.f32 %v3843_v1, %v3801_v53  ;;  %v7989_v19 = vld [vmem:[#allocation197_spill] sm:$0xff] }
 0x321   :  { %4234 = vmatprep.subr.bf16.mxu0 %v7941_v39  ;;  %v5614_v39 = vld [vmem:[#allocation8 + $0xe4] ss:$16 sps:$4 sm:$0xff]   ;;  %v5629_v53 = vld [vmem:[#allocation8] ss:$16 sps:$4 sm:$0xff]  }
 0x322   :  { %v5626_v1 = vld [vmem:[#allocation8 + $0x24] ss:$16 sps:$4 sm:$0xff]  }
 0x323   :  { %4192 = vmatpush1.bf16.msra.mxu1 %v7942_v43  ;;  %v3886_v43 = vpop.f32.mrf.mxu0  ;;  %v5628_v51 = vld [vmem:[#allocation8 + $0x4] ss:$16 sps:$4 sm:$0xff]  }
 0x324   :  { %4193 = vmatprep.subr.bf16.mxu1 %v7943_v5  ;;  %4235 = vmatpush1.bf16.msra.mxu0 %v7944_v10  ;;  %v3885_v10 = vadd.f32 %v3884_v57, %v3842_v31  ;;  %v7994_v57 = vld [vmem:[#allocation207_spill] sm:$0xff] }
 0x325   :  { %4236 = vmatprep.subr.bf16.mxu0 %v7945_v18  ;;  %v3846_v18 = vadd.f32 %v3845_v47, %v3803_v14  ;;  %v3888_v0 = vpop.f32.mrf.mxu0  ;;  %v5630_v31 = vld [vmem:[#allocation8 + $0x1e4] ss:$16 sps:$4 sm:$0xff]  }
 0x326   :  { %v7996_v47 = vld [vmem:[#allocation211_spill] sm:$0xff]  ;;  %v7997_v14 = vld [vmem:[#allocation213_spill] sm:$0xff] }
 0x327   :  { %4194 = vmatpush2.bf16.msra.mxu1 %v7946_v20 }
 0x328   :  { %4195 = vmatprep.subr.bf16.mxu1 %v7947_v26  ;;  %4237 = vmatpush2.bf16.msra.mxu0 %v7948_v28  ;;  %v7979_v26 = vld [vmem:[#allocation177_spill] sm:$0xff] }
 0x329   :  { %4238 = vmatprep.subr.bf16.mxu0 %v7949_v34  ;;  %v7980_v34 = vld [vmem:[#allocation179_spill] sm:$0xff] }
 0x32b   :  { %4196 = vmatpush2.bf16.msra.mxu1 %v7950_v36  ;;  %v5615_v36 = vld [vmem:[#allocation8 + $0xe0] ss:$16 sps:$4 sm:$0xff]  }
 0x32c   :  { %4197 = vmatprep.subr.bf16.mxu1 %v7951_v42  ;;  %4239 = vmatpush2.bf16.msra.mxu0 %v7952_v44  ;;  %v3887_v42 = vadd.f32 %v3886_v43, %v3844_v35  ;;  %v5633_v35 = vld [vmem:[#allocation8 + $0x1c0] ss:$16 sps:$4 sm:$0xff]  }
 0x32d   :  { %4240 = vmatprep.subr.bf16.mxu0 %v7953_v50  ;;  %v7999_v43 = vld [vmem:[#allocation217_spill] sm:$0xff] }
 0x32f   :  { %4198 = vmatpush2.bf16.msra.mxu1 %v7954_v52  ;;  %v5616_v52 = vld [vmem:[#allocation8 + $0xc4] ss:$16 sps:$4 sm:$0xff]  }
 0x330   :  { %4199 = vmatprep.subr.bf16.mxu1 %v7955_v2  ;;  %4241 = vmatpush2.bf16.msra.mxu0 %v7956_v13  ;;  %v3889_v13 = vadd.f32 %v3888_v0, %v3846_v18  ;;  %v5636_v18 = vld [vmem:[#allocation8 + $0x184] ss:$16 sps:$4 sm:$0xff]  }
 0x331   :  { %4242 = vmatprep.subr.bf16.mxu0 %v7957_v16  ;;  %v8006_v0 = vld [vmem:[#allocation231_spill] sm:$0xff] }
 0x333   :  { %4200 = vmatpush2.bf16.msra.mxu1 %v7958_v30 }
 0x334   :  { %4201 = vmatprep.subr.bf16.mxu1 %v7959_v46  ;;  %4243 = vmatpush2.bf16.msra.mxu0 %v7960_v48  ;;  %v7982_v46 = vld [vmem:[#allocation183_spill] sm:$0xff] }
 0x335   :  { %4244 = vmatprep.subr.bf16.mxu0 %v7961_v59  ;;  %v5617_v48 = vld [vmem:[#allocation8 + $0xc0] ss:$16 sps:$4 sm:$0xff]  }
 0x337   :  { %4202 = vmatpush2.bf16.msra.mxu1 %v7962_v61 }
 0x338   :  { %4203 = vmatprep.subr.bf16.mxu1 %v7963_v7  ;;  %4245 = vmatpush2.bf16.msra.mxu0 %v7964_v29  ;;  %v7984_v7 = vld [vmem:[#allocation187_spill] sm:$0xff] }
 0x339   :  { %4246 = vmatprep.subr.bf16.mxu0 %v7965_v6  ;;  %v5619_v29 = vld [vmem:[#allocation8 + $0xa0] ss:$16 sps:$4 sm:$0xff]   ;;  %v5620_v6 = vld [vmem:[#allocation8 + $0x84] ss:$16 sps:$4 sm:$0xff]  }
 0x33b   :  { %4204 = vmatpush2.bf16.msra.mxu1 %v7967_v33  ;;  %v7986_v33 = vld [vmem:[#allocation191_spill] sm:$0xff] }
 0x33c   :  { %4205 = vmatprep.subr.bf16.mxu1 %v7968_v63  ;;  %4247 = vmatpush2.bf16.msra.mxu0 %v7969_v41  ;;  %v7987_v63 = vld [vmem:[#allocation193_spill] sm:$0xff]  ;;  %v7988_v41 = vld [vmem:[#allocation195_spill] sm:$0xff] }
 0x33d   :  { %4248 = vmatprep.subr.bf16.mxu0 %v7971_v21  ;;  %v5624_v21 = vld [vmem:[#allocation8 + $0x44] ss:$16 sps:$4 sm:$0xff]  }
 0x33f   :  { %4206 = vmatpush2.bf16.msra.mxu1 %v7972_v62  ;;  %v5625_v62 = vld [vmem:[#allocation8 + $0x40] ss:$16 sps:$4 sm:$0xff]  }
 0x340   :  { %4207 = vmatprep.subr.bf16.mxu1 %v7973_v58  ;;  %4249 = vmatpush2.bf16.msra.mxu0 %v7974_v45  ;;  %v7991_v58 = vld [vmem:[#allocation201_spill] sm:$0xff]  ;;  %v7992_v45 = vld [vmem:[#allocation203_spill] sm:$0xff] }
 0x341   :  { %4250 = vmatprep.subr.bf16.mxu0 %v7975_v56  ;;  %v7993_v56 = vld [vmem:[#allocation205_spill] sm:$0xff] }
 0x343   :  { %4208 = vmatpush2.bf16.msra.mxu1 %v7976_v12  ;;  %v7995_v12 = vld [vmem:[#allocation209_spill] sm:$0xff] }
 0x344   :  { %4263 = vmatprep.subr.bf16.mxu1 %v7977_v49  ;;  %4251 = vmatpush2.bf16.msra.mxu0 %v7978_v27  ;;  %v5631_v49 = vld [vmem:[#allocation8 + $0x1e0] ss:$16 sps:$4 sm:$0xff]   ;;  %v5632_v27 = vld [vmem:[#allocation8 + $0x1c4] ss:$16 sps:$4 sm:$0xff]  }
 0x345   :  { %4330 = vmatprep.subr.bf16.mxu0 %v5614_v39  ;;  %v5634_v39 = vld [vmem:[#allocation8 + $0x1a4] ss:$16 sps:$4 sm:$0xff]  }
 0x346   :  { %v3925_v5 = vpop.f32.mrf.mxu1  ;;  %4210 = vmatmul.mubr.bf16.vlgmr.msra.gmra.mxu1 %v7051_v15 }
 0x347   :  { %v3926_v20 = vadd.f32 %v3925_v5, %v3883_v3  ;;  %4264 = vmatpush1.bf16.msra.mxu1 %v7979_v26  ;;  %4253 = vmatmul.mubr.bf16.vlgmr.msra.gmra.mxu0 %v6964_v55  ;;  %v7998_v3 = vld [vmem:[#allocation215_spill] sm:$0xff] }
 0x348   :  { %v3927_v28 = vpop.f32.mrf.mxu1  ;;  %4265 = vmatprep.subr.bf16.mxu1 %v7980_v34  ;;  %4331 = vmatpush1.bf16.msra.mxu0 %v5615_v36  ;;  %v8000_v5 = vld [vmem:[#allocation219_spill] sm:$0xff]  ;;  %v8003_v36 = vld [vmem:[#allocation225_spill] sm:$0xff] }
 0x349   :  { %v3936_v44 = vmax.f32 %v3926_v20, 0.0  ;;  %v3928_v50 = vadd.f32 %v3927_v28, %v3885_v10  ;;  %4332 = vmatprep.subr.bf16.mxu0 %v5616_v52  ;;  %4295 = vmatprep.mubr.bf16.mxu1 %v6969_v11  ;;  %v5635_v10 = vld [vmem:[#allocation8 + $0x1a0] ss:$16 sps:$4 sm:$0xff]   ;;  %v5638_v34 = vld [vmem:[#allocation8 + $0x164] ss:$16 sps:$4 sm:$0xff]  }
 0x34a   :  { %v3929_v2 = vpop.f32.mrf.mxu1  ;;  %v8001_v20 = vld [vmem:[#allocation221_spill] sm:$0xff]  ;;  %v8002_v26 = vld [vmem:[#allocation223_spill] sm:$0xff] }
 0x34b   :  { %3944 = vst [vmem:[#allocation10 + $0x10] sm:$0xff] %v3936_v44  ;;  %v3937_v16 = vmax.f32 %v3928_v50, 0.0  ;;  %v3930_v30 = vadd.f32 %v3929_v2, %v3887_v42  ;;  %4266 = vmatpush1.bf16.msra.mxu1 %v7981_v32  ;;  %v5637_v28 = vld [vmem:[#allocation8 + $0x180] ss:$16 sps:$4 sm:$0xff]   ;;  %v5640_v50 = vld [vmem:[#allocation8 + $0x144] ss:$16 sps:$4 sm:$0xff]   ;;  %v3996_v2 = vpop.f32.mrf.mxu0 }
 0x34c   :  { %v3931_v55 = vpop.f32.mrf.mxu1  ;;  %4267 = vmatprep.subr.bf16.mxu1 %v7982_v46  ;;  %4333 = vmatpush1.bf16.msra.mxu0 %v5617_v48  ;;  %v8004_v42 = vld [vmem:[#allocation227_spill] sm:$0xff]  ;;  %v8005_v52 = vld [vmem:[#allocation229_spill] sm:$0xff] }
 0x34d   :  { %3945 = vst [vmem:[#allocation10 + $0x18] sm:$0xff] %v3937_v16  ;;  %v3940_v59 = vmax.f32 %v3930_v30, 0.0  ;;  %v3932_v61 = vadd.f32 %v3931_v55, %v3889_v13  ;;  %4334 = vmatprep.subr.bf16.mxu0 %v5618_v22  ;;  %v5639_v44 = vld [vmem:[#allocation8 + $0x160] ss:$16 sps:$4 sm:$0xff]   ;;  %v5642_v16 = vld [vmem:[#allocation8 + $0x124] ss:$16 sps:$4 sm:$0xff]   ;;  %v3998_v32 = vpop.f32.mrf.mxu0 }
 0x34e   :  { %v5641_v13 = vld [vmem:[#allocation8 + $0x140] ss:$16 sps:$4 sm:$0xff]   ;;  %v5644_v48 = vld [vmem:[#allocation8 + $0x104] ss:$16 sps:$4 sm:$0xff]  }
 0x34f   :  { %3948 = vst [vmem:[#allocation10 + $0x30] sm:$0xff] %v3940_v59  ;;  %v3941_v11 = vmax.f32 %v3932_v61, 0.0  ;;  %4268 = vmatpush1.bf16.msra.mxu1 %v7983_v24  ;;  %v8007_v30 = vld [vmem:[#allocation233_spill] sm:$0xff]  ;;  %v8008_v55 = vld [vmem:[#allocation235_spill] sm:$0xff]  ;;  %v4000_v61 = vpop.f32.mrf.mxu0 }
 0x350   :  { %4269 = vmatprep.subr.bf16.mxu1 %v7984_v7  ;;  %4335 = vmatpush1.bf16.msra.mxu0 %v5619_v29  ;;  %v5643_v46 = vld [vmem:[#allocation8 + $0x120] ss:$16 sps:$4 sm:$0xff]   ;;  %v5647_v24 = vld [vmem:[#allocation8 + $0x4e4] ss:$16 sps:$4 sm:$0xff]   ;;  %v8010_v29 = vld [vmem:[#allocation238_spill] sm:$0xff] }
 0x351   :  { %3949 = vst [vmem:[#allocation10 + $0x38] sm:$0xff] %v3941_v11  ;;  %4336 = vmatprep.subr.bf16.mxu0 %v5620_v6  ;;  %v8009_v59 = vld [vmem:[#allocation237_spill] sm:$0xff]  ;;  %v3999_v6 = vadd.f32 %v3998_v32, %v8010_v29 }
 0x352   :  { %v5645_v22 = vld [vmem:[#allocation8 + $0x100] ss:$16 sps:$4 sm:$0xff]   ;;  %v5646_v11 = vld [vmem:[#allocation8 + $0x2e4] ss:$16 sps:$4 sm:$0xff]  }
 0x353   :  { %4270 = vmatpush1.bf16.msra.mxu1 %v7985_v38  ;;  %v5648_v38 = vld [vmem:[#allocation8 + $0x2e0] ss:$16 sps:$4 sm:$0xff]   ;;  %v5677_v32 = vld [vmem:[#allocation8 + $0x424] ss:$16 sps:$4 sm:$0xff]  }
 0x354   :  { %4271 = vmatprep.subr.bf16.mxu1 %v7986_v33  ;;  %4337 = vmatpush1.bf16.msra.mxu0 %v5621_v17  ;;  %v8011_v33 = vld [vmem:[#allocation239_spill] sm:$0xff] }
 0x355   :  { %4338 = vmatprep.subr.bf16.mxu0 %v5622_v8  ;;  %v3997_v17 = vadd.f32 %v3996_v2, %v8011_v33  ;;  %v4002_v8 = vpop.f32.mrf.mxu0  ;;  %v5673_v2 = vld [vmem:[#allocation8 + $0x444] ss:$16 sps:$4 sm:$0xff]  }
 0x357   :  { %4272 = vmatpush1.bf16.msra.mxu1 %v7987_v63 }
 0x358   :  { %4273 = vmatprep.subr.bf16.mxu1 %v7988_v41  ;;  %4339 = vmatpush1.bf16.msra.mxu0 %v5623_v4  ;;  %v5649_v41 = vld [vmem:[#allocation8 + $0x2c4] ss:$16 sps:$4 sm:$0xff]   ;;  %v4001_v4 = vadd.f32 %v4000_v61, %v8011_v33  ;;  %v5682_v61 = vld [vmem:[#allocation8 + $0x3a0] ss:$16 sps:$4 sm:$0xff]  }
 0x359   :  { %4340 = vmatprep.subr.bf16.mxu0 %v5624_v21  ;;  %v5690_v33 = vld [vmem:[#allocation8 + $0x360] ss:$16 sps:$4 sm:$0xff]  }
 0x35b   :  { %4274 = vmatpush1.bf16.msra.mxu1 %v7989_v19  ;;  %v4003_v19 = vadd.f32 %v4002_v8, %v8010_v29  ;;  %v5687_v29 = vld [vmem:[#allocation8 + $0x364] ss:$16 sps:$4 sm:$0xff]   ;;  %v5692_v8 = vld [vmem:[#allocation8 + $0x5c0] ss:$16 sps:$4 sm:$0xff]  }
 0x35c   :  { %4275 = vmatprep.subr.bf16.mxu1 %v7990_v23  ;;  %4341 = vmatpush1.bf16.msra.mxu0 %v5625_v62 }
 0x35d   :  { %4342 = vmatprep.subr.bf16.mxu0 %v5626_v1  ;;  %v5650_v1 = vld [vmem:[#allocation8 + $0x2c0] ss:$16 sps:$4 sm:$0xff]  }
 0x35f   :  { %4276 = vmatpush1.bf16.msra.mxu1 %v7991_v58 }
 0x360   :  { %4277 = vmatprep.subr.bf16.mxu1 %v7992_v45  ;;  %4343 = vmatpush1.bf16.msra.mxu0 %v5627_v54  ;;  %v5651_v45 = vld [vmem:[#allocation8 + $0x2a4] ss:$16 sps:$4 sm:$0xff]  }
 0x361   :  { %4344 = vmatprep.subr.bf16.mxu0 %v5628_v51 }
 0x363   :  { %4278 = vmatpush1.bf16.msra.mxu1 %v7993_v56 }
 0x364   :  { %4279 = vmatprep.subr.bf16.mxu1 %v7994_v57  ;;  %4345 = vmatpush1.bf16.msra.mxu0 %v5629_v53  ;;  %v5652_v53 = vld [vmem:[#allocation8 + $0x2a0] ss:$16 sps:$4 sm:$0xff]  }
 0x365   :  { %4346 = vmatprep.subr.bf16.mxu0 %v5630_v31 }
 0x367   :  { %4280 = vmatpush2.bf16.msra.mxu1 %v7995_v12  ;;  %v5653_v12 = vld [vmem:[#allocation8 + $0x284] ss:$16 sps:$4 sm:$0xff]  }
 0x368   :  { %4281 = vmatprep.subr.bf16.mxu1 %v7996_v47  ;;  %4347 = vmatpush2.bf16.msra.mxu0 %v5631_v49 }
 0x369   :  { %4348 = vmatprep.subr.bf16.mxu0 %v5632_v27  ;;  %v5654_v27 = vld [vmem:[#allocation8 + $0x280] ss:$16 sps:$4 sm:$0xff]  }
 0x36b   :  { %4282 = vmatpush2.bf16.msra.mxu1 %v7997_v14  ;;  %v5655_v14 = vld [vmem:[#allocation8 + $0x264] ss:$16 sps:$4 sm:$0xff]  }
 0x36c   :  { %4283 = vmatprep.subr.bf16.mxu1 %v7998_v3  ;;  %4349 = vmatpush2.bf16.msra.mxu0 %v5633_v35  ;;  %v5656_v3 = vld [vmem:[#allocation8 + $0x4e0] ss:$16 sps:$4 sm:$0xff]   ;;  %v5657_v35 = vld [vmem:[#allocation8 + $0x4c4] ss:$16 sps:$4 sm:$0xff]  }
 0x36d   :  { %4350 = vmatprep.subr.bf16.mxu0 %v5634_v39  ;;  %v5658_v39 = vld [vmem:[#allocation8 + $0x260] ss:$16 sps:$4 sm:$0xff]  }
 0x36f   :  { %4284 = vmatpush2.bf16.msra.mxu1 %v7999_v43  ;;  %v5659_v43 = vld [vmem:[#allocation8 + $0x244] ss:$16 sps:$4 sm:$0xff]  }
 0x370   :  { %4285 = vmatprep.subr.bf16.mxu1 %v8000_v5  ;;  %4351 = vmatpush2.bf16.msra.mxu0 %v5635_v10  ;;  %v5660_v5 = vld [vmem:[#allocation8 + $0x4c0] ss:$16 sps:$4 sm:$0xff]   ;;  %v5661_v10 = vld [vmem:[#allocation8 + $0x4a4] ss:$16 sps:$4 sm:$0xff]  }
 0x371   :  { %4352 = vmatprep.subr.bf16.mxu0 %v5636_v18  ;;  %v5662_v18 = vld [vmem:[#allocation8 + $0x240] ss:$16 sps:$4 sm:$0xff]  }
 0x373   :  { %4286 = vmatpush2.bf16.msra.mxu1 %v8001_v20  ;;  %v5663_v20 = vld [vmem:[#allocation8 + $0x224] ss:$16 sps:$4 sm:$0xff]  }
 0x374   :  { %4287 = vmatprep.subr.bf16.mxu1 %v8002_v26  ;;  %4353 = vmatpush2.bf16.msra.mxu0 %v5637_v28  ;;  %v5664_v26 = vld [vmem:[#allocation8 + $0x4a0] ss:$16 sps:$4 sm:$0xff]   ;;  %v5665_v28 = vld [vmem:[#allocation8 + $0x484] ss:$16 sps:$4 sm:$0xff]  }
 0x375   :  { %4354 = vmatprep.subr.bf16.mxu0 %v5638_v34  ;;  %v5666_v34 = vld [vmem:[#allocation8 + $0x220] ss:$16 sps:$4 sm:$0xff]  }
 0x377   :  { %4288 = vmatpush2.bf16.msra.mxu1 %v8003_v36  ;;  %v5667_v36 = vld [vmem:[#allocation8 + $0x204] ss:$16 sps:$4 sm:$0xff]  }
 0x378   :  { %4289 = vmatprep.subr.bf16.mxu1 %v8004_v42  ;;  %4355 = vmatpush2.bf16.msra.mxu0 %v5639_v44  ;;  %v5668_v42 = vld [vmem:[#allocation8 + $0x480] ss:$16 sps:$4 sm:$0xff]   ;;  %v5669_v44 = vld [vmem:[#allocation8 + $0x464] ss:$16 sps:$4 sm:$0xff]  }
 0x379   :  { %4356 = vmatprep.subr.bf16.mxu0 %v5640_v50  ;;  %v5670_v50 = vld [vmem:[#allocation8 + $0x200] ss:$16 sps:$4 sm:$0xff]  }
 0x37b   :  { %4290 = vmatpush2.bf16.msra.mxu1 %v8005_v52  ;;  %v5671_v52 = vld [vmem:[#allocation8 + $0x3e4] ss:$16 sps:$4 sm:$0xff]  }
 0x37c   :  { %4291 = vmatprep.subr.bf16.mxu1 %v8006_v0  ;;  %4357 = vmatpush2.bf16.msra.mxu0 %v5641_v13  ;;  %v5672_v0 = vld [vmem:[#allocation8 + $0x460] ss:$16 sps:$4 sm:$0xff]  }
 0x37d   :  { %4358 = vmatprep.subr.bf16.mxu0 %v5642_v16  ;;  %v5674_v13 = vld [vmem:[#allocation8 + $0x3e0] ss:$16 sps:$4 sm:$0xff]   ;;  %v5675_v16 = vld [vmem:[#allocation8 + $0x3c4] ss:$16 sps:$4 sm:$0xff]  }
 0x37f   :  { %4292 = vmatpush2.bf16.msra.mxu1 %v8007_v30  ;;  %v5676_v30 = vld [vmem:[#allocation8 + $0x440] ss:$16 sps:$4 sm:$0xff]  }
 0x380   :  { %4293 = vmatprep.subr.bf16.mxu1 %v8008_v55  ;;  %4359 = vmatpush2.bf16.msra.mxu0 %v5643_v46  ;;  %v5678_v55 = vld [vmem:[#allocation8 + $0x3c0] ss:$16 sps:$4 sm:$0xff]   ;;  %v5679_v46 = vld [vmem:[#allocation8 + $0x3a4] ss:$16 sps:$4 sm:$0xff]  }
 0x381   :  { %4360 = vmatprep.subr.bf16.mxu0 %v5644_v48  ;;  %v5680_v48 = vld [vmem:[#allocation8 + $0x420] ss:$16 sps:$4 sm:$0xff]  }
 0x383   :  { %4294 = vmatpush2.bf16.msra.mxu1 %v8009_v59  ;;  %v5681_v59 = vld [vmem:[#allocation8 + $0x404] ss:$16 sps:$4 sm:$0xff]  }
 0x384   :  { %4361 = vmatpush2.bf16.msra.mxu0 %v5645_v22  ;;  %4373 = vmatprep.subr.bf16.mxu1 %v5646_v11  ;;  %v5683_v22 = vld [vmem:[#allocation8 + $0x384] ss:$16 sps:$4 sm:$0xff]   ;;  %v5684_v11 = vld [vmem:[#allocation8 + $0x400] ss:$16 sps:$4 sm:$0xff]  }
 0x385   :  { %4416 = vmatprep.subr.bf16.mxu0 %v5647_v24  ;;  %v5685_v24 = vld [vmem:[#allocation8 + $0x5e4] ss:$16 sps:$4 sm:$0xff]  }
 0x386   :  { %v4039_v7 = vpop.f32.mrf.mxu1  ;;  %4296 = vmatmul.mubr.bf16.vlgmr.msra.gmra.mxu1 %v7051_v15 }
 0x387   :  { %4374 = vmatpush1.bf16.msra.mxu1 %v5648_v38  ;;  %v4040_v15 = vadd.f32 %v4039_v7, %v3997_v17  ;;  %v5686_v7 = vld [vmem:[#allocation8 + $0x380] ss:$16 sps:$4 sm:$0xff]   ;;  %v5689_v38 = vld [vmem:[#allocation8 + $0x5c4] ss:$16 sps:$4 sm:$0xff]  }
 0x388   :  { %v4041_v63 = vpop.f32.mrf.mxu1  ;;  %4375 = vmatprep.subr.bf16.mxu1 %v5649_v41  ;;  %v5691_v17 = vld [vmem:[#allocation8 + $0x344] ss:$16 sps:$4 sm:$0xff]   ;;  %v5694_v41 = vld [vmem:[#allocation8 + $0x340] ss:$16 sps:$4 sm:$0xff]  }
 0x389   :  { %v4042_v23 = vadd.f32 %v4041_v63, %v3999_v6  ;;  %v4306_v31 = vmax.f32 %v4040_v15, 0.0  ;;  %v5688_v6 = vld [vmem:[#allocation8 + $0x5e0] ss:$16 sps:$4 sm:$0xff]   ;;  %v5693_v63 = vld [vmem:[#allocation8 + $0x5a4] ss:$16 sps:$4 sm:$0xff]  }
 0x38a   :  { %v4043_v21 = vpop.f32.mrf.mxu1  ;;  %v5699_v15 = vld [vmem:[#allocation8 + $0x304] ss:$16 sps:$4 sm:$0xff]  }
 0x38b   :  { %v4044_v62 = vadd.f32 %v4043_v21, %v4001_v4  ;;  %4376 = vmatpush1.bf16.msra.mxu1 %v5650_v1  ;;  %v4307_v56 = vmax.f32 %v4042_v23, 0.0  ;;  %v4082_v4 = vpop.f32.mrf.mxu0  ;;  %v5695_v21 = vld [vmem:[#allocation8 + $0x324] ss:$16 sps:$4 sm:$0xff]  }
 0x38c   :  { %v4045_v58 = vpop.f32.mrf.mxu1  ;;  %4377 = vmatprep.subr.bf16.mxu1 %v5651_v45  ;;  %v5697_v23 = vld [vmem:[#allocation8 + $0x584] ss:$16 sps:$4 sm:$0xff]  }
 0x38d   :  { %v4046_v54 = vadd.f32 %v4045_v58, %v4003_v19  ;;  %v4314_v51 = vmax.f32 %v4044_v62, 0.0  ;;  %v5696_v19 = vld [vmem:[#allocation8 + $0x5a0] ss:$16 sps:$4 sm:$0xff]   ;;  %v4084_v1 = vpop.f32.mrf.mxu0  ;;  %v5701_v45 = vld [vmem:[#allocation8 + $0x564] ss:$16 sps:$4 sm:$0xff]  }
 0x38e   :  { %v5698_v62 = vld [vmem:[#allocation8 + $0x320] ss:$16 sps:$4 sm:$0xff]  }
 0x38f   :  { %v4315_v57 = vmax.f32 %v4046_v54, 0.0  ;;  %4378 = vmatpush1.bf16.msra.mxu1 %v5652_v53  ;;  %v7250_v49 = vpack.c.bf16 %v4314_v51, %v4306_v31  ;;  %v5700_v58 = vld [vmem:[#allocation8 + $0x580] ss:$16 sps:$4 sm:$0xff]   ;;  %v4086_v51 = vpop.f32.mrf.mxu0  ;;  %v5705_v31 = vld [vmem:[#allocation8 + $0x544] ss:$16 sps:$4 sm:$0xff]  }
 0x390   :  { %4379 = vmatprep.subr.bf16.mxu1 %v5653_v12  ;;  %v5702_v54 = vld [vmem:[#allocation8 + $0x300] ss:$16 sps:$4 sm:$0xff]   ;;  %v8012_v12 = vld [vmem:[#allocation240_spill] sm:$0xff] }
 0x391   :  { %v7248_v47 = vpack.c.bf16 %v4315_v57, %v4307_v56  ;;  %v5703_v56 = vld [vmem:[#allocation8 + $0x6e4] ss:$16 sps:$4 sm:$0xff]   ;;  %v5704_v57 = vld [vmem:[#allocation8 + $0x560] ss:$16 sps:$4 sm:$0xff]  }
 0x393   :  { %4362 = vmatprep.mubr.bf16.mxu0 %v7248_v47  ;;  %4380 = vmatpush1.bf16.msra.mxu1 %v5654_v27  ;;  %v4085_v27 = vadd.f32 %v4084_v1, %v8012_v12  ;;  %v5732_v1 = vld [vmem:[#allocation8 + $0x7a0] ss:$16 sps:$4 sm:$0xff]  }
 0x394   :  { %4363 = vmatmul.mubr.bf16.vlgmr.msra.gmra.mxu0 %v7250_v49  ;;  %4381 = vmatprep.subr.bf16.mxu1 %v5655_v14  ;;  %v8013_v14 = vld [vmem:[#allocation241_spill] sm:$0xff] }
 0x395   :  { %4417 = vmatpush1.bf16.msra.mxu0 %v5656_v3  ;;  %v4083_v3 = vadd.f32 %v4082_v4, %v8013_v14  ;;  %v5728_v4 = vld [vmem:[#allocation8 + $0x7e0] ss:$16 sps:$4 sm:$0xff]  }
 0x396   :  { %4418 = vmatprep.subr.bf16.mxu0 %v5657_v35  ;;  %v4088_v35 = vpop.f32.mrf.mxu0 }
 0x397   :  { %4382 = vmatpush1.bf16.msra.mxu1 %v5658_v39 }
 0x398   :  { %4383 = vmatprep.subr.bf16.mxu1 %v5659_v43  ;;  %v4087_v43 = vadd.f32 %v4086_v51, %v8013_v14 }
 0x399   :  { %4419 = vmatpush1.bf16.msra.mxu0 %v5660_v5  ;;  %v5706_v5 = vld [vmem:[#allocation8 + $0x540] ss:$16 sps:$4 sm:$0xff]  }
 0x39a   :  { %4420 = vmatprep.subr.bf16.mxu0 %v5661_v10 }
 0x39b   :  { %4384 = vmatpush1.bf16.msra.mxu1 %v5662_v18  ;;  %v5707_v18 = vld [vmem:[#allocation8 + $0x524] ss:$16 sps:$4 sm:$0xff]  }
 0x39c   :  { %4385 = vmatprep.subr.bf16.mxu1 %v5663_v20  ;;  %v4089_v20 = vadd.f32 %v4088_v35, %v8012_v12 }
 0x39d   :  { %4421 = vmatpush1.bf16.msra.mxu0 %v5664_v26 }
 0x39e   :  { %4422 = vmatprep.subr.bf16.mxu0 %v5665_v28 }
 0x39f   :  { %4386 = vmatpush1.bf16.msra.mxu1 %v5666_v34 }
 0x3a0   :  { %4387 = vmatprep.subr.bf16.mxu1 %v5667_v36 }
 0x3a1   :  { %4423 = vmatpush1.bf16.msra.mxu0 %v5668_v42 }
 0x3a2   :  { %4424 = vmatprep.subr.bf16.mxu0 %v5669_v44  ;;  %v5708_v44 = vld [vmem:[#allocation8 + $0x520] ss:$16 sps:$4 sm:$0xff]  }
 0x3a3   :  { %4388 = vmatpush1.bf16.msra.mxu1 %v5670_v50 }
 0x3a4   :  { %4389 = vmatprep.subr.bf16.mxu1 %v5671_v52  ;;  %v5709_v52 = vld [vmem:[#allocation8 + $0x504] ss:$16 sps:$4 sm:$0xff]  }
 0x3a5   :  { %4425 = vmatpush1.bf16.msra.mxu0 %v5672_v0 }
 0x3a6   :  { %4426 = vmatprep.subr.bf16.mxu0 %v5673_v2 }
 0x3a7   :  { %4390 = vmatpush2.bf16.msra.mxu1 %v5674_v13 }
 0x3a8   :  { %4391 = vmatprep.subr.bf16.mxu1 %v5675_v16 }
 0x3a9   :  { %4427 = vmatpush1.bf16.msra.mxu0 %v5676_v30  ;;  %v5710_v30 = vld [vmem:[#allocation8 + $0x500] ss:$16 sps:$4 sm:$0xff]  }
 0x3aa   :  { %4428 = vmatprep.subr.bf16.mxu0 %v5677_v32 }
 0x3ab   :  { %4392 = vmatpush2.bf16.msra.mxu1 %v5678_v55  ;;  %v5711_v55 = vld [vmem:[#allocation8 + $0xec] ss:$16 sps:$4 sm:$0xff]  }
 0x3ac   :  { %4393 = vmatprep.subr.bf16.mxu1 %v5679_v46  ;;  %v5712_v46 = vld [vmem:[#allocation8 + $0x6e0] ss:$16 sps:$4 sm:$0xff]  }
 0x3ad   :  { %4429 = vmatpush1.bf16.msra.mxu0 %v5680_v48  ;;  %v5713_v48 = vld [vmem:[#allocation8 + $0x6c4] ss:$16 sps:$4 sm:$0xff]  }
 0x3ae   :  { %4430 = vmatprep.subr.bf16.mxu0 %v5681_v59  ;;  %v5714_v59 = vld [vmem:[#allocation8 + $0x6c0] ss:$16 sps:$4 sm:$0xff]  }
 0x3af   :  { %4394 = vmatpush2.bf16.msra.mxu1 %v5682_v61  ;;  %v5715_v61 = vld [vmem:[#allocation8 + $0x6a4] ss:$16 sps:$4 sm:$0xff]  }
 0x3b0   :  { %4395 = vmatprep.subr.bf16.mxu1 %v5683_v22  ;;  %v5716_v22 = vld [vmem:[#allocation8 + $0x6a0] ss:$16 sps:$4 sm:$0xff]  }
 0x3b1   :  { %4431 = vmatpush1.bf16.msra.mxu0 %v5684_v11  ;;  %v5717_v11 = vld [vmem:[#allocation8 + $0x684] ss:$16 sps:$4 sm:$0xff]  }
 0x3b2   :  { %4432 = vmatprep.subr.bf16.mxu0 %v5685_v24  ;;  %v5718_v24 = vld [vmem:[#allocation8 + $0x680] ss:$16 sps:$4 sm:$0xff]  }
 0x3b3   :  { %4396 = vmatpush2.bf16.msra.mxu1 %v5686_v7  ;;  %v5719_v7 = vld [vmem:[#allocation8 + $0x664] ss:$16 sps:$4 sm:$0xff]  }
 0x3b4   :  { %4397 = vmatprep.subr.bf16.mxu1 %v5687_v29  ;;  %v5720_v29 = vld [vmem:[#allocation8 + $0x660] ss:$16 sps:$4 sm:$0xff]  }
 0x3b5   :  { %4433 = vmatpush2.bf16.msra.mxu0 %v5688_v6  ;;  %v5721_v6 = vld [vmem:[#allocation8 + $0x644] ss:$16 sps:$4 sm:$0xff]  }
 0x3b6   :  { %4434 = vmatprep.subr.bf16.mxu0 %v5689_v38  ;;  %v5722_v38 = vld [vmem:[#allocation8 + $0x640] ss:$16 sps:$4 sm:$0xff]  }
 0x3b7   :  { %4398 = vmatpush2.bf16.msra.mxu1 %v5690_v33  ;;  %v5723_v33 = vld [vmem:[#allocation8 + $0x624] ss:$16 sps:$4 sm:$0xff]  }
 0x3b8   :  { %4399 = vmatprep.subr.bf16.mxu1 %v5691_v17  ;;  %v5724_v17 = vld [vmem:[#allocation8 + $0x620] ss:$16 sps:$4 sm:$0xff]  }
 0x3b9   :  { %4435 = vmatpush2.bf16.msra.mxu0 %v5692_v8  ;;  %v5725_v8 = vld [vmem:[#allocation8 + $0x604] ss:$16 sps:$4 sm:$0xff]  }
 0x3ba   :  { %4436 = vmatprep.subr.bf16.mxu0 %v5693_v63  ;;  %v5726_v63 = vld [vmem:[#allocation8 + $0x600] ss:$16 sps:$4 sm:$0xff]  }
 0x3bb   :  { %4400 = vmatpush2.bf16.msra.mxu1 %v5694_v41  ;;  %v5727_v41 = vld [vmem:[#allocation8 + $0x7e4] ss:$16 sps:$4 sm:$0xff]  }
 0x3bc   :  { %4401 = vmatprep.subr.bf16.mxu1 %v5695_v21  ;;  %v5729_v21 = vld [vmem:[#allocation8 + $0x7c4] ss:$16 sps:$4 sm:$0xff]  }
 0x3bd   :  { %4437 = vmatpush2.bf16.msra.mxu0 %v5696_v19  ;;  %v5730_v19 = vld [vmem:[#allocation8 + $0x7c0] ss:$16 sps:$4 sm:$0xff]  }
 0x3be   :  { %4438 = vmatprep.subr.bf16.mxu0 %v5697_v23  ;;  %v5731_v23 = vld [vmem:[#allocation8 + $0x7a4] ss:$16 sps:$4 sm:$0xff]  }
 0x3bf   :  { %4402 = vmatpush2.bf16.msra.mxu1 %v5698_v62 }
 0x3c0   :  { %4403 = vmatprep.subr.bf16.mxu1 %v5699_v15  ;;  %v5733_v15 = vld [vmem:[#allocation8 + $0x784] ss:$16 sps:$4 sm:$0xff]  }
 0x3c1   :  { %4439 = vmatpush2.bf16.msra.mxu0 %v5700_v58 }
 0x3c2   :  { %4440 = vmatprep.subr.bf16.mxu0 %v5701_v45  ;;  %v5734_v45 = vld [vmem:[#allocation8 + $0x780] ss:$16 sps:$4 sm:$0xff]  }
 0x3c3   :  { %4404 = vmatpush2.bf16.msra.mxu1 %v5702_v54  ;;  %v5735_v54 = vld [vmem:[#allocation8 + $0x764] ss:$16 sps:$4 sm:$0xff]  }
 0x3c4   :  { %4459 = vmatprep.subr.bf16.mxu1 %v5703_v56  ;;  %v5736_v56 = vld [vmem:[#allocation8 + $0x760] ss:$16 sps:$4 sm:$0xff]  }
 0x3c5   :  { %4441 = vmatpush2.bf16.msra.mxu0 %v5704_v57 }
 0x3c6   :  { %v4125_v53 = vpop.f32.mrf.mxu1  ;;  %4442 = vmatprep.subr.bf16.mxu0 %v5705_v31  ;;  %v8014_v31 = vld [vmem:[#allocation242_spill] sm:$0xff] }
 0x3c7   :  { %v4126_v34 = vadd.f32 %v4125_v53, %v4083_v3  ;;  %v4168_v62 = vpop.f32.mrf.mxu0  ;;  %v5737_v53 = vld [vmem:[#allocation8 + $0x744] ss:$16 sps:$4 sm:$0xff]  }
 0x3c8   :  { %v4127_v39 = vpop.f32.mrf.mxu1 }
 0x3c9   :  { %4443 = vmatpush2.bf16.msra.mxu0 %v5706_v5  ;;  %v4128_v26 = vadd.f32 %v4127_v39, %v4085_v27  ;;  %v4308_v13 = vmax.f32 %v4126_v34, 0.0  ;;  %v4170_v58 = vpop.f32.mrf.mxu0  ;;  %v8015_v27 = vld [vmem:[#allocation243_spill] sm:$0xff] }
 0x3ca   :  { %v4129_v10 = vpop.f32.mrf.mxu1  ;;  %4444 = vmatprep.subr.bf16.mxu0 %v5707_v18  ;;  %v4171_v12 = vadd.f32 %v4170_v58, %v8014_v31  ;;  %v4169_v14 = vadd.f32 %v4168_v62, %v8015_v27 }
 0x3cb   :  { %v4130_v28 = vadd.f32 %v4129_v10, %v4087_v43  ;;  %v4309_v0 = vmax.f32 %v4128_v26, 0.0  ;;  %v4172_v51 = vpop.f32.mrf.mxu0  ;;  %v5738_v43 = vld [vmem:[#allocation8 + $0x740] ss:$16 sps:$4 sm:$0xff]   ;;  %v5739_v10 = vld [vmem:[#allocation8 + $0x724] ss:$16 sps:$4 sm:$0xff]  }
 0x3cc   :  { %v4131_v36 = vpop.f32.mrf.mxu1  ;;  %v4173_v39 = vadd.f32 %v4172_v51, %v8015_v27 }
 0x3cd   :  { %v4132_v42 = vadd.f32 %v4131_v36, %v4089_v20  ;;  %4445 = vmatpush2.bf16.msra.mxu0 %v5708_v44  ;;  %v4316_v50 = vmax.f32 %v4130_v28, 0.0  ;;  %v4174_v3 = vpop.f32.mrf.mxu0 }
 0x3ce   :  { %4446 = vmatprep.subr.bf16.mxu0 %v5709_v52  ;;  %v4175_v18 = vadd.f32 %v4174_v3, %v8014_v31  ;;  %v8016_v31 = vld [vmem:[#allocation244_spill] sm:$0xff] }
 0x3cf   :  { %v4317_v2 = vmax.f32 %v4132_v42, 0.0  ;;  %v7260_v32 = vpack.c.bf16 %v4316_v50, %v4308_v13  ;;  %v5740_v42 = vld [vmem:[#allocation8 + $0x720] ss:$16 sps:$4 sm:$0xff]   ;;  %v5741_v50 = vld [vmem:[#allocation8 + $0x704] ss:$16 sps:$4 sm:$0xff]  }
 0x3d1   :  { %v7258_v16 = vpack.c.bf16 %v4317_v2, %v4309_v0  ;;  %4447 = vmatpush2.bf16.msra.mxu0 %v5710_v30  ;;  %v5742_v30 = vld [vmem:[#allocation8 + $0x700] ss:$16 sps:$4 sm:$0xff]  }
 0x3d2   :  { %4502 = vmatprep.subr.bf16.mxu0 %v5711_v55 }
 0x3d3   :  { %4405 = vmatprep.mubr.bf16.mxu1 %v7258_v16 }
 0x3d4   :  { %4406 = vmatmul.mubr.bf16.vlgmr.msra.gmra.mxu1 %v7260_v32 }
 0x3d5   :  { %4460 = vmatpush1.bf16.msra.mxu1 %v5712_v46  ;;  %v5743_v46 = vld [vmem:[#allocation8 + $0x2ec] ss:$16 sps:$4 sm:$0xff]  }
 0x3d6   :  { %4461 = vmatprep.subr.bf16.mxu1 %v5713_v48  ;;  %v5744_v48 = vld [vmem:[#allocation8 + $0xe8] ss:$16 sps:$4 sm:$0xff]  }
 0x3d9   :  { %4462 = vmatpush1.bf16.msra.mxu1 %v5714_v59  ;;  %v5745_v59 = vld [vmem:[#allocation8 + $0xcc] ss:$16 sps:$4 sm:$0xff]  }
 0x3da   :  { %4463 = vmatprep.subr.bf16.mxu1 %v5715_v61  ;;  %v5746_v61 = vld [vmem:[#allocation8 + $0xc8] ss:$16 sps:$4 sm:$0xff]  }
 0x3dd   :  { %4464 = vmatpush1.bf16.msra.mxu1 %v5716_v22  ;;  %v5747_v22 = vld [vmem:[#allocation8 + $0xac] ss:$16 sps:$4 sm:$0xff]  }
 0x3de   :  { %4465 = vmatprep.subr.bf16.mxu1 %v5717_v11  ;;  %v5748_v11 = vld [vmem:[#allocation8 + $0xa8] ss:$16 sps:$4 sm:$0xff]  }
 0x3e1   :  { %4466 = vmatpush1.bf16.msra.mxu1 %v5718_v24  ;;  %v5749_v24 = vld [vmem:[#allocation8 + $0x8c] ss:$16 sps:$4 sm:$0xff]  }
 0x3e2   :  { %4467 = vmatprep.subr.bf16.mxu1 %v5719_v7  ;;  %v5750_v7 = vld [vmem:[#allocation8 + $0x88] ss:$16 sps:$4 sm:$0xff]  }
 0x3e5   :  { %4468 = vmatpush1.bf16.msra.mxu1 %v5720_v29  ;;  %v5751_v29 = vld [vmem:[#allocation8 + $0x6c] ss:$16 sps:$4 sm:$0xff]  }
 0x3e6   :  { %4469 = vmatprep.subr.bf16.mxu1 %v5721_v6  ;;  %v5752_v6 = vld [vmem:[#allocation8 + $0x68] ss:$16 sps:$4 sm:$0xff]  }
 0x3e9   :  { %4470 = vmatpush1.bf16.msra.mxu1 %v5722_v38  ;;  %v5753_v38 = vld [vmem:[#allocation8 + $0x4c] ss:$16 sps:$4 sm:$0xff]  }
 0x3ea   :  { %4471 = vmatprep.subr.bf16.mxu1 %v5723_v33  ;;  %v5754_v33 = vld [vmem:[#allocation8 + $0x48] ss:$16 sps:$4 sm:$0xff]  }
 0x3ed   :  { %4472 = vmatpush1.bf16.msra.mxu1 %v5724_v17  ;;  %v5756_v17 = vld [vmem:[#allocation8 + $0x28] ss:$16 sps:$4 sm:$0xff]  }
 0x3ee   :  { %4473 = vmatprep.subr.bf16.mxu1 %v5725_v8  ;;  %v5757_v8 = vld [vmem:[#allocation8 + $0xc] ss:$16 sps:$4 sm:$0xff]  }
 0x3f1   :  { %4474 = vmatpush1.bf16.msra.mxu1 %v5726_v63  ;;  %v5758_v63 = vld [vmem:[#allocation8 + $0x8] ss:$16 sps:$4 sm:$0xff]  }
 0x3f2   :  { %4475 = vmatprep.subr.bf16.mxu1 %v5727_v41  ;;  %v5759_v41 = vld [vmem:[#allocation8 + $0x1ec] ss:$16 sps:$4 sm:$0xff]  }
 0x3f5   :  { %4476 = vmatpush2.bf16.msra.mxu1 %v5728_v4  ;;  %v5760_v4 = vld [vmem:[#allocation8 + $0x1e8] ss:$16 sps:$4 sm:$0xff]  }
 0x3f6   :  { %4477 = vmatprep.subr.bf16.mxu1 %v5729_v21  ;;  %v5761_v21 = vld [vmem:[#allocation8 + $0x1cc] ss:$16 sps:$4 sm:$0xff]  }
 0x3f9   :  { %4478 = vmatpush2.bf16.msra.mxu1 %v5730_v19  ;;  %v5762_v19 = vld [vmem:[#allocation8 + $0x1c8] ss:$16 sps:$4 sm:$0xff]  }
 0x3fa   :  { %4479 = vmatprep.subr.bf16.mxu1 %v5731_v23  ;;  %v5763_v23 = vld [vmem:[#allocation8 + $0x1ac] ss:$16 sps:$4 sm:$0xff]  }
 0x3fd   :  { %4480 = vmatpush2.bf16.msra.mxu1 %v5732_v1  ;;  %v5764_v1 = vld [vmem:[#allocation8 + $0x1a8] ss:$16 sps:$4 sm:$0xff]  }
 0x3fe   :  { %4481 = vmatprep.subr.bf16.mxu1 %v5733_v15  ;;  %v5765_v15 = vld [vmem:[#allocation8 + $0x18c] ss:$16 sps:$4 sm:$0xff]  }
 0x401   :  { %4482 = vmatpush2.bf16.msra.mxu1 %v5734_v45  ;;  %v5766_v45 = vld [vmem:[#allocation8 + $0x188] ss:$16 sps:$4 sm:$0xff]  }
 0x402   :  { %4483 = vmatprep.subr.bf16.mxu1 %v5735_v54  ;;  %v5767_v54 = vld [vmem:[#allocation8 + $0x16c] ss:$16 sps:$4 sm:$0xff]  }
 0x405   :  { %4484 = vmatpush2.bf16.msra.mxu1 %v5736_v56  ;;  %v5768_v56 = vld [vmem:[#allocation8 + $0x168] ss:$16 sps:$4 sm:$0xff]  }
 0x406   :  { %v4211_v57 = vpop.f32.mrf.mxu1  ;;  %4485 = vmatprep.subr.bf16.mxu1 %v5737_v53  ;;  %v5769_v53 = vld [vmem:[#allocation8 + $0x14c] ss:$16 sps:$4 sm:$0xff]  }
 0x407   :  { %v4212_v28 = vadd.f32 %v4211_v57, %v4169_v14  ;;  %v4254_v62 = vpop.f32.mrf.mxu0 }
 0x408   :  { %v4213_v35 = vpop.f32.mrf.mxu1 }
 0x409   :  { %4486 = vmatpush2.bf16.msra.mxu1 %v5738_v43  ;;  %v4214_v20 = vadd.f32 %v4213_v35, %v4171_v12  ;;  %v4310_v2 = vmax.f32 %v4212_v28, 0.0  ;;  %v4256_v58 = vpop.f32.mrf.mxu0  ;;  %v4255_v12 = vadd.f32 %v4254_v62, %v8016_v31  ;;  %v5799_v62 = vld [vmem:[#allocation8 + $0x42c] ss:$16 sps:$4 sm:$0xff]  }
 0x40a   :  { %v4215_v5 = vpop.f32.mrf.mxu1  ;;  %4487 = vmatprep.subr.bf16.mxu1 %v5739_v10  ;;  %v4257_v3 = vadd.f32 %v4256_v58, %v6909_v9  ;;  %v5802_v58 = vld [vmem:[#allocation8 + $0x20c] ss:$16 sps:$4 sm:$0xff]  }
 0x40b   :  { %v4216_v26 = vadd.f32 %v4215_v5, %v4173_v39  ;;  %v4311_v52 = vmax.f32 %v4214_v20, 0.0  ;;  %v4258_v51 = vpop.f32.mrf.mxu0  ;;  %v5770_v39 = vld [vmem:[#allocation8 + $0x148] ss:$16 sps:$4 sm:$0xff]   ;;  %v5771_v5 = vld [vmem:[#allocation8 + $0x12c] ss:$16 sps:$4 sm:$0xff]  }
 0x40c   :  { %v4217_v34 = vpop.f32.mrf.mxu1  ;;  %v4259_v35 = vadd.f32 %v4258_v51, %v8016_v31  ;;  %v5805_v51 = vld [vmem:[#allocation8 + $0x408] ss:$16 sps:$4 sm:$0xff]  }
 0x40d   :  { %v4218_v36 = vadd.f32 %v4217_v34, %v4175_v18  ;;  %4488 = vmatpush2.bf16.msra.mxu1 %v5740_v42  ;;  %v4318_v44 = vmax.f32 %v4216_v26, 0.0  ;;  %v4260_v27 = vpop.f32.mrf.mxu0  ;;  %v5809_v31 = vld [vmem:[#allocation8 + $0x5e8] ss:$16 sps:$4 sm:$0xff]  }
 0x40e   :  { %4489 = vmatprep.subr.bf16.mxu1 %v5741_v50  ;;  %v4261_v10 = vadd.f32 %v4260_v27, %v6909_v9  ;;  %v5775_v9 = vld [vmem:[#allocation8 + $0x4ec] ss:$16 sps:$4 sm:$0xff]  }
 0x40f   :  { %v4319_v0 = vmax.f32 %v4218_v36, 0.0  ;;  %v7270_v55 = vpack.c.bf16 %v4318_v44, %v4310_v2  ;;  %v5772_v36 = vld [vmem:[#allocation8 + $0x128] ss:$16 sps:$4 sm:$0xff]   ;;  %v5773_v44 = vld [vmem:[#allocation8 + $0x10c] ss:$16 sps:$4 sm:$0xff]  }
 0x410   :  { %v5811_v27 = vld [vmem:[#allocation8 + $0x5cc] ss:$16 sps:$4 sm:$0xff]  }
 0x411   :  { %v7268_v13 = vpack.c.bf16 %v4319_v0, %v4311_v52  ;;  %4490 = vmatpush2.bf16.msra.mxu1 %v5742_v30  ;;  %v5774_v30 = vld [vmem:[#allocation8 + $0x108] ss:$16 sps:$4 sm:$0xff]  }
 0x412   :  { %4545 = vmatprep.subr.bf16.mxu1 %v5743_v46 }
 0x413   :  { %4448 = vmatprep.mubr.bf16.mxu0 %v7268_v13 }
 0x414   :  { %4449 = vmatmul.mubr.bf16.vlgmr.msra.gmra.mxu0 %v7270_v55 }
 0x415   :  { %4503 = vmatpush1.bf16.msra.mxu0 %v5744_v48  ;;  %4534 = vmatprep.mubr.bf16.mxu0 %v7248_v47  ;;  %v5755_v47 = vld [vmem:[#allocation8 + $0x2c] ss:$16 sps:$4 sm:$0xff]   ;;  %v5776_v48 = vld [vmem:[#allocation8 + $0x2e8] ss:$16 sps:$4 sm:$0xff]  }
 0x416   :  { %4504 = vmatprep.subr.bf16.mxu0 %v5745_v59  ;;  %v5777_v59 = vld [vmem:[#allocation8 + $0x4e8] ss:$16 sps:$4 sm:$0xff]  }
 0x419   :  { %4505 = vmatpush1.bf16.msra.mxu0 %v5746_v61  ;;  %v5778_v61 = vld [vmem:[#allocation8 + $0x2cc] ss:$16 sps:$4 sm:$0xff]  }
 0x41a   :  { %4506 = vmatprep.subr.bf16.mxu0 %v5747_v22  ;;  %v5779_v22 = vld [vmem:[#allocation8 + $0x4cc] ss:$16 sps:$4 sm:$0xff]  }
 0x41d   :  { %4507 = vmatpush1.bf16.msra.mxu0 %v5748_v11  ;;  %v5780_v11 = vld [vmem:[#allocation8 + $0x2c8] ss:$16 sps:$4 sm:$0xff]  }
 0x41e   :  { %4508 = vmatprep.subr.bf16.mxu0 %v5749_v24  ;;  %v5781_v24 = vld [vmem:[#allocation8 + $0x4c8] ss:$16 sps:$4 sm:$0xff]  }
 0x421   :  { %4509 = vmatpush1.bf16.msra.mxu0 %v5750_v7  ;;  %v5782_v7 = vld [vmem:[#allocation8 + $0x2ac] ss:$16 sps:$4 sm:$0xff]  }
 0x422   :  { %4510 = vmatprep.subr.bf16.mxu0 %v5751_v29  ;;  %v5784_v29 = vld [vmem:[#allocation8 + $0x2a8] ss:$16 sps:$4 sm:$0xff]  }
 0x425   :  { %4511 = vmatpush1.bf16.msra.mxu0 %v5752_v6  ;;  %v5785_v6 = vld [vmem:[#allocation8 + $0x4a8] ss:$16 sps:$4 sm:$0xff]  }
 0x426   :  { %4512 = vmatprep.subr.bf16.mxu0 %v5753_v38  ;;  %v5786_v38 = vld [vmem:[#allocation8 + $0x28c] ss:$16 sps:$4 sm:$0xff]  }
 0x429   :  { %4513 = vmatpush1.bf16.msra.mxu0 %v5754_v33  ;;  %v5789_v33 = vld [vmem:[#allocation8 + $0x488] ss:$16 sps:$4 sm:$0xff]  }
 0x42a   :  { %4514 = vmatprep.subr.bf16.mxu0 %v5755_v47  ;;  %v5790_v47 = vld [vmem:[#allocation8 + $0x26c] ss:$16 sps:$4 sm:$0xff]  }
 0x42d   :  { %4515 = vmatpush1.bf16.msra.mxu0 %v5756_v17  ;;  %v5791_v17 = vld [vmem:[#allocation8 + $0x46c] ss:$16 sps:$4 sm:$0xff]  }
 0x42e   :  { %4516 = vmatprep.subr.bf16.mxu0 %v5757_v8  ;;  %v5792_v8 = vld [vmem:[#allocation8 + $0x268] ss:$16 sps:$4 sm:$0xff]  }
 0x431   :  { %4517 = vmatpush1.bf16.msra.mxu0 %v5758_v63  ;;  %v5793_v63 = vld [vmem:[#allocation8 + $0x468] ss:$16 sps:$4 sm:$0xff]  }
 0x432   :  { %4518 = vmatprep.subr.bf16.mxu0 %v5759_v41  ;;  %v5794_v41 = vld [vmem:[#allocation8 + $0x24c] ss:$16 sps:$4 sm:$0xff]  }
 0x435   :  { %4519 = vmatpush2.bf16.msra.mxu0 %v5760_v4  ;;  %v5795_v4 = vld [vmem:[#allocation8 + $0x44c] ss:$16 sps:$4 sm:$0xff]  }
 0x436   :  { %4520 = vmatprep.subr.bf16.mxu0 %v5761_v21  ;;  %v5796_v21 = vld [vmem:[#allocation8 + $0x248] ss:$16 sps:$4 sm:$0xff]  }
 0x439   :  { %4521 = vmatpush2.bf16.msra.mxu0 %v5762_v19  ;;  %v5797_v19 = vld [vmem:[#allocation8 + $0x448] ss:$16 sps:$4 sm:$0xff]  }
 0x43a   :  { %4522 = vmatprep.subr.bf16.mxu0 %v5763_v23  ;;  %v5798_v23 = vld [vmem:[#allocation8 + $0x22c] ss:$16 sps:$4 sm:$0xff]  }
 0x43d   :  { %4523 = vmatpush2.bf16.msra.mxu0 %v5764_v1  ;;  %v5800_v1 = vld [vmem:[#allocation8 + $0x228] ss:$16 sps:$4 sm:$0xff]  }
 0x43e   :  { %4524 = vmatprep.subr.bf16.mxu0 %v5765_v15  ;;  %v5801_v15 = vld [vmem:[#allocation8 + $0x428] ss:$16 sps:$4 sm:$0xff]  }
 0x441   :  { %4525 = vmatpush2.bf16.msra.mxu0 %v5766_v45  ;;  %v5803_v45 = vld [vmem:[#allocation8 + $0x40c] ss:$16 sps:$4 sm:$0xff]  }
 0x442   :  { %4526 = vmatprep.subr.bf16.mxu0 %v5767_v54  ;;  %v5804_v54 = vld [vmem:[#allocation8 + $0x208] ss:$16 sps:$4 sm:$0xff]  }
 0x445   :  { %4527 = vmatpush2.bf16.msra.mxu0 %v5768_v56  ;;  %v5806_v56 = vld [vmem:[#allocation8 + $0x3ec] ss:$16 sps:$4 sm:$0xff]  }
 0x446   :  { %v4297_v57 = vpop.f32.mrf.mxu1  ;;  %4528 = vmatprep.subr.bf16.mxu0 %v5769_v53  ;;  %v5808_v53 = vld [vmem:[#allocation8 + $0x3e8] ss:$16 sps:$4 sm:$0xff]  }
 0x447   :  { %v4298_v26 = vadd.f32 %v4297_v57, %v4255_v12  ;;  %v5807_v57 = vld [vmem:[#allocation8 + $0x5ec] ss:$16 sps:$4 sm:$0xff]  }
 0x448   :  { %v4299_v14 = vpop.f32.mrf.mxu1  ;;  %v5810_v12 = vld [vmem:[#allocation8 + $0x3cc] ss:$16 sps:$4 sm:$0xff]  }
 0x449   :  { %4529 = vmatpush2.bf16.msra.mxu0 %v5770_v39  ;;  %v4300_v18 = vadd.f32 %v4299_v14, %v4257_v3  ;;  %v4312_v0 = vmax.f32 %v4298_v26, 0.0  ;;  %v5812_v14 = vld [vmem:[#allocation8 + $0x3c8] ss:$16 sps:$4 sm:$0xff]   ;;  %v5815_v39 = vld [vmem:[#allocation8 + $0x5ac] ss:$16 sps:$4 sm:$0xff]  }
 0x44a   :  { %v4301_v43 = vpop.f32.mrf.mxu1  ;;  %4530 = vmatprep.subr.bf16.mxu0 %v5771_v5  ;;  %v5813_v3 = vld [vmem:[#allocation8 + $0x5c8] ss:$16 sps:$4 sm:$0xff]  }
 0x44b   :  { %v4302_v20 = vadd.f32 %v4301_v43, %v4259_v35  ;;  %v4313_v50 = vmax.f32 %v4300_v18, 0.0  ;;  %v5814_v35 = vld [vmem:[#allocation8 + $0x3ac] ss:$16 sps:$4 sm:$0xff]   ;;  %v5816_v43 = vld [vmem:[#allocation8 + $0x3a8] ss:$16 sps:$4 sm:$0xff]  }
 0x44c   :  { %v4303_v28 = vpop.f32.mrf.mxu1  ;;  %v5817_v5 = vld [vmem:[#allocation8 + $0x5a8] ss:$16 sps:$4 sm:$0xff]   ;;  %v5819_v18 = vld [vmem:[#allocation8 + $0x58c] ss:$16 sps:$4 sm:$0xff]  }
 0x44d   :  { %v4304_v34 = vadd.f32 %v4303_v28, %v4261_v10  ;;  %4531 = vmatpush2.bf16.msra.mxu0 %v5772_v36  ;;  %v4320_v42 = vmax.f32 %v4302_v20, 0.0  ;;  %v5818_v10 = vld [vmem:[#allocation8 + $0x38c] ss:$16 sps:$4 sm:$0xff]   ;;  %v5820_v20 = vld [vmem:[#allocation8 + $0x388] ss:$16 sps:$4 sm:$0xff]  }
 0x44e   :  { %4532 = vmatprep.subr.bf16.mxu0 %v5773_v44  ;;  %v5821_v26 = vld [vmem:[#allocation8 + $0x588] ss:$16 sps:$4 sm:$0xff]   ;;  %v5822_v28 = vld [vmem:[#allocation8 + $0x36c] ss:$16 sps:$4 sm:$0xff]  }
 0x44f   :  { %v4321_v52 = vmax.f32 %v4304_v34, 0.0  ;;  %v7281_v46 = vpack.c.bf16 %v4320_v42, %v4312_v0  ;;  %v5823_v34 = vld [vmem:[#allocation8 + $0x56c] ss:$16 sps:$4 sm:$0xff]   ;;  %v5824_v36 = vld [vmem:[#allocation8 + $0x368] ss:$16 sps:$4 sm:$0xff]  }
 0x450   :  { %v5825_v42 = vld [vmem:[#allocation8 + $0x568] ss:$16 sps:$4 sm:$0xff]   ;;  %v5826_v44 = vld [vmem:[#allocation8 + $0x34c] ss:$16 sps:$4 sm:$0xff]  }
 0x451   :  { %v7279_v2 = vpack.c.bf16 %v4321_v52, %v4313_v50  ;;  %4533 = vmatpush2.bf16.msra.mxu0 %v5774_v30  ;;  %v5827_v50 = vld [vmem:[#allocation8 + $0x54c] ss:$16 sps:$4 sm:$0xff]   ;;  %v5828_v52 = vld [vmem:[#allocation8 + $0x348] ss:$16 sps:$4 sm:$0xff]  }
 0x452   :  { %4588 = vmatprep.subr.bf16.mxu0 %v5775_v9  ;;  %v5829_v0 = vld [vmem:[#allocation8 + $0x548] ss:$16 sps:$4 sm:$0xff]   ;;  %v5830_v30 = vld [vmem:[#allocation8 + $0x32c] ss:$16 sps:$4 sm:$0xff]  }
 0x453   :  { %4491 = vmatprep.mubr.bf16.mxu1 %v7279_v2  ;;  %v5831_v9 = vld [vmem:[#allocation8 + $0x52c] ss:$16 sps:$4 sm:$0xff]  }
 0x454   :  { %4535 = vmatmul.mubr.bf16.vlgmr.msra.gmra.mxu0 %v7250_v49  ;;  %4492 = vmatmul.mubr.bf16.vlgmr.msra.gmra.mxu1 %v7281_v46  ;;  %v5783_v49 = vld [vmem:[#allocation8 + $0x4ac] ss:$16 sps:$4 sm:$0xff]  }
 0x455   :  { %4546 = vmatpush1.bf16.msra.mxu1 %v5776_v48  ;;  %4589 = vmatpush1.bf16.msra.mxu0 %v5777_v59  ;;  %v5832_v48 = vld [vmem:[#allocation8 + $0x328] ss:$16 sps:$4 sm:$0xff]  }
 0x456   :  { %4620 = vmatprep.mubr.bf16.mxu0 %v7268_v13  ;;  %4577 = vmatprep.mubr.bf16.mxu1 %v7258_v16  ;;  %v5787_v13 = vld [vmem:[#allocation8 + $0x48c] ss:$16 sps:$4 sm:$0xff]   ;;  %v5788_v16 = vld [vmem:[#allocation8 + $0x288] ss:$16 sps:$4 sm:$0xff]  }
 0x457   :  { %4547 = vmatprep.subr.bf16.mxu1 %v5778_v61  ;;  %4590 = vmatprep.subr.bf16.mxu0 %v5779_v22  ;;  %v5833_v59 = vld [vmem:[#allocation8 + $0x528] ss:$16 sps:$4 sm:$0xff]   ;;  %v5834_v61 = vld [vmem:[#allocation8 + $0x30c] ss:$16 sps:$4 sm:$0xff]  }
 0x458   :  { %v5835_v22 = vld [vmem:[#allocation8 + $0x50c] ss:$16 sps:$4 sm:$0xff]  }
 0x459   :  { %4548 = vmatpush1.bf16.msra.mxu1 %v5780_v11  ;;  %4591 = vmatpush1.bf16.msra.mxu0 %v5781_v24  ;;  %v5836_v11 = vld [vmem:[#allocation8 + $0x308] ss:$16 sps:$4 sm:$0xff]  }
 0x45a   :  { %4549 = vmatprep.subr.bf16.mxu1 %v5782_v7  ;;  %4592 = vmatprep.subr.bf16.mxu0 %v5783_v49  ;;  %v5837_v24 = vld [vmem:[#allocation8 + $0x508] ss:$16 sps:$4 sm:$0xff]   ;;  %v5838_v7 = vld [vmem:[#allocation8 + $0x6ec] ss:$16 sps:$4 sm:$0xff]  }
 0x45b   :  { %v5839_v49 = vld [vmem:[#allocation8 + $0x6e8] ss:$16 sps:$4 sm:$0xff]  }
 0x45d   :  { %4550 = vmatpush1.bf16.msra.mxu1 %v5784_v29  ;;  %4593 = vmatpush1.bf16.msra.mxu0 %v5785_v6  ;;  %v5840_v29 = vld [vmem:[#allocation8 + $0x6cc] ss:$16 sps:$4 sm:$0xff]   ;;  %v5841_v6 = vld [vmem:[#allocation8 + $0x6c8] ss:$16 sps:$4 sm:$0xff]  }
 0x45e   :  { %4551 = vmatprep.subr.bf16.mxu1 %v5786_v38  ;;  %4594 = vmatprep.subr.bf16.mxu0 %v5787_v13  ;;  %v5842_v38 = vld [vmem:[#allocation8 + $0x6ac] ss:$16 sps:$4 sm:$0xff]   ;;  %v5843_v13 = vld [vmem:[#allocation8 + $0x6a8] ss:$16 sps:$4 sm:$0xff]  }
 0x461   :  { %4552 = vmatpush1.bf16.msra.mxu1 %v5788_v16  ;;  %4595 = vmatpush1.bf16.msra.mxu0 %v5789_v33  ;;  %v5844_v16 = vld [vmem:[#allocation8 + $0x68c] ss:$16 sps:$4 sm:$0xff]   ;;  %v5845_v33 = vld [vmem:[#allocation8 + $0x688] ss:$16 sps:$4 sm:$0xff]  }
 0x462   :  { %4553 = vmatprep.subr.bf16.mxu1 %v5790_v47  ;;  %4596 = vmatprep.subr.bf16.mxu0 %v5791_v17  ;;  %v5846_v47 = vld [vmem:[#allocation8 + $0x66c] ss:$16 sps:$4 sm:$0xff]   ;;  %v5849_v17 = vld [vmem:[#allocation8 + $0x648] ss:$16 sps:$4 sm:$0xff]  }
 0x465   :  { %4554 = vmatpush1.bf16.msra.mxu1 %v5792_v8  ;;  %4597 = vmatpush1.bf16.msra.mxu0 %v5793_v63  ;;  %v5851_v8 = vld [vmem:[#allocation8 + $0x628] ss:$16 sps:$4 sm:$0xff]   ;;  %v5852_v63 = vld [vmem:[#allocation8 + $0x60c] ss:$16 sps:$4 sm:$0xff]  }
 0x466   :  { %4555 = vmatprep.subr.bf16.mxu1 %v5794_v41  ;;  %4598 = vmatprep.subr.bf16.mxu0 %v5795_v4  ;;  %v5853_v41 = vld [vmem:[#allocation8 + $0x608] ss:$16 sps:$4 sm:$0xff]   ;;  %v5854_v4 = vld [vmem:[#allocation8 + $0x7ec] ss:$16 sps:$4 sm:$0xff]  }
 0x469   :  { %4556 = vmatpush1.bf16.msra.mxu1 %v5796_v21  ;;  %4599 = vmatpush1.bf16.msra.mxu0 %v5797_v19  ;;  %v5855_v21 = vld [vmem:[#allocation8 + $0x7e8] ss:$16 sps:$4 sm:$0xff]   ;;  %v5856_v19 = vld [vmem:[#allocation8 + $0x7cc] ss:$16 sps:$4 sm:$0xff]  }
 0x46a   :  { %4557 = vmatprep.subr.bf16.mxu1 %v5798_v23  ;;  %4600 = vmatprep.subr.bf16.mxu0 %v5799_v62  ;;  %v5857_v23 = vld [vmem:[#allocation8 + $0x7c8] ss:$16 sps:$4 sm:$0xff]   ;;  %v5858_v62 = vld [vmem:[#allocation8 + $0x7ac] ss:$16 sps:$4 sm:$0xff]  }
 0x46d   :  { %4558 = vmatpush1.bf16.msra.mxu1 %v5800_v1  ;;  %4601 = vmatpush1.bf16.msra.mxu0 %v5801_v15  ;;  %v5859_v1 = vld [vmem:[#allocation8 + $0x7a8] ss:$16 sps:$4 sm:$0xff]   ;;  %v5860_v15 = vld [vmem:[#allocation8 + $0x78c] ss:$16 sps:$4 sm:$0xff]  }
 0x46e   :  { %4559 = vmatprep.subr.bf16.mxu1 %v5802_v58  ;;  %4602 = vmatprep.subr.bf16.mxu0 %v5803_v45  ;;  %v5861_v58 = vld [vmem:[#allocation8 + $0x788] ss:$16 sps:$4 sm:$0xff]   ;;  %v5862_v45 = vld [vmem:[#allocation8 + $0x76c] ss:$16 sps:$4 sm:$0xff]  }
 0x471   :  { %4560 = vmatpush1.bf16.msra.mxu1 %v5804_v54  ;;  %4603 = vmatpush1.bf16.msra.mxu0 %v5805_v51  ;;  %v5863_v54 = vld [vmem:[#allocation8 + $0x768] ss:$16 sps:$4 sm:$0xff]   ;;  %v5864_v51 = vld [vmem:[#allocation8 + $0x74c] ss:$16 sps:$4 sm:$0xff]  }
 0x472   :  { %4561 = vmatprep.subr.bf16.mxu1 %v5806_v56  ;;  %4604 = vmatprep.subr.bf16.mxu0 %v5807_v57  ;;  %v5865_v56 = vld [vmem:[#allocation8 + $0x748] ss:$16 sps:$4 sm:$0xff]   ;;  %v5866_v57 = vld [vmem:[#allocation8 + $0x72c] ss:$16 sps:$4 sm:$0xff]  }
 0x475   :  { %4562 = vmatpush2.bf16.msra.mxu1 %v5808_v53  ;;  %4605 = vmatpush2.bf16.msra.mxu0 %v5809_v31  ;;  %v5867_v53 = vld [vmem:[#allocation8 + $0x728] ss:$16 sps:$4 sm:$0xff]   ;;  %v5868_v31 = vld [vmem:[#allocation8 + $0x70c] ss:$16 sps:$4 sm:$0xff]  }
 0x476   :  { %4563 = vmatprep.subr.bf16.mxu1 %v5810_v12  ;;  %4606 = vmatprep.subr.bf16.mxu0 %v5811_v27  ;;  %v5869_v12 = vld [vmem:[#allocation8 + $0x708] ss:$16 sps:$4 sm:$0xff]   ;;  %v4364_v27 = vpop.f32.mrf.mxu0 }
 0x479   :  { %4564 = vmatpush2.bf16.msra.mxu1 %v5812_v14  ;;  %4607 = vmatpush2.bf16.msra.mxu0 %v5813_v3  ;;  %v4366_v14 = vpop.f32.mrf.mxu0 }
 0x47a   :  { %4565 = vmatprep.subr.bf16.mxu1 %v5814_v35  ;;  %4608 = vmatprep.subr.bf16.mxu0 %v5815_v39 }
 0x47b   :  { %v4368_v3 = vpop.f32.mrf.mxu0 }
 0x47d   :  { %4566 = vmatpush2.bf16.msra.mxu1 %v5816_v43  ;;  %4609 = vmatpush2.bf16.msra.mxu0 %v5817_v5  ;;  %v4370_v39 = vpop.f32.mrf.mxu0 }
 0x47e   :  { %4567 = vmatprep.subr.bf16.mxu1 %v5818_v10  ;;  %4610 = vmatprep.subr.bf16.mxu0 %v5819_v18 }
 0x481   :  { %4568 = vmatpush2.bf16.msra.mxu1 %v5820_v20  ;;  %4611 = vmatpush2.bf16.msra.mxu0 %v5821_v26  ;;  %v4365_v20 = vadd.f32 %v4364_v27, %v7038_v60  ;;  %v4367_v26 = vadd.f32 %v4366_v14, %v7044_v25 }
 0x482   :  { %4569 = vmatprep.subr.bf16.mxu1 %v5822_v28  ;;  %4612 = vmatprep.subr.bf16.mxu0 %v5823_v34 }
 0x485   :  { %4570 = vmatpush2.bf16.msra.mxu1 %v5824_v36  ;;  %4613 = vmatpush2.bf16.msra.mxu0 %v5825_v42  ;;  %v4369_v42 = vadd.f32 %v4368_v3, %v7038_v60 }
 0x486   :  { %4571 = vmatprep.subr.bf16.mxu1 %v5826_v44  ;;  %4614 = vmatprep.subr.bf16.mxu0 %v5827_v50 }
 0x489   :  { %4572 = vmatpush2.bf16.msra.mxu1 %v5828_v52  ;;  %4615 = vmatpush2.bf16.msra.mxu0 %v5829_v0  ;;  %v4371_v52 = vadd.f32 %v4370_v39, %v7044_v25 }
 0x48a   :  { %4573 = vmatprep.subr.bf16.mxu1 %v5830_v30  ;;  %4616 = vmatprep.subr.bf16.mxu0 %v5831_v9 }
 0x48d   :  { %4574 = vmatpush2.bf16.msra.mxu1 %v5832_v48  ;;  %4617 = vmatpush2.bf16.msra.mxu0 %v5833_v59 }
 0x48e   :  { %4575 = vmatprep.subr.bf16.mxu1 %v5834_v61  ;;  %4618 = vmatprep.subr.bf16.mxu0 %v5835_v22 }
 0x491   :  { %4576 = vmatpush2.bf16.msra.mxu1 %v5836_v11  ;;  %4619 = vmatpush2.bf16.msra.mxu0 %v5837_v24 }
 0x492   :  { %4631 = vmatprep.subr.bf16.mxu1 %v5838_v7 }
 0x494   :  { %4578 = vmatmul.mubr.bf16.vlgmr.msra.gmra.mxu1 %v7260_v32  ;;  %4621 = vmatmul.mubr.bf16.vlgmr.msra.gmra.mxu0 %v7270_v55  ;;  %v5847_v32 = vld [vmem:[#allocation8 + $0x668] ss:$16 sps:$4 sm:$0xff]   ;;  %v5848_v55 = vld [vmem:[#allocation8 + $0x64c] ss:$16 sps:$4 sm:$0xff]   ;;  %v4407_v35 = vpop.f32.mrf.mxu1 }
 0x495   :  { %4632 = vmatpush1.bf16.msra.mxu1 %v5839_v49  ;;  %4663 = vmatprep.mubr.bf16.mxu1 %v7279_v2  ;;  %v5850_v2 = vld [vmem:[#allocation8 + $0x62c] ss:$16 sps:$4 sm:$0xff]   ;;  %v4408_v28 = vadd.f32 %v4407_v35, %v4365_v20 }
 0x496   :  { %4633 = vmatprep.subr.bf16.mxu1 %v5840_v29  ;;  %v4409_v43 = vpop.f32.mrf.mxu1 }
 0x497   :  { %v4410_v44 = vadd.f32 %v4409_v43, %v4367_v26 }
 0x498   :  { %v4411_v10 = vpop.f32.mrf.mxu1 }
 0x499   :  { %4634 = vmatpush1.bf16.msra.mxu1 %v5841_v6  ;;  %v4412_v0 = vadd.f32 %v4411_v10, %v4369_v42 }
 0x49a   :  { %4635 = vmatprep.subr.bf16.mxu1 %v5842_v38  ;;  %v4413_v34 = vpop.f32.mrf.mxu1 }
 0x49b   :  { %v4414_v61 = vadd.f32 %v4413_v34, %v4371_v52 }
 0x49d   :  { %4636 = vmatpush1.bf16.msra.mxu1 %v5843_v13 }
 0x49e   :  { %4637 = vmatprep.subr.bf16.mxu1 %v5844_v16 }
 0x4a1   :  { %4638 = vmatpush1.bf16.msra.mxu1 %v5845_v33 }
 0x4a2   :  { %4639 = vmatprep.subr.bf16.mxu1 %v5846_v47 }
 0x4a5   :  { %4640 = vmatpush1.bf16.msra.mxu1 %v5847_v32 }
 0x4a6   :  { %4641 = vmatprep.subr.bf16.mxu1 %v5848_v55 }
 0x4a9   :  { %4642 = vmatpush1.bf16.msra.mxu1 %v5849_v17 }
 0x4aa   :  { %4643 = vmatprep.subr.bf16.mxu1 %v5850_v2 }
 0x4ad   :  { %4644 = vmatpush1.bf16.msra.mxu1 %v5851_v8 }
 0x4ae   :  { %4645 = vmatprep.subr.bf16.mxu1 %v5852_v63 }
 0x4b1   :  { %4646 = vmatpush1.bf16.msra.mxu1 %v5853_v41 }
 0x4b2   :  { %4647 = vmatprep.subr.bf16.mxu1 %v5854_v4 }
 0x4b5   :  { %4648 = vmatpush2.bf16.msra.mxu1 %v5855_v21 }
 0x4b6   :  { %4649 = vmatprep.subr.bf16.mxu1 %v5856_v19 }
 0x4b9   :  { %4650 = vmatpush2.bf16.msra.mxu1 %v5857_v23 }
 0x4ba   :  { %4651 = vmatprep.subr.bf16.mxu1 %v5858_v62 }
 0x4bd   :  { %4652 = vmatpush2.bf16.msra.mxu1 %v5859_v1 }
 0x4be   :  { %4653 = vmatprep.subr.bf16.mxu1 %v5860_v15 }
 0x4c1   :  { %4654 = vmatpush2.bf16.msra.mxu1 %v5861_v58 }
 0x4c2   :  { %4655 = vmatprep.subr.bf16.mxu1 %v5862_v45 }
 0x4c5   :  { %4656 = vmatpush2.bf16.msra.mxu1 %v5863_v54 }
 0x4c6   :  { %4657 = vmatprep.subr.bf16.mxu1 %v5864_v51 }
 0x4c9   :  { %4658 = vmatpush2.bf16.msra.mxu1 %v5865_v56 }
 0x4ca   :  { %4659 = vmatprep.subr.bf16.mxu1 %v5866_v57 }
 0x4cd   :  { %4660 = vmatpush2.bf16.msra.mxu1 %v5867_v53 }
 0x4ce   :  { %4661 = vmatprep.subr.bf16.mxu1 %v5868_v31 }
 0x4d1   :  { %4662 = vmatpush2.bf16.msra.mxu1 %v5869_v12 }
 0x4d4   :  { %4664 = vmatmul.mubr.bf16.vlgmr.msra.gmra.mxu1 %v7281_v46  ;;  %v4450_v5 = vpop.f32.mrf.mxu0 }
 0x4d5   :  { %v4451_v46 = vadd.f32 %v4450_v5, %v4408_v28 }
 0x4d6   :  { %v4452_v18 = vpop.f32.mrf.mxu0 }
 0x4d7   :  { %v4453_v30 = vadd.f32 %v4452_v18, %v4410_v44 }
 0x4d8   :  { %v4454_v36 = vpop.f32.mrf.mxu0 }
 0x4d9   :  { %v4455_v22 = vadd.f32 %v4454_v36, %v4412_v0 }
 0x4da   :  { %v4456_v48 = vpop.f32.mrf.mxu0 }
 0x4db   :  { %v4457_v49 = vadd.f32 %v4456_v48, %v4414_v61 }
 0x514   :  { %v4493_v50 = vpop.f32.mrf.mxu1  ;;  %v4536_v16 = vpop.f32.mrf.mxu0 }
 0x515   :  { %v4494_v9 = vadd.f32 %v4493_v50, %v4451_v46  ;;  %v4537_v8 = vadd.f32 %v4536_v16, %v7187_v40 }
 0x516   :  { %v4495_v59 = vpop.f32.mrf.mxu1  ;;  %v4538_v33 = vpop.f32.mrf.mxu0 }
 0x517   :  { %v4674_v11 = vmax.f32 %v4494_v9, 0.0  ;;  %v4496_v24 = vadd.f32 %v4495_v59, %v4453_v30  ;;  %v4539_v41 = vadd.f32 %v4538_v33, %v7195_v37 }
 0x518   :  { %v4497_v7 = vpop.f32.mrf.mxu1  ;;  %v4540_v47 = vpop.f32.mrf.mxu0 }
 0x519   :  { %4682 = vst [vmem:[#allocation10 + $0x40] sm:$0xff] %v4674_v11  ;;  %v4675_v29 = vmax.f32 %v4496_v24, 0.0  ;;  %v4498_v6 = vadd.f32 %v4497_v7, %v4455_v22  ;;  %v4541_v19 = vadd.f32 %v4540_v47, %v7187_v40 }
 0x51a   :  { %v4499_v60 = vpop.f32.mrf.mxu1  ;;  %v4542_v55 = vpop.f32.mrf.mxu0 }
 0x51b   :  { %4683 = vst [vmem:[#allocation10 + $0x48] sm:$0xff] %v4675_v29  ;;  %v4678_v38 = vmax.f32 %v4498_v6, 0.0  ;;  %v4500_v13 = vadd.f32 %v4499_v60, %v4457_v49  ;;  %v4543_v1 = vadd.f32 %v4542_v55, %v7195_v37 }
 0x51d   :  { %4686 = vst [vmem:[#allocation10 + $0x60] sm:$0xff] %v4678_v38  ;;  %v4679_v25 = vmax.f32 %v4500_v13, 0.0 }
 0x51f   :  { %4687 = vst [vmem:[#allocation10 + $0x68] sm:$0xff] %v4679_v25 }
 0x554   :  { %v4579_v32 = vpop.f32.mrf.mxu1  ;;  %v4622_v2 = vpop.f32.mrf.mxu0 }
 0x555   :  { %v4580_v4 = vadd.f32 %v4579_v32, %v4537_v8 }
 0x556   :  { %v4581_v17 = vpop.f32.mrf.mxu1  ;;  %v4624_v21 = vpop.f32.mrf.mxu0 }
 0x557   :  { %v4582_v23 = vadd.f32 %v4581_v17, %v4539_v41  ;;  %v4623_v15 = vadd.f32 %v4622_v2, %v4580_v4 }
 0x558   :  { %v4583_v63 = vpop.f32.mrf.mxu1  ;;  %v4626_v45 = vpop.f32.mrf.mxu0 }
 0x559   :  { %v4584_v58 = vadd.f32 %v4583_v63, %v4541_v19  ;;  %v4625_v51 = vadd.f32 %v4624_v21, %v4582_v23 }
 0x55a   :  { %v4585_v62 = vpop.f32.mrf.mxu1  ;;  %v4628_v14 = vpop.f32.mrf.mxu0 }
 0x55b   :  { %v4586_v56 = vadd.f32 %v4585_v62, %v4543_v1  ;;  %v4627_v31 = vadd.f32 %v4626_v45, %v4584_v58 }
 0x55d   :  { %v4629_v35 = vadd.f32 %v4628_v14, %v4586_v56 }
 0x594   :  { %v4665_v54 = vpop.f32.mrf.mxu1 }
 0x595   :  { %v4666_v57 = vadd.f32 %v4665_v54, %v4623_v15 }
 0x596   :  { %v4667_v53 = vpop.f32.mrf.mxu1 }
 0x597   :  { %v4676_v12 = vmax.f32 %v4666_v57, 0.0  ;;  %v4668_v27 = vadd.f32 %v4667_v53, %v4625_v51 }
 0x598   :  { %v4669_v3 = vpop.f32.mrf.mxu1 }
 0x599   :  { %4684 = vst [vmem:[#allocation10 + $0x50] sm:$0xff] %v4676_v12  ;;  %v4677_v40 = vmax.f32 %v4668_v27, 0.0  ;;  %v4670_v39 = vadd.f32 %v4669_v3, %v4627_v31 }
 0x59a   :  { %v4671_v43 = vpop.f32.mrf.mxu1 }
 0x59b   :  { %4685 = vst [vmem:[#allocation10 + $0x58] sm:$0xff] %v4677_v40  ;;  %v4680_v37 = vmax.f32 %v4670_v39, 0.0  ;;  %v4672_v5 = vadd.f32 %v4671_v43, %v4629_v35 }
 0x59d   :  { %4688 = vst [vmem:[#allocation10 + $0x70] sm:$0xff] %v4680_v37  ;;  %v4681_v10 = vmax.f32 %v4672_v5, 0.0 }
 0x59f   :  { %4689 = vst [vmem:[#allocation10 + $0x78] sm:$0xff] %v4681_v10 }
 0x5a0   :  { %5961 = shalt.err (!%p5958_p10)
}
 0x5a1   :  { %4701 = dma.vmem_to_hbm [thread:$0]  %s4696_s15, 2048, %s7311_s5, [#allocation4], %s5980_s23, %s5980_s23, %s5981_s24  }
 0x5a2   :  { %5976 = dma.done.wait [#allocation4], 2048  }
 0x5a3   :  { %5977 = vsyncadd [#allocation4], 4294965248 }
 0x5a4   :  { %4705 = vsyncpa [#allocation3], 1 }
 0x5a5   :  { %4706 = vsyncpa [#allocation6], 1 }
 0x5a6   :  { %4707 = vsyncpa [#allocation9], 1 }
 0x5a7   :  { %4708 = vsyncpa [#allocation4], 1 }

</bundles_post_ra>
